<compile_context>
chip_gen: v5e
topology: v5e:2x2
jax: 0.10.0
libtpu: 0.0.40
codegen_flags: <defaults>
</compile_context>

<pallas_src>
import math

import jax
import jax.numpy as jnp
from jax.experimental import pallas as pl
from jax.experimental.pallas import tpu as pltpu

LEAK = 0.2
BN_EPS = 1e-5
H_RET = 512            # returns_network hidden width
H_COND = 128           # condition_network hidden width
H_CAT = H_RET + H_COND # 640 (multiple of 128)
H_PAD = 1024           # combined hidden width 1000 padded to 1024 (lane-dense)


def _round_up(x, m):
    return ((x + m - 1) // m) * m


def _leaky_relu(x):
    return jnp.where(x > 0, x, LEAK * x)


# ---------------------------------------------------------------------------
# Kernel
# ---------------------------------------------------------------------------
def discriminator_kernel(
    x_ref,                 # (tb, k_fused) bf16: [returns_flat | condition | 0-pad]
    w12_ref, b12_ref,      # block-diag Linear(input_dim,512) (+) Linear(cond,128)
    w3_ref, b3_ref,        # Linear(640,1000)+BN folded, cols padded to 1024
    w4_ref, b4_ref,        # Linear(1000,1000)+BN folded, padded to 1024x1024
    w5_ref, b5_ref,        # Linear(1000,1) as (1,1024) row vector + (1,1) bias
    out_ref,               # (1, tb) f32 row (lane-dense)
):
    # returns_network / condition_network fused: one MXU pass, LeakyReLU
    # (Dropout(0.3) is identity in eval mode).
    h = _leaky_relu(
        jnp.dot(x_ref[...], w12_ref[...], preferred_element_type=jnp.float32)
        + b12_ref[...]
    )

    # combined block 1: Linear(640,1000) + eval-BN (folded) -> LeakyReLU -> Dropout(0.6)
    z = _leaky_relu(
        jnp.dot(h.astype(jnp.bfloat16), w3_ref[...],
                preferred_element_type=jnp.float32)
        + b3_ref[...]
    )

    # combined block 2: Linear(1000,1000) + eval-BN (folded) -> LeakyReLU -> Dropout(0.6)
    z = _leaky_relu(
        jnp.dot(z.astype(jnp.bfloat16), w4_ref[...],
                preferred_element_type=jnp.float32)
        + b4_ref[...]
    )

    # final Linear(1000, 1): VPU multiply + lane reduction (no N=1 matmul),
    # stored as a lane-dense (1, tb) row.
    row = jnp.sum(z * w5_ref[...], axis=-1)            # (tb,)
    out_ref[...] = row[None, :] + b5_ref[...]           # (1, tb)


# ---------------------------------------------------------------------------
# Parameter construction / packing
# ---------------------------------------------------------------------------
def init_params(key, input_dim, cond_dim):
    """Deterministic PyTorch-style uniform(-1/sqrt(fan_in), 1/sqrt(fan_in)) init."""
    def linear(k, fan_in, fan_out):
        kw, kb = jax.random.split(k)
        bound = 1.0 / math.sqrt(fan_in)
        w = jax.random.uniform(kw, (fan_in, fan_out), jnp.float32, -bound, bound)
        b = jax.random.uniform(kb, (1, fan_out), jnp.float32, -bound, bound)
        return w, b

    k1, k2, k3, k4, k5 = jax.random.split(key, 5)
    w1, b1 = linear(k1, input_dim, H_RET)
    w2, b2 = linear(k2, cond_dim, H_COND)
    w3, b3 = linear(k3, H_CAT, 1000)
    w4, b4 = linear(k4, 1000, 1000)
    w5, b5 = linear(k5, 1000, 1)

    # BatchNorm1d default params / running stats (eval mode).
    def bn(n):
        return (jnp.ones((1, n), jnp.float32),    # gamma
                jnp.zeros((1, n), jnp.float32),   # beta
                jnp.zeros((1, n), jnp.float32),   # running_mean
                jnp.ones((1, n), jnp.float32))    # running_var

    g1, be1, m1, v1 = bn(1000)
    g2, be2, m2, v2 = bn(1000)

    return (w1, b1, w2, b2,
            w3, b3, g1, be1, m1, v1,
            w4, b4, g2, be2, m2, v2,
            w5, b5)


def pack_params(params):
    """Fold eval-mode BN into the preceding Linear, fuse W1/W2 into one
    block-diagonal first-layer weight, pad 1000->1024, cast weights to bf16
    (biases stay f32)."""
    (w1, b1, w2, b2,
     w3, b3, g1, be1, m1, v1,
     w4, b4, g2, be2, m2, v2,
     w5, b5) = params

    input_dim = w1.shape[0]
    cond_dim = w2.shape[0]

    # BN fold: ((x@W + b) - m) * g / sqrt(v+eps) + beta == x@(W*s) + ((b-m)*s + beta)
    s1 = g1 * jax.lax.rsqrt(v1 + BN_EPS)
    w3f = w3 * s1
    b3f = (b3 - m1) * s1 + be1
    s2 = g2 * jax.lax.rsqrt(v2 + BN_EPS)
    w4f = w4 * s2
    b4f = (b4 - m2) * s2 + be2

    # Fused block-diagonal first layer: x_fused @ [[W1,0],[0,W2]] = [x@W1 | c@W2].
    k_fused = _round_up(input_dim + cond_dim, 8)
    w12 = jnp.zeros((k_fused, H_CAT), jnp.float32)
    w12 = w12.at[:input_dim, :H_RET].set(w1)
    w12 = w12.at[input_dim:input_dim + cond_dim, H_RET:].set(w2)
    b12 = jnp.concatenate([b1, b2], axis=1)

    def pad_cols(a, n):
        return jnp.pad(a, ((0, 0), (0, n - a.shape[1])))

    def pad_rows(a, n):
        return jnp.pad(a, ((0, n - a.shape[0]), (0, 0)))

    w3p = pad_cols(w3f, H_PAD)
    b3p = pad_cols(b3f, H_PAD)
    w4p = pad_cols(pad_rows(w4f, H_PAD), H_PAD)
    b4p = pad_cols(b4f, H_PAD)
    w5row = pad_rows(w5, H_PAD).T                 # (1, 1024) row vector, zeros in pad

    bf16, f32 = jnp.bfloat16, jnp.float32
    return (w12.astype(bf16), b12.astype(f32),
            w3p.astype(bf16), b3p.astype(f32),
            w4p.astype(bf16), b4p.astype(f32),
            w5row.astype(f32), b5.astype(f32))


# ---------------------------------------------------------------------------
# Wrapper
# ---------------------------------------------------------------------------
def _vmem_limit_bytes():
    # v7x has 64 MiB physical VMEM per TensorCore; v5e/v6e have 128 MiB.
    # Use 3/4 of physical, capped at 96 MiB (-> 48 MiB on v7x, 96 MiB on v5e/v6e).
    phys = 64 * 1024 * 1024
    try:
        phys = int(pltpu.get_tpu_info().vmem_capacity_bytes)
    except Exception:
        pass
    return max(32 * 1024 * 1024, min(96 * 1024 * 1024, (phys * 3) // 4))


def _pick_batch_tile(B):
    """Batch tile: large enough to amortize per-grid-step pipeline overhead and
    MXU weight (re)loads, small enough that big batches get an even number
    (>=2) of grid steps so both v7x TensorCores are used ("parallel" axis)."""
    b8 = _round_up(max(B, 1), 8)
    if b8 <= 256:
        return b8                       # tiny batch: one tile
    n = max(2, pl.cdiv(b8, 512))
    if n % 2:
        n += 1                          # even grid for 2-TC (v7x) chips
    return min(512, _round_up(pl.cdiv(b8, n), 8))


def _resident(arr):
    # Full-array block with a constant index_map: DMA'd once, VMEM-resident
    # across all batch tiles.  All packed params are 2-D.
    return pl.BlockSpec(arr.shape, lambda i: (0, 0))


def discriminator_forward(returns, condition, packed_params, *, tb=None):
    """returns: (B, *input_shape), condition: (B, cond_dim) -> validity (B, 1)."""
    (w12, b12, w3, b3, w4, b4, w5, b5) = packed_params
    B = returns.shape[0]
    k_fused = w12.shape[0]

    # returns.view(B, -1), concat with condition, pad feature dim, cast to bf16.
    x = jnp.concatenate([returns.reshape(B, -1), condition], axis=1)
    if x.shape[1] < k_fused:
        x = jnp.pad(x, ((0, 0), (0, k_fused - x.shape[1])))
    x = x.astype(jnp.bfloat16)

    tb = _pick_batch_tile(B) if tb is None else tb
    n_tiles = pl.cdiv(B, tb)
    b_pad = n_tiles * tb
    if b_pad != B:
        x = jnp.pad(x, ((0, b_pad - B), (0, 0)))

    in_specs = [pl.BlockSpec((tb, k_fused), lambda i: (i, 0))]
    in_specs += [_resident(a) for a in packed_params]

    out = pl.pallas_call(
        discriminator_kernel,
        out_shape=jax.ShapeDtypeStruct((n_tiles, 1, tb), jnp.float32),
        grid=(n_tiles,),
        in_specs=in_specs,
        # Lane-dense row output: one (1, tb) row per tile (no masked column stores).
        out_specs=pl.BlockSpec((None, 1, tb), lambda i: (i, 0, 0)),
        compiler_params=pltpu.CompilerParams(
            dimension_semantics=("parallel",),
            vmem_limit_bytes=_vmem_limit_bytes(),
        ),
    )(x, *packed_params)

    return out.reshape(-1)[:B].reshape(B, 1)


# ---------------------------------------------------------------------------
# Pure-JAX reference (eval-mode semantics) for a sanity check.
# ---------------------------------------------------------------------------
def reference_forward(returns, condition, params):
    (w1, b1, w2, b2,
     w3, b3, g1, be1, m1, v1,
     w4, b4, g2, be2, m2, v2,
     w5, b5) = params
    B = returns.shape[0]
    hr = _leaky_relu(returns.reshape(B, -1) @ w1 + b1)
    hc = _leaky_relu(condition @ w2 + b2)
    h = jnp.concatenate([hr, hc], axis=1)
    z = h @ w3 + b3
    z = _leaky_relu((z - m1) * g1 * jax.lax.rsqrt(v1 + BN_EPS) + be1)
    z = z @ w4 + b4
    z = _leaky_relu((z - m2) * g2 * jax.lax.rsqrt(v2 + BN_EPS) + be2)
    return z @ w5 + b5


if __name__ == "__main__":
    key = jax.random.PRNGKey(0)
    k_ret, k_cond, k_params = jax.random.split(key, 3)

    # Small shapes consistent with the module: input_shape=(4, 16), cond_dim=8
    batch = 2
    input_shape = (4, 16)     # -> input_dim = 64
    cond_dim = 8
    input_dim = math.prod(input_shape)

    returns = jax.random.normal(k_ret, (batch,) + input_shape, jnp.float32)
    condition = jax.random.normal(k_cond, (batch, cond_dim), jnp.float32)

    raw_params = init_params(k_params, input_dim, cond_dim)
    packed = pack_params(raw_params)

    validity = discriminator_forward(returns, condition, packed)
    jax.block_until_ready(validity)
    assert validity.shape == (batch, 1)

    ref = reference_forward(returns, condition, raw_params)
    assert jnp.allclose(validity, ref, rtol=5e-2, atol=5e-2), (validity, ref)

    print("KERNEL_OK")
</pallas_src>

<mosaic_0001>
module attributes {stable_mosaic.version = 11 : i64} {
  func.func @discriminator_kernel(%arg0: i32, %arg1: memref<8x72xbf16, #tpu.memory_space<vmem>>, %arg2: memref<72x640xbf16, #tpu.memory_space<vmem>>, %arg3: memref<1x640xf32, #tpu.memory_space<vmem>>, %arg4: memref<640x1024xbf16, #tpu.memory_space<vmem>>, %arg5: memref<1x1024xf32, #tpu.memory_space<vmem>>, %arg6: memref<1024x1024xbf16, #tpu.memory_space<vmem>>, %arg7: memref<1x1024xf32, #tpu.memory_space<vmem>>, %arg8: memref<1x1024xf32, #tpu.memory_space<vmem>>, %arg9: memref<1x1xf32, #tpu.memory_space<vmem>>, %arg10: memref<1x1x8xf32, #tpu.memory_space<vmem>>) attributes {dimension_semantics = [#tpu.dimension_semantics<parallel>], iteration_bounds = array<i64: 1>, scalar_prefetch = 0 : i64, scratch_operands = 0 : i64, tpu.core_type = #tpu.core_type<tc>, window_params = [{transform_indices = @transform_0, window_bounds = array<i64: 8, 72>}, {pipeline_mode = #tpu.pipeline_mode<synchronous>, transform_indices = @transform_1, window_bounds = array<i64: 72, 640>}, {pipeline_mode = #tpu.pipeline_mode<synchronous>, transform_indices = @transform_2, window_bounds = array<i64: 1, 640>}, {pipeline_mode = #tpu.pipeline_mode<synchronous>, transform_indices = @transform_3, window_bounds = array<i64: 640, 1024>}, {pipeline_mode = #tpu.pipeline_mode<synchronous>, transform_indices = @transform_4, window_bounds = array<i64: 1, 1024>}, {pipeline_mode = #tpu.pipeline_mode<synchronous>, transform_indices = @transform_5, window_bounds = array<i64: 1024, 1024>}, {pipeline_mode = #tpu.pipeline_mode<synchronous>, transform_indices = @transform_6, window_bounds = array<i64: 1, 1024>}, {pipeline_mode = #tpu.pipeline_mode<synchronous>, transform_indices = @transform_7, window_bounds = array<i64: 1, 1024>}, {pipeline_mode = #tpu.pipeline_mode<synchronous>, transform_indices = @transform_8, window_bounds = array<i64: 1, 1>}, {transform_indices = @transform_9, window_bounds = array<i64: 1, 1, 8>}]} {
    %c0 = arith.constant 0 : index
    %c0_0 = arith.constant 0 : index
    %0 = vector.load %arg1[%c0, %c0_0] : memref<8x72xbf16, #tpu.memory_space<vmem>>, vector<8x72xbf16>
    %c0_1 = arith.constant 0 : index
    %c0_2 = arith.constant 0 : index
    %1 = vector.load %arg2[%c0_1, %c0_2] : memref<72x640xbf16, #tpu.memory_space<vmem>>, vector<72x640xbf16>
    %cst = arith.constant dense<0.000000e+00> : vector<8x640xf32>
    %2 = tpu.matmul %0, %1, %cst {dimension_numbers = #tpu.dot_dimension_numbers<[1], [0], [0], [1], [0, 0, 1, 1], [], []>} : vector<8x72xbf16>, vector<72x640xbf16>, vector<8x640xf32> -> vector<8x640xf32>
    %c0_3 = arith.constant 0 : index
    %c0_4 = arith.constant 0 : index
    %3 = vector.load %arg3[%c0_3, %c0_4] : memref<1x640xf32, #tpu.memory_space<vmem>>, vector<1x640xf32>
    %4 = vector.broadcast %3 : vector<1x640xf32> to vector<8x640xf32>
    %5 = arith.addf %2, %4 : vector<8x640xf32>
    %cst_5 = arith.constant 0.000000e+00 : f32
    %6 = vector.broadcast %cst_5 : f32 to vector<8x640xf32>
    %7 = arith.cmpf ogt, %5, %6 : vector<8x640xf32>
    %cst_6 = arith.constant 2.000000e-01 : f32
    %8 = vector.broadcast %cst_6 : f32 to vector<8x640xf32>
    %9 = arith.mulf %8, %5 : vector<8x640xf32>
    %10 = arith.select %7, %5, %9 : vector<8x640xi1>, vector<8x640xf32>
    %11 = arith.truncf %10 : vector<8x640xf32> to vector<8x640xbf16>
    %c0_7 = arith.constant 0 : index
    %c0_8 = arith.constant 0 : index
    %12 = vector.load %arg4[%c0_7, %c0_8] : memref<640x1024xbf16, #tpu.memory_space<vmem>>, vector<640x1024xbf16>
    %cst_9 = arith.constant dense<0.000000e+00> : vector<8x1024xf32>
    %13 = tpu.matmul %11, %12, %cst_9 {dimension_numbers = #tpu.dot_dimension_numbers<[1], [0], [0], [1], [0, 0, 1, 1], [], []>} : vector<8x640xbf16>, vector<640x1024xbf16>, vector<8x1024xf32> -> vector<8x1024xf32>
    %c0_10 = arith.constant 0 : index
    %c0_11 = arith.constant 0 : index
    %14 = vector.load %arg5[%c0_10, %c0_11] : memref<1x1024xf32, #tpu.memory_space<vmem>>, vector<1x1024xf32>
    %15 = vector.broadcast %14 : vector<1x1024xf32> to vector<8x1024xf32>
    %16 = arith.addf %13, %15 : vector<8x1024xf32>
    %cst_12 = arith.constant 0.000000e+00 : f32
    %17 = vector.broadcast %cst_12 : f32 to vector<8x1024xf32>
    %18 = arith.cmpf ogt, %16, %17 : vector<8x1024xf32>
    %cst_13 = arith.constant 2.000000e-01 : f32
    %19 = vector.broadcast %cst_13 : f32 to vector<8x1024xf32>
    %20 = arith.mulf %19, %16 : vector<8x1024xf32>
    %21 = arith.select %18, %16, %20 : vector<8x1024xi1>, vector<8x1024xf32>
    %22 = arith.truncf %21 : vector<8x1024xf32> to vector<8x1024xbf16>
    %c0_14 = arith.constant 0 : index
    %c0_15 = arith.constant 0 : index
    %23 = vector.load %arg6[%c0_14, %c0_15] : memref<1024x1024xbf16, #tpu.memory_space<vmem>>, vector<1024x1024xbf16>
    %cst_16 = arith.constant dense<0.000000e+00> : vector<8x1024xf32>
    %24 = tpu.matmul %22, %23, %cst_16 {dimension_numbers = #tpu.dot_dimension_numbers<[1], [0], [0], [1], [0, 0, 1, 1], [], []>} : vector<8x1024xbf16>, vector<1024x1024xbf16>, vector<8x1024xf32> -> vector<8x1024xf32>
    %c0_17 = arith.constant 0 : index
    %c0_18 = arith.constant 0 : index
    %25 = vector.load %arg7[%c0_17, %c0_18] : memref<1x1024xf32, #tpu.memory_space<vmem>>, vector<1x1024xf32>
    %26 = vector.broadcast %25 : vector<1x1024xf32> to vector<8x1024xf32>
    %27 = arith.addf %24, %26 : vector<8x1024xf32>
    %cst_19 = arith.constant 0.000000e+00 : f32
    %28 = vector.broadcast %cst_19 : f32 to vector<8x1024xf32>
    %29 = arith.cmpf ogt, %27, %28 : vector<8x1024xf32>
    %cst_20 = arith.constant 2.000000e-01 : f32
    %30 = vector.broadcast %cst_20 : f32 to vector<8x1024xf32>
    %31 = arith.mulf %30, %27 : vector<8x1024xf32>
    %32 = arith.select %29, %27, %31 : vector<8x1024xi1>, vector<8x1024xf32>
    %c0_21 = arith.constant 0 : index
    %c0_22 = arith.constant 0 : index
    %33 = vector.load %arg8[%c0_21, %c0_22] : memref<1x1024xf32, #tpu.memory_space<vmem>>, vector<1x1024xf32>
    %34 = vector.broadcast %33 : vector<1x1024xf32> to vector<8x1024xf32>
    %35 = arith.mulf %32, %34 : vector<8x1024xf32>
    %cst_23 = arith.constant dense<0.000000e+00> : vector<8xf32>
    %36 = vector.multi_reduction <add>, %35, %cst_23 [1] : vector<8x1024xf32> to vector<8xf32>
    %37 = vector.shape_cast %36 : vector<8xf32> to vector<1x8xf32>
    %c0_24 = arith.constant 0 : index
    %c0_25 = arith.constant 0 : index
    %38 = vector.load %arg9[%c0_24, %c0_25] : memref<1x1xf32, #tpu.memory_space<vmem>>, vector<1x1xf32>
    %39 = vector.broadcast %38 : vector<1x1xf32> to vector<1x8xf32>
    %40 = arith.addf %37, %39 : vector<1x8xf32>
    %c0_26 = arith.constant 0 : index
    %c0_27 = arith.constant 0 : index
    %c0_28 = arith.constant 0 : index
    %41 = vector.load %arg10[%c0_26, %c0_27, %c0_28] : memref<1x1x8xf32, #tpu.memory_space<vmem>>, vector<1x1x8xf32>
    %42 = vector.shape_cast %41 : vector<1x1x8xf32> to vector<1x8xf32>
    %43 = vector.shape_cast %40 : vector<1x8xf32> to vector<1x1x8xf32>
    tpu.vector_store %arg10[%c0_26, %c0_27, %c0_28], %43 {strides = array<i32>} : memref<1x1x8xf32, #tpu.memory_space<vmem>>, vector<1x1x8xf32>,
    return
  }
  func.func @transform_0(%arg0: i32) -> (i32, i32) {
    %c0_i32 = arith.constant 0 : i32
    %c0_i32_0 = arith.constant 0 : i32
    return %arg0, %c0_i32 : i32, i32
  }
  func.func @transform_1(%arg0: i32) -> (i32, i32) {
    %c0_i32 = arith.constant 0 : i32
    %c0_i32_0 = arith.constant 0 : i32
    %c0_i32_1 = arith.constant 0 : i32
    return %c0_i32, %c0_i32_0 : i32, i32
  }
  func.func @transform_2(%arg0: i32) -> (i32, i32) {
    %c0_i32 = arith.constant 0 : i32
    %c0_i32_0 = arith.constant 0 : i32
    %c0_i32_1 = arith.constant 0 : i32
    return %c0_i32, %c0_i32_0 : i32, i32
  }
  func.func @transform_3(%arg0: i32) -> (i32, i32) {
    %c0_i32 = arith.constant 0 : i32
    %c0_i32_0 = arith.constant 0 : i32
    %c0_i32_1 = arith.constant 0 : i32
    return %c0_i32, %c0_i32_0 : i32, i32
  }
  func.func @transform_4(%arg0: i32) -> (i32, i32) {
    %c0_i32 = arith.constant 0 : i32
    %c0_i32_0 = arith.constant 0 : i32
    %c0_i32_1 = arith.constant 0 : i32
    return %c0_i32, %c0_i32_0 : i32, i32
  }
  func.func @transform_5(%arg0: i32) -> (i32, i32) {
    %c0_i32 = arith.constant 0 : i32
    %c0_i32_0 = arith.constant 0 : i32
    %c0_i32_1 = arith.constant 0 : i32
    return %c0_i32, %c0_i32_0 : i32, i32
  }
  func.func @transform_6(%arg0: i32) -> (i32, i32) {
    %c0_i32 = arith.constant 0 : i32
    %c0_i32_0 = arith.constant 0 : i32
    %c0_i32_1 = arith.constant 0 : i32
    return %c0_i32, %c0_i32_0 : i32, i32
  }
  func.func @transform_7(%arg0: i32) -> (i32, i32) {
    %c0_i32 = arith.constant 0 : i32
    %c0_i32_0 = arith.constant 0 : i32
    %c0_i32_1 = arith.constant 0 : i32
    return %c0_i32, %c0_i32_0 : i32, i32
  }
  func.func @transform_8(%arg0: i32) -> (i32, i32) {
    %c0_i32 = arith.constant 0 : i32
    %c0_i32_0 = arith.constant 0 : i32
    %c0_i32_1 = arith.constant 0 : i32
    return %c0_i32, %c0_i32_0 : i32, i32
  }
  func.func @transform_9(%arg0: i32) -> (i32, i32, i32) {
    %c0_i32 = arith.constant 0 : i32
    %c0_i32_0 = arith.constant 0 : i32
    %c0_i32_1 = arith.constant 0 : i32
    return %arg0, %c0_i32, %c0_i32_0 : i32, i32, i32
  }
}

</mosaic_0001>

<bundles_post_ra>
// kernel: tpu_custom_call.1
= control target key start
LH: loop header
LB: loop body
LE: loop exit
PB: predicated region body
PF: predicated region fallthrough
CT: control target
= control target key end

     0   :  { %s11888_s0 = inlined_call_operand.hbm [shape: bf16[8,72], index: 0, kind: input, shape index: {}]   ;;  %s11889_s1 = inlined_call_operand.hbm [shape: bf16[72,640], index: 1, kind: input, shape index: {}]   ;;  %s11890_s2 = inlined_call_operand.hbm [shape: f32[1,640], index: 2, kind: input, shape index: {}]   ;;  %s11891_s3 = inlined_call_operand.hbm [shape: bf16[640,1024], index: 3, kind: input, shape index: {}]   ;;  %s11892_s4 = inlined_call_operand.hbm [shape: f32[1,1024], index: 4, kind: input, shape index: {}]   ;;  %s11893_s5 = inlined_call_operand.hbm [shape: bf16[1024,1024], index: 5, kind: input, shape index: {}]   ;;  %s11894_s6 = inlined_call_operand.hbm [shape: f32[1,1024], index: 6, kind: input, shape index: {}]   ;;  %s11895_s7 = inlined_call_operand.hbm [shape: f32[1,1024], index: 7, kind: input, shape index: {}]   ;;  %s11896_s8 = inlined_call_operand.<no memory space> [shape: f32[1,1], index: 8, kind: input, shape index: {}]   ;;  %s11897_s9 = inlined_call_operand.hbm [shape: f32[1,1,8], index: 9, kind: output, shape index: {}]  }
   0x1   :  { %v14_v0 = vstv %s11896_s8 }
   0x2   :  { %15 = vst [vmem:[#allocation2] sm:$0x1] %v14_v0 }
   0x3   :  { %16 = vsyncpa [#allocation4], 0 }
   0x4   :  { %17 = vsyncpa [#allocation7], 0 }
   0x5   :  { %18 = vsyncpa [#allocation10], 0 }
   0x6   :  { %19 = vsyncpa [#allocation13], 0 }
   0x7   :  { %20 = vsyncpa [#allocation16], 0  ;;  %s37_s13 = sshll.u32 %s11889_s1, 4  ;;  %s38_s13 = int_to_ptr.hbm [resolvable:$true] %s37_s13 }
   0x8   :  { %21 = vsyncpa [#allocation5], 0  ;;  %s11434_s14 = smov [#allocation6]   ;;  %s61_s18 = sshll.u32 %s11891_s3, 4  ;;  %s62_s18 = int_to_ptr.hbm [resolvable:$true] %s61_s18 }
   0x9   :  { %s39_s15 = sshll.u32 %s11434_s14, 4  ;;  %s11435_s8 = smov 320   ;;  %s40_s15 = int_to_ptr.vmem [resolvable:$true] %s39_s15 }
   0xa   :  { %s11436_s19 = smov 20   ;;  %s11437_s20 = smov [#allocation9]  }
   0xb   :  { %45 = dma.hbm_to_vmem [thread:$0]  %s38_s13, 2880, %s40_s15, [#allocation7], %s11435_s8, %s11435_s8, %s11436_s19  }
   0xc   :  { %s63_s21 = sshll.u32 %s11437_s20, 4  ;;  %s11438_s22 = smov 512   ;;  %s64_s21 = int_to_ptr.vmem [resolvable:$true] %s63_s21 }
   0xd   :  { %s11439_s23 = smov 32   ;;  %s85_s25 = sshll.u32 %s11893_s5, 4  ;;  %s86_s25 = int_to_ptr.hbm [resolvable:$true] %s85_s25 }
   0xe   :  { %69 = dma.hbm_to_vmem [thread:$0]  %s62_s18, 40960, %s64_s21, [#allocation10], %s11438_s22, %s11438_s22, %s11439_s23  }
   0xf   :  { %s11440_s26 = smov [#allocation12]   ;;  %s27_s29 = sshll.u32 %s11888_s0, 4  ;;  %s28_s29 = int_to_ptr.hbm [resolvable:$true] %s27_s29 }
  0x10   :  { %s87_s27 = sshll.u32 %s11440_s26, 4  ;;  %s11441_s30 = smov [#allocation3]   ;;  %s88_s27 = int_to_ptr.vmem [resolvable:$true] %s87_s27 }
  0x11   :  { %93 = dma.hbm_to_vmem [thread:$0]  %s86_s25, 65536, %s88_s27, [#allocation13], %s11438_s22, %s11438_s22, %s11439_s23  }
  0x12   :  { %s29_s10 = sshll.u32 %s11441_s30, 4  ;;  %s51_s13 = sshll.u32 %s11890_s2, 4  ;;  %s30_s10 = int_to_ptr.vmem [resolvable:$true] %s29_s10  ;;  %s52_s13 = int_to_ptr.hbm [resolvable:$true] %s51_s13 }
  0x13   :  { %32 = dma.hbm_to_vmem [thread:$0]  %s28_s29, 64, %s30_s10, [#allocation4]  }
  0x14   :  { %s75_s15 = sshll.u32 %s11892_s4, 4  ;;  %s11442_s16 = smov [#allocation8]   ;;  %s76_s15 = int_to_ptr.hbm [resolvable:$true] %s75_s15 }
  0x15   :  { %s53_s17 = sshll.u32 %s11442_s16, 4  ;;  %s11443_s0 = smov [#allocation11]   ;;  %s54_s17 = int_to_ptr.vmem [resolvable:$true] %s53_s17 }
  0x16   :  { %56 = dma.hbm_to_vmem [thread:$0]  %s52_s13, 80, %s54_s17, [#allocation7]  }
  0x17   :  { %s77_s18 = sshll.u32 %s11443_s0, 4  ;;  %s99_s20 = sshll.u32 %s11894_s6, 4  ;;  %s78_s18 = int_to_ptr.vmem [resolvable:$true] %s77_s18  ;;  %s100_s20 = int_to_ptr.hbm [resolvable:$true] %s99_s20 }
  0x18   :  { %80 = dma.hbm_to_vmem [thread:$0]  %s76_s15, 128, %s78_s18, [#allocation10]  }
  0x19   :  { %s110_s22 = sshll.u32 %s11895_s7, 4  ;;  %s11444_s23 = smov [#allocation14]   ;;  %s111_s22 = int_to_ptr.hbm [resolvable:$true] %s110_s22 }
  0x1a   :  { %s101_s4 = sshll.u32 %s11444_s23, 4  ;;  %s11445_s1 = smov [#allocation15]   ;;  %s102_s4 = int_to_ptr.vmem [resolvable:$true] %s101_s4 }
  0x1b   :  { %104 = dma.hbm_to_vmem [thread:$0]  %s100_s20, 128, %s102_s4, [#allocation13]  }
  0x1c   :  { %s112_s24 = sshll.u32 %s11445_s1, 4  ;;  %s113_s24 = int_to_ptr.vmem [resolvable:$true] %s112_s24 }
  0x1d   :  { %115 = dma.hbm_to_vmem [thread:$0]  %s111_s22, 128, %s113_s24, [#allocation16]  }
  0x1e   :  { %11422 = dma.done.wait [#allocation4], 64  }
  0x1f   :  { %11423 = vsyncadd [#allocation4], 4294967232 }
  0x20   :  { %11424 = dma.done.wait [#allocation7], 2960  }
  0x21   :  { %11425 = vsyncadd [#allocation7], 4294964336 }
  0x22   :  { %11426 = dma.done.wait [#allocation10], 41088  }
  0x23   :  { %11427 = vsyncadd [#allocation10], 4294926208 }
  0x24   :  { %11428 = dma.done.wait [#allocation13], 65664  }
  0x25   :  { %11429 = vsyncadd [#allocation13], 4294901632 }
  0x26   :  { %11430 = dma.done.wait [#allocation16], 128  }
  0x27   :  { %11431 = vsyncadd [#allocation16], 4294967168  ;;  %v176_v1 = vld [vmem:[#allocation6 + $0xa0] sm:$0xff]  ;;  %v177_v2 = vld [vmem:[#allocation6 + $0xa8] sm:$0xff]  ;;  %vm312_vm0 = vcmask 1043456   ;;  %vm308_vm1 = vcmask 588800  }
  0x28   :  { %v258_v3 = vunpack.c.l.b16 %v176_v1  ;;  %v259_v4 = vunpack.c.h.b16 %v176_v1  ;;  %v260_v5 = vunpack.c.l.b16 %v177_v2  ;;  %v261_v6 = vunpack.c.h.b16 %v177_v2  ;;  %v6982_v7 = vld [vmem:[#allocation6 + $0x78] sm:$0xf]  ;;  %v10350_v8 = vld [vmem:[#allocation6 + $0x88] sm:$0xf0]  ;;  %v10348_v13 = vld [vmem:[#allocation6 + $0x7c] sm:$0xf] }
  0x29   :  { %v6984_v14 = vld [vmem:[#allocation6 + $0x8c] sm:$0xf0]  ;;  %v6990_v15 = vld [vmem:[#allocation6 + $0x80] sm:$0xf]  ;;  %v10351_v16 = vld [vmem:[#allocation6 + $0x90] sm:$0xf0]  ;;  %v6983_v23 = vor.u32 %v10350_v8, %v6982_v7 }
  0x2a   :  { %v283_v9 = vpack.c.b16 %v258_v3, %v258_v3  ;;  %v284_v10 = vpack.c.b16 %v259_v4, %v259_v4  ;;  %v285_v11 = vpack.c.b16 %v260_v5, %v260_v5  ;;  %v286_v12 = vpack.c.b16 %v261_v6, %v261_v6  ;;  %v10349_v17 = vld [vmem:[#allocation6 + $0x84] sm:$0xf]  ;;  %v6992_v18 = vld [vmem:[#allocation6 + $0x94] sm:$0xf0]  ;;  %v6962_v25 = vld [vmem:[#allocation6 + $0x50] sm:$0xf] }
  0x2b   :  { %v6987_v24 = vor.u32 %v10348_v13, %v6984_v14  ;;  %v10345_v26 = vld [vmem:[#allocation6 + $0x60] sm:$0xf0]  ;;  %v6991_v27 = vor.u32 %v10351_v16, %v6990_v15  ;;  %v6995_v28 = vor.u32 %v10349_v17, %v6992_v18  ;;  %v10343_v29 = vld [vmem:[#allocation6 + $0x54] sm:$0xf]  ;;  %v6964_v30 = vld [vmem:[#allocation6 + $0x64] sm:$0xf0] }
  0x2c   :  { %v314_v19 = vsel %vm312_vm0, %v283_v9, 0  ;;  %v317_v20 = vsel %vm312_vm0, %v284_v10, 0  ;;  %v320_v21 = vsel %vm312_vm0, %v285_v11, 0  ;;  %v323_v22 = vsel %vm312_vm0, %v286_v12, 0  ;;  %v6970_v31 = vld [vmem:[#allocation6 + $0x58] sm:$0xf] }
  0x2d   :  { %331 = vmatpush.bf16.msra.mxu0 %v314_v19  ;;  %344 = vmatpush.bf16.msra.mxu1 %v317_v20  ;;  %v10346_v32 = vld [vmem:[#allocation6 + $0x68] sm:$0xf0]  ;;  %v10344_v33 = vld [vmem:[#allocation6 + $0x5c] sm:$0xf]  ;;  %v6972_v34 = vld [vmem:[#allocation6 + $0x6c] sm:$0xf0]  ;;  %v6963_v35 = vor.u32 %v10345_v26, %v6962_v25  ;;  %v6967_v36 = vor.u32 %v10343_v29, %v6964_v30 }
  0x2e   :  { %357 = vmatpush.bf16.msra.mxu2 %v320_v21  ;;  %370 = vmatpush.bf16.msra.mxu3 %v323_v22  ;;  %v6942_v37 = vld [vmem:[#allocation6 + $0x28] sm:$0xf]  ;;  %v10340_v38 = vld [vmem:[#allocation6 + $0x38] sm:$0xf0]  ;;  %v10338_v39 = vld [vmem:[#allocation6 + $0x2c] sm:$0xf]  ;;  %v6971_v40 = vor.u32 %v10346_v32, %v6970_v31  ;;  %v6975_v41 = vor.u32 %v10344_v33, %v6972_v34 }
  0x2f   :  { %v6944_v42 = vld [vmem:[#allocation6 + $0x3c] sm:$0xf0]  ;;  %v6950_v43 = vld [vmem:[#allocation6 + $0x30] sm:$0xf]  ;;  %v10341_v44 = vld [vmem:[#allocation6 + $0x40] sm:$0xf0]  ;;  %v6943_v49 = vor.u32 %v10340_v38, %v6942_v37 }
  0x30   :  { %v10339_v45 = vld [vmem:[#allocation6 + $0x34] sm:$0xf]  ;;  %v6952_v46 = vld [vmem:[#allocation6 + $0x44] sm:$0xf0]  ;;  %v178_v47 = vld [vmem:[#allocation6 + $0xb0] sm:$0xf]  ;;  %v6947_v50 = vor.u32 %v10338_v39, %v6944_v42  ;;  %v6951_v53 = vor.u32 %v10341_v44, %v6950_v43 }
  0x31   :  { %332 = vmatpush.bf16.msra.mxu0 %v6983_v23  ;;  %345 = vmatpush.bf16.msra.mxu1 %v6987_v24  ;;  %v262_v48 = vunpack.c.l.b16 %v178_v47  ;;  %v6922_v51 = vld [vmem:[#allocation6] sm:$0xf]  ;;  %v10335_v52 = vld [vmem:[#allocation6 + $0x10] sm:$0xf0]  ;;  %v6955_v54 = vor.u32 %v10339_v45, %v6952_v46  ;;  %v10333_v55 = vld [vmem:[#allocation6 + $0x4] sm:$0xf] }
  0x32   :  { %358 = vmatpush.bf16.msra.mxu2 %v6991_v27  ;;  %371 = vmatpush.bf16.msra.mxu3 %v6995_v28  ;;  %v6924_v56 = vld [vmem:[#allocation6 + $0x14] sm:$0xf0]  ;;  %v6930_v57 = vld [vmem:[#allocation6 + $0x8] sm:$0xf]  ;;  %v10336_v58 = vld [vmem:[#allocation6 + $0x18] sm:$0xf0]  ;;  %v6923_v0 = vor.u32 %v10335_v52, %v6922_v51 }
  0x33   :  { %v10334_v59 = vld [vmem:[#allocation6 + $0xc] sm:$0xf]  ;;  %v6932_v60 = vld [vmem:[#allocation6 + $0x1c] sm:$0xf0]  ;;  %v287_v61 = vpack.c.b16 %v262_v48, %v262_v48  ;;  %v7231_v62 = vld [vmem:[#allocation9 + $0x1c0] sm:$0xf]  ;;  %v6927_v1 = vor.u32 %v10333_v55, %v6924_v56  ;;  %v6931_v2 = vor.u32 %v10336_v58, %v6930_v57 }
  0x34   :  { %v10413_v63 = vld [vmem:[#allocation9 + $0x1dc] sm:$0xf0]  ;;  %v6935_v3 = vor.u32 %v10334_v59, %v6932_v60  ;;  %v6998_v4 = vld [vmem:[#allocation6 + $0x88] sm:$0xf]  ;;  %v6978_v15 = vld [vmem:[#allocation6 + $0x60] sm:$0xf] }
  0x35   :  { %333 = vmatpush.bf16.msra.mxu0 %v6963_v35  ;;  %346 = vmatpush.bf16.msra.mxu1 %v6967_v36  ;;  %v10352_v5 = vld [vmem:[#allocation6 + $0x98] sm:$0xf0]  ;;  %v7232_v7 = vor.u32 %v10413_v63, %v7231_v62  ;;  %v326_v11 = vsel %vm312_vm0, %v287_v61, 0  ;;  %v10347_v24 = vld [vmem:[#allocation6 + $0x70] sm:$0xf0]  ;;  %s11447_s6 = smov [#allocation17]  }
  0x36   :  { %359 = vmatpush.bf16.msra.mxu2 %v6971_v40  ;;  %372 = vmatpush.bf16.msra.mxu3 %v6975_v41  ;;  %v7487_v6 = vld [vmem:[#allocation9 + $0x3c0] sm:$0xf]  ;;  %v6999_v19 = vor.u32 %v10352_v5, %v6998_v4  ;;  %v6979_v31 = vor.u32 %v10347_v24, %v6978_v15  ;;  %v10342_v36 = vld [vmem:[#allocation6 + $0x48] sm:$0xf0]  ;;  %v6938_v39 = vld [vmem:[#allocation6 + $0x10] sm:$0xf] }
  0x37   :  { %v10477_v8 = vld [vmem:[#allocation9 + $0x3dc] sm:$0xf0]  ;;  %v10337_v48 = vld [vmem:[#allocation6 + $0x20] sm:$0xf0]  ;;  %s6904_s7 = sshll.u32 %s11447_s6, 4  ;;  %s6906_s27 = sshll.u32 %s11897_s9, 4  ;;  %s6905_s7 = int_to_ptr.vmem [resolvable:$true] %s6904_s7  ;;  %s6907_s27 = int_to_ptr.hbm [resolvable:$true] %s6906_s27 }
  0x38   :  { %v7743_v9 = vld [vmem:[#allocation9 + $0x5c0] sm:$0xf]  ;;  %v7488_v16 = vor.u32 %v10477_v8, %v7487_v6  ;;  %v6939_v55 = vor.u32 %v10337_v48, %v6938_v39 }
  0x39   :  { %334 = vmatpush.bf16.msra.mxu0 %v6943_v49  ;;  %347 = vmatpush.bf16.msra.mxu1 %v6947_v50  ;;  %v10541_v10 = vld [vmem:[#allocation9 + $0x5dc] sm:$0xf0] }
  0x3a   :  { %360 = vmatpush.bf16.msra.mxu2 %v6951_v53  ;;  %373 = vmatpush.bf16.msra.mxu3 %v6955_v54  ;;  %v7199_v12 = vld [vmem:[#allocation9 + $0x180] sm:$0xf]  ;;  %v7744_v18 = vor.u32 %v10541_v10, %v7743_v9 }
  0x3b   :  { %v10405_v13 = vld [vmem:[#allocation9 + $0x19c] sm:$0xf0] }
  0x3c   :  { %v11530_v14 = vld [vmem:[#allocation3] sm:$0xf]  ;;  %v7200_v20 = vor.u32 %v10405_v13, %v7199_v12  ;;  %v6958_v27 = vld [vmem:[#allocation6 + $0x38] sm:$0xf] }
  0x3d   :  { %335 = vmatpush.bf16.msra.mxu0 %v6923_v0  ;;  %348 = vmatpush.bf16.msra.mxu1 %v6927_v1  ;;  %v7455_v17 = vld [vmem:[#allocation9 + $0x380] sm:$0xf]  ;;  %v6959_v43 = vor.u32 %v10342_v36, %v6958_v27 }
  0x3e   :  { %361 = vmatpush.bf16.msra.mxu2 %v6931_v2  ;;  %374 = vmatpush.bf16.msra.mxu3 %v6935_v3  ;;  %v10469_v21 = vld [vmem:[#allocation9 + $0x39c] sm:$0xf0] }
  0x3f   :  { %v7711_v22 = vld [vmem:[#allocation9 + $0x580] sm:$0xf]  ;;  %v7456_v28 = vor.u32 %v10469_v21, %v7455_v17 }
  0x40   :  { %v10533_v23 = vld [vmem:[#allocation9 + $0x59c] sm:$0xf0]  ;;  %7000 = vmatmul.msk.bf16.vlgmr.msra.gmra.mxu0 %vm308_vm1, %v11530_v14  ;;  %7001 = vmatmul.msk.bf16.vlgmr.msra.gmra.mxu1 %vm308_vm1, %v11530_v14 }
  0x41   :  { %383 = vmatpush.bf16.msrb.mxu0 %v326_v11  ;;  %2351 = vmatpush.bf16.msrb.mxu1 %v7232_v7  ;;  %v7167_v25 = vld [vmem:[#allocation9 + $0x140] sm:$0xf]  ;;  %v7712_v30 = vor.u32 %v10533_v23, %v7711_v22 }
  0x42   :  { %v10397_v26 = vld [vmem:[#allocation9 + $0x15c] sm:$0xf0]  ;;  %7002 = vmatmul.msk.bf16.vlgmr.msra.gmra.mxu2 %vm308_vm1, %v11530_v14  ;;  %7003 = vmatmul.msk.bf16.vlgmr.msra.gmra.mxu3 %vm308_vm1, %v11530_v14 }
  0x43   :  { %2364 = vmatpush.bf16.msrb.mxu2 %v7488_v16  ;;  %2377 = vmatpush.bf16.msrb.mxu3 %v7744_v18  ;;  %v7423_v29 = vld [vmem:[#allocation9 + $0x340] sm:$0xf]  ;;  %v7168_v32 = vor.u32 %v10397_v26, %v7167_v25 }
  0x44   :  { %v10461_v33 = vld [vmem:[#allocation9 + $0x35c] sm:$0xf0] }
  0x45   :  { %384 = vmatpush.bf16.msrb.mxu0 %v6999_v19  ;;  %2352 = vmatpush.bf16.msrb.mxu1 %v7200_v20  ;;  %v7679_v34 = vld [vmem:[#allocation9 + $0x540] sm:$0xf]  ;;  %v7424_v40 = vor.u32 %v10461_v33, %v7423_v29  ;;  %v10409_v33 = vld [vmem:[#allocation9 + $0x1c4] sm:$0xf] }
  0x46   :  { %v10525_v35 = vld [vmem:[#allocation9 + $0x55c] sm:$0xf0] }
  0x47   :  { %v7135_v37 = vld [vmem:[#allocation9 + $0x100] sm:$0xf]  ;;  %2365 = vmatpush.bf16.msrb.mxu2 %v7456_v28  ;;  %2378 = vmatpush.bf16.msrb.mxu3 %v7712_v30  ;;  %v7680_v42 = vor.u32 %v10525_v35, %v7679_v34 }
  0x48   :  { %v10389_v38 = vld [vmem:[#allocation9 + $0x11c] sm:$0xf0] }
  0x49   :  { %v7391_v41 = vld [vmem:[#allocation9 + $0x300] sm:$0xf]  ;;  %385 = vmatpush.bf16.msrb.mxu0 %v6979_v31  ;;  %2353 = vmatpush.bf16.msrb.mxu1 %v7168_v32  ;;  %v7136_v44 = vor.u32 %v10389_v38, %v7135_v37  ;;  %v7233_v37 = vld [vmem:[#allocation9 + $0x1e0] sm:$0xf0] }
  0x4a   :  { %v10453_v45 = vld [vmem:[#allocation9 + $0x31c] sm:$0xf0] }
  0x4b   :  { %v7647_v46 = vld [vmem:[#allocation9 + $0x500] sm:$0xf]  ;;  %2366 = vmatpush.bf16.msrb.mxu2 %v7424_v40  ;;  %v7392_v53 = vor.u32 %v10453_v45, %v7391_v41  ;;  %2379 = vmatpush.bf16.msrb.mxu3 %v7680_v42  ;;  %v7489_v45 = vld [vmem:[#allocation9 + $0x3e0] sm:$0xf0] }
  0x4c   :  { %v10517_v47 = vld [vmem:[#allocation9 + $0x51c] sm:$0xf0] }
  0x4d   :  { %v7103_v49 = vld [vmem:[#allocation9 + $0xc0] sm:$0xf]  ;;  %v7648_v54 = vor.u32 %v10517_v47, %v7647_v46  ;;  %386 = vmatpush.bf16.msrb.mxu0 %v6959_v43  ;;  %2354 = vmatpush.bf16.msrb.mxu1 %v7136_v44  ;;  %v10473_v44 = vld [vmem:[#allocation9 + $0x3c4] sm:$0xf]  ;;  %v7236_v46 = vor.u32 %v10409_v33, %v7233_v37 }
  0x4e   :  { %v10381_v50 = vld [vmem:[#allocation9 + $0xdc] sm:$0xf0]  ;;  %v10521_v37 = vld [vmem:[#allocation9 + $0x544] sm:$0xf] }
  0x4f   :  { %v7999_v51 = vld [vmem:[#allocation9 + $0x7c0] sm:$0xf]  ;;  %v7104_v56 = vor.u32 %v10381_v50, %v7103_v49  ;;  %2367 = vmatpush.bf16.msrb.mxu2 %v7392_v53  ;;  %2380 = vmatpush.bf16.msrb.mxu3 %v7648_v54  ;;  %v7492_v54 = vor.u32 %v10473_v44, %v7489_v45  ;;  %v10441_v44 = vld [vmem:[#allocation9 + $0x2c4] sm:$0xf] }
  0x50   :  { %v10605_v52 = vld [vmem:[#allocation9 + $0x7dc] sm:$0xf0]  ;;  %v7361_v45 = vld [vmem:[#allocation9 + $0x2e0] sm:$0xf0] }
  0x51   :  { %v7359_v57 = vld [vmem:[#allocation9 + $0x2c0] sm:$0xf]  ;;  %v8000_v60 = vor.u32 %v10605_v52, %v7999_v51  ;;  %387 = vmatpush.bf16.msrb.mxu0 %v6939_v55  ;;  %2355 = vmatpush.bf16.msrb.mxu1 %v7104_v56  ;;  %v10401_v51 = vld [vmem:[#allocation9 + $0x184] sm:$0xf] }
  0x52   :  { %v10445_v58 = vld [vmem:[#allocation9 + $0x2dc] sm:$0xf0]  ;;  %v7201_v52 = vld [vmem:[#allocation9 + $0x1a0] sm:$0xf0] }
  0x53   :  { %v7071_v59 = vld [vmem:[#allocation9 + $0x80] sm:$0xf]  ;;  %v7360_v2 = vor.u32 %v10445_v58, %v7359_v57  ;;  %v10465_v57 = vld [vmem:[#allocation9 + $0x384] sm:$0xf] }
  0x54   :  { %v10373_v61 = vld [vmem:[#allocation9 + $0x9c] sm:$0xf0]  ;;  %7004 = vmatmul.msk.bf16.vlgmr.msrb.gmra.mxu0 %vm308_vm1, %v11530_v14  ;;  %v7457_v58 = vld [vmem:[#allocation9 + $0x3a0] sm:$0xf0] }
  0x55   :  { %v7615_v62 = vld [vmem:[#allocation9 + $0x4c0] sm:$0xf]  ;;  %v7072_v3 = vor.u32 %v10373_v61, %v7071_v59  ;;  %2390 = vmatpush.bf16.msra.mxu0 %v8000_v60  ;;  %2368 = vmatpush.bf16.msrb.mxu2 %v7360_v2  ;;  %v7204_v59 = vor.u32 %v10401_v51, %v7201_v52  ;;  %v7460_v2 = vor.u32 %v10465_v57, %v7457_v58  ;;  %v10361_v52 = vld [vmem:[#allocation9 + $0x44] sm:$0xf] }
  0x56   :  { %v10509_v63 = vld [vmem:[#allocation9 + $0x4dc] sm:$0xf0]  ;;  %v7329_v57 = vld [vmem:[#allocation9 + $0x2a0] sm:$0xf0] }
  0x57   :  { %v7967_v0 = vld [vmem:[#allocation9 + $0x780] sm:$0xf]  ;;  %v7616_v6 = vor.u32 %v10509_v63, %v7615_v62  ;;  %2356 = vmatpush.bf16.msrb.mxu1 %v7072_v3  ;;  %v10393_v63 = vld [vmem:[#allocation9 + $0x144] sm:$0xf] }
  0x58   :  { %v10597_v1 = vld [vmem:[#allocation9 + $0x79c] sm:$0xf0]  ;;  %v10497_v58 = vld [vmem:[#allocation9 + $0x484] sm:$0xf] }
  0x59   :  { %v7327_v4 = vld [vmem:[#allocation9 + $0x280] sm:$0xf]  ;;  %v7968_v8 = vor.u32 %v10597_v1, %v7967_v0  ;;  %2381 = vmatpush.bf16.msrb.mxu3 %v7616_v6  ;;  %v7169_v0 = vld [vmem:[#allocation9 + $0x160] sm:$0xf0] }
  0x5a   :  { %v10437_v5 = vld [vmem:[#allocation9 + $0x29c] sm:$0xf0]  ;;  %v7425_v6 = vld [vmem:[#allocation9 + $0x360] sm:$0xf0] }
  0x5b   :  { %v7039_v7 = vld [vmem:[#allocation9 + $0x40] sm:$0xf]  ;;  %v7328_v15 = vor.u32 %v10437_v5, %v7327_v4  ;;  %2391 = vmatpush.bf16.msra.mxu0 %v7968_v8  ;;  %v10457_v5 = vld [vmem:[#allocation9 + $0x344] sm:$0xf]  ;;  %v7172_v8 = vor.u32 %v10393_v63, %v7169_v0 }
  0x5c   :  { %v10365_v9 = vld [vmem:[#allocation9 + $0x5c] sm:$0xf0]  ;;  %v10353_v0 = vld [vmem:[#allocation9 + $0x4] sm:$0xf] }
  0x5d   :  { %v7583_v10 = vld [vmem:[#allocation9 + $0x480] sm:$0xf]  ;;  %v7040_v17 = vor.u32 %v10365_v9, %v7039_v7  ;;  %2369 = vmatpush.bf16.msrb.mxu2 %v7328_v15  ;;  %v10537_v15 = vld [vmem:[#allocation9 + $0x5c4] sm:$0xf] }
  0x5e   :  { %v10501_v11 = vld [vmem:[#allocation9 + $0x49c] sm:$0xf0] }
  0x5f   :  { %v7935_v12 = vld [vmem:[#allocation9 + $0x740] sm:$0xf]  ;;  %v7584_v20 = vor.u32 %v10501_v11, %v7583_v10  ;;  %2357 = vmatpush.bf16.msrb.mxu1 %v7040_v17 }
  0x60   :  { %v10589_v13 = vld [vmem:[#allocation9 + $0x75c] sm:$0xf0] }
  0x61   :  { %v7903_v16 = vld [vmem:[#allocation9 + $0x700] sm:$0xf]  ;;  %v7936_v22 = vor.u32 %v10589_v13, %v7935_v12  ;;  %2382 = vmatpush.bf16.msrb.mxu3 %v7584_v20  ;;  %v10385_v12 = vld [vmem:[#allocation9 + $0x104] sm:$0xf] }
  0x62   :  { %v7295_v18 = vld [vmem:[#allocation9 + $0x240] sm:$0xf]  ;;  %v7137_v13 = vld [vmem:[#allocation9 + $0x120] sm:$0xf0] }
  0x63   :  { %v10429_v19 = vld [vmem:[#allocation9 + $0x25c] sm:$0xf0]  ;;  %2392 = vmatpush.bf16.msra.mxu0 %v7936_v22  ;;  %v10449_v20 = vld [vmem:[#allocation9 + $0x304] sm:$0xf]  ;;  %v7140_v22 = vor.u32 %v10385_v12, %v7137_v13 }
  0x64   :  { %v7007_v21 = vld [vmem:[#allocation9] sm:$0xf]  ;;  %v7296_v14 = vor.u32 %v10429_v19, %v7295_v18  ;;  %v7745_v19 = vld [vmem:[#allocation9 + $0x5e0] sm:$0xf0] }
  0x65   :  { %v10357_v23 = vld [vmem:[#allocation9 + $0x1c] sm:$0xf0]  ;;  %v10481_v13 = vld [vmem:[#allocation9 + $0x404] sm:$0xf] }
  0x66   :  { %v7551_v24 = vld [vmem:[#allocation9 + $0x440] sm:$0xf]  ;;  %v7008_v30 = vor.u32 %v10357_v23, %v7007_v21  ;;  %2370 = vmatpush.bf16.msrb.mxu2 %v7296_v14  ;;  %v7393_v21 = vld [vmem:[#allocation9 + $0x320] sm:$0xf0] }
  0x67   :  { %v10493_v25 = vld [vmem:[#allocation9 + $0x45c] sm:$0xf0] }
  0x68   :  { %v10581_v26 = vld [vmem:[#allocation9 + $0x71c] sm:$0xf0]  ;;  %v7552_v34 = vor.u32 %v10493_v25, %v7551_v24  ;;  %2358 = vmatpush.bf16.msrb.mxu1 %v7008_v30  ;;  %v10377_v25 = vld [vmem:[#allocation9 + $0xc4] sm:$0xf] }
  0x69   :  { %v8255_v27 = vld [vmem:[#allocation9 + $0x9c0] sm:$0xf]  ;;  %v7904_v35 = vor.u32 %v10581_v26, %v7903_v16  ;;  %v7428_v16 = vor.u32 %v10457_v5, %v7425_v6  ;;  %v7105_v26 = vld [vmem:[#allocation9 + $0xe0] sm:$0xf0] }
  0x6a   :  { %v10669_v28 = vld [vmem:[#allocation9 + $0x9dc] sm:$0xf0]  ;;  %2383 = vmatpush.bf16.msrb.mxu3 %v7552_v34  ;;  %v10529_v30 = vld [vmem:[#allocation9 + $0x584] sm:$0xf] }
  0x6b   :  { %v7871_v29 = vld [vmem:[#allocation9 + $0x6c0] sm:$0xf]  ;;  %v8256_v36 = vor.u32 %v10669_v28, %v8255_v27  ;;  %2393 = vmatpush.bf16.msra.mxu0 %v7904_v35  ;;  %v7748_v27 = vor.u32 %v10537_v15, %v7745_v19  ;;  %v7396_v28 = vor.u32 %v10449_v20, %v7393_v21  ;;  %v10369_v34 = vld [vmem:[#allocation9 + $0x84] sm:$0xf] }
  0x6c   :  { %v7263_v31 = vld [vmem:[#allocation9 + $0x200] sm:$0xf]  ;;  %v7073_v35 = vld [vmem:[#allocation9 + $0xa0] sm:$0xf0] }
  0x6d   :  { %v10421_v32 = vld [vmem:[#allocation9 + $0x21c] sm:$0xf0]  ;;  %2403 = vmatpush.bf16.msra.mxu1 %v8256_v36  ;;  %v7297_v5 = vld [vmem:[#allocation9 + $0x260] sm:$0xf0] }
  0x6e   :  { %v7519_v38 = vld [vmem:[#allocation9 + $0x400] sm:$0xf]  ;;  %v7264_v43 = vor.u32 %v10421_v32, %v7263_v31  ;;  %v7713_v31 = vld [vmem:[#allocation9 + $0x5a0] sm:$0xf0]  ;;  %v7108_v32 = vor.u32 %v10377_v25, %v7105_v26 }
  0x6f   :  { %v10485_v39 = vld [vmem:[#allocation9 + $0x41c] sm:$0xf0]  ;;  %v7716_v36 = vor.u32 %v10529_v30, %v7713_v31  ;;  %v10489_v6 = vld [vmem:[#allocation9 + $0x444] sm:$0xf] }
  0x70   :  { %v10573_v40 = vld [vmem:[#allocation9 + $0x6dc] sm:$0xf0]  ;;  %v7520_v47 = vor.u32 %v10485_v39, %v7519_v38  ;;  %2371 = vmatpush.bf16.msrb.mxu2 %v7264_v43  ;;  %v7681_v38 = vld [vmem:[#allocation9 + $0x560] sm:$0xf0]  ;;  %v7076_v39 = vor.u32 %v10369_v34, %v7073_v35 }
  0x71   :  { %v8223_v41 = vld [vmem:[#allocation9 + $0x980] sm:$0xf]  ;;  %v7872_v48 = vor.u32 %v10573_v40, %v7871_v29  ;;  %v7684_v40 = vor.u32 %v10521_v37, %v7681_v38  ;;  %v7521_v15 = vld [vmem:[#allocation9 + $0x420] sm:$0xf0] }
  0x72   :  { %v10661_v42 = vld [vmem:[#allocation9 + $0x99c] sm:$0xf0]  ;;  %2384 = vmatpush.bf16.msrb.mxu3 %v7520_v47  ;;  %v7364_v47 = vor.u32 %v10441_v44, %v7361_v45  ;;  %v8001_v25 = vld [vmem:[#allocation9 + $0x7e0] sm:$0xf0]  ;;  %v10414_v44 = vld [vmem:[#allocation9 + $0x1e4] sm:$0xf0] }
  0x73   :  { %v7839_v49 = vld [vmem:[#allocation9 + $0x680] sm:$0xf]  ;;  %v8224_v50 = vor.u32 %v10661_v42, %v8223_v41  ;;  %2394 = vmatpush.bf16.msra.mxu0 %v7872_v48  ;;  %v10513_v41 = vld [vmem:[#allocation9 + $0x504] sm:$0xf] }
  0x74   :  { %v10565_v53 = vld [vmem:[#allocation9 + $0x69c] sm:$0xf0]  ;;  %2416 = vmatpush.bf16.msra.mxu2 %v7236_v46  ;;  %v7649_v42 = vld [vmem:[#allocation9 + $0x520] sm:$0xf0] }
  0x75   :  { %v8191_v55 = vld [vmem:[#allocation9 + $0x940] sm:$0xf]  ;;  %v7840_v60 = vor.u32 %v10565_v53, %v7839_v49  ;;  %2404 = vmatpush.bf16.msra.mxu1 %v8224_v50  ;;  %v7652_v43 = vor.u32 %v10513_v41, %v7649_v42  ;;  %v10505_v46 = vld [vmem:[#allocation9 + $0x4c4] sm:$0xf] }
  0x76   :  { %v10653_v56 = vld [vmem:[#allocation9 + $0x95c] sm:$0xf0]  ;;  %2429 = vmatpush.bf16.msra.mxu3 %v7492_v54  ;;  %v7617_v48 = vld [vmem:[#allocation9 + $0x4e0] sm:$0xf0] }
  0x77   :  { %v7807_v61 = vld [vmem:[#allocation9 + $0x640] sm:$0xf]  ;;  %v8192_v62 = vor.u32 %v10653_v56, %v8191_v55  ;;  %2395 = vmatpush.bf16.msra.mxu0 %v7840_v60  ;;  %v7620_v49 = vor.u32 %v10505_v46, %v7617_v48  ;;  %v7041_v54 = vld [vmem:[#allocation9 + $0x60] sm:$0xf0] }
  0x78   :  { %v10557_v1 = vld [vmem:[#allocation9 + $0x65c] sm:$0xf0]  ;;  %2417 = vmatpush.bf16.msra.mxu2 %v7204_v59  ;;  %v7044_v55 = vor.u32 %v10361_v52, %v7041_v54  ;;  %v10433_v56 = vld [vmem:[#allocation9 + $0x284] sm:$0xf] }
  0x79   :  { %v8159_v3 = vld [vmem:[#allocation9 + $0x900] sm:$0xf]  ;;  %v7808_v9 = vor.u32 %v10557_v1, %v7807_v61  ;;  %2405 = vmatpush.bf16.msra.mxu1 %v8192_v62  ;;  %v7332_v59 = vor.u32 %v10433_v56, %v7329_v57  ;;  %v7585_v60 = vld [vmem:[#allocation9 + $0x4a0] sm:$0xf0] }
  0x7a   :  { %v10645_v4 = vld [vmem:[#allocation9 + $0x91c] sm:$0xf0]  ;;  %2430 = vmatpush.bf16.msra.mxu3 %v7460_v2  ;;  %v7588_v61 = vor.u32 %v10497_v58, %v7585_v60  ;;  %v7009_v2 = vld [vmem:[#allocation9 + $0x20] sm:$0xf0] }
  0x7b   :  { %v7775_v7 = vld [vmem:[#allocation9 + $0x600] sm:$0xf]  ;;  %v8160_v11 = vor.u32 %v10645_v4, %v8159_v3  ;;  %2396 = vmatpush.bf16.msra.mxu0 %v7808_v9  ;;  %v7012_v3 = vor.u32 %v10353_v0, %v7009_v2  ;;  %v10425_v4 = vld [vmem:[#allocation9 + $0x244] sm:$0xf]  ;;  %v7207_v0 = vld [vmem:[#allocation9 + $0x188] sm:$0xf] }
  0x7c   :  { %v10549_v10 = vld [vmem:[#allocation9 + $0x61c] sm:$0xf0]  ;;  %2418 = vmatpush.bf16.msra.mxu2 %v7172_v8  ;;  %v7553_v8 = vld [vmem:[#allocation9 + $0x460] sm:$0xf0] }
  0x7d   :  { %v8127_v17 = vld [vmem:[#allocation9 + $0x8c0] sm:$0xf]  ;;  %v7776_v23 = vor.u32 %v10549_v10, %v7775_v7  ;;  %2406 = vmatpush.bf16.msra.mxu1 %v8160_v11  ;;  %v7300_v7 = vor.u32 %v10425_v4, %v7297_v5  ;;  %v7556_v9 = vor.u32 %v10489_v6, %v7553_v8  ;;  %v10417_v10 = vld [vmem:[#allocation9 + $0x204] sm:$0xf]  ;;  %v7463_v5 = vld [vmem:[#allocation9 + $0x388] sm:$0xf] }
  0x7e   :  { %v10637_v18 = vld [vmem:[#allocation9 + $0x8dc] sm:$0xf0]  ;;  %2431 = vmatpush.bf16.msra.mxu3 %v7428_v16  ;;  %v7265_v11 = vld [vmem:[#allocation9 + $0x220] sm:$0xf0]  ;;  %v7524_v16 = vor.u32 %v10481_v13, %v7521_v15  ;;  %v10470_v6 = vld [vmem:[#allocation9 + $0x3a4] sm:$0xf0] }
  0x7f   :  { %v8128_v24 = vor.u32 %v10637_v18, %v8127_v17  ;;  %v8095_v14 = vld [vmem:[#allocation9 + $0x880] sm:$0xf]  ;;  %2397 = vmatpush.bf16.msra.mxu0 %v7776_v23  ;;  %v7268_v12 = vor.u32 %v10417_v10, %v7265_v11  ;;  %v11542_v17 = vld [vmem:[#allocation8] sm:$0x1f]  ;;  %v10665_v26 = vld [vmem:[#allocation9 + $0x9c4] sm:$0xf] }
  0x80   :  { %v10629_v29 = vld [vmem:[#allocation9 + $0x89c] sm:$0xf0]  ;;  %2419 = vmatpush.bf16.msra.mxu2 %v7140_v22  ;;  %v181_v18 = vperm.slane %v11542_v17, 0  ;;  %v182_v19 = vperm.slane %v11542_v17, 1  ;;  %v184_v30 = vperm.slane %v11542_v17, 3  ;;  %v185_v13 = vperm.slane %v11542_v17, 4 }
  0x81   :  { %2407 = vmatpush.bf16.msra.mxu1 %v8128_v24  ;;  %v8096_v33 = vor.u32 %v10629_v29, %v8095_v14  ;;  %v8063_v50 = vld [vmem:[#allocation9 + $0x840] sm:$0xf]  ;;  %v10601_v24 = vld [vmem:[#allocation9 + $0x7c4] sm:$0xf]  ;;  %v183_v29 = vperm.slane %v11542_v17, 2 }
  0x82   :  { %2432 = vmatpush.bf16.msra.mxu3 %v7396_v28  ;;  %v10621_v51 = vld [vmem:[#allocation9 + $0x85c] sm:$0xf0]  ;;  %v10593_v35 = vld [vmem:[#allocation9 + $0x784] sm:$0xf] }
  0x83   :  { %2442 = vmatpush.bf16.msrb.mxu0 %v7748_v27  ;;  %v8064_v53 = vor.u32 %v10621_v51, %v8063_v50  ;;  %v8031_v62 = vld [vmem:[#allocation9 + $0x800] sm:$0xf]  ;;  %v8257_v27 = vld [vmem:[#allocation9 + $0x9e0] sm:$0xf0]  ;;  %v10478_v50 = vld [vmem:[#allocation9 + $0x3e4] sm:$0xf0] }
  0x84   :  { %2420 = vmatpush.bf16.msra.mxu2 %v7108_v32  ;;  %v10613_v63 = vld [vmem:[#allocation9 + $0x81c] sm:$0xf0]  ;;  %v8260_v34 = vor.u32 %v10665_v26, %v8257_v27  ;;  %v7969_v38 = vld [vmem:[#allocation9 + $0x7a0] sm:$0xf0] }
  0x85   :  { %2408 = vmatpush.bf16.msra.mxu1 %v8096_v33  ;;  %v8032_v1 = vor.u32 %v10613_v63, %v8031_v62  ;;  %v8004_v33 = vor.u32 %v10601_v24, %v8001_v25  ;;  %v10585_v51 = vld [vmem:[#allocation9 + $0x744] sm:$0xf]  ;;  %v7972_v52 = vor.u32 %v10593_v35, %v7969_v38  ;;  %v10454_v35 = vld [vmem:[#allocation9 + $0x324] sm:$0xf0] }
  0x86   :  { %2433 = vmatpush.bf16.msra.mxu3 %v7364_v47  ;;  %v7937_v54 = vld [vmem:[#allocation9 + $0x760] sm:$0xf0] }
  0x87   :  { %2443 = vmatpush.bf16.msrb.mxu0 %v7716_v36  ;;  %v8193_v56 = vld [vmem:[#allocation9 + $0x960] sm:$0xf0]  ;;  %v7940_v63 = vor.u32 %v10585_v51, %v7937_v54  ;;  %v10446_v51 = vld [vmem:[#allocation9 + $0x2e4] sm:$0xf0] }
  0x88   :  { %2421 = vmatpush.bf16.msra.mxu2 %v7076_v39  ;;  %v10657_v39 = vld [vmem:[#allocation9 + $0x984] sm:$0xf] }
  0x89   :  { %2409 = vmatpush.bf16.msra.mxu1 %v8064_v53  ;;  %v7905_v8 = vld [vmem:[#allocation9 + $0x720] sm:$0xf0] }
  0x8a   :  { %2434 = vmatpush.bf16.msra.mxu3 %v7332_v59  ;;  %v8161_v10 = vld [vmem:[#allocation9 + $0x920] sm:$0xf0] }
  0x8b   :  { %2444 = vmatpush.bf16.msrb.mxu0 %v7684_v40  ;;  %v8225_v40 = vld [vmem:[#allocation9 + $0x9a0] sm:$0xf0] }
  0x8c   :  { %2422 = vmatpush.bf16.msra.mxu2 %v7044_v55  ;;  %v8228_v53 = vor.u32 %v10657_v39, %v8225_v40  ;;  %v10649_v55 = vld [vmem:[#allocation9 + $0x944] sm:$0xf] }
  0x8d   :  { %2410 = vmatpush.bf16.msra.mxu1 %v8032_v1  ;;  %v10406_v1 = vld [vmem:[#allocation9 + $0x1a4] sm:$0xf0]  ;;  %v8196_v4 = vor.u32 %v10649_v55, %v8193_v56  ;;  %v10569_v25 = vld [vmem:[#allocation9 + $0x6c4] sm:$0xf] }
  0x8e   :  { %2435 = vmatpush.bf16.msra.mxu3 %v7300_v7  ;;  %v10577_v7 = vld [vmem:[#allocation9 + $0x704] sm:$0xf]  ;;  %v7208_v15 = vor.u32 %v10406_v1, %v7207_v0  ;;  %v10438_v0 = vld [vmem:[#allocation9 + $0x2a4] sm:$0xf0] }
  0x8f   :  { %2445 = vmatpush.bf16.msrb.mxu0 %v7652_v43  ;;  %v7239_v43 = vld [vmem:[#allocation9 + $0x1c8] sm:$0xf]  ;;  %v7873_v26 = vld [vmem:[#allocation9 + $0x6e0] sm:$0xf0] }
  0x90   :  { %2423 = vmatpush.bf16.msra.mxu2 %v7012_v3  ;;  %v7240_v59 = vor.u32 %v10414_v44, %v7239_v43  ;;  %v10561_v39 = vld [vmem:[#allocation9 + $0x684] sm:$0xf] }
  0x91   :  { %v7841_v40 = vld [vmem:[#allocation9 + $0x6a0] sm:$0xf0] }
  0x92   :  { %2436 = vmatpush.bf16.msra.mxu3 %v7268_v12  ;;  %v8097_v43 = vld [vmem:[#allocation9 + $0x8a0] sm:$0xf0] }
  0x93   :  { %2446 = vmatpush.bf16.msrb.mxu0 %v7620_v49  ;;  %v7495_v49 = vld [vmem:[#allocation9 + $0x3c8] sm:$0xf]  ;;  %v7809_v54 = vld [vmem:[#allocation9 + $0x660] sm:$0xf0] }
  0x94   :  { %v7496_v62 = vor.u32 %v10478_v50, %v7495_v49  ;;  %v10382_v49 = vld [vmem:[#allocation9 + $0xe4] sm:$0xf0]  ;;  %v10617_v56 = vld [vmem:[#allocation9 + $0x844] sm:$0xf] }
  0x95   :  { %v7367_v50 = vld [vmem:[#allocation9 + $0x2c8] sm:$0xf] }
  0x97   :  { %2447 = vmatpush.bf16.msrb.mxu0 %v7588_v61 }
  0x9b   :  { %2448 = vmatpush.bf16.msrb.mxu0 %v7556_v9  ;;  %v10641_v9 = vld [vmem:[#allocation9 + $0x904] sm:$0xf] }
  0x9f   :  { %2449 = vmatpush.bf16.msrb.mxu0 %v7524_v16  ;;  %v7464_v16 = vor.u32 %v10470_v6, %v7463_v5  ;;  %v7777_v5 = vld [vmem:[#allocation9 + $0x620] sm:$0xf0] }
  0xa0   :  { %v10609_v6 = vld [vmem:[#allocation9 + $0x804] sm:$0xf] }
  0xbd   :  { %v337_v20 = vpop.f32.mrf.mxu0  ;;  %v350_v21 = vpop.f32.mrf.mxu1 }
  0xbe   :  { %v338_v22 = vadd.f32 %v337_v20, %v181_v18  ;;  %v351_v23 = vadd.f32 %v350_v21, %v182_v19  ;;  %v7175_v18 = vld [vmem:[#allocation9 + $0x148] sm:$0xf]  ;;  %v7908_v19 = vor.u32 %v10577_v7, %v7905_v8  ;;  %v8164_v20 = vor.u32 %v10641_v9, %v8161_v10  ;;  %v8033_v7 = vld [vmem:[#allocation9 + $0x820] sm:$0xf0] }
  0xbf   :  { %v10398_v21 = vld [vmem:[#allocation9 + $0x164] sm:$0xf0] }
  0xc0   :  { %vm393_vm2 = vcmp.gt.f32.partialorder %v338_v22, 0.0  ;;  %v398_v28 = vmul.f32 0.2, %v338_v22  ;;  %vm394_vm3 = vcmp.gt.f32.partialorder %v351_v23, 0.0  ;;  %v399_v14 = vmul.f32 0.2, %v351_v23 }
  0xc1   :  { %v7176_v17 = vor.u32 %v10398_v21, %v7175_v18  ;;  %v7751_v8 = vld [vmem:[#allocation9 + $0x5c8] sm:$0xf]  ;;  %v8036_v21 = vor.u32 %v10609_v6, %v8033_v7 }
  0xc2   :  { %v403_v31 = vsel %vm393_vm2, %v338_v22, %v398_v28  ;;  %v404_v32 = vsel %vm394_vm3, %v351_v23, %v399_v14  ;;  %v7431_v22 = vld [vmem:[#allocation9 + $0x348] sm:$0xf]  ;;  %v10633_v28 = vld [vmem:[#allocation9 + $0x8c4] sm:$0xf] }
  0xc3   :  { %v11548_v36 = vpack.c.bf16 %v403_v31, %v403_v31  ;;  %v11550_v37 = vpack.c.bf16 %v404_v32, %v404_v32  ;;  %v10462_v23 = vld [vmem:[#allocation9 + $0x364] sm:$0xf0]  ;;  %v8129_v14 = vld [vmem:[#allocation9 + $0x8e0] sm:$0xf0] }
  0xc4   :  { %v10390_v31 = vld [vmem:[#allocation9 + $0x124] sm:$0xf0]  ;;  %v8132_v38 = vor.u32 %v10633_v28, %v8129_v14 }
  0xc5   :  { %v363_v41 = vpop.f32.mrf.mxu2  ;;  %v376_v42 = vpop.f32.mrf.mxu3  ;;  %2359 = vmatmul.bf16.vlgmr.msrb.gmra.mxu1 %v11548_v36  ;;  %2372 = vmatmul.bf16.vlgmr.msrb.gmra.mxu2 %v11550_v37  ;;  %v7399_v32 = vld [vmem:[#allocation9 + $0x308] sm:$0xf] }
  0xc6   :  { %v364_v45 = vadd.f32 %v363_v41, %v183_v29  ;;  %v377_v46 = vadd.f32 %v376_v42, %v184_v30  ;;  %v339_v47 = vpop.f32.mrf.mxu0  ;;  %v352_v48 = vpop.f32.mrf.mxu1  ;;  %2455 = vmatpush.bf16.msrb.mxu1 %v8004_v33  ;;  %2468 = vmatpush.bf16.msrb.mxu2 %v8260_v34  ;;  %v7432_v29 = vor.u32 %v10462_v23, %v7431_v22  ;;  %v7143_v30 = vld [vmem:[#allocation9 + $0x108] sm:$0xf]  ;;  %v10625_v42 = vld [vmem:[#allocation9 + $0x884] sm:$0xf] }
  0xc7   :  { %v7876_v34 = vor.u32 %v10569_v25, %v7873_v26  ;;  %v7111_v47 = vld [vmem:[#allocation9 + $0xc8] sm:$0xf]  ;;  %v7844_v48 = vor.u32 %v10561_v39, %v7841_v40 }
  0xc8   :  { %vm395_vm4 = vcmp.gt.f32.partialorder %v364_v45, 0.0  ;;  %v400_v57 = vmul.f32 0.2, %v364_v45  ;;  %vm396_vm5 = vcmp.gt.f32.partialorder %v377_v46, 0.0  ;;  %v401_v58 = vmul.f32 0.2, %v377_v46 }
  0xc9   :  { %v10542_v9 = vld [vmem:[#allocation9 + $0x5e4] sm:$0xf0] }
  0xca   :  { %v405_v60 = vsel %vm395_vm4, %v364_v45, %v400_v57  ;;  %v406_v61 = vsel %vm396_vm5, %v377_v46, %v401_v58  ;;  %2456 = vmatpush.bf16.msrb.mxu1 %v7972_v52  ;;  %2469 = vmatpush.bf16.msrb.mxu2 %v8228_v53  ;;  %v7144_v45 = vor.u32 %v10390_v31, %v7143_v30  ;;  %v10553_v53 = vld [vmem:[#allocation9 + $0x644] sm:$0xf]  ;;  %v10366_v18 = vld [vmem:[#allocation9 + $0x64] sm:$0xf0] }
  0xcb   :  { %v11554_v2 = vpack.c.bf16 %v405_v60, %v405_v60  ;;  %v11556_v3 = vpack.c.bf16 %v406_v61, %v406_v61  ;;  %v7400_v46 = vor.u32 %v10454_v35, %v7399_v32  ;;  %v8100_v52 = vor.u32 %v10625_v42, %v8097_v43  ;;  %v8065_v57 = vld [vmem:[#allocation9 + $0x860] sm:$0xf0]  ;;  %v7079_v60 = vld [vmem:[#allocation9 + $0x88] sm:$0xf]  ;;  %v7241_v35 = vld [vmem:[#allocation9 + $0x1e8] sm:$0xf0] }
  0xcc   :  { %v7112_v58 = vor.u32 %v10382_v49, %v7111_v47  ;;  %v7812_v61 = vor.u32 %v10553_v53, %v7809_v54  ;;  %v8068_v1 = vor.u32 %v10617_v56, %v8065_v57  ;;  %v7752_v22 = vor.u32 %v10542_v9, %v7751_v8  ;;  %v10534_v25 = vld [vmem:[#allocation9 + $0x5a4] sm:$0xf0] }
  0xcd   :  { %v365_v11 = vpop.f32.mrf.mxu2  ;;  %v378_v12 = vpop.f32.mrf.mxu3  ;;  %2385 = vmatmul.bf16.vlgmr.msrb.gmra.mxu3 %v11554_v2  ;;  %2398 = vmatmul.bf16.vlgmr.msra.gmra.mxu0 %v11556_v3  ;;  %v7975_v26 = vld [vmem:[#allocation9 + $0x788] sm:$0xf] }
  0xce   :  { %2481 = vmatpush.bf16.msrb.mxu3 %v7240_v59  ;;  %2494 = vmatpush.bf16.msra.mxu0 %v7496_v62  ;;  %v7368_v59 = vor.u32 %v10446_v51, %v7367_v50  ;;  %v10374_v62 = vld [vmem:[#allocation9 + $0xa4] sm:$0xf0]  ;;  %v10402_v51 = vld [vmem:[#allocation9 + $0x18c] sm:$0xf] }
  0xcf   :  { %2457 = vmatpush.bf16.msrb.mxu1 %v7940_v63  ;;  %2470 = vmatpush.bf16.msrb.mxu2 %v8196_v4  ;;  %v7335_v63 = vld [vmem:[#allocation9 + $0x288] sm:$0xf]  ;;  %v10545_v4 = vld [vmem:[#allocation9 + $0x604] sm:$0xf]  ;;  %v7080_v10 = vor.u32 %v10374_v62, %v7079_v60 }
  0xd0   :  { %v7336_v11 = vor.u32 %v10438_v0, %v7335_v63  ;;  %v8007_v12 = vld [vmem:[#allocation9 + $0x7c8] sm:$0xf]  ;;  %v10394_v63 = vld [vmem:[#allocation9 + $0x14c] sm:$0xf] }
  0xd1   :  { %v389_v24 = vpop.f32.mrf.mxu0  ;;  %v10598_v14 = vld [vmem:[#allocation9 + $0x7a4] sm:$0xf0]  ;;  %v7177_v0 = vld [vmem:[#allocation9 + $0x168] sm:$0xf0] }
  0xd2   :  { %v390_v27 = vadd.f32 %v389_v24, %v185_v13  ;;  %2482 = vmatpush.bf16.msrb.mxu3 %v7208_v15  ;;  %2495 = vmatpush.bf16.msra.mxu0 %v7464_v16  ;;  %v10606_v13 = vld [vmem:[#allocation9 + $0x7e4] sm:$0xf0]  ;;  %v7780_v16 = vor.u32 %v10545_v4, %v7777_v5  ;;  %v7976_v39 = vor.u32 %v10598_v14, %v7975_v26 }
  0xd3   :  { %2458 = vmatpush.bf16.msrb.mxu1 %v7908_v19  ;;  %2471 = vmatpush.bf16.msrb.mxu2 %v8164_v20  ;;  %v7047_v15 = vld [vmem:[#allocation9 + $0x48] sm:$0xf]  ;;  %v8008_v23 = vor.u32 %v10606_v13, %v8007_v12  ;;  %v10386_v13 = vld [vmem:[#allocation9 + $0x10c] sm:$0xf] }
  0xd4   :  { %vm397_vm6 = vcmp.gt.f32.partialorder %v390_v27, 0.0  ;;  %v402_v33 = vmul.f32 0.2, %v390_v27  ;;  %v7303_v19 = vld [vmem:[#allocation9 + $0x248] sm:$0xf] }
  0xd5   :  { %2424 = vmatmul.bf16.vlgmr.msra.gmra.mxu2 %v11548_v36  ;;  %v10430_v20 = vld [vmem:[#allocation9 + $0x264] sm:$0xf0] }
  0xd6   :  { %v407_v41 = vsel %vm397_vm6, %v390_v27, %v402_v33  ;;  %2483 = vmatpush.bf16.msrb.mxu3 %v7176_v17  ;;  %2496 = vmatpush.bf16.msra.mxu0 %v7432_v29  ;;  %v7719_v24 = vld [vmem:[#allocation9 + $0x588] sm:$0xf]  ;;  %v7048_v27 = vor.u32 %v10366_v18, %v7047_v15  ;;  %v7304_v28 = vor.u32 %v10430_v20, %v7303_v19  ;;  %v7145_v15 = vld [vmem:[#allocation9 + $0x128] sm:$0xf0] }
  0xd7   :  { %v11561_v44 = vpack.c.bf16 %v407_v41, %v407_v41  ;;  %2459 = vmatpush.bf16.msrb.mxu1 %v7876_v34  ;;  %2472 = vmatpush.bf16.msrb.mxu2 %v8132_v38  ;;  %v7015_v17 = vld [vmem:[#allocation9 + $0x8] sm:$0xf]  ;;  %v10410_v34 = vld [vmem:[#allocation9 + $0x1cc] sm:$0xf]  ;;  %v7720_v38 = vor.u32 %v10534_v25, %v7719_v24  ;;  %v7148_v24 = vor.u32 %v10386_v13, %v7145_v15 }
  0xd8   :  { %v10358_v29 = vld [vmem:[#allocation9 + $0x24] sm:$0xf0]  ;;  %v8265_v13 = vld [vmem:[#allocation9 + $0x9e8] sm:$0xf0] }
  0xd9   :  { %2411 = vmatmul.bf16.vlgmr.msra.gmra.mxu1 %v11561_v44  ;;  %v391_v55 = vpop.f32.mrf.mxu0  ;;  %v7271_v30 = vld [vmem:[#allocation9 + $0x208] sm:$0xf]  ;;  %v7016_v41 = vor.u32 %v10358_v29, %v7015_v17 }
  0xda   :  { %2484 = vmatpush.bf16.msrb.mxu3 %v7144_v45  ;;  %2497 = vmatpush.bf16.msra.mxu0 %v7400_v46  ;;  %v10422_v31 = vld [vmem:[#allocation9 + $0x224] sm:$0xf0] }
  0xdb   :  { %2460 = vmatpush.bf16.msrb.mxu1 %v7844_v48  ;;  %2473 = vmatpush.bf16.msrb.mxu2 %v8100_v52  ;;  %v8263_v32 = vld [vmem:[#allocation9 + $0x9c8] sm:$0xf]  ;;  %v7272_v42 = vor.u32 %v10422_v31, %v7271_v30  ;;  %v7244_v48 = vor.u32 %v10410_v34, %v7241_v35  ;;  %v7209_v52 = vld [vmem:[#allocation9 + $0x1a8] sm:$0xf0] }
  0xdc   :  { %v10670_v33 = vld [vmem:[#allocation9 + $0x9e4] sm:$0xf0]  ;;  %v7212_v60 = vor.u32 %v10402_v51, %v7209_v52  ;;  %v10538_v52 = vld [vmem:[#allocation9 + $0x5cc] sm:$0xf] }
  0xdd   :  { %2437 = vmatmul.bf16.vlgmr.msra.gmra.mxu3 %v11550_v37  ;;  %2450 = vmatmul.bf16.vlgmr.msrb.gmra.mxu0 %v11554_v2  ;;  %v7687_v40 = vld [vmem:[#allocation9 + $0x548] sm:$0xf]  ;;  %v8264_v47 = vor.u32 %v10670_v33, %v8263_v32 }
  0xde   :  { %2485 = vmatpush.bf16.msrb.mxu3 %v7112_v58  ;;  %2498 = vmatpush.bf16.msra.mxu0 %v7368_v59  ;;  %v10526_v43 = vld [vmem:[#allocation9 + $0x564] sm:$0xf0] }
  0xdf   :  { %2461 = vmatpush.bf16.msrb.mxu1 %v7812_v61  ;;  %2474 = vmatpush.bf16.msrb.mxu2 %v8068_v1  ;;  %v7943_v45 = vld [vmem:[#allocation9 + $0x748] sm:$0xf]  ;;  %v7688_v53 = vor.u32 %v10526_v43, %v7687_v40  ;;  %v7081_v40 = vld [vmem:[#allocation9 + $0xa8] sm:$0xf0] }
  0xe0   :  { %v10590_v46 = vld [vmem:[#allocation9 + $0x764] sm:$0xf0] }
  0xe1   :  { %v8231_v49 = vld [vmem:[#allocation9 + $0x988] sm:$0xf]  ;;  %v7944_v54 = vor.u32 %v10590_v46, %v7943_v45 }
  0xe2   :  { %2486 = vmatpush.bf16.msrb.mxu3 %v7080_v10  ;;  %2499 = vmatpush.bf16.msra.mxu0 %v7336_v11  ;;  %v10662_v50 = vld [vmem:[#allocation9 + $0x9a4] sm:$0xf0]  ;;  %v7180_v10 = vor.u32 %v10394_v63, %v7177_v0  ;;  %v7465_v63 = vld [vmem:[#allocation9 + $0x3a8] sm:$0xf0] }
  0xe3   :  { %2462 = vmatpush.bf16.msrb.mxu1 %v7780_v16  ;;  %2475 = vmatpush.bf16.msrb.mxu2 %v8036_v21  ;;  %v7655_v55 = vld [vmem:[#allocation9 + $0x508] sm:$0xf]  ;;  %v8232_v59 = vor.u32 %v10662_v50, %v8231_v49  ;;  %v7497_v49 = vld [vmem:[#allocation9 + $0x3e8] sm:$0xf0] }
  0xe4   :  { %v10518_v56 = vld [vmem:[#allocation9 + $0x524] sm:$0xf0]  ;;  %v10530_v0 = vld [vmem:[#allocation9 + $0x58c] sm:$0xf] }
  0xe5   :  { %v7911_v57 = vld [vmem:[#allocation9 + $0x708] sm:$0xf]  ;;  %v7656_v1 = vor.u32 %v10518_v56, %v7655_v55  ;;  %v10362_v56 = vld [vmem:[#allocation9 + $0x4c] sm:$0xf] }
  0xe6   :  { %2487 = vmatpush.bf16.msrb.mxu3 %v7048_v27  ;;  %2500 = vmatpush.bf16.msra.mxu0 %v7304_v28  ;;  %v10582_v58 = vld [vmem:[#allocation9 + $0x724] sm:$0xf0]  ;;  %v10378_v27 = vld [vmem:[#allocation9 + $0xcc] sm:$0xf] }
  0xe7   :  { %2507 = vmatpush.bf16.msra.mxu1 %v7752_v22  ;;  %2520 = vmatpush.bf16.msra.mxu2 %v8008_v23  ;;  %v8199_v61 = vld [vmem:[#allocation9 + $0x948] sm:$0xf]  ;;  %v7912_v4 = vor.u32 %v10582_v58, %v7911_v57  ;;  %v7113_v28 = vld [vmem:[#allocation9 + $0xe8] sm:$0xf0] }
  0xe8   :  { %2476 = vmatmul.bf16.vlgmr.msrb.gmra.mxu2 %v11561_v44  ;;  %v10654_v62 = vld [vmem:[#allocation9 + $0x964] sm:$0xf0]  ;;  %v7116_v34 = vor.u32 %v10378_v27, %v7113_v28  ;;  %v7049_v57 = vld [vmem:[#allocation9 + $0x68] sm:$0xf0] }
  0xe9   :  { %2463 = vmatmul.bf16.vlgmr.msrb.gmra.mxu1 %v11556_v3  ;;  %v7623_v5 = vld [vmem:[#allocation9 + $0x4c8] sm:$0xf]  ;;  %v8200_v9 = vor.u32 %v10654_v62, %v8199_v61  ;;  %v10466_v62 = vld [vmem:[#allocation9 + $0x38c] sm:$0xf] }
  0xea   :  { %2488 = vmatpush.bf16.msrb.mxu3 %v7016_v41  ;;  %2501 = vmatpush.bf16.msra.mxu0 %v7272_v42  ;;  %v10510_v6 = vld [vmem:[#allocation9 + $0x4e4] sm:$0xf0]  ;;  %v7468_v15 = vor.u32 %v10466_v62, %v7465_v63  ;;  %v7977_v27 = vld [vmem:[#allocation9 + $0x7a8] sm:$0xf0] }
  0xeb   :  { %2508 = vmatpush.bf16.msra.mxu1 %v7720_v38  ;;  %2521 = vmatpush.bf16.msra.mxu2 %v7976_v39  ;;  %v7879_v7 = vld [vmem:[#allocation9 + $0x6c8] sm:$0xf]  ;;  %v7624_v16 = vor.u32 %v10510_v6, %v7623_v5  ;;  %v10370_v39 = vld [vmem:[#allocation9 + $0x8c] sm:$0xf] }
  0xec   :  { %v10574_v8 = vld [vmem:[#allocation9 + $0x6e4] sm:$0xf0]  ;;  %v7084_v51 = vor.u32 %v10370_v39, %v7081_v40  ;;  %v7721_v5 = vld [vmem:[#allocation9 + $0x5a8] sm:$0xf0] }
  0xed   :  { %2489 = vmatmul.bf16.vlgmr.msrb.gmra.mxu3 %v11548_v36  ;;  %2502 = vmatmul.bf16.vlgmr.msra.gmra.mxu0 %v11550_v37  ;;  %v8167_v11 = vld [vmem:[#allocation9 + $0x908] sm:$0xf]  ;;  %v7880_v18 = vor.u32 %v10574_v8, %v7879_v7  ;;  %v10354_v8 = vld [vmem:[#allocation9 + $0xc] sm:$0xf] }
  0xee   :  { %2533 = vmatpush.bf16.msra.mxu3 %v8264_v47  ;;  %2546 = vmatpush.bf16.msrb.mxu0 %v7244_v48  ;;  %v10646_v12 = vld [vmem:[#allocation9 + $0x924] sm:$0xf0]  ;;  %v10474_v48 = vld [vmem:[#allocation9 + $0x3cc] sm:$0xf] }
  0xef   :  { %2509 = vmatpush.bf16.msra.mxu1 %v7688_v53  ;;  %2522 = vmatpush.bf16.msra.mxu2 %v7944_v54  ;;  %v7591_v19 = vld [vmem:[#allocation9 + $0x488] sm:$0xf]  ;;  %v8168_v23 = vor.u32 %v10646_v12, %v8167_v11  ;;  %v7753_v53 = vld [vmem:[#allocation9 + $0x5e8] sm:$0xf0] }
  0xf0   :  { %v10502_v20 = vld [vmem:[#allocation9 + $0x4a4] sm:$0xf0]  ;;  %v7756_v61 = vor.u32 %v10538_v52, %v7753_v53  ;;  %v8009_v11 = vld [vmem:[#allocation9 + $0x7e8] sm:$0xf0] }
  0xf1   :  { %v7847_v21 = vld [vmem:[#allocation9 + $0x688] sm:$0xf]  ;;  %v7592_v14 = vor.u32 %v10502_v20, %v7591_v19  ;;  %v10666_v12 = vld [vmem:[#allocation9 + $0x9cc] sm:$0xf] }
  0xf2   :  { %2534 = vmatpush.bf16.msra.mxu3 %v8232_v59  ;;  %2547 = vmatpush.bf16.msrb.mxu0 %v7212_v60  ;;  %v10566_v22 = vld [vmem:[#allocation9 + $0x6a4] sm:$0xf0]  ;;  %v7500_v60 = vor.u32 %v10474_v48, %v7497_v49  ;;  %v10458_v20 = vld [vmem:[#allocation9 + $0x34c] sm:$0xf] }
  0xf3   :  { %2510 = vmatpush.bf16.msra.mxu1 %v7656_v1  ;;  %2523 = vmatpush.bf16.msra.mxu2 %v7912_v4  ;;  %v8135_v25 = vld [vmem:[#allocation9 + $0x8c8] sm:$0xf]  ;;  %v7848_v17 = vor.u32 %v10566_v22, %v7847_v21  ;;  %v7052_v4 = vor.u32 %v10362_v56, %v7049_v57  ;;  %v7433_v21 = vld [vmem:[#allocation9 + $0x368] sm:$0xf0] }
  0xf4   :  { %v10638_v26 = vld [vmem:[#allocation9 + $0x8e4] sm:$0xf0]  ;;  %v10658_v28 = vld [vmem:[#allocation9 + $0x98c] sm:$0xf] }
  0xf5   :  { %v7559_v29 = vld [vmem:[#allocation9 + $0x448] sm:$0xf]  ;;  %v8136_v33 = vor.u32 %v10638_v26, %v8135_v25  ;;  %v7689_v25 = vld [vmem:[#allocation9 + $0x568] sm:$0xf0] }
  0xf6   :  { %2535 = vmatpush.bf16.msra.mxu3 %v8200_v9  ;;  %2548 = vmatpush.bf16.msrb.mxu0 %v7180_v10  ;;  %v10494_v30 = vld [vmem:[#allocation9 + $0x464] sm:$0xf0]  ;;  %v7017_v9 = vld [vmem:[#allocation9 + $0x28] sm:$0xf0] }
  0xf7   :  { %2511 = vmatpush.bf16.msra.mxu1 %v7624_v16  ;;  %2524 = vmatpush.bf16.msra.mxu2 %v7880_v18  ;;  %v7815_v31 = vld [vmem:[#allocation9 + $0x648] sm:$0xf]  ;;  %v7560_v41 = vor.u32 %v10494_v30, %v7559_v29  ;;  %v10602_v10 = vld [vmem:[#allocation9 + $0x7cc] sm:$0xf]  ;;  %v7724_v16 = vor.u32 %v10530_v0, %v7721_v5  ;;  %v7020_v19 = vor.u32 %v10354_v8, %v7017_v9 }
  0xf8   :  { %v10558_v32 = vld [vmem:[#allocation9 + $0x664] sm:$0xf0]  ;;  %v8012_v22 = vor.u32 %v10602_v10, %v8009_v11  ;;  %v10594_v26 = vld [vmem:[#allocation9 + $0x78c] sm:$0xf] }
  0xf9   :  { %v8103_v35 = vld [vmem:[#allocation9 + $0x888] sm:$0xf]  ;;  %v7816_v42 = vor.u32 %v10558_v32, %v7815_v31  ;;  %v10450_v30 = vld [vmem:[#allocation9 + $0x30c] sm:$0xf]  ;;  %v7980_v32 = vor.u32 %v10594_v26, %v7977_v27  ;;  %v7247_v27 = vld [vmem:[#allocation9 + $0x1d0] sm:$0xf] }
  0xfa   :  { %2536 = vmatpush.bf16.msra.mxu3 %v8168_v23  ;;  %2549 = vmatpush.bf16.msrb.mxu0 %v7148_v24  ;;  %v10630_v38 = vld [vmem:[#allocation9 + $0x8a4] sm:$0xf0]  ;;  %v8268_v23 = vor.u32 %v10666_v12, %v8265_v13  ;;  %v10522_v24 = vld [vmem:[#allocation9 + $0x54c] sm:$0xf] }
  0xfb   :  { %2512 = vmatpush.bf16.msra.mxu1 %v7592_v14  ;;  %2525 = vmatpush.bf16.msra.mxu2 %v7848_v17  ;;  %v7527_v43 = vld [vmem:[#allocation9 + $0x408] sm:$0xf]  ;;  %v8104_v50 = vor.u32 %v10630_v38, %v8103_v35  ;;  %v8233_v14 = vld [vmem:[#allocation9 + $0x9a8] sm:$0xf0]  ;;  %v7436_v17 = vor.u32 %v10458_v20, %v7433_v21  ;;  %v7692_v29 = vor.u32 %v10522_v24, %v7689_v25 }
  0xfc   :  { %v10486_v45 = vld [vmem:[#allocation9 + $0x424] sm:$0xf0]  ;;  %v7401_v31 = vld [vmem:[#allocation9 + $0x328] sm:$0xf0] }
  0xfd   :  { %v7783_v46 = vld [vmem:[#allocation9 + $0x608] sm:$0xf]  ;;  %v7528_v58 = vor.u32 %v10486_v45, %v7527_v43  ;;  %v7657_v35 = vld [vmem:[#allocation9 + $0x528] sm:$0xf0] }
  0xfe   :  { %v10550_v47 = vld [vmem:[#allocation9 + $0x624] sm:$0xf0]  ;;  %2537 = vmatpush.bf16.msra.mxu3 %v8136_v33  ;;  %2550 = vmatpush.bf16.msrb.mxu0 %v7116_v34  ;;  %v8236_v33 = vor.u32 %v10658_v28, %v8233_v14  ;;  %v10514_v34 = vld [vmem:[#allocation9 + $0x50c] sm:$0xf]  ;;  %v10415_v28 = vld [vmem:[#allocation9 + $0x1ec] sm:$0xf0] }
  0xff   :  { %v8071_v54 = vld [vmem:[#allocation9 + $0x848] sm:$0xf]  ;;  %2513 = vmatpush.bf16.msra.mxu1 %v7560_v41  ;;  %2526 = vmatpush.bf16.msra.mxu2 %v7816_v42  ;;  %v7784_v59 = vor.u32 %v10550_v47, %v7783_v46  ;;  %v10586_v38 = vld [vmem:[#allocation9 + $0x74c] sm:$0xf]  ;;  %v7404_v42 = vor.u32 %v10450_v30, %v7401_v31  ;;  %v7660_v43 = vor.u32 %v10514_v34, %v7657_v35  ;;  %v7503_v14 = vld [vmem:[#allocation9 + $0x3d0] sm:$0xf] }
 0x100   :  { %v10622_v55 = vld [vmem:[#allocation9 + $0x864] sm:$0xf0]  ;;  %v7945_v39 = vld [vmem:[#allocation9 + $0x768] sm:$0xf0]  ;;  %v7248_v35 = vor.u32 %v10415_v28, %v7247_v27  ;;  %v10447_v27 = vld [vmem:[#allocation9 + $0x2ec] sm:$0xf0] }
 0x101   :  { %v8072_v1 = vor.u32 %v10622_v55, %v8071_v54  ;;  %v8039_v6 = vld [vmem:[#allocation9 + $0x808] sm:$0xf]  ;;  %v10650_v40 = vld [vmem:[#allocation9 + $0x94c] sm:$0xf]  ;;  %v7948_v47 = vor.u32 %v10586_v38, %v7945_v39  ;;  %v7215_v39 = vld [vmem:[#allocation9 + $0x190] sm:$0xf] }
 0x102   :  { %2538 = vmatpush.bf16.msra.mxu3 %v8104_v50  ;;  %2551 = vmatpush.bf16.msrb.mxu0 %v7084_v51  ;;  %v10614_v7 = vld [vmem:[#allocation9 + $0x824] sm:$0xf0]  ;;  %v8201_v41 = vld [vmem:[#allocation9 + $0x968] sm:$0xf0]  ;;  %v7663_v28 = vld [vmem:[#allocation9 + $0x510] sm:$0xf] }
 0x103   :  { %2514 = vmatpush.bf16.msra.mxu1 %v7528_v58  ;;  %2527 = vmatpush.bf16.msra.mxu2 %v7784_v59  ;;  %v8040_v18 = vor.u32 %v10614_v7, %v8039_v6  ;;  %v10442_v45 = vld [vmem:[#allocation9 + $0x2cc] sm:$0xf]  ;;  %v8204_v48 = vor.u32 %v10650_v40, %v8201_v41  ;;  %v10407_v40 = vld [vmem:[#allocation9 + $0x1ac] sm:$0xf0] }
 0x104   :  { %v7369_v46 = vld [vmem:[#allocation9 + $0x2e8] sm:$0xf0]  ;;  %v7471_v41 = vld [vmem:[#allocation9 + $0x390] sm:$0xf] }
 0x105   :  { %v10506_v49 = vld [vmem:[#allocation9 + $0x4cc] sm:$0xf]  ;;  %v7372_v55 = vor.u32 %v10442_v45, %v7369_v46  ;;  %v10471_v45 = vld [vmem:[#allocation9 + $0x3ac] sm:$0xf0] }
 0x106   :  { %2539 = vmatpush.bf16.msra.mxu3 %v8072_v1  ;;  %2552 = vmatpush.bf16.msrb.mxu0 %v7052_v4  ;;  %v7625_v50 = vld [vmem:[#allocation9 + $0x4e8] sm:$0xf0] }
 0x107   :  { %2559 = vmatpush.bf16.msrb.mxu1 %v7500_v60  ;;  %2572 = vmatpush.bf16.msrb.mxu2 %v7756_v61  ;;  %v10578_v51 = vld [vmem:[#allocation9 + $0x70c] sm:$0xf]  ;;  %v7628_v56 = vor.u32 %v10506_v49, %v7625_v50  ;;  %v7759_v50 = vld [vmem:[#allocation9 + $0x5d0] sm:$0xf] }
 0x108   :  { %2515 = vmatmul.bf16.vlgmr.msra.gmra.mxu1 %v11554_v2  ;;  %2528 = vmatmul.bf16.vlgmr.msra.gmra.mxu2 %v11556_v3  ;;  %v7913_v52 = vld [vmem:[#allocation9 + $0x728] sm:$0xf0] }
 0x109   :  { %v10642_v53 = vld [vmem:[#allocation9 + $0x90c] sm:$0xf]  ;;  %v7916_v59 = vor.u32 %v10578_v51, %v7913_v52  ;;  %v10543_v51 = vld [vmem:[#allocation9 + $0x5ec] sm:$0xf0] }
 0x10a   :  { %2540 = vmatpush.bf16.msra.mxu3 %v8040_v18  ;;  %2553 = vmatpush.bf16.msrb.mxu0 %v7020_v19  ;;  %v8169_v54 = vld [vmem:[#allocation9 + $0x928] sm:$0xf0]  ;;  %v8015_v52 = vld [vmem:[#allocation9 + $0x7d0] sm:$0xf] }
 0x10b   :  { %2560 = vmatpush.bf16.msrb.mxu1 %v7468_v15  ;;  %2573 = vmatpush.bf16.msrb.mxu2 %v7724_v16  ;;  %v10434_v57 = vld [vmem:[#allocation9 + $0x28c] sm:$0xf]  ;;  %v8172_v60 = vor.u32 %v10642_v53, %v8169_v54  ;;  %v10607_v53 = vld [vmem:[#allocation9 + $0x7ec] sm:$0xf0]  ;;  %v7216_v54 = vor.u32 %v10407_v40, %v7215_v39 }
 0x10c   :  { %v7337_v58 = vld [vmem:[#allocation9 + $0x2a8] sm:$0xf0]  ;;  %v10439_v39 = vld [vmem:[#allocation9 + $0x2ac] sm:$0xf0] }
 0x10d   :  { %2541 = vmatmul.bf16.vlgmr.msra.gmra.mxu3 %v11561_v44  ;;  %2554 = vmatmul.bf16.vlgmr.msrb.gmra.mxu0 %v11548_v36  ;;  %v10498_v61 = vld [vmem:[#allocation9 + $0x48c] sm:$0xf]  ;;  %v7340_v5 = vor.u32 %v10434_v57, %v7337_v58  ;;  %v7183_v58 = vld [vmem:[#allocation9 + $0x150] sm:$0xf] }
 0x10e   :  { %2585 = vmatpush.bf16.msrb.mxu3 %v8012_v22  ;;  %2598 = vmatpush.bf16.msra.mxu0 %v8268_v23  ;;  %v7593_v62 = vld [vmem:[#allocation9 + $0x4a8] sm:$0xf0]  ;;  %v7631_v40 = vld [vmem:[#allocation9 + $0x4d0] sm:$0xf] }
 0x10f   :  { %2561 = vmatpush.bf16.msrb.mxu1 %v7436_v17  ;;  %2574 = vmatpush.bf16.msrb.mxu2 %v7692_v29  ;;  %v10570_v63 = vld [vmem:[#allocation9 + $0x6cc] sm:$0xf]  ;;  %v7596_v6 = vor.u32 %v10498_v61, %v7593_v62  ;;  %v10479_v17 = vld [vmem:[#allocation9 + $0x3ec] sm:$0xf0]  ;;  %v8016_v61 = vor.u32 %v10607_v53, %v8015_v52 }
 0x110   :  { %v7881_v0 = vld [vmem:[#allocation9 + $0x6e8] sm:$0xf0]  ;;  %v7504_v38 = vor.u32 %v10479_v17, %v7503_v14  ;;  %v7439_v62 = vld [vmem:[#allocation9 + $0x350] sm:$0xf] }
 0x111   :  { %v10634_v1 = vld [vmem:[#allocation9 + $0x8cc] sm:$0xf]  ;;  %v7884_v9 = vor.u32 %v10570_v63, %v7881_v0  ;;  %v10463_v63 = vld [vmem:[#allocation9 + $0x36c] sm:$0xf0] }
 0x112   :  { %2586 = vmatpush.bf16.msrb.mxu3 %v7980_v32  ;;  %2599 = vmatpush.bf16.msra.mxu0 %v8236_v33  ;;  %v8137_v4 = vld [vmem:[#allocation9 + $0x8e8] sm:$0xf0]  ;;  %v7727_v0 = vld [vmem:[#allocation9 + $0x590] sm:$0xf] }
 0x113   :  { %2562 = vmatpush.bf16.msrb.mxu1 %v7404_v42  ;;  %2575 = vmatpush.bf16.msrb.mxu2 %v7660_v43  ;;  %v10426_v7 = vld [vmem:[#allocation9 + $0x24c] sm:$0xf]  ;;  %v8140_v10 = vor.u32 %v10634_v1, %v8137_v4  ;;  %v10535_v1 = vld [vmem:[#allocation9 + $0x5ac] sm:$0xf0] }
 0x114   :  { %v7305_v8 = vld [vmem:[#allocation9 + $0x268] sm:$0xf0]  ;;  %v7983_v4 = vld [vmem:[#allocation9 + $0x790] sm:$0xf] }
 0x115   :  { %v10490_v11 = vld [vmem:[#allocation9 + $0x44c] sm:$0xf]  ;;  %v7308_v19 = vor.u32 %v10426_v7, %v7305_v8  ;;  %v7440_v7 = vor.u32 %v10463_v63, %v7439_v62  ;;  %v7151_v8 = vld [vmem:[#allocation9 + $0x110] sm:$0xf] }
 0x116   :  { %2587 = vmatpush.bf16.msrb.mxu3 %v7948_v47  ;;  %2600 = vmatpush.bf16.msra.mxu0 %v8204_v48  ;;  %v7561_v12 = vld [vmem:[#allocation9 + $0x468] sm:$0xf0]  ;;  %v10519_v14 = vld [vmem:[#allocation9 + $0x52c] sm:$0xf0] }
 0x117   :  { %2563 = vmatpush.bf16.msrb.mxu1 %v7372_v55  ;;  %2576 = vmatpush.bf16.msrb.mxu2 %v7628_v56  ;;  %v10562_v13 = vld [vmem:[#allocation9 + $0x68c] sm:$0xf]  ;;  %v7564_v20 = vor.u32 %v10490_v11, %v7561_v12  ;;  %v7472_v55 = vor.u32 %v10471_v45, %v7471_v41  ;;  %v7407_v12 = vld [vmem:[#allocation9 + $0x310] sm:$0xf] }
 0x118   :  { %v7849_v15 = vld [vmem:[#allocation9 + $0x6a8] sm:$0xf0]  ;;  %v7919_v17 = vld [vmem:[#allocation9 + $0x710] sm:$0xf] }
 0x119   :  { %v10626_v16 = vld [vmem:[#allocation9 + $0x88c] sm:$0xf]  ;;  %v7852_v24 = vor.u32 %v10562_v13, %v7849_v15  ;;  %v10455_v13 = vld [vmem:[#allocation9 + $0x32c] sm:$0xf0] }
 0x11a   :  { %2588 = vmatpush.bf16.msrb.mxu3 %v7916_v59  ;;  %2601 = vmatpush.bf16.msra.mxu0 %v8172_v60  ;;  %v8105_v18 = vld [vmem:[#allocation9 + $0x8a8] sm:$0xf0]  ;;  %v10399_v59 = vld [vmem:[#allocation9 + $0x16c] sm:$0xf0]  ;;  %v7760_v60 = vor.u32 %v10543_v51, %v7759_v50 }
 0x11b   :  { %2564 = vmatpush.bf16.msrb.mxu1 %v7340_v5  ;;  %2577 = vmatpush.bf16.msrb.mxu2 %v7596_v6  ;;  %v10418_v21 = vld [vmem:[#allocation9 + $0x20c] sm:$0xf]  ;;  %v8108_v25 = vor.u32 %v10626_v16, %v8105_v18  ;;  %v10599_v5 = vld [vmem:[#allocation9 + $0x7ac] sm:$0xf0]  ;;  %v7184_v6 = vor.u32 %v10399_v59, %v7183_v58 }
 0x11c   :  { %v7273_v22 = vld [vmem:[#allocation9 + $0x228] sm:$0xf0]  ;;  %v7984_v11 = vor.u32 %v10599_v5, %v7983_v4  ;;  %v7695_v15 = vld [vmem:[#allocation9 + $0x550] sm:$0xf]  ;;  %v10411_v5 = vld [vmem:[#allocation9 + $0x1d4] sm:$0xf] }
 0x11d   :  { %v10482_v23 = vld [vmem:[#allocation9 + $0x40c] sm:$0xf]  ;;  %v7276_v33 = vor.u32 %v10418_v21, %v7273_v22  ;;  %v10527_v16 = vld [vmem:[#allocation9 + $0x56c] sm:$0xf0]  ;;  %v7408_v21 = vor.u32 %v10455_v13, %v7407_v12 }
 0x11e   :  { %2589 = vmatpush.bf16.msrb.mxu3 %v7884_v9  ;;  %2602 = vmatpush.bf16.msra.mxu0 %v8140_v10  ;;  %v7529_v26 = vld [vmem:[#allocation9 + $0x428] sm:$0xf0]  ;;  %v10391_v9 = vld [vmem:[#allocation9 + $0x12c] sm:$0xf0]  ;;  %v7728_v10 = vor.u32 %v10535_v1, %v7727_v0 }
 0x11f   :  { %v10554_v29 = vld [vmem:[#allocation9 + $0x64c] sm:$0xf]  ;;  %2565 = vmatpush.bf16.msrb.mxu1 %v7308_v19  ;;  %2578 = vmatpush.bf16.msrb.mxu2 %v7564_v20  ;;  %v7532_v34 = vor.u32 %v10482_v23, %v7529_v26  ;;  %v7951_v18 = vld [vmem:[#allocation9 + $0x750] sm:$0xf]  ;;  %v7152_v20 = vor.u32 %v10391_v9, %v7151_v8 }
 0x120   :  { %v7817_v30 = vld [vmem:[#allocation9 + $0x668] sm:$0xf0]  ;;  %v10591_v19 = vld [vmem:[#allocation9 + $0x76c] sm:$0xf0] }
 0x121   :  { %v10618_v31 = vld [vmem:[#allocation9 + $0x84c] sm:$0xf]  ;;  %v7820_v42 = vor.u32 %v10554_v29, %v7817_v30  ;;  %v7119_v22 = vld [vmem:[#allocation9 + $0xd0] sm:$0xf] }
 0x122   :  { %v8073_v32 = vld [vmem:[#allocation9 + $0x868] sm:$0xf0]  ;;  %2590 = vmatpush.bf16.msrb.mxu3 %v7852_v24  ;;  %2603 = vmatpush.bf16.msra.mxu0 %v8108_v25  ;;  %v10383_v23 = vld [vmem:[#allocation9 + $0xec] sm:$0xf0]  ;;  %v7696_v24 = vor.u32 %v10527_v16, %v7695_v15  ;;  %v7952_v25 = vor.u32 %v10591_v19, %v7951_v18  ;;  %v10403_v19 = vld [vmem:[#allocation9 + $0x194] sm:$0xf] }
 0x123   :  { %v8076_v43 = vor.u32 %v10618_v31, %v8073_v32  ;;  %v10546_v46 = vld [vmem:[#allocation9 + $0x60c] sm:$0xf]  ;;  %2566 = vmatpush.bf16.msrb.mxu1 %v7276_v33  ;;  %2579 = vmatpush.bf16.msrb.mxu2 %v7532_v34  ;;  %v7375_v26 = vld [vmem:[#allocation9 + $0x2d0] sm:$0xf]  ;;  %v7120_v30 = vor.u32 %v10383_v23, %v7119_v22  ;;  %v7664_v34 = vor.u32 %v10519_v14, %v7663_v28  ;;  %v7217_v22 = vld [vmem:[#allocation9 + $0x1b0] sm:$0xf0] }
 0x124   :  { %v7785_v47 = vld [vmem:[#allocation9 + $0x628] sm:$0xf0]  ;;  %v10583_v29 = vld [vmem:[#allocation9 + $0x72c] sm:$0xf0]  ;;  %v7376_v31 = vor.u32 %v10447_v27, %v7375_v26  ;;  %v10475_v27 = vld [vmem:[#allocation9 + $0x3d4] sm:$0xf] }
 0x125   :  { %v10610_v48 = vld [vmem:[#allocation9 + $0x80c] sm:$0xf]  ;;  %v7788_v56 = vor.u32 %v10546_v46, %v7785_v47  ;;  %v7087_v32 = vld [vmem:[#allocation9 + $0x90] sm:$0xf]  ;;  %v7505_v28 = vld [vmem:[#allocation9 + $0x3f0] sm:$0xf0] }
 0x126   :  { %v8041_v49 = vld [vmem:[#allocation9 + $0x828] sm:$0xf0]  ;;  %2591 = vmatpush.bf16.msrb.mxu3 %v7820_v42  ;;  %2604 = vmatpush.bf16.msra.mxu0 %v8076_v43  ;;  %v10375_v33 = vld [vmem:[#allocation9 + $0xac] sm:$0xf0]  ;;  %v10539_v14 = vld [vmem:[#allocation9 + $0x5d4] sm:$0xf] }
 0x127   :  { %2611 = vmatpush.bf16.msra.mxu1 %v7248_v35  ;;  %2624 = vmatpush.bf16.msra.mxu2 %v7504_v38  ;;  %v8044_v57 = vor.u32 %v10610_v48, %v8041_v49  ;;  %v7920_v35 = vor.u32 %v10583_v29, %v7919_v17  ;;  %v7343_v38 = vld [vmem:[#allocation9 + $0x290] sm:$0xf]  ;;  %v7088_v45 = vor.u32 %v10375_v33, %v7087_v32  ;;  %v7761_v17 = vld [vmem:[#allocation9 + $0x5f0] sm:$0xf0] }
 0x128   :  { %2567 = vmatmul.bf16.vlgmr.msrb.gmra.mxu1 %v11550_v37  ;;  %2580 = vmatmul.bf16.vlgmr.msrb.gmra.mxu2 %v11554_v2  ;;  %v10511_v41 = vld [vmem:[#allocation9 + $0x4ec] sm:$0xf0]  ;;  %v7344_v46 = vor.u32 %v10439_v39, %v7343_v38  ;;  %v7508_v38 = vor.u32 %v10475_v27, %v7505_v28  ;;  %v7764_v39 = vor.u32 %v10539_v14, %v7761_v17  ;;  %v7377_v27 = vld [vmem:[#allocation9 + $0x2f0] sm:$0xf0] }
 0x129   :  { %v7887_v42 = vld [vmem:[#allocation9 + $0x6d0] sm:$0xf]  ;;  %v7632_v49 = vor.u32 %v10511_v41, %v7631_v40  ;;  %v10395_v40 = vld [vmem:[#allocation9 + $0x154] sm:$0xf] }
 0x12a   :  { %2592 = vmatpush.bf16.msrb.mxu3 %v7788_v56  ;;  %2605 = vmatpush.bf16.msra.mxu0 %v8044_v57  ;;  %v10575_v43 = vld [vmem:[#allocation9 + $0x6ec] sm:$0xf0]  ;;  %v7185_v41 = vld [vmem:[#allocation9 + $0x170] sm:$0xf0] }
 0x12b   :  { %2612 = vmatpush.bf16.msra.mxu1 %v7216_v54  ;;  %2625 = vmatpush.bf16.msra.mxu2 %v7472_v55  ;;  %v7055_v47 = vld [vmem:[#allocation9 + $0x50] sm:$0xf]  ;;  %v7888_v50 = vor.u32 %v10575_v43, %v7887_v42  ;;  %v10467_v42 = vld [vmem:[#allocation9 + $0x394] sm:$0xf] }
 0x12c   :  { %v10367_v48 = vld [vmem:[#allocation9 + $0x6c] sm:$0xf0]  ;;  %v7473_v43 = vld [vmem:[#allocation9 + $0x3b0] sm:$0xf0] }
 0x12d   :  { %2593 = vmatmul.bf16.vlgmr.msrb.gmra.mxu3 %v11556_v3  ;;  %2606 = vmatmul.bf16.vlgmr.msra.gmra.mxu0 %v11561_v44  ;;  %v7311_v51 = vld [vmem:[#allocation9 + $0x250] sm:$0xf]  ;;  %v7056_v57 = vor.u32 %v10367_v48, %v7055_v47  ;;  %v10507_v28 = vld [vmem:[#allocation9 + $0x4d4] sm:$0xf] }
 0x12e   :  { %2637 = vmatpush.bf16.msra.mxu3 %v7760_v60  ;;  %2650 = vmatpush.bf16.msrb.mxu0 %v8016_v61  ;;  %v10431_v52 = vld [vmem:[#allocation9 + $0x26c] sm:$0xf0]  ;;  %v7633_v14 = vld [vmem:[#allocation9 + $0x4f0] sm:$0xf0] }
 0x12f   :  { %2613 = vmatpush.bf16.msra.mxu1 %v7184_v6  ;;  %2626 = vmatpush.bf16.msra.mxu2 %v7440_v7  ;;  %v7599_v53 = vld [vmem:[#allocation9 + $0x490] sm:$0xf]  ;;  %v7312_v58 = vor.u32 %v10431_v52, %v7311_v51  ;;  %v7249_v6 = vld [vmem:[#allocation9 + $0x1f0] sm:$0xf0] }
 0x130   :  { %v10503_v54 = vld [vmem:[#allocation9 + $0x4ac] sm:$0xf0]  ;;  %v7252_v15 = vor.u32 %v10411_v5, %v7249_v6  ;;  %v10379_v6 = vld [vmem:[#allocation9 + $0xd4] sm:$0xf] }
 0x131   :  { %v7855_v55 = vld [vmem:[#allocation9 + $0x690] sm:$0xf]  ;;  %v7600_v62 = vor.u32 %v10503_v54, %v7599_v53  ;;  %v7476_v53 = vor.u32 %v10467_v42, %v7473_v43  ;;  %v7345_v43 = vld [vmem:[#allocation9 + $0x2b0] sm:$0xf0] }
 0x132   :  { %2638 = vmatpush.bf16.msra.mxu3 %v7728_v10  ;;  %2651 = vmatpush.bf16.msrb.mxu0 %v7984_v11  ;;  %v10567_v56 = vld [vmem:[#allocation9 + $0x6ac] sm:$0xf0] }
 0x133   :  { %2614 = vmatpush.bf16.msra.mxu1 %v7152_v20  ;;  %2627 = vmatpush.bf16.msra.mxu2 %v7408_v21  ;;  %v7023_v59 = vld [vmem:[#allocation9 + $0x10] sm:$0xf]  ;;  %v7856_v63 = vor.u32 %v10567_v56, %v7855_v55  ;;  %v10387_v55 = vld [vmem:[#allocation9 + $0x114] sm:$0xf] }
 0x134   :  { %v10359_v60 = vld [vmem:[#allocation9 + $0x2c] sm:$0xf0]  ;;  %v7153_v56 = vld [vmem:[#allocation9 + $0x130] sm:$0xf0] }
 0x135   :  { %v7279_v61 = vld [vmem:[#allocation9 + $0x210] sm:$0xf]  ;;  %v7024_v11 = vor.u32 %v10359_v60, %v7023_v59  ;;  %v10523_v59 = vld [vmem:[#allocation9 + $0x554] sm:$0xf] }
 0x136   :  { %2639 = vmatpush.bf16.msra.mxu3 %v7696_v24  ;;  %2652 = vmatpush.bf16.msrb.mxu0 %v7952_v25  ;;  %v10423_v0 = vld [vmem:[#allocation9 + $0x22c] sm:$0xf0]  ;;  %v7697_v60 = vld [vmem:[#allocation9 + $0x570] sm:$0xf0] }
 0x137   :  { %2615 = vmatpush.bf16.msra.mxu1 %v7120_v30  ;;  %2628 = vmatpush.bf16.msra.mxu2 %v7376_v31  ;;  %v8271_v1 = vld [vmem:[#allocation9 + $0x9d0] sm:$0xf]  ;;  %v7280_v12 = vor.u32 %v10423_v0, %v7279_v61  ;;  %v7220_v30 = vor.u32 %v10403_v19, %v7217_v22  ;;  %v7700_v5 = vor.u32 %v10523_v59, %v7697_v60  ;;  %v10667_v60 = vld [vmem:[#allocation9 + $0x9d4] sm:$0xf] }
 0x138   :  { %v10671_v4 = vld [vmem:[#allocation9 + $0x9ec] sm:$0xf0] }
 0x139   :  { %v7567_v7 = vld [vmem:[#allocation9 + $0x450] sm:$0xf]  ;;  %v8272_v13 = vor.u32 %v10671_v4, %v8271_v1 }
 0x13a   :  { %2640 = vmatpush.bf16.msra.mxu3 %v7664_v34  ;;  %2653 = vmatpush.bf16.msrb.mxu0 %v7920_v35  ;;  %v10495_v8 = vld [vmem:[#allocation9 + $0x46c] sm:$0xf0]  ;;  %v11579_v35 = vld [vmem:[#allocation11] sm:$0xff] }
 0x13b   :  { %2616 = vmatpush.bf16.msra.mxu1 %v7088_v45  ;;  %2629 = vmatpush.bf16.msra.mxu2 %v7344_v46  ;;  %v7823_v9 = vld [vmem:[#allocation9 + $0x650] sm:$0xf]  ;;  %v7568_v20 = vor.u32 %v10495_v8, %v7567_v7  ;;  %v10531_v45 = vld [vmem:[#allocation9 + $0x594] sm:$0xf]  ;;  %v735_v47 = vperm.slane %v11579_v35, 0 }
 0x13c   :  { %v10559_v10 = vld [vmem:[#allocation9 + $0x66c] sm:$0xf0]  ;;  %v7729_v46 = vld [vmem:[#allocation9 + $0x5b0] sm:$0xf0] }
 0x13d   :  { %v8239_v16 = vld [vmem:[#allocation9 + $0x990] sm:$0xf]  ;;  %v7824_v21 = vor.u32 %v10559_v10, %v7823_v9  ;;  %v7732_v54 = vor.u32 %v10531_v45, %v7729_v46  ;;  %v7121_v7 = vld [vmem:[#allocation9 + $0xf0] sm:$0xf0] }
 0x13e   :  { %2641 = vmatpush.bf16.msra.mxu3 %v7632_v49  ;;  %2654 = vmatpush.bf16.msrb.mxu0 %v7888_v50  ;;  %v10663_v18 = vld [vmem:[#allocation9 + $0x9ac] sm:$0xf0]  ;;  %v7188_v49 = vor.u32 %v10395_v40, %v7185_v41  ;;  %v10451_v8 = vld [vmem:[#allocation9 + $0x314] sm:$0xf] }
 0x13f   :  { %2617 = vmatpush.bf16.msra.mxu1 %v7056_v57  ;;  %2630 = vmatpush.bf16.msra.mxu2 %v7312_v58  ;;  %v7535_v23 = vld [vmem:[#allocation9 + $0x410] sm:$0xf]  ;;  %v8240_v29 = vor.u32 %v10663_v18, %v8239_v16  ;;  %v10459_v57 = vld [vmem:[#allocation9 + $0x354] sm:$0xf]  ;;  %v7124_v18 = vor.u32 %v10379_v6, %v7121_v7  ;;  %v736_v7 = vperm.slane %v11579_v35, 1 }
 0x140   :  { %v10487_v24 = vld [vmem:[#allocation9 + $0x42c] sm:$0xf0]  ;;  %v7441_v58 = vld [vmem:[#allocation9 + $0x370] sm:$0xf0] }
 0x141   :  { %v7791_v25 = vld [vmem:[#allocation9 + $0x610] sm:$0xf]  ;;  %v7536_v31 = vor.u32 %v10487_v24, %v7535_v23  ;;  %v7444_v4 = vor.u32 %v10459_v57, %v7441_v58  ;;  %v7409_v10 = vld [vmem:[#allocation9 + $0x330] sm:$0xf0] }
 0x142   :  { %2642 = vmatpush.bf16.msra.mxu3 %v7600_v62  ;;  %2655 = vmatpush.bf16.msrb.mxu0 %v7856_v63  ;;  %v10551_v26 = vld [vmem:[#allocation9 + $0x62c] sm:$0xf0]  ;;  %v2360_v50 = vpop.f32.mrf.mxu1  ;;  %v7156_v63 = vor.u32 %v10387_v55, %v7153_v56  ;;  %v7412_v22 = vor.u32 %v10451_v8, %v7409_v10  ;;  %v10371_v24 = vld [vmem:[#allocation9 + $0x94] sm:$0xf] }
 0x143   :  { %2618 = vmatpush.bf16.msra.mxu1 %v7024_v11  ;;  %2631 = vmatpush.bf16.msra.mxu2 %v7280_v12  ;;  %v7792_v32 = vor.u32 %v10551_v26, %v7791_v25  ;;  %v8207_v33 = vld [vmem:[#allocation9 + $0x950] sm:$0xf]  ;;  %v2361_v61 = vadd.f32 %v2360_v50, %v735_v47  ;;  %v10515_v11 = vld [vmem:[#allocation9 + $0x514] sm:$0xf] }
 0x144   :  { %v10655_v34 = vld [vmem:[#allocation9 + $0x96c] sm:$0xf0]  ;;  %v7665_v12 = vld [vmem:[#allocation9 + $0x530] sm:$0xf0] }
 0x145   :  { %v8208_v48 = vor.u32 %v10655_v34, %v8207_v33  ;;  %v8175_v51 = vld [vmem:[#allocation9 + $0x910] sm:$0xf]  ;;  %v7668_v23 = vor.u32 %v10515_v11, %v7665_v12  ;;  %v7089_v25 = vld [vmem:[#allocation9 + $0xb0] sm:$0xf0]  ;;  %v7636_v34 = vor.u32 %v10507_v28, %v7633_v14  ;;  %v10480_v28 = vld [vmem:[#allocation9 + $0x3f4] sm:$0xf0] }
 0x146   :  { %2643 = vmatpush.bf16.msra.mxu3 %v7568_v20  ;;  %2656 = vmatpush.bf16.msrb.mxu0 %v7824_v21  ;;  %v10647_v52 = vld [vmem:[#allocation9 + $0x92c] sm:$0xf0]  ;;  %v10443_v26 = vld [vmem:[#allocation9 + $0x2d4] sm:$0xf] }
 0x147   :  { %2663 = vmatpush.bf16.msrb.mxu1 %v8272_v13  ;;  %2676 = vmatpush.bf16.msrb.mxu2 %v7252_v15  ;;  %v8176_v62 = vor.u32 %v10647_v52, %v8175_v51  ;;  %v8143_v0 = vld [vmem:[#allocation9 + $0x8d0] sm:$0xf]  ;;  %v7380_v33 = vor.u32 %v10443_v26, %v7377_v27  ;;  %v10435_v40 = vld [vmem:[#allocation9 + $0x294] sm:$0xf]  ;;  %v10416_v26 = vld [vmem:[#allocation9 + $0x1f4] sm:$0xf0] }
 0x148   :  { %2619 = vmatmul.bf16.vlgmr.msra.gmra.mxu1 %v11548_v36  ;;  %2632 = vmatmul.bf16.vlgmr.msra.gmra.mxu2 %v11550_v37  ;;  %v10639_v1 = vld [vmem:[#allocation9 + $0x8ec] sm:$0xf0]  ;;  %v2373_v9 = vpop.f32.mrf.mxu2  ;;  %v10499_v45 = vld [vmem:[#allocation9 + $0x494] sm:$0xf]  ;;  %v7511_v27 = vld [vmem:[#allocation9 + $0x3d8] sm:$0xf] }
 0x149   :  { %v2374_v13 = vadd.f32 %v2373_v9, %v2361_v61  ;;  %v8144_v16 = vor.u32 %v10639_v1, %v8143_v0  ;;  %v8111_v20 = vld [vmem:[#allocation9 + $0x890] sm:$0xf]  ;;  %v7601_v46 = vld [vmem:[#allocation9 + $0x4b0] sm:$0xf0] }
 0x14a   :  { %2644 = vmatpush.bf16.msra.mxu3 %v7536_v31  ;;  %2657 = vmatpush.bf16.msrb.mxu0 %v7792_v32  ;;  %v2399_v15 = vpop.f32.mrf.mxu0  ;;  %v2362_v19 = vpop.f32.mrf.mxu1  ;;  %v10631_v21 = vld [vmem:[#allocation9 + $0x8ac] sm:$0xf0]  ;;  %v7604_v55 = vor.u32 %v10499_v45, %v7601_v46  ;;  %v7025_v56 = vld [vmem:[#allocation9 + $0x30] sm:$0xf0]  ;;  %v7479_v45 = vld [vmem:[#allocation9 + $0x398] sm:$0xf] }
 0x14b   :  { %2664 = vmatpush.bf16.msrb.mxu1 %v8240_v29  ;;  %2677 = vmatpush.bf16.msrb.mxu2 %v7220_v30  ;;  %v8112_v17 = vor.u32 %v10631_v21, %v8111_v20  ;;  %v7092_v29 = vor.u32 %v10371_v24, %v7089_v25  ;;  %v8079_v30 = vld [vmem:[#allocation9 + $0x850] sm:$0xf]  ;;  %v10603_v57 = vld [vmem:[#allocation9 + $0x7d4] sm:$0xf]  ;;  %v7255_v25 = vld [vmem:[#allocation9 + $0x1d8] sm:$0xf] }
 0x14c   :  { %v10623_v31 = vld [vmem:[#allocation9 + $0x86c] sm:$0xf0]  ;;  %v8017_v58 = vld [vmem:[#allocation9 + $0x7f0] sm:$0xf0]  ;;  %v10472_v46 = vld [vmem:[#allocation9 + $0x3b4] sm:$0xf0] }
 0x14d   :  { %2645 = vmatmul.bf16.vlgmr.msra.gmra.mxu3 %v11554_v2  ;;  %2658 = vmatmul.bf16.vlgmr.msrb.gmra.mxu0 %v11556_v3  ;;  %v8047_v51 = vld [vmem:[#allocation9 + $0x810] sm:$0xf]  ;;  %v8273_v61 = vld [vmem:[#allocation9 + $0x9f0] sm:$0xf0]  ;;  %v8020_v9 = vor.u32 %v10603_v57, %v8017_v58 }
 0x14e   :  { %2689 = vmatpush.bf16.msrb.mxu3 %v7508_v38  ;;  %2702 = vmatpush.bf16.msra.mxu0 %v7764_v39  ;;  %v10363_v38 = vld [vmem:[#allocation9 + $0x54] sm:$0xf]  ;;  %v10615_v52 = vld [vmem:[#allocation9 + $0x82c] sm:$0xf0]  ;;  %v8276_v10 = vor.u32 %v10667_v60, %v8273_v61  ;;  %v10400_v61 = vld [vmem:[#allocation9 + $0x174] sm:$0xf0] }
 0x14f   :  { %2665 = vmatpush.bf16.msrb.mxu1 %v8208_v48  ;;  %2678 = vmatpush.bf16.msrb.mxu2 %v7188_v49  ;;  %v7057_v39 = vld [vmem:[#allocation9 + $0x70] sm:$0xf0]  ;;  %v8080_v48 = vor.u32 %v10623_v31, %v8079_v30 }
 0x150   :  { %v2386_v32 = vpop.f32.mrf.mxu3  ;;  %v2375_v42 = vpop.f32.mrf.mxu2  ;;  %v7060_v49 = vor.u32 %v10363_v38, %v7057_v39  ;;  %v7313_v0 = vld [vmem:[#allocation9 + $0x270] sm:$0xf0]  ;;  %v7512_v38 = vor.u32 %v10480_v28, %v7511_v27 }
 0x151   :  { %v2387_v41 = vadd.f32 %v2386_v32, %v2374_v13  ;;  %v10491_v1 = vld [vmem:[#allocation9 + $0x454] sm:$0xf] }
 0x152   :  { %2690 = vmatpush.bf16.msrb.mxu3 %v7476_v53  ;;  %2703 = vmatpush.bf16.msra.mxu0 %v7732_v54  ;;  %v2401_v47 = vpop.f32.mrf.mxu0  ;;  %v10355_v53 = vld [vmem:[#allocation9 + $0x14] sm:$0xf]  ;;  %v7348_v54 = vor.u32 %v10435_v40, %v7345_v43  ;;  %v10408_v43 = vld [vmem:[#allocation9 + $0x1b4] sm:$0xf0] }
 0x153   :  { %2666 = vmatpush.bf16.msrb.mxu1 %v8176_v62  ;;  %2679 = vmatpush.bf16.msrb.mxu2 %v7156_v63  ;;  %v2400_v50 = vadd.f32 %v2399_v15, %v2387_v41  ;;  %v10427_v62 = vld [vmem:[#allocation9 + $0x254] sm:$0xf]  ;;  %v7028_v6 = vor.u32 %v10355_v53, %v7025_v56  ;;  %v7223_v41 = vld [vmem:[#allocation9 + $0x198] sm:$0xf]  ;;  %v7480_v56 = vor.u32 %v10472_v46, %v7479_v45 }
 0x154   :  { %v10595_v11 = vld [vmem:[#allocation9 + $0x794] sm:$0xf]  ;;  %v7316_v15 = vor.u32 %v10427_v62, %v7313_v0  ;;  %v7447_v62 = vld [vmem:[#allocation9 + $0x358] sm:$0xf] }
 0x155   :  { %v7985_v12 = vld [vmem:[#allocation9 + $0x7b0] sm:$0xf0]  ;;  %v10464_v0 = vld [vmem:[#allocation9 + $0x374] sm:$0xf0] }
 0x156   :  { %2691 = vmatpush.bf16.msrb.mxu3 %v7444_v4  ;;  %2704 = vmatpush.bf16.msra.mxu0 %v7700_v5  ;;  %v2412_v59 = vpop.f32.mrf.mxu1  ;;  %v7569_v4 = vld [vmem:[#allocation9 + $0x470] sm:$0xf0]  ;;  %v8048_v5 = vor.u32 %v10615_v52, %v8047_v51  ;;  %v7988_v14 = vor.u32 %v10595_v11, %v7985_v12 }
 0x157   :  { %2667 = vmatpush.bf16.msrb.mxu1 %v8144_v16  ;;  %2680 = vmatpush.bf16.msrb.mxu2 %v7124_v18  ;;  %v11586_v63 = vadd.f32 %v2412_v59, %v2400_v50  ;;  %v10659_v13 = vld [vmem:[#allocation9 + $0x994] sm:$0xf]  ;;  %v7572_v16 = vor.u32 %v10491_v1, %v7569_v4  ;;  %v7191_v59 = vld [vmem:[#allocation9 + $0x158] sm:$0xf] }
 0x158   :  { %v2388_v8 = vpop.f32.mrf.mxu3  ;;  %v8241_v18 = vld [vmem:[#allocation9 + $0x9b0] sm:$0xf0]  ;;  %v2425_v21 = vpop.f32.mrf.mxu2 }
 0x159   :  { %v10419_v19 = vld [vmem:[#allocation9 + $0x214] sm:$0xf]  ;;  %v2426_v42 = vadd.f32 %v2425_v21, %v736_v7  ;;  %vm2871_vm7 = vcmp.gt.f32.partialorder %v11586_v63, 0.0 }
 0x15a   :  { %2692 = vmatpush.bf16.msrb.mxu3 %v7412_v22  ;;  %2705 = vmatpush.bf16.msra.mxu0 %v7668_v23  ;;  %v7281_v20 = vld [vmem:[#allocation9 + $0x230] sm:$0xf0]  ;;  %v2451_v22 = vpop.f32.mrf.mxu0 }
 0x15b   :  { %2668 = vmatpush.bf16.msrb.mxu1 %v8112_v17  ;;  %2681 = vmatpush.bf16.msrb.mxu2 %v7092_v29  ;;  %v10483_v23 = vld [vmem:[#allocation9 + $0x414] sm:$0xf]  ;;  %v8244_v17 = vor.u32 %v10659_v13, %v8241_v18  ;;  %v7284_v30 = vor.u32 %v10419_v19, %v7281_v20  ;;  %v7159_v13 = vld [vmem:[#allocation9 + $0x118] sm:$0xf] }
 0x15c   :  { %v7537_v24 = vld [vmem:[#allocation9 + $0x430] sm:$0xf0]  ;;  %v10456_v18 = vld [vmem:[#allocation9 + $0x334] sm:$0xf0] }
 0x15d   :  { %v7540_v31 = vor.u32 %v10483_v23, %v7537_v24  ;;  %v10587_v32 = vld [vmem:[#allocation9 + $0x754] sm:$0xf] }
 0x15e   :  { %2693 = vmatpush.bf16.msrb.mxu3 %v7380_v33  ;;  %2706 = vmatpush.bf16.msra.mxu0 %v7636_v34  ;;  %v2414_v29 = vpop.f32.mrf.mxu1  ;;  %v7953_v33 = vld [vmem:[#allocation9 + $0x770] sm:$0xf0]  ;;  %v7256_v34 = vor.u32 %v10416_v26, %v7255_v25 }
 0x15f   :  { %2669 = vmatpush.bf16.msrb.mxu1 %v8080_v48  ;;  %2682 = vmatpush.bf16.msrb.mxu2 %v7060_v49  ;;  %v10651_v39 = vld [vmem:[#allocation9 + $0x954] sm:$0xf]  ;;  %v7956_v49 = vor.u32 %v10587_v32, %v7953_v33  ;;  %v10448_v32 = vld [vmem:[#allocation9 + $0x2f4] sm:$0xf0] }
 0x160   :  { %v8209_v40 = vld [vmem:[#allocation9 + $0x970] sm:$0xf0]  ;;  %v2438_v47 = vpop.f32.mrf.mxu3  ;;  %v2427_v53 = vpop.f32.mrf.mxu2 }
 0x161   :  { %v2439_v48 = vadd.f32 %v2438_v47, %v2426_v42  ;;  %v8212_v50 = vor.u32 %v10651_v39, %v8209_v40  ;;  %v10579_v51 = vld [vmem:[#allocation9 + $0x714] sm:$0xf]  ;;  %v737_v39 = vperm.slane %v11579_v35, 2  ;;  %v7095_v47 = vld [vmem:[#allocation9 + $0x98] sm:$0xf] }
 0x162   :  { %2694 = vmatpush.bf16.msrb.mxu3 %v7348_v54  ;;  %2707 = vmatpush.bf16.msra.mxu0 %v7604_v55  ;;  %v7921_v52 = vld [vmem:[#allocation9 + $0x730] sm:$0xf0]  ;;  %v2453_v54 = vpop.f32.mrf.mxu0  ;;  %v7224_v55 = vor.u32 %v10408_v43, %v7223_v41 }
 0x163   :  { %2670 = vmatpush.bf16.msrb.mxu1 %v8048_v5  ;;  %2683 = vmatpush.bf16.msrb.mxu2 %v7028_v6  ;;  %v10643_v57 = vld [vmem:[#allocation9 + $0x914] sm:$0xf]  ;;  %v2452_v60 = vadd.f32 %v2451_v22, %v2439_v48  ;;  %v7924_v1 = vor.u32 %v10579_v51, %v7921_v52  ;;  %v10376_v48 = vld [vmem:[#allocation9 + $0xb4] sm:$0xf0] }
 0x164   :  { %v8177_v58 = vld [vmem:[#allocation9 + $0x930] sm:$0xf0] }
 0x165   :  { %v8180_v4 = vor.u32 %v10643_v57, %v8177_v58  ;;  %v10571_v6 = vld [vmem:[#allocation9 + $0x6d4] sm:$0xf]  ;;  %v7096_v58 = vor.u32 %v10376_v48, %v7095_v47  ;;  %v7225_v47 = vld [vmem:[#allocation9 + $0x1b8] sm:$0xf0] }
 0x166   :  { %2695 = vmatpush.bf16.msrb.mxu3 %v7316_v15  ;;  %2708 = vmatpush.bf16.msra.mxu0 %v7572_v16  ;;  %v2464_v5 = vpop.f32.mrf.mxu1  ;;  %v7889_v7 = vld [vmem:[#allocation9 + $0x6f0] sm:$0xf0]  ;;  %v10392_v15 = vld [vmem:[#allocation9 + $0x134] sm:$0xf0] }
 0x167   :  { %2715 = vmatpush.bf16.msra.mxu1 %v8020_v9  ;;  %2728 = vmatpush.bf16.msra.mxu2 %v8276_v10  ;;  %v2465_v8 = vadd.f32 %v2464_v5, %v2452_v60  ;;  %v7192_v9 = vor.u32 %v10400_v61, %v7191_v59  ;;  %v7448_v10 = vor.u32 %v10464_v0, %v7447_v62  ;;  %v10635_v11 = vld [vmem:[#allocation9 + $0x8d4] sm:$0xf]  ;;  %v7415_v16 = vld [vmem:[#allocation9 + $0x318] sm:$0xf] }
 0x168   :  { %2671 = vmatmul.bf16.vlgmr.msrb.gmra.mxu1 %v11561_v44  ;;  %2684 = vmatmul.bf16.vlgmr.msrb.gmra.mxu2 %v11548_v36  ;;  %v8145_v12 = vld [vmem:[#allocation9 + $0x8f0] sm:$0xf0]  ;;  %v2440_v19 = vpop.f32.mrf.mxu3  ;;  %v7892_v20 = vor.u32 %v10571_v6, %v7889_v7  ;;  %v7160_v25 = vor.u32 %v10392_v15, %v7159_v13  ;;  %v7416_v26 = vor.u32 %v10456_v18, %v7415_v16  ;;  %v7767_v61 = vld [vmem:[#allocation9 + $0x5d8] sm:$0xf] }
 0x169   :  { %v8148_v21 = vor.u32 %v10635_v11, %v8145_v12  ;;  %v10563_v22 = vld [vmem:[#allocation9 + $0x694] sm:$0xf]  ;;  %v10544_v62 = vld [vmem:[#allocation9 + $0x5f4] sm:$0xf0] }
 0x16a   :  { %2696 = vmatpush.bf16.msrb.mxu3 %v7284_v30  ;;  %2709 = vmatpush.bf16.msra.mxu0 %v7540_v31  ;;  %v7857_v23 = vld [vmem:[#allocation9 + $0x6b0] sm:$0xf0]  ;;  %v2503_v29 = vpop.f32.mrf.mxu0  ;;  %v10384_v30 = vld [vmem:[#allocation9 + $0xf4] sm:$0xf0]  ;;  %v7768_v12 = vor.u32 %v10544_v62, %v7767_v61 }
 0x16b   :  { %2716 = vmatpush.bf16.msra.mxu1 %v7988_v14  ;;  %2729 = vmatpush.bf16.msra.mxu2 %v8244_v17  ;;  %v2477_v24 = vpop.f32.mrf.mxu2  ;;  %v10627_v27 = vld [vmem:[#allocation9 + $0x894] sm:$0xf]  ;;  %v7127_v14 = vld [vmem:[#allocation9 + $0xd8] sm:$0xf]  ;;  %v7860_v33 = vor.u32 %v10563_v22, %v7857_v23 }
 0x16c   :  { %v8113_v28 = vld [vmem:[#allocation9 + $0x8b0] sm:$0xf0]  ;;  %v11593_v17 = vadd.f32 %v2477_v24, %v2465_v8  ;;  %v7383_v31 = vld [vmem:[#allocation9 + $0x2d8] sm:$0xf]  ;;  %v7128_v42 = vor.u32 %v10384_v30, %v7127_v14  ;;  %v10412_v14 = vld [vmem:[#allocation9 + $0x1dc] sm:$0xf] }
 0x16d   :  { %2697 = vmatmul.bf16.vlgmr.msrb.gmra.mxu3 %v11550_v37  ;;  %2710 = vmatmul.bf16.vlgmr.msra.gmra.mxu0 %v11554_v2  ;;  %v10555_v40 = vld [vmem:[#allocation9 + $0x654] sm:$0xf]  ;;  %v7384_v43 = vor.u32 %v10448_v32, %v7383_v31  ;;  %v7063_v5 = vld [vmem:[#allocation9 + $0x58] sm:$0xf] }
 0x16e   :  { %2741 = vmatpush.bf16.msra.mxu3 %v7256_v34  ;;  %2754 = vmatpush.bf16.msrb.mxu0 %v7512_v38  ;;  %v8116_v34 = vor.u32 %v10627_v27, %v8113_v28  ;;  %v2466_v38 = vpop.f32.mrf.mxu1  ;;  %v7825_v41 = vld [vmem:[#allocation9 + $0x670] sm:$0xf0]  ;;  %v10368_v6 = vld [vmem:[#allocation9 + $0x74] sm:$0xf0]  ;;  %vm2872_vm8 = vcmp.gt.f32.partialorder %v11593_v17, 0.0 }
 0x16f   :  { %2717 = vmatpush.bf16.msra.mxu1 %v7956_v49  ;;  %2730 = vmatpush.bf16.msra.mxu2 %v8212_v50  ;;  %v10619_v45 = vld [vmem:[#allocation9 + $0x854] sm:$0xf]  ;;  %v7351_v49 = vld [vmem:[#allocation9 + $0x298] sm:$0xf]  ;;  %v7828_v52 = vor.u32 %v10555_v40, %v7825_v41  ;;  %v7064_v19 = vor.u32 %v10368_v6, %v7063_v5 }
 0x170   :  { %v8081_v46 = vld [vmem:[#allocation9 + $0x870] sm:$0xf0]  ;;  %v10440_v50 = vld [vmem:[#allocation9 + $0x2b4] sm:$0xf0]  ;;  %v2490_v51 = vpop.f32.mrf.mxu3 }
 0x171   :  { %v8084_v53 = vor.u32 %v10619_v45, %v8081_v46  ;;  %v10547_v54 = vld [vmem:[#allocation9 + $0x614] sm:$0xf]  ;;  %v7352_v59 = vor.u32 %v10440_v50, %v7351_v49  ;;  %v7319_v7 = vld [vmem:[#allocation9 + $0x258] sm:$0xf]  ;;  %v10404_v46 = vld [vmem:[#allocation9 + $0x19c] sm:$0xf] }
 0x172   :  { %2742 = vmatpush.bf16.msra.mxu3 %v7224_v55  ;;  %2755 = vmatpush.bf16.msrb.mxu0 %v7480_v56  ;;  %v7793_v55 = vld [vmem:[#allocation9 + $0x630] sm:$0xf0]  ;;  %v2491_v56 = vadd.f32 %v2490_v51, %v737_v39  ;;  %v2505_v0 = vpop.f32.mrf.mxu0  ;;  %v10432_v8 = vld [vmem:[#allocation9 + $0x274] sm:$0xf0] }
 0x173   :  { %2718 = vmatpush.bf16.msra.mxu1 %v7924_v1  ;;  %2731 = vmatpush.bf16.msra.mxu2 %v8180_v4  ;;  %v10611_v35 = vld [vmem:[#allocation9 + $0x814] sm:$0xf]  ;;  %v2479_v57 = vpop.f32.mrf.mxu2  ;;  %v8023_v1 = vld [vmem:[#allocation9 + $0x7d8] sm:$0xf] }
 0x174   :  { %v8049_v60 = vld [vmem:[#allocation9 + $0x830] sm:$0xf0]  ;;  %v10608_v4 = vld [vmem:[#allocation9 + $0x7f4] sm:$0xf0] }
 0x175   :  { %v8052_v11 = vor.u32 %v10611_v35, %v8049_v60  ;;  %v8024_v13 = vor.u32 %v10608_v4, %v8023_v1  ;;  %v7735_v15 = vld [vmem:[#allocation9 + $0x598] sm:$0xf] }
 0x176   :  { %2743 = vmatpush.bf16.msra.mxu3 %v7192_v9  ;;  %2756 = vmatpush.bf16.msrb.mxu0 %v7448_v10  ;;  %v11596_v9 = vadd.f32 %v2503_v29, %v2491_v56  ;;  %v7796_v10 = vor.u32 %v10547_v54, %v7793_v55  ;;  %v10536_v16 = vld [vmem:[#allocation9 + $0x5b4] sm:$0xf0]  ;;  %v7257_v29 = vld [vmem:[#allocation9 + $0x1f8] sm:$0xf0] }
 0x177   :  { %2719 = vmatpush.bf16.msra.mxu1 %v7892_v20  ;;  %2732 = vmatpush.bf16.msra.mxu2 %v8148_v21  ;;  %v7991_v18 = vld [vmem:[#allocation9 + $0x798] sm:$0xf]  ;;  %v7320_v20 = vor.u32 %v10432_v8, %v7319_v7  ;;  %v7736_v30 = vor.u32 %v10536_v16, %v7735_v15  ;;  %v7260_v40 = vor.u32 %v10412_v14, %v7257_v29  ;;  %v7129_v14 = vld [vmem:[#allocation9 + $0xf8] sm:$0xf0] }
 0x178   :  { %v10600_v21 = vld [vmem:[#allocation9 + $0x7b4] sm:$0xf0]  ;;  %v2492_v27 = vpop.f32.mrf.mxu3 }
 0x179   :  { %v7031_v22 = vld [vmem:[#allocation9 + $0x18] sm:$0xf]  ;;  %v7992_v31 = vor.u32 %v10600_v21, %v7991_v18 }
 0x17a   :  { %2744 = vmatpush.bf16.msra.mxu3 %v7160_v25  ;;  %2757 = vmatpush.bf16.msrb.mxu0 %v7416_v26  ;;  %v10360_v23 = vld [vmem:[#allocation9 + $0x34] sm:$0xf0] }
 0x17b   :  { %2720 = vmatpush.bf16.msra.mxu1 %v7860_v33  ;;  %2733 = vmatpush.bf16.msra.mxu2 %v8116_v34  ;;  %v7287_v24 = vld [vmem:[#allocation9 + $0x218] sm:$0xf]  ;;  %v7032_v32 = vor.u32 %v10360_v23, %v7031_v22 }
 0x17c   :  { %v10424_v25 = vld [vmem:[#allocation9 + $0x234] sm:$0xf0] }
 0x17d   :  { %v8279_v26 = vld [vmem:[#allocation9 + $0x9d8] sm:$0xf]  ;;  %v7288_v33 = vor.u32 %v10424_v25, %v7287_v24 }
 0x17e   :  { %2745 = vmatpush.bf16.msra.mxu3 %v7128_v42  ;;  %2758 = vmatpush.bf16.msrb.mxu0 %v7384_v43  ;;  %v10672_v28 = vld [vmem:[#allocation9 + $0x9f4] sm:$0xf0] }
 0x17f   :  { %2721 = vmatpush.bf16.msra.mxu1 %v7828_v52  ;;  %2734 = vmatpush.bf16.msra.mxu2 %v8084_v53  ;;  %v7703_v34 = vld [vmem:[#allocation9 + $0x558] sm:$0xf]  ;;  %v8280_v39 = vor.u32 %v10672_v28, %v8279_v26  ;;  %v7228_v53 = vor.u32 %v10404_v46, %v7225_v47  ;;  %v10380_v28 = vld [vmem:[#allocation9 + $0xdc] sm:$0xf] }
 0x180   :  { %v10528_v38 = vld [vmem:[#allocation9 + $0x574] sm:$0xf0] }
 0x181   :  { %v7959_v41 = vld [vmem:[#allocation9 + $0x758] sm:$0xf]  ;;  %v7704_v48 = vor.u32 %v10528_v38, %v7703_v34  ;;  %v7132_v34 = vor.u32 %v10380_v28, %v7129_v14  ;;  %v10460_v14 = vld [vmem:[#allocation9 + $0x35c] sm:$0xf] }
 0x182   :  { %2746 = vmatpush.bf16.msra.mxu3 %v7096_v58  ;;  %2759 = vmatpush.bf16.msrb.mxu0 %v7352_v59  ;;  %v10592_v42 = vld [vmem:[#allocation9 + $0x774] sm:$0xf0]  ;;  %v10396_v58 = vld [vmem:[#allocation9 + $0x15c] sm:$0xf] }
 0x183   :  { %2722 = vmatpush.bf16.msra.mxu1 %v7796_v10  ;;  %2735 = vmatpush.bf16.msra.mxu2 %v8052_v11  ;;  %v8247_v43 = vld [vmem:[#allocation9 + $0x998] sm:$0xf]  ;;  %v7960_v49 = vor.u32 %v10592_v42, %v7959_v41  ;;  %v7193_v59 = vld [vmem:[#allocation9 + $0x178] sm:$0xf0] }
 0x184   :  { %v10664_v45 = vld [vmem:[#allocation9 + $0x9b4] sm:$0xf0]  ;;  %v7196_v5 = vor.u32 %v10396_v58, %v7193_v59  ;;  %v10388_v11 = vld [vmem:[#allocation9 + $0x11c] sm:$0xf] }
 0x185   :  { %v7671_v50 = vld [vmem:[#allocation9 + $0x518] sm:$0xf]  ;;  %v8248_v52 = vor.u32 %v10664_v45, %v8247_v43  ;;  %v2516_v56 = vpop.f32.mrf.mxu1  ;;  %v10372_v43 = vld [vmem:[#allocation9 + $0x9c] sm:$0xf] }
 0x186   :  { %2747 = vmatpush.bf16.msra.mxu3 %v7064_v19  ;;  %2760 = vmatpush.bf16.msrb.mxu0 %v7320_v20  ;;  %v10520_v51 = vld [vmem:[#allocation9 + $0x534] sm:$0xf0]  ;;  %v2517_v60 = vadd.f32 %v2516_v56, %v11596_v9  ;;  %v7097_v45 = vld [vmem:[#allocation9 + $0xb8] sm:$0xf0] }
 0x187   :  { %2767 = vmatpush.bf16.msrb.mxu1 %v7768_v12  ;;  %2780 = vmatpush.bf16.msrb.mxu2 %v8024_v13  ;;  %v7927_v54 = vld [vmem:[#allocation9 + $0x718] sm:$0xf]  ;;  %v7672_v61 = vor.u32 %v10520_v51, %v7671_v50  ;;  %v7161_v12 = vld [vmem:[#allocation9 + $0x138] sm:$0xf0] }
 0x188   :  { %2723 = vmatmul.bf16.vlgmr.msra.gmra.mxu1 %v11556_v3  ;;  %2736 = vmatmul.bf16.vlgmr.msra.gmra.mxu2 %v11561_v44  ;;  %v10584_v55 = vld [vmem:[#allocation9 + $0x734] sm:$0xf0]  ;;  %v7164_v22 = vor.u32 %v10388_v11, %v7161_v12  ;;  %v10476_v56 = vld [vmem:[#allocation9 + $0x3dc] sm:$0xf] }
 0x189   :  { %v8215_v35 = vld [vmem:[#allocation9 + $0x958] sm:$0xf]  ;;  %v7928_v62 = vor.u32 %v10584_v55, %v7927_v54  ;;  %v7100_v55 = vor.u32 %v10372_v43, %v7097_v45  ;;  %v10540_v58 = vld [vmem:[#allocation9 + $0x5dc] sm:$0xf] }
 0x18a   :  { %2748 = vmatpush.bf16.msra.mxu3 %v7032_v32  ;;  %2761 = vmatpush.bf16.msrb.mxu0 %v7288_v33  ;;  %v10656_v57 = vld [vmem:[#allocation9 + $0x974] sm:$0xf0]  ;;  %v11603_v16 = vpop.f32.mrf.mxu0  ;;  %v7769_v59 = vld [vmem:[#allocation9 + $0x5f8] sm:$0xf0] }
 0x18b   :  { %2768 = vmatpush.bf16.msrb.mxu1 %v7736_v30  ;;  %2781 = vmatpush.bf16.msrb.mxu2 %v7992_v31  ;;  %v7639_v0 = vld [vmem:[#allocation9 + $0x4d8] sm:$0xf]  ;;  %v8216_v4 = vor.u32 %v10656_v57, %v8215_v35  ;;  %v2529_v15 = vpop.f32.mrf.mxu2  ;;  %v7513_v57 = vld [vmem:[#allocation9 + $0x3f8] sm:$0xf0] }
 0x18c   :  { %v10512_v1 = vld [vmem:[#allocation9 + $0x4f4] sm:$0xf0]  ;;  %v2530_v20 = vadd.f32 %v2529_v15, %v2517_v60  ;;  %v10452_v43 = vld [vmem:[#allocation9 + $0x31c] sm:$0xf] }
 0x18d   :  { %2749 = vmatmul.bf16.vlgmr.msra.gmra.mxu3 %v11548_v36  ;;  %2762 = vmatmul.bf16.vlgmr.msrb.gmra.mxu0 %v11550_v37  ;;  %v7895_v6 = vld [vmem:[#allocation9 + $0x6d8] sm:$0xf]  ;;  %v7640_v13 = vor.u32 %v10512_v1, %v7639_v0  ;;  %v2518_v26 = vpop.f32.mrf.mxu1  ;;  %v7065_v0 = vld [vmem:[#allocation9 + $0x78] sm:$0xf0] }
 0x18e   :  { %2793 = vmatpush.bf16.msrb.mxu3 %v8280_v39  ;;  %2806 = vmatpush.bf16.msra.mxu0 %v7260_v40  ;;  %v10576_v7 = vld [vmem:[#allocation9 + $0x6f4] sm:$0xf0]  ;;  %v7417_v45 = vld [vmem:[#allocation9 + $0x338] sm:$0xf0] }
 0x18f   :  { %2769 = vmatpush.bf16.msrb.mxu1 %v7704_v48  ;;  %2782 = vmatpush.bf16.msrb.mxu2 %v7960_v49  ;;  %v8183_v8 = vld [vmem:[#allocation9 + $0x918] sm:$0xf]  ;;  %v7896_v9 = vor.u32 %v10576_v7, %v7895_v6  ;;  %v7772_v6 = vor.u32 %v10540_v58, %v7769_v59  ;;  %v10468_v7 = vld [vmem:[#allocation9 + $0x39c] sm:$0xf] }
 0x190   :  { %v10648_v10 = vld [vmem:[#allocation9 + $0x934] sm:$0xf0]  ;;  %v2542_v41 = vpop.f32.mrf.mxu3  ;;  %v7385_v58 = vld [vmem:[#allocation9 + $0x2f8] sm:$0xf0] }
 0x191   :  { %v7607_v18 = vld [vmem:[#allocation9 + $0x498] sm:$0xf]  ;;  %v8184_v21 = vor.u32 %v10648_v10, %v8183_v8  ;;  %v11605_v46 = vadd.f32 %v2542_v41, %v2530_v20  ;;  %v7481_v8 = vld [vmem:[#allocation9 + $0x3b8] sm:$0xf0] }
 0x192   :  { %2794 = vmatpush.bf16.msrb.mxu3 %v8248_v52  ;;  %2807 = vmatpush.bf16.msra.mxu0 %v7228_v53  ;;  %v10504_v19 = vld [vmem:[#allocation9 + $0x4b4] sm:$0xf0]  ;;  %v2557_v50 = vpop.f32.mrf.mxu0  ;;  %v10532_v10 = vld [vmem:[#allocation9 + $0x59c] sm:$0xf] }
 0x193   :  { %2770 = vmatpush.bf16.msrb.mxu1 %v7672_v61  ;;  %2783 = vmatpush.bf16.msrb.mxu2 %v7928_v62  ;;  %v7863_v23 = vld [vmem:[#allocation9 + $0x698] sm:$0xf]  ;;  %v7608_v29 = vor.u32 %v10504_v19, %v7607_v18  ;;  %v2531_v49 = vpop.f32.mrf.mxu2  ;;  %v10364_v62 = vld [vmem:[#allocation9 + $0x5c] sm:$0xf]  ;;  %vm2873_vm9 = vcmp.gt.f32.partialorder %v11605_v46, 0.0 }
 0x194   :  { %v10568_v24 = vld [vmem:[#allocation9 + $0x6b4] sm:$0xf0]  ;;  %v7068_v12 = vor.u32 %v10364_v62, %v7065_v0  ;;  %v10356_v19 = vld [vmem:[#allocation9 + $0x1c] sm:$0xf] }
 0x195   :  { %v8151_v25 = vld [vmem:[#allocation9 + $0x8d8] sm:$0xf]  ;;  %v7864_v30 = vor.u32 %v10568_v24, %v7863_v23  ;;  %v7033_v20 = vld [vmem:[#allocation9 + $0x38] sm:$0xf0] }
 0x196   :  { %2795 = vmatpush.bf16.msrb.mxu3 %v8216_v4  ;;  %2808 = vmatpush.bf16.msra.mxu0 %v7196_v5  ;;  %v10640_v27 = vld [vmem:[#allocation9 + $0x8f4] sm:$0xf0]  ;;  %v7516_v5 = vor.u32 %v10476_v56, %v7513_v57  ;;  %v10668_v23 = vld [vmem:[#allocation9 + $0x9dc] sm:$0xf]  ;;  %v7036_v28 = vor.u32 %v10356_v19, %v7033_v20 }
 0x197   :  { %2771 = vmatpush.bf16.msrb.mxu1 %v7640_v13  ;;  %2784 = vmatpush.bf16.msrb.mxu2 %v7896_v9  ;;  %v7575_v31 = vld [vmem:[#allocation9 + $0x458] sm:$0xf]  ;;  %v8152_v33 = vor.u32 %v10640_v27, %v8151_v25  ;;  %v7737_v9 = vld [vmem:[#allocation9 + $0x5b8] sm:$0xf0]  ;;  %v7484_v25 = vor.u32 %v10468_v7, %v7481_v8 }
 0x198   :  { %v10496_v32 = vld [vmem:[#allocation9 + $0x474] sm:$0xf0]  ;;  %v2544_v13 = vpop.f32.mrf.mxu3  ;;  %v8281_v24 = vld [vmem:[#allocation9 + $0x9f8] sm:$0xf0]  ;;  %v7740_v26 = vor.u32 %v10532_v10, %v7737_v9 }
 0x199   :  { %v7831_v38 = vld [vmem:[#allocation9 + $0x658] sm:$0xf]  ;;  %v7576_v47 = vor.u32 %v10496_v32, %v7575_v31  ;;  %v8284_v31 = vor.u32 %v10668_v23, %v8281_v24  ;;  %v10524_v32 = vld [vmem:[#allocation9 + $0x55c] sm:$0xf] }
 0x19a   :  { %2796 = vmatpush.bf16.msrb.mxu3 %v8184_v21  ;;  %2809 = vmatpush.bf16.msra.mxu0 %v7164_v22  ;;  %v10560_v39 = vld [vmem:[#allocation9 + $0x674] sm:$0xf0]  ;;  %v10604_v21 = vld [vmem:[#allocation9 + $0x7dc] sm:$0xf] }
 0x19b   :  { %v8119_v40 = vld [vmem:[#allocation9 + $0x898] sm:$0xf]  ;;  %2772 = vmatpush.bf16.msrb.mxu1 %v7608_v29  ;;  %2785 = vmatpush.bf16.msrb.mxu2 %v7864_v30  ;;  %v7832_v48 = vor.u32 %v10560_v39, %v7831_v38  ;;  %v8025_v22 = vld [vmem:[#allocation9 + $0x7f8] sm:$0xf0] }
 0x19c   :  { %v10632_v42 = vld [vmem:[#allocation9 + $0x8b4] sm:$0xf0]  ;;  %v7449_v29 = vld [vmem:[#allocation9 + $0x378] sm:$0xf0]  ;;  %v8028_v30 = vor.u32 %v10604_v21, %v8025_v22 }
 0x19d   :  { %v7543_v51 = vld [vmem:[#allocation9 + $0x418] sm:$0xf]  ;;  %v8120_v54 = vor.u32 %v10632_v42, %v8119_v40  ;;  %v7993_v38 = vld [vmem:[#allocation9 + $0x7b8] sm:$0xf0]  ;;  %v7452_v41 = vor.u32 %v10460_v14, %v7449_v29 }
 0x19e   :  { %v10488_v52 = vld [vmem:[#allocation9 + $0x434] sm:$0xf0]  ;;  %2797 = vmatpush.bf16.msrb.mxu3 %v8152_v33  ;;  %2810 = vmatpush.bf16.msra.mxu0 %v7132_v34  ;;  %v7705_v33 = vld [vmem:[#allocation9 + $0x578] sm:$0xf0] }
 0x19f   :  { %v7799_v53 = vld [vmem:[#allocation9 + $0x618] sm:$0xf]  ;;  %2773 = vmatpush.bf16.msrb.mxu1 %v7576_v47  ;;  %2786 = vmatpush.bf16.msrb.mxu2 %v7832_v48  ;;  %v7544_v1 = vor.u32 %v10488_v52, %v7543_v51  ;;  %v10596_v34 = vld [vmem:[#allocation9 + $0x79c] sm:$0xf]  ;;  %v7708_v42 = vor.u32 %v10524_v32, %v7705_v33 }
 0x1a0   :  { %v10552_v35 = vld [vmem:[#allocation9 + $0x634] sm:$0xf0]  ;;  %v10660_v39 = vld [vmem:[#allocation9 + $0x99c] sm:$0xf]  ;;  %v7996_v47 = vor.u32 %v10596_v34, %v7993_v38 }
 0x1a1   :  { %v8087_v60 = vld [vmem:[#allocation9 + $0x858] sm:$0xf]  ;;  %v7800_v4 = vor.u32 %v10552_v35, %v7799_v53  ;;  %v8249_v40 = vld [vmem:[#allocation9 + $0x9b8] sm:$0xf0]  ;;  %v7420_v35 = vor.u32 %v10452_v43, %v7417_v45 }
 0x1a2   :  { %v10624_v61 = vld [vmem:[#allocation9 + $0x874] sm:$0xf0]  ;;  %2798 = vmatpush.bf16.msrb.mxu3 %v8120_v54  ;;  %2811 = vmatpush.bf16.msra.mxu0 %v7100_v55  ;;  %v8252_v48 = vor.u32 %v10660_v39, %v8249_v40  ;;  %v10516_v49 = vld [vmem:[#allocation9 + $0x51c] sm:$0xf] }
 0x1a3   :  { %v8088_v11 = vor.u32 %v10624_v61, %v8087_v60  ;;  %v8055_v15 = vld [vmem:[#allocation9 + $0x818] sm:$0xf]  ;;  %2774 = vmatpush.bf16.msrb.mxu1 %v7544_v1  ;;  %2787 = vmatpush.bf16.msrb.mxu2 %v7800_v4  ;;  %v7673_v50 = vld [vmem:[#allocation9 + $0x538] sm:$0xf0] }
 0x1a4   :  { %v10616_v18 = vld [vmem:[#allocation9 + $0x834] sm:$0xf0]  ;;  %v10588_v51 = vld [vmem:[#allocation9 + $0x75c] sm:$0xf]  ;;  %v7676_v56 = vor.u32 %v10516_v49, %v7673_v50  ;;  %v8511_v50 = vld [vmem:[#allocation12 + $0x1c0] sm:$0xf] }
 0x1a5   :  { %v8056_v27 = vor.u32 %v10616_v18, %v8055_v15  ;;  %v11609_v52 = vpop.f32.mrf.mxu1  ;;  %v7961_v53 = vld [vmem:[#allocation9 + $0x778] sm:$0xf0] }
 0x1a6   :  { %2799 = vmatpush.bf16.msrb.mxu3 %v8088_v11  ;;  %2812 = vmatpush.bf16.msra.mxu0 %v7068_v12  ;;  %v10652_v54 = vld [vmem:[#allocation9 + $0x95c] sm:$0xf]  ;;  %v7964_v59 = vor.u32 %v10588_v51, %v7961_v53  ;;  %v10733_v51 = vld [vmem:[#allocation12 + $0x1dc] sm:$0xf0] }
 0x1a7   :  { %2819 = vmatpush.bf16.msra.mxu1 %v7516_v5  ;;  %2832 = vmatpush.bf16.msra.mxu2 %v7772_v6  ;;  %v8217_v55 = vld [vmem:[#allocation9 + $0x978] sm:$0xf0]  ;;  %v8767_v53 = vld [vmem:[#allocation12 + $0x3c0] sm:$0xf] }
 0x1a8   :  { %2775 = vmatmul.bf16.vlgmr.msrb.gmra.mxu1 %v11554_v2  ;;  %2788 = vmatmul.bf16.vlgmr.msrb.gmra.mxu2 %v11556_v3  ;;  %v10444_v57 = vld [vmem:[#allocation9 + $0x2dc] sm:$0xf]  ;;  %v8220_v60 = vor.u32 %v10652_v54, %v8217_v55  ;;  %v10797_v54 = vld [vmem:[#allocation12 + $0x3dc] sm:$0xf0] }
 0x1a9   :  { %v10508_v61 = vld [vmem:[#allocation9 + $0x4dc] sm:$0xf]  ;;  %v7388_v6 = vor.u32 %v10444_v57, %v7385_v58 }
 0x1aa   :  { %2800 = vmatpush.bf16.msrb.mxu3 %v8056_v27  ;;  %2813 = vmatpush.bf16.msra.mxu0 %v7036_v28  ;;  %v7641_v62 = vld [vmem:[#allocation9 + $0x4f8] sm:$0xf0]  ;;  %v11615_v8 = vpop.f32.mrf.mxu0 }
 0x1ab   :  { %2820 = vmatpush.bf16.msra.mxu1 %v7484_v25  ;;  %2833 = vmatpush.bf16.msra.mxu2 %v7740_v26  ;;  %v10580_v0 = vld [vmem:[#allocation9 + $0x71c] sm:$0xf]  ;;  %v11613_v7 = vpop.f32.mrf.mxu2 }
 0x1ac   :  { %v7929_v1 = vld [vmem:[#allocation9 + $0x738] sm:$0xf0] }
 0x1ad   :  { %2801 = vmatmul.bf16.vlgmr.msrb.gmra.mxu3 %v11561_v44  ;;  %2814 = vmatmul.bf16.vlgmr.msra.gmra.mxu0 %v11548_v36  ;;  %v10644_v4 = vld [vmem:[#allocation9 + $0x91c] sm:$0xf]  ;;  %v7644_v36 = vor.u32 %v10508_v61, %v7641_v62  ;;  %v7932_v12 = vor.u32 %v10580_v0, %v7929_v1  ;;  %v2570_v19 = vpop.f32.mrf.mxu1  ;;  %v8768_v61 = vor.u32 %v10797_v54, %v8767_v53  ;;  %v8479_v62 = vld [vmem:[#allocation12 + $0x180] sm:$0xf] }
 0x1ae   :  { %2845 = vmatpush.bf16.msra.mxu3 %v8028_v30  ;;  %2858 = vmatpush.bf16.msrb.mxu0 %v8284_v31  ;;  %v8185_v5 = vld [vmem:[#allocation9 + $0x938] sm:$0xf0]  ;;  %v10725_v0 = vld [vmem:[#allocation12 + $0x19c] sm:$0xf0] }
 0x1af   :  { %2821 = vmatpush.bf16.msra.mxu1 %v7452_v41  ;;  %2834 = vmatpush.bf16.msra.mxu2 %v7708_v42  ;;  %v10436_v10 = vld [vmem:[#allocation9 + $0x29c] sm:$0xf]  ;;  %v8188_v13 = vor.u32 %v10644_v4, %v8185_v5  ;;  %v8735_v1 = vld [vmem:[#allocation12 + $0x380] sm:$0xf] }
 0x1b0   :  { %v7353_v11 = vld [vmem:[#allocation9 + $0x2b8] sm:$0xf0]  ;;  %v11617_v31 = vpop.f32.mrf.mxu3  ;;  %v10925_v19 = vld [vmem:[#allocation12 + $0x7dc] sm:$0xf0] }
 0x1b1   :  { %v10500_v9 = vld [vmem:[#allocation9 + $0x49c] sm:$0xf]  ;;  %v7356_v23 = vor.u32 %v10436_v10, %v7353_v11 }
 0x1b2   :  { %2846 = vmatpush.bf16.msra.mxu3 %v7996_v47  ;;  %2859 = vmatpush.bf16.msrb.mxu0 %v8252_v48  ;;  %v7609_v15 = vld [vmem:[#allocation9 + $0x4b8] sm:$0xf0]  ;;  %v2609_v41 = vpop.f32.mrf.mxu0 }
 0x1b3   :  { %2822 = vmatpush.bf16.msra.mxu1 %v7420_v35  ;;  %2835 = vmatpush.bf16.msra.mxu2 %v7676_v56  ;;  %v10572_v18 = vld [vmem:[#allocation9 + $0x6dc] sm:$0xf]  ;;  %v7612_v24 = vor.u32 %v10500_v9, %v7609_v15  ;;  %v2583_v40 = vpop.f32.mrf.mxu2  ;;  %v9023_v9 = vld [vmem:[#allocation12 + $0x5c0] sm:$0xf] }
 0x1b4   :  { %v7897_v20 = vld [vmem:[#allocation9 + $0x6f8] sm:$0xf0]  ;;  %v10861_v15 = vld [vmem:[#allocation12 + $0x5dc] sm:$0xf0] }
 0x1b5   :  { %v10636_v21 = vld [vmem:[#allocation9 + $0x8dc] sm:$0xf]  ;;  %v7900_v27 = vor.u32 %v10572_v18, %v7897_v20  ;;  %v9279_v18 = vld [vmem:[#allocation12 + $0x7c0] sm:$0xf]  ;;  %v8480_v20 = vor.u32 %v10725_v0, %v8479_v62 }
 0x1b6   :  { %2847 = vmatpush.bf16.msra.mxu3 %v7964_v59  ;;  %2860 = vmatpush.bf16.msrb.mxu0 %v8220_v60  ;;  %v8153_v22 = vld [vmem:[#allocation9 + $0x8f8] sm:$0xf0]  ;;  %v8512_v60 = vor.u32 %v10733_v51, %v8511_v50  ;;  %v10709_v40 = vld [vmem:[#allocation12 + $0x11c] sm:$0xf0]  ;;  %v11625_v50 = vld [vmem:[#allocation11] sm:$0xff] }
 0x1b7   :  { %2823 = vmatpush.bf16.msra.mxu1 %v7388_v6  ;;  %2836 = vmatpush.bf16.msra.mxu2 %v7644_v36  ;;  %v10428_v25 = vld [vmem:[#allocation9 + $0x25c] sm:$0xf]  ;;  %v8156_v28 = vor.u32 %v10636_v21, %v8153_v22  ;;  %v10789_v36 = vld [vmem:[#allocation12 + $0x39c] sm:$0xf0]  ;;  %v738_v51 = vperm.slane %v11625_v50, 3 }
 0x1b8   :  { %v7321_v26 = vld [vmem:[#allocation9 + $0x278] sm:$0xf0]  ;;  %v2596_v6 = vpop.f32.mrf.mxu3  ;;  %v8736_v21 = vor.u32 %v10789_v36, %v8735_v1  ;;  %v8671_v41 = vld [vmem:[#allocation12 + $0x300] sm:$0xf] }
 0x1b9   :  { %v10492_v14 = vld [vmem:[#allocation9 + $0x45c] sm:$0xf]  ;;  %v7324_v38 = vor.u32 %v10428_v25, %v7321_v26  ;;  %v10717_v25 = vld [vmem:[#allocation12 + $0x15c] sm:$0xf0]  ;;  %v9024_v26 = vor.u32 %v10861_v15, %v9023_v9  ;;  %v2556_v9 = vadd.f32 %v11603_v16, %v738_v51 }
 0x1ba   :  { %2848 = vmatpush.bf16.msra.mxu3 %v7932_v12  ;;  %2861 = vmatpush.bf16.msrb.mxu0 %v8188_v13  ;;  %v7577_v29 = vld [vmem:[#allocation9 + $0x478] sm:$0xf0]  ;;  %v10693_v6 = vld [vmem:[#allocation12 + $0x9c] sm:$0xf0] }
 0x1bb   :  { %v10564_v30 = vld [vmem:[#allocation9 + $0x69c] sm:$0xf]  ;;  %2824 = vmatpush.bf16.msra.mxu1 %v7356_v23  ;;  %2837 = vmatpush.bf16.msra.mxu2 %v7612_v24  ;;  %v7580_v39 = vor.u32 %v10492_v14, %v7577_v29  ;;  %v8447_v24 = vld [vmem:[#allocation12 + $0x140] sm:$0xf] }
 0x1bc   :  { %v7865_v32 = vld [vmem:[#allocation9 + $0x6b8] sm:$0xf0]  ;;  %v10781_v14 = vld [vmem:[#allocation12 + $0x35c] sm:$0xf0] }
 0x1bd   :  { %v10628_v33 = vld [vmem:[#allocation9 + $0x89c] sm:$0xf]  ;;  %v7868_v47 = vor.u32 %v10564_v30, %v7865_v32  ;;  %v8991_v29 = vld [vmem:[#allocation12 + $0x580] sm:$0xf] }
 0x1be   :  { %v8121_v34 = vld [vmem:[#allocation9 + $0x8b8] sm:$0xf0]  ;;  %2849 = vmatpush.bf16.msra.mxu3 %v7900_v27  ;;  %2862 = vmatpush.bf16.msrb.mxu0 %v8156_v28  ;;  %v9280_v27 = vor.u32 %v10925_v19, %v9279_v18  ;;  %v8703_v28 = vld [vmem:[#allocation12 + $0x340] sm:$0xf] }
 0x1bf   :  { %v10420_v42 = vld [vmem:[#allocation9 + $0x21c] sm:$0xf]  ;;  %v8124_v48 = vor.u32 %v10628_v33, %v8121_v34  ;;  %2825 = vmatpush.bf16.msra.mxu1 %v7324_v38  ;;  %2838 = vmatpush.bf16.msra.mxu2 %v7580_v39  ;;  %v10853_v30 = vld [vmem:[#allocation12 + $0x59c] sm:$0xf0]  ;;  %v8448_v34 = vor.u32 %v10717_v25, %v8447_v24  ;;  %v8704_v38 = vor.u32 %v10781_v14, %v8703_v28 }
 0x1c0   :  { %v7289_v43 = vld [vmem:[#allocation9 + $0x238] sm:$0xf0]  ;;  %v9247_v32 = vld [vmem:[#allocation12 + $0x780] sm:$0xf] }
 0x1c1   :  { %v10484_v45 = vld [vmem:[#allocation9 + $0x41c] sm:$0xf]  ;;  %v7292_v58 = vor.u32 %v10420_v42, %v7289_v43  ;;  %v10917_v33 = vld [vmem:[#allocation12 + $0x79c] sm:$0xf0] }
 0x1c2   :  { %v7545_v49 = vld [vmem:[#allocation9 + $0x438] sm:$0xf0]  ;;  %2850 = vmatpush.bf16.msra.mxu3 %v7868_v47  ;;  %2863 = vmatpush.bf16.msrb.mxu0 %v8124_v48  ;;  %v8415_v39 = vld [vmem:[#allocation12 + $0x100] sm:$0xf] }
 0x1c3   :  { %v10556_v55 = vld [vmem:[#allocation9 + $0x65c] sm:$0xf]  ;;  %v7548_v59 = vor.u32 %v10484_v45, %v7545_v49  ;;  %2826 = vmatpush.bf16.msra.mxu1 %v7292_v58  ;;  %v10773_v42 = vld [vmem:[#allocation12 + $0x31c] sm:$0xf0]  ;;  %v8416_v53 = vor.u32 %v10709_v40, %v8415_v39 }
 0x1c4   :  { %v7833_v35 = vld [vmem:[#allocation9 + $0x678] sm:$0xf0]  ;;  %v8959_v43 = vld [vmem:[#allocation12 + $0x540] sm:$0xf]  ;;  %v8672_v54 = vor.u32 %v10773_v42, %v8671_v41 }
 0x1c5   :  { %v10620_v56 = vld [vmem:[#allocation9 + $0x85c] sm:$0xf]  ;;  %v7836_v4 = vor.u32 %v10556_v55, %v7833_v35  ;;  %2839 = vmatpush.bf16.msra.mxu2 %v7548_v59  ;;  %v11621_v45 = vpop.f32.mrf.mxu1  ;;  %v10845_v47 = vld [vmem:[#allocation12 + $0x55c] sm:$0xf0] }
 0x1c6   :  { %v8089_v57 = vld [vmem:[#allocation9 + $0x878] sm:$0xf0]  ;;  %2827 = vmatmul.bf16.vlgmr.msra.gmra.mxu1 %v11550_v37  ;;  %v8992_v37 = vor.u32 %v10853_v30, %v8991_v29  ;;  %v9215_v48 = vld [vmem:[#allocation12 + $0x740] sm:$0xf] }
 0x1c7   :  { %v8092_v5 = vor.u32 %v10620_v56, %v8089_v57  ;;  %v10548_v10 = vld [vmem:[#allocation9 + $0x61c] sm:$0xf]  ;;  %5993 = vmatpush.bf16.msrb.mxu1 %v8512_v60  ;;  %2851 = vmatpush.bf16.msra.mxu3 %v7836_v4  ;;  %v10909_v49 = vld [vmem:[#allocation12 + $0x75c] sm:$0xf0]  ;;  %v8960_v56 = vor.u32 %v10845_v47, %v8959_v43 }
 0x1c8   :  { %v7801_v11 = vld [vmem:[#allocation9 + $0x638] sm:$0xf0]  ;;  %2840 = vmatmul.bf16.vlgmr.msra.gmra.mxu2 %v11554_v2  ;;  %v9248_v2 = vor.u32 %v10917_v33, %v9247_v32  ;;  %v8383_v55 = vld [vmem:[#allocation12 + $0xc0] sm:$0xf]  ;;  %v9216_v57 = vor.u32 %v10909_v49, %v9215_v48 }
 0x1c9   :  { %v10612_v12 = vld [vmem:[#allocation9 + $0x81c] sm:$0xf]  ;;  %6006 = vmatpush.bf16.msrb.mxu2 %v8768_v61  ;;  %2864 = vmatpush.bf16.msrb.mxu0 %v8092_v5  ;;  %v7804_v22 = vor.u32 %v10548_v10, %v7801_v11  ;;  %v10701_v35 = vld [vmem:[#allocation12 + $0xdc] sm:$0xf0] }
 0x1ca   :  { %v8057_v13 = vld [vmem:[#allocation9 + $0x838] sm:$0xf0]  ;;  %v8639_v58 = vld [vmem:[#allocation12 + $0x2c0] sm:$0xf]  ;;  %v8384_v62 = vor.u32 %v10701_v35, %v8383_v55  ;;  %v11630_v4 = vpop.f32.mrf.mxu0 }
 0x1cb   :  { %v8060_v23 = vor.u32 %v10612_v12, %v8057_v13  ;;  %5994 = vmatpush.bf16.msrb.mxu1 %v8480_v20  ;;  %2852 = vmatpush.bf16.msra.mxu3 %v7804_v22  ;;  %v10765_v59 = vld [vmem:[#allocation12 + $0x2dc] sm:$0xf0]  ;;  %v11628_v1 = vpop.f32.mrf.mxu2 }
 0x1cc   :  { %v8927_v60 = vld [vmem:[#allocation12 + $0x500] sm:$0xf]  ;;  %v8640_v0 = vor.u32 %v10765_v59, %v8639_v58 }
 0x1cd   :  { %6007 = vmatpush.bf16.msrb.mxu2 %v8736_v21  ;;  %2865 = vmatpush.bf16.msrb.mxu0 %v8060_v23  ;;  %v9183_v61 = vld [vmem:[#allocation12 + $0x700] sm:$0xf]  ;;  %v2622_v15 = vpop.f32.mrf.mxu1  ;;  %v2569_v21 = vadd.f32 %v11609_v52, %v2556_v9 }
 0x1ce   :  { %2853 = vmatmul.bf16.vlgmr.msra.gmra.mxu3 %v11556_v3  ;;  %v10837_v3 = vld [vmem:[#allocation12 + $0x51c] sm:$0xf0] }
 0x1cf   :  { %6019 = vmatpush.bf16.msrb.mxu3 %v9024_v26  ;;  %5995 = vmatpush.bf16.msrb.mxu1 %v8448_v34  ;;  %v8351_v5 = vld [vmem:[#allocation12 + $0x80] sm:$0xf]  ;;  %v8928_v36 = vor.u32 %v10837_v3, %v8927_v60  ;;  %v2582_v16 = vadd.f32 %v11613_v7, %v2569_v21  ;;  %v2879_v34 = vmul.f32 0.2, %v11586_v63 }
 0x1d0   :  { %2866 = vmatmul.bf16.vlgmr.msrb.gmra.mxu0 %v11561_v44  ;;  %v10901_v44 = vld [vmem:[#allocation12 + $0x71c] sm:$0xf0]  ;;  %v8352_v22 = vor.u32 %v10693_v6, %v8351_v5  ;;  %v11635_v30 = vpop.f32.mrf.mxu3 }
 0x1d1   :  { %6032 = vmatpush.bf16.msra.mxu0 %v9280_v27  ;;  %6008 = vmatpush.bf16.msrb.mxu2 %v8704_v38  ;;  %v9184_v10 = vor.u32 %v10901_v44, %v9183_v61  ;;  %v8607_v11 = vld [vmem:[#allocation12 + $0x280] sm:$0xf]  ;;  %v2880_v38 = vmul.f32 0.2, %v11593_v17  ;;  %v2595_v39 = vadd.f32 %v11617_v31, %v2582_v16  ;;  %v2887_v31 = vsel %vm2871_vm7, %v11586_v63, %v2879_v34 }
 0x1d2   :  { %v10757_v12 = vld [vmem:[#allocation12 + $0x29c] sm:$0xf0]  ;;  %v2881_v44 = vmul.f32 0.2, %v11605_v46  ;;  %v739_v34 = vperm.slane %v11625_v50, 4  ;;  %vm6897_vm7 = vcmask 57344  }
 0x1d3   :  { %6020 = vmatpush.bf16.msrb.mxu3 %v8992_v37  ;;  %5996 = vmatpush.bf16.msrb.mxu1 %v8416_v53  ;;  %v8895_v13 = vld [vmem:[#allocation12 + $0x4c0] sm:$0xf]  ;;  %v8608_v23 = vor.u32 %v10757_v12, %v8607_v11  ;;  %v2635_v7 = vpop.f32.mrf.mxu2  ;;  %v2608_v59 = vadd.f32 %v11615_v8, %v2595_v39  ;;  %v2888_v61 = vsel %vm2872_vm8, %v11593_v17, %v2880_v38 }
 0x1d4   :  { %v10829_v18 = vld [vmem:[#allocation12 + $0x4dc] sm:$0xf0]  ;;  %v11652_v17 = vpack.c.bf16 %v2888_v61, %v2888_v61  ;;  %v2889_v16 = vsel %vm2873_vm9, %v11605_v46, %v2881_v44 }
 0x1d5   :  { %6033 = vmatpush.bf16.msra.mxu0 %v9248_v2  ;;  %6009 = vmatpush.bf16.msrb.mxu2 %v8672_v54  ;;  %v9151_v19 = vld [vmem:[#allocation12 + $0x6c0] sm:$0xf]  ;;  %v8896_v26 = vor.u32 %v10829_v18, %v8895_v13  ;;  %v2661_v2 = vpop.f32.mrf.mxu0  ;;  %v11650_v18 = vpack.c.bf16 %v2887_v31, %v2887_v31  ;;  %vm2874_vm10 = vcmp.gt.f32.partialorder %v2608_v59, 0.0 }
 0x1d6   :  { %v10893_v20 = vld [vmem:[#allocation12 + $0x6dc] sm:$0xf0] }
 0x1d7   :  { %6021 = vmatpush.bf16.msrb.mxu3 %v8960_v56  ;;  %5997 = vmatpush.bf16.msrb.mxu1 %v8384_v62  ;;  %v8319_v24 = vld [vmem:[#allocation12 + $0x40] sm:$0xf]  ;;  %v9152_v27 = vor.u32 %v10893_v20, %v9151_v19  ;;  %v2882_v19 = vmul.f32 0.2, %v2608_v59 }
 0x1d8   :  { %v10685_v25 = vld [vmem:[#allocation12 + $0x5c] sm:$0xf0] }
 0x1d9   :  { %6034 = vmatpush.bf16.msra.mxu0 %v9216_v57  ;;  %6010 = vmatpush.bf16.msrb.mxu2 %v8640_v0  ;;  %v8575_v28 = vld [vmem:[#allocation12 + $0x240] sm:$0xf]  ;;  %v8320_v40 = vor.u32 %v10685_v25, %v8319_v24 }
 0x1da   :  { %v10749_v14 = vld [vmem:[#allocation12 + $0x25c] sm:$0xf0] }
 0x1db   :  { %6022 = vmatpush.bf16.msrb.mxu3 %v8928_v36  ;;  %v8863_v29 = vld [vmem:[#allocation12 + $0x480] sm:$0xf]  ;;  %5998 = vmatpush.bf16.msrb.mxu1 %v8352_v22  ;;  %v8576_v37 = vor.u32 %v10749_v14, %v8575_v28 }
 0x1dc   :  { %v10821_v32 = vld [vmem:[#allocation12 + $0x49c] sm:$0xf0] }
 0x1dd   :  { %6035 = vmatpush.bf16.msra.mxu0 %v9184_v10  ;;  %v9119_v33 = vld [vmem:[#allocation12 + $0x680] sm:$0xf]  ;;  %6011 = vmatpush.bf16.msrb.mxu2 %v8608_v23  ;;  %v8864_v47 = vor.u32 %v10821_v32, %v8863_v29  ;;  %v2648_v10 = vpop.f32.mrf.mxu3  ;;  %v2890_v32 = vsel %vm2874_vm10, %v2608_v59, %v2882_v19 }
 0x1de   :  { %v10885_v52 = vld [vmem:[#allocation12 + $0x69c] sm:$0xf0]  ;;  %v11664_v7 = vpack.c.bf16 %v2890_v32, %v2890_v32  ;;  %v8513_v32 = vld [vmem:[#allocation12 + $0x1e0] sm:$0xf0] }
 0x1df   :  { %v8287_v41 = vld [vmem:[#allocation12] sm:$0xf]  ;;  %6023 = vmatpush.bf16.msrb.mxu3 %v8896_v26  ;;  %v9120_v48 = vor.u32 %v10885_v52, %v9119_v33  ;;  %5999 = vmatpush.bf16.msrb.mxu1 %v8320_v40 }
 0x1e0   :  { %v10677_v42 = vld [vmem:[#allocation12 + $0x1c] sm:$0xf0] }
 0x1e1   :  { %v8543_v43 = vld [vmem:[#allocation12 + $0x200] sm:$0xf]  ;;  %6036 = vmatpush.bf16.msra.mxu0 %v9152_v27  ;;  %6012 = vmatpush.bf16.msrb.mxu2 %v8576_v37  ;;  %v8288_v60 = vor.u32 %v10677_v42, %v8287_v41  ;;  %v11662_v37 = vpack.c.bf16 %v2889_v16, %v2889_v16  ;;  %v10729_v16 = vld [vmem:[#allocation12 + $0x1c4] sm:$0xf] }
 0x1e2   :  { %v10741_v49 = vld [vmem:[#allocation12 + $0x21c] sm:$0xf0] }
 0x1e3   :  { %v9535_v51 = vld [vmem:[#allocation12 + $0x9c0] sm:$0xf]  ;;  %v8544_v3 = vor.u32 %v10741_v49, %v8543_v43  ;;  %6024 = vmatpush.bf16.msrb.mxu3 %v8864_v47  ;;  %6000 = vmatpush.bf16.msrb.mxu1 %v8288_v60  ;;  %v2621_v49 = vadd.f32 %v11621_v45, %v739_v34  ;;  %v10793_v34 = vld [vmem:[#allocation12 + $0x3c4] sm:$0xf] }
 0x1e4   :  { %v10989_v53 = vld [vmem:[#allocation12 + $0x9dc] sm:$0xf0] }
 0x1e5   :  { %v9791_v54 = vld [vmem:[#allocation12 + $0xbc0] sm:$0xf]  ;;  %6037 = vmatpush.bf16.msra.mxu0 %v9120_v48  ;;  %v9536_v62 = vor.u32 %v10989_v53, %v9535_v51  ;;  %6013 = vmatpush.bf16.msrb.mxu2 %v8544_v3  ;;  %v2672_v43 = vpop.f32.mrf.mxu1 }
 0x1e6   :  { %v11053_v55 = vld [vmem:[#allocation12 + $0xbdc] sm:$0xf0]  ;;  %6001 = vmatmul.bf16.vlgmr.msrb.gmra.mxu1 %v11650_v18 }
 0x1e7   :  { %v8831_v35 = vld [vmem:[#allocation12 + $0x440] sm:$0xf]  ;;  %v9792_v0 = vor.u32 %v11053_v55, %v9791_v54  ;;  %6045 = vmatpush.bf16.msra.mxu1 %v9536_v62 }
 0x1e8   :  { %v10813_v56 = vld [vmem:[#allocation12 + $0x45c] sm:$0xf0]  ;;  %6014 = vmatmul.bf16.vlgmr.msrb.gmra.mxu2 %v11652_v17 }
 0x1e9   :  { %v9087_v57 = vld [vmem:[#allocation12 + $0x640] sm:$0xf]  ;;  %v8832_v6 = vor.u32 %v10813_v56, %v8831_v35  ;;  %6058 = vmatpush.bf16.msra.mxu2 %v9792_v0 }
 0x1ea   :  { %v10877_v58 = vld [vmem:[#allocation12 + $0x65c] sm:$0xf0]  ;;  %v11673_v44 = vpop.f32.mrf.mxu0 }
 0x1eb   :  { %v9503_v63 = vld [vmem:[#allocation12 + $0x980] sm:$0xf]  ;;  %v9088_v36 = vor.u32 %v10877_v58, %v9087_v57  ;;  %6025 = vmatpush.bf16.msrb.mxu3 %v8832_v6  ;;  %v2634_v57 = vadd.f32 %v11628_v1, %v2621_v49  ;;  %v11671_v61 = vpop.f32.mrf.mxu2 }
 0x1ec   :  { %v10981_v5 = vld [vmem:[#allocation12 + $0x99c] sm:$0xf0] }
 0x1ed   :  { %v9759_v8 = vld [vmem:[#allocation12 + $0xb80] sm:$0xf]  ;;  %v9504_v22 = vor.u32 %v10981_v5, %v9503_v63  ;;  %6038 = vmatpush.bf16.msra.mxu0 %v9088_v36  ;;  %v2647_v60 = vadd.f32 %v11635_v30, %v2634_v57  ;;  %v2674_v36 = vpop.f32.mrf.mxu1  ;;  %v740_v57 = vperm.slane %v11625_v50, 5 }
 0x1ee   :  { %v11045_v11 = vld [vmem:[#allocation12 + $0xb9c] sm:$0xf0] }
 0x1ef   :  { %v8799_v12 = vld [vmem:[#allocation12 + $0x400] sm:$0xf]  ;;  %v9760_v23 = vor.u32 %v11045_v11, %v9759_v8  ;;  %6046 = vmatpush.bf16.msra.mxu1 %v9504_v22  ;;  %v2660_v8 = vadd.f32 %v11630_v4, %v2647_v60 }
 0x1f0   :  { %v10805_v13 = vld [vmem:[#allocation12 + $0x41c] sm:$0xf0] }
 0x1f1   :  { %v9055_v9 = vld [vmem:[#allocation12 + $0x600] sm:$0xf]  ;;  %v8800_v24 = vor.u32 %v10805_v13, %v8799_v12  ;;  %6059 = vmatpush.bf16.msra.mxu2 %v9760_v23 }
 0x1f2   :  { %v10869_v15 = vld [vmem:[#allocation12 + $0x61c] sm:$0xf0] }
 0x1f3   :  { %v10047_v20 = vld [vmem:[#allocation12 + $0xdc0] sm:$0xf]  ;;  %v9056_v25 = vor.u32 %v10869_v15, %v9055_v9  ;;  %6026 = vmatpush.bf16.msrb.mxu3 %v8800_v24  ;;  %v2687_v4 = vpop.f32.mrf.mxu2 }
 0x1f4   :  { %v11117_v21 = vld [vmem:[#allocation12 + $0xddc] sm:$0xf0] }
 0x1f5   :  { %v9471_v26 = vld [vmem:[#allocation12 + $0x940] sm:$0xf]  ;;  %v10048_v29 = vor.u32 %v11117_v21, %v10047_v20  ;;  %6039 = vmatpush.bf16.msra.mxu0 %v9056_v25  ;;  %v2673_v20 = vadd.f32 %v2672_v43, %v2660_v8  ;;  %v11676_v21 = vpop.f32.mrf.mxu3  ;;  %v10721_v43 = vld [vmem:[#allocation12 + $0x184] sm:$0xf] }
 0x1f6   :  { %v10973_v27 = vld [vmem:[#allocation12 + $0x95c] sm:$0xf0]  ;;  %6027 = vmatmul.bf16.vlgmr.msrb.gmra.mxu3 %v11662_v37 }
 0x1f7   :  { %v9727_v28 = vld [vmem:[#allocation12 + $0xb40] sm:$0xf]  ;;  %v9472_v38 = vor.u32 %v10973_v27, %v9471_v26  ;;  %6071 = vmatpush.bf16.msra.mxu3 %v10048_v29  ;;  %v2713_v26 = vpop.f32.mrf.mxu0  ;;  %vm2875_vm11 = vcmp.gt.f32.partialorder %v2673_v20, 0.0 }
 0x1f8   :  { %v11037_v14 = vld [vmem:[#allocation12 + $0xb5c] sm:$0xf0]  ;;  %6040 = vmatmul.bf16.vlgmr.msra.gmra.mxu0 %v11664_v7 }
 0x1f9   :  { %v10015_v33 = vld [vmem:[#allocation12 + $0xd80] sm:$0xf]  ;;  %v9728_v39 = vor.u32 %v11037_v14, %v9727_v28  ;;  %6047 = vmatpush.bf16.msra.mxu1 %v9472_v38  ;;  %v8769_v38 = vld [vmem:[#allocation12 + $0x3e0] sm:$0xf0] }
 0x1fa   :  { %v11109_v52 = vld [vmem:[#allocation12 + $0xd9c] sm:$0xf0] }
 0x1fb   :  { %v9439_v40 = vld [vmem:[#allocation12 + $0x900] sm:$0xf]  ;;  %v10016_v42 = vor.u32 %v11109_v52, %v10015_v33  ;;  %6060 = vmatpush.bf16.msra.mxu2 %v9728_v39  ;;  %v2883_v52 = vmul.f32 0.2, %v2673_v20 }
 0x1fc   :  { %v10965_v2 = vld [vmem:[#allocation12 + $0x91c] sm:$0xf0] }
 0x1fd   :  { %v9695_v41 = vld [vmem:[#allocation12 + $0xb00] sm:$0xf]  ;;  %v9440_v51 = vor.u32 %v10965_v2, %v9439_v40  ;;  %6072 = vmatpush.bf16.msra.mxu3 %v10016_v42  ;;  %v8772_v42 = vor.u32 %v10793_v34, %v8769_v38  ;;  %v2700_v49 = vpop.f32.mrf.mxu3  ;;  %v8641_v34 = vld [vmem:[#allocation12 + $0x2e0] sm:$0xf0] }
 0x1fe   :  { %v11029_v46 = vld [vmem:[#allocation12 + $0xb1c] sm:$0xf0]  ;;  %v8353_v49 = vld [vmem:[#allocation12 + $0xa0] sm:$0xf0] }
 0x1ff   :  { %v9983_v47 = vld [vmem:[#allocation12 + $0xd40] sm:$0xf]  ;;  %v9696_v53 = vor.u32 %v11029_v46, %v9695_v41  ;;  %6048 = vmatpush.bf16.msra.mxu1 %v9440_v51  ;;  %v8516_v46 = vor.u32 %v10729_v16, %v8513_v32  ;;  %v10785_v51 = vld [vmem:[#allocation12 + $0x384] sm:$0xf] }
 0x200   :  { %v11101_v48 = vld [vmem:[#allocation12 + $0xd5c] sm:$0xf0]  ;;  %v10697_v32 = vld [vmem:[#allocation12 + $0xc4] sm:$0xf] }
 0x201   :  { %v9407_v54 = vld [vmem:[#allocation12 + $0x8c0] sm:$0xf]  ;;  %v9984_v56 = vor.u32 %v11101_v48, %v9983_v47  ;;  %6061 = vmatpush.bf16.msra.mxu2 %v9696_v53  ;;  %v8481_v47 = vld [vmem:[#allocation12 + $0x1a0] sm:$0xf0]  ;;  %v2891_v48 = vsel %vm2875_vm11, %v2673_v20, %v2883_v52 }
 0x202   :  { %v10957_v55 = vld [vmem:[#allocation12 + $0x8dc] sm:$0xf0]  ;;  %v8737_v53 = vld [vmem:[#allocation12 + $0x3a0] sm:$0xf0] }
 0x203   :  { %v9663_v35 = vld [vmem:[#allocation12 + $0xac0] sm:$0xf]  ;;  %v9408_v3 = vor.u32 %v10957_v55, %v9407_v54  ;;  %6073 = vmatpush.bf16.msra.mxu3 %v9984_v56  ;;  %v8417_v20 = vld [vmem:[#allocation12 + $0x120] sm:$0xf0] }
 0x204   :  { %v11021_v31 = vld [vmem:[#allocation12 + $0xadc] sm:$0xf0]  ;;  %v10761_v52 = vld [vmem:[#allocation12 + $0x2c4] sm:$0xf] }
 0x205   :  { %v9951_v58 = vld [vmem:[#allocation12 + $0xd00] sm:$0xf]  ;;  %v9664_v45 = vor.u32 %v11021_v31, %v9663_v35  ;;  %6049 = vmatpush.bf16.msra.mxu1 %v9408_v3  ;;  %v11679_v3 = vpack.c.bf16 %v2891_v48, %v2891_v48  ;;  %v10689_v48 = vld [vmem:[#allocation12 + $0x84] sm:$0xf] }
 0x206   :  { %v11093_v59 = vld [vmem:[#allocation12 + $0xd1c] sm:$0xf0] }
 0x207   :  { %v9375_v62 = vld [vmem:[#allocation12 + $0x880] sm:$0xf]  ;;  %v9952_v6 = vor.u32 %v11093_v59, %v9951_v58  ;;  %6062 = vmatpush.bf16.msra.mxu2 %v9664_v45  ;;  %v10857_v58 = vld [vmem:[#allocation12 + $0x5c4] sm:$0xf]  ;;  %v8484_v45 = vor.u32 %v10721_v43, %v8481_v47  ;;  %v8644_v47 = vor.u32 %v10761_v52, %v8641_v34 }
 0x208   :  { %v10949_v0 = vld [vmem:[#allocation12 + $0x89c] sm:$0xf0]  ;;  %v9025_v59 = vld [vmem:[#allocation12 + $0x5e0] sm:$0xf0] }
 0x209   :  { %v9631_v63 = vld [vmem:[#allocation12 + $0xa80] sm:$0xf]  ;;  %v9376_v30 = vor.u32 %v10949_v0, %v9375_v62  ;;  %6074 = vmatpush.bf16.msra.mxu3 %v9952_v6  ;;  %v8740_v62 = vor.u32 %v10785_v51, %v8737_v53  ;;  %v10713_v0 = vld [vmem:[#allocation12 + $0x144] sm:$0xf]  ;;  %v9028_v8 = vor.u32 %v10857_v58, %v9025_v59 }
 0x20a   :  { %v11013_v5 = vld [vmem:[#allocation12 + $0xa9c] sm:$0xf0]  ;;  %v8705_v6 = vld [vmem:[#allocation12 + $0x360] sm:$0xf0] }
 0x20b   :  { %v9919_v1 = vld [vmem:[#allocation12 + $0xcc0] sm:$0xf]  ;;  %v9632_v11 = vor.u32 %v11013_v5, %v9631_v63  ;;  %6050 = vmatpush.bf16.msra.mxu1 %v9376_v30  ;;  %v8449_v63 = vld [vmem:[#allocation12 + $0x160] sm:$0xf0]  ;;  %v2737_v53 = vpop.f32.mrf.mxu2 }
 0x20c   :  { %v11085_v10 = vld [vmem:[#allocation12 + $0xcdc] sm:$0xf0]  ;;  %v10777_v5 = vld [vmem:[#allocation12 + $0x344] sm:$0xf] }
 0x20d   :  { %v9343_v12 = vld [vmem:[#allocation12 + $0x840] sm:$0xf]  ;;  %v9920_v19 = vor.u32 %v11085_v10, %v9919_v1  ;;  %6063 = vmatpush.bf16.msra.mxu2 %v9632_v11  ;;  %v10849_v11 = vld [vmem:[#allocation12 + $0x584] sm:$0xf] }
 0x20e   :  { %v10941_v13 = vld [vmem:[#allocation12 + $0x85c] sm:$0xf0]  ;;  %v10753_v51 = vld [vmem:[#allocation12 + $0x284] sm:$0xf] }
 0x20f   :  { %v9599_v9 = vld [vmem:[#allocation12 + $0xa40] sm:$0xf]  ;;  %v9344_v24 = vor.u32 %v10941_v13, %v9343_v12  ;;  %6075 = vmatpush.bf16.msra.mxu3 %v9920_v19  ;;  %v8993_v12 = vld [vmem:[#allocation12 + $0x5a0] sm:$0xf0]  ;;  %v2686_v13 = vadd.f32 %v11671_v61, %v740_v57 }
 0x210   :  { %v11005_v15 = vld [vmem:[#allocation12 + $0xa5c] sm:$0xf0]  ;;  %v10705_v19 = vld [vmem:[#allocation12 + $0x104] sm:$0xf] }
 0x211   :  { %v9887_v22 = vld [vmem:[#allocation12 + $0xc80] sm:$0xf]  ;;  %v9600_v25 = vor.u32 %v11005_v15, %v9599_v9  ;;  %6051 = vmatpush.bf16.msra.mxu1 %v9344_v24  ;;  %v8452_v9 = vor.u32 %v10713_v0, %v8449_v63  ;;  %v8708_v15 = vor.u32 %v10777_v5, %v8705_v6  ;;  %v2699_v24 = vadd.f32 %v11676_v21, %v2686_v13  ;;  %v10825_v59 = vld [vmem:[#allocation12 + $0x4c4] sm:$0xf] }
 0x212   :  { %v11077_v23 = vld [vmem:[#allocation12 + $0xc9c] sm:$0xf0]  ;;  %v10681_v63 = vld [vmem:[#allocation12 + $0x44] sm:$0xf] }
 0x213   :  { %v9311_v27 = vld [vmem:[#allocation12 + $0x800] sm:$0xf]  ;;  %v9888_v33 = vor.u32 %v11077_v23, %v9887_v22  ;;  %6064 = vmatpush.bf16.msra.mxu2 %v9600_v25  ;;  %v10769_v22 = vld [vmem:[#allocation12 + $0x304] sm:$0xf]  ;;  %v8996_v25 = vor.u32 %v10849_v11, %v8993_v12  ;;  %v2712_v21 = vadd.f32 %v11673_v44, %v2699_v24  ;;  %v11689_v12 = vpop.f32.mrf.mxu3 }
 0x214   :  { %v10933_v28 = vld [vmem:[#allocation12 + $0x81c] sm:$0xf0]  ;;  %v8673_v23 = vld [vmem:[#allocation12 + $0x320] sm:$0xf0] }
 0x215   :  { %v9567_v14 = vld [vmem:[#allocation12 + $0xa00] sm:$0xf]  ;;  %v9312_v2 = vor.u32 %v10933_v28, %v9311_v27  ;;  %6076 = vmatpush.bf16.msra.mxu3 %v9888_v33  ;;  %v2724_v27 = vpop.f32.mrf.mxu1  ;;  %v10841_v28 = vld [vmem:[#allocation12 + $0x544] sm:$0xf]  ;;  %v8676_v16 = vor.u32 %v10769_v22, %v8673_v23 }
 0x216   :  { %v10997_v29 = vld [vmem:[#allocation12 + $0xa1c] sm:$0xf0]  ;;  %v8385_v33 = vld [vmem:[#allocation12 + $0xe0] sm:$0xf0] }
 0x217   :  { %v9855_v39 = vld [vmem:[#allocation12 + $0xc40] sm:$0xf]  ;;  %v9568_v41 = vor.u32 %v10997_v29, %v9567_v14  ;;  %6052 = vmatpush.bf16.msra.mxu1 %v9312_v2  ;;  %v8961_v14 = vld [vmem:[#allocation12 + $0x560] sm:$0xf0]  ;;  %v8420_v29 = vor.u32 %v10705_v19, %v8417_v20  ;;  %v8388_v43 = vor.u32 %v10697_v32, %v8385_v33 }
 0x218   :  { %v11069_v40 = vld [vmem:[#allocation12 + $0xc5c] sm:$0xf0]  ;;  %v8321_v5 = vld [vmem:[#allocation12 + $0x60] sm:$0xf0] }
 0x219   :  { %v9856_v54 = vor.u32 %v11069_v40, %v9855_v39  ;;  %v9823_v55 = vld [vmem:[#allocation12 + $0xc00] sm:$0xf]  ;;  %6065 = vmatpush.bf16.msra.mxu2 %v9568_v41  ;;  %v8964_v40 = vor.u32 %v10841_v28, %v8961_v14  ;;  %v10833_v41 = vld [vmem:[#allocation12 + $0x504] sm:$0xf]  ;;  %v8324_v20 = vor.u32 %v10681_v63, %v8321_v5 }
 0x21a   :  { %v11061_v35 = vld [vmem:[#allocation12 + $0xc1c] sm:$0xf0]  ;;  %6053 = vmatmul.bf16.vlgmr.msra.gmra.mxu1 %v11679_v3  ;;  %v10745_v6 = vld [vmem:[#allocation12 + $0x244] sm:$0xf] }
 0x21b   :  { %v10303_v31 = vld [vmem:[#allocation12 + $0xfc0] sm:$0xf]  ;;  %6097 = vmatpush.bf16.msrb.mxu1 %v8516_v46  ;;  %6077 = vmatpush.bf16.msra.mxu3 %v9856_v54  ;;  %v9824_v36 = vor.u32 %v11061_v35, %v9823_v55  ;;  %v8929_v46 = vld [vmem:[#allocation12 + $0x520] sm:$0xf0]  ;;  %v11685_v54 = vpop.f32.mrf.mxu0 }
 0x21c   :  { %v11181_v56 = vld [vmem:[#allocation12 + $0xfdc] sm:$0xf0]  ;;  %v8609_v55 = vld [vmem:[#allocation12 + $0x2a0] sm:$0xf0] }
 0x21d   :  { %v10304_v60 = vor.u32 %v11181_v56, %v10303_v31  ;;  %6110 = vmatpush.bf16.msrb.mxu2 %v8772_v42  ;;  %v10271_v1 = vld [vmem:[#allocation12 + $0xf80] sm:$0xf]  ;;  %v2725_v42 = vadd.f32 %v2724_v27, %v2712_v21  ;;  %v8932_v56 = vor.u32 %v10833_v41, %v8929_v46  ;;  %v2726_v58 = vpop.f32.mrf.mxu1  ;;  %v8612_v0 = vor.u32 %v10753_v51, %v8609_v55  ;;  %v10673_v13 = vld [vmem:[#allocation12 + $0x4] sm:$0xf] }
 0x21e   :  { %v11173_v10 = vld [vmem:[#allocation12 + $0xf9c] sm:$0xf0]  ;;  %v8289_v23 = vld [vmem:[#allocation12 + $0x20] sm:$0xf0] }
 0x21f   :  { %6084 = vmatpush.bf16.msrb.mxu0 %v10304_v60  ;;  %v10272_v30 = vor.u32 %v11173_v10, %v10271_v1  ;;  %6098 = vmatpush.bf16.msrb.mxu1 %v8484_v45  ;;  %v10239_v4 = vld [vmem:[#allocation12 + $0xf40] sm:$0xf]  ;;  %v2738_v31 = vadd.f32 %v2737_v53, %v2725_v42  ;;  %v8897_v60 = vld [vmem:[#allocation12 + $0x4e0] sm:$0xf0] }
 0x220   :  { %6078 = vmatpush.bf16.msra.mxu3 %v9824_v36  ;;  %v11165_v26 = vld [vmem:[#allocation12 + $0xf5c] sm:$0xf0]  ;;  %v8577_v36 = vld [vmem:[#allocation12 + $0x260] sm:$0xf0]  ;;  %v8900_v10 = vor.u32 %v10825_v59, %v8897_v60 }
 0x221   :  { %6111 = vmatpush.bf16.msrb.mxu2 %v8740_v62  ;;  %v10240_v61 = vor.u32 %v11165_v26, %v10239_v4  ;;  %v10207_v38 = vld [vmem:[#allocation12 + $0xf00] sm:$0xf]  ;;  %vm2876_vm12 = vcmp.gt.f32.partialorder %v2738_v31, 0.0  ;;  %v2884_v45 = vmul.f32 0.2, %v2738_v31  ;;  %v8356_v62 = vor.u32 %v10689_v48, %v8353_v49  ;;  %v2739_v4 = vpop.f32.mrf.mxu2  ;;  %v2752_v48 = vpop.f32.mrf.mxu3 }
 0x222   :  { %v11157_v39 = vld [vmem:[#allocation12 + $0xf1c] sm:$0xf0]  ;;  %v8580_v22 = vor.u32 %v10745_v6, %v8577_v36  ;;  %v10737_v24 = vld [vmem:[#allocation12 + $0x204] sm:$0xf] }
 0x223   :  { %6085 = vmatpush.bf16.msrb.mxu0 %v10272_v30  ;;  %6099 = vmatpush.bf16.msrb.mxu1 %v8452_v9  ;;  %v10208_v2 = vor.u32 %v11157_v39, %v10207_v38  ;;  %v10175_v35 = vld [vmem:[#allocation12 + $0xec0] sm:$0xf]  ;;  %v2892_v1 = vsel %vm2876_vm12, %v2738_v31, %v2884_v45  ;;  %v10817_v9 = vld [vmem:[#allocation12 + $0x484] sm:$0xf]  ;;  %v2765_v26 = vpop.f32.mrf.mxu0  ;;  %v8292_v38 = vor.u32 %v10673_v13, %v8289_v23  ;;  %v741_v13 = vperm.slane %v11625_v50, 6 }
 0x224   :  { %6123 = vmatpush.bf16.msrb.mxu3 %v9028_v8  ;;  %v11149_v44 = vld [vmem:[#allocation12 + $0xedc] sm:$0xf0]  ;;  %v11687_v11 = vpack.c.bf16 %v2892_v1, %v2892_v1  ;;  %v10985_v27 = vld [vmem:[#allocation12 + $0x9c4] sm:$0xf] }
 0x225   :  { %6112 = vmatpush.bf16.msrb.mxu2 %v8708_v15  ;;  %v10176_v57 = vor.u32 %v11149_v44, %v10175_v35  ;;  %v10143_v8 = vld [vmem:[#allocation12 + $0xe80] sm:$0xf]  ;;  %v8865_v15 = vld [vmem:[#allocation12 + $0x4a0] sm:$0xf0] }
 0x226   :  { %v11141_v30 = vld [vmem:[#allocation12 + $0xe9c] sm:$0xf0]  ;;  %6066 = vmatmul.bf16.vlgmr.msra.gmra.mxu2 %v11687_v11  ;;  %v9537_v28 = vld [vmem:[#allocation12 + $0x9e0] sm:$0xf0] }
 0x227   :  { %6086 = vmatpush.bf16.msrb.mxu0 %v10240_v61  ;;  %6100 = vmatpush.bf16.msrb.mxu1 %v8420_v29  ;;  %v10144_v19 = vor.u32 %v11141_v30, %v10143_v8  ;;  %v11049_v14 = vld [vmem:[#allocation12 + $0xbc4] sm:$0xf]  ;;  %v8868_v29 = vor.u32 %v10817_v9, %v8865_v15  ;;  %v11133_v32 = vld [vmem:[#allocation12 + $0xe5c] sm:$0xf0]  ;;  %v9540_v21 = vor.u32 %v10985_v27, %v9537_v28 }
 0x228   :  { %6124 = vmatpush.bf16.msrb.mxu3 %v8996_v25  ;;  %v8545_v25 = vld [vmem:[#allocation12 + $0x220] sm:$0xf0]  ;;  %v10079_v51 = vld [vmem:[#allocation12 + $0xe00] sm:$0xf]  ;;  %v2751_v27 = vadd.f32 %v11689_v12, %v741_v13 }
 0x229   :  { %6113 = vmatpush.bf16.msrb.mxu2 %v8676_v16  ;;  %v9793_v61 = vld [vmem:[#allocation12 + $0xbe0] sm:$0xf0]  ;;  %v10111_v16 = vld [vmem:[#allocation12 + $0xe40] sm:$0xf]  ;;  %v8548_v39 = vor.u32 %v10737_v24, %v8545_v25 }
 0x22a   :  { %v10809_v33 = vld [vmem:[#allocation12 + $0x444] sm:$0xf]  ;;  %v10112_v34 = vor.u32 %v11133_v32, %v10111_v16  ;;  %v11125_v53 = vld [vmem:[#allocation12 + $0xe1c] sm:$0xf0] }
 0x22b   :  { %6087 = vmatpush.bf16.msrb.mxu0 %v10208_v2  ;;  %6101 = vmatpush.bf16.msrb.mxu1 %v8388_v43  ;;  %v8833_v52 = vld [vmem:[#allocation12 + $0x460] sm:$0xf0]  ;;  %v10080_v55 = vor.u32 %v11125_v53, %v10079_v51 }
 0x22c   :  { %6125 = vmatpush.bf16.msrb.mxu3 %v8964_v40  ;;  %v9796_v40 = vor.u32 %v11049_v14, %v9793_v61  ;;  %v10977_v2 = vld [vmem:[#allocation12 + $0x984] sm:$0xf]  ;;  %v8836_v43 = vor.u32 %v10809_v33, %v8833_v52 }
 0x22d   :  { %6114 = vmatpush.bf16.msrb.mxu2 %v8644_v47  ;;  %v9505_v41 = vld [vmem:[#allocation12 + $0x9a0] sm:$0xf0] }
 0x22e   :  { %v11041_v46 = vld [vmem:[#allocation12 + $0xb84] sm:$0xf]  ;;  %v9508_v31 = vor.u32 %v10977_v2, %v9505_v41 }
 0x22f   :  { %6088 = vmatpush.bf16.msrb.mxu0 %v10176_v57  ;;  %6102 = vmatpush.bf16.msrb.mxu1 %v8356_v62  ;;  %v9761_v42 = vld [vmem:[#allocation12 + $0xba0] sm:$0xf0] }
 0x230   :  { %6126 = vmatpush.bf16.msrb.mxu3 %v8932_v56  ;;  %v10801_v47 = vld [vmem:[#allocation12 + $0x404] sm:$0xf]  ;;  %v9764_v56 = vor.u32 %v11041_v46, %v9761_v42 }
 0x231   :  { %6115 = vmatpush.bf16.msrb.mxu2 %v8612_v0  ;;  %v8801_v49 = vld [vmem:[#allocation12 + $0x420] sm:$0xf0] }
 0x232   :  { %v10921_v35 = vld [vmem:[#allocation12 + $0x7c4] sm:$0xf]  ;;  %v8804_v62 = vor.u32 %v10801_v47, %v8801_v49 }
 0x233   :  { %6089 = vmatpush.bf16.msrb.mxu0 %v10144_v19  ;;  %6103 = vmatpush.bf16.msrb.mxu1 %v8324_v20  ;;  %v9281_v44 = vld [vmem:[#allocation12 + $0x7e0] sm:$0xf0]  ;;  %v2776_v19 = vpop.f32.mrf.mxu1 }
 0x234   :  { %6127 = vmatpush.bf16.msrb.mxu3 %v8900_v10  ;;  %v10969_v57 = vld [vmem:[#allocation12 + $0x944] sm:$0xf]  ;;  %v9284_v58 = vor.u32 %v10921_v35, %v9281_v44 }
 0x235   :  { %6116 = vmatpush.bf16.msrb.mxu2 %v8580_v22  ;;  %v9473_v59 = vld [vmem:[#allocation12 + $0x960] sm:$0xf0] }
 0x236   :  { %v11033_v60 = vld [vmem:[#allocation12 + $0xb44] sm:$0xf]  ;;  %v9476_v5 = vor.u32 %v10969_v57, %v9473_v59 }
 0x237   :  { %6090 = vmatpush.bf16.msrb.mxu0 %v10112_v34  ;;  %6104 = vmatpush.bf16.msrb.mxu1 %v8292_v38  ;;  %v9729_v45 = vld [vmem:[#allocation12 + $0xb60] sm:$0xf0]  ;;  %v2789_v34 = vpop.f32.mrf.mxu2  ;;  %v11696_v38 = vpop.f32.mrf.mxu0 }
 0x238   :  { %6128 = vmatpush.bf16.msrb.mxu3 %v8868_v29  ;;  %v10913_v0 = vld [vmem:[#allocation12 + $0x784] sm:$0xf]  ;;  %v9732_v6 = vor.u32 %v11033_v60, %v9729_v45  ;;  %v8519_v45 = vld [vmem:[#allocation12 + $0x1c8] sm:$0xf] }
 0x239   :  { %6117 = vmatpush.bf16.msrb.mxu2 %v8548_v39  ;;  %v9249_v63 = vld [vmem:[#allocation12 + $0x7a0] sm:$0xf0]  ;;  %v2764_v39 = vadd.f32 %v11685_v54, %v2751_v27  ;;  %v2802_v54 = vpop.f32.mrf.mxu3 }
 0x23a   :  { %6105 = vmatmul.bf16.vlgmr.msrb.gmra.mxu1 %v11650_v18  ;;  %v10961_v36 = vld [vmem:[#allocation12 + $0x904] sm:$0xf]  ;;  %v9252_v1 = vor.u32 %v10913_v0, %v9249_v63  ;;  %v10734_v63 = vld [vmem:[#allocation12 + $0x1e4] sm:$0xf0] }
 0x23b   :  { %6149 = vmatpush.bf16.msra.mxu1 %v9540_v21  ;;  %6091 = vmatpush.bf16.msrb.mxu0 %v10080_v55  ;;  %v9441_v10 = vld [vmem:[#allocation12 + $0x920] sm:$0xf0]  ;;  %v2778_v12 = vpop.f32.mrf.mxu1 }
 0x23c   :  { %6129 = vmatpush.bf16.msrb.mxu3 %v8836_v43  ;;  %v11025_v8 = vld [vmem:[#allocation12 + $0xb04] sm:$0xf]  ;;  %v9444_v20 = vor.u32 %v10961_v36, %v9441_v10  ;;  %6118 = vmatmul.bf16.vlgmr.msrb.gmra.mxu2 %v11652_v17  ;;  %v2777_v43 = vadd.f32 %v2776_v19, %v2764_v39  ;;  %v8711_v39 = vld [vmem:[#allocation12 + $0x348] sm:$0xf] }
 0x23d   :  { %6162 = vmatpush.bf16.msra.mxu2 %v9796_v40  ;;  %v9697_v30 = vld [vmem:[#allocation12 + $0xb20] sm:$0xf0] }
 0x23e   :  { %v10905_v9 = vld [vmem:[#allocation12 + $0x744] sm:$0xf]  ;;  %v9700_v22 = vor.u32 %v11025_v8, %v9697_v30  ;;  %v2790_v51 = vadd.f32 %v2789_v34, %v2777_v43  ;;  %v10718_v34 = vld [vmem:[#allocation12 + $0x164] sm:$0xf0] }
 0x23f   :  { %6136 = vmatpush.bf16.msra.mxu0 %v9284_v58  ;;  %6150 = vmatpush.bf16.msra.mxu1 %v9508_v31  ;;  %v9217_v15 = vld [vmem:[#allocation12 + $0x760] sm:$0xf0]  ;;  %v2817_v0 = vpop.f32.mrf.mxu0  ;;  %v10710_v43 = vld [vmem:[#allocation12 + $0x124] sm:$0xf0] }
 0x240   :  { %6130 = vmatpush.bf16.msrb.mxu3 %v8804_v62  ;;  %v10953_v23 = vld [vmem:[#allocation12 + $0x8c4] sm:$0xf]  ;;  %v9220_v24 = vor.u32 %v10905_v9, %v9217_v15  ;;  %v2803_v58 = vadd.f32 %v2802_v54, %v2790_v51  ;;  %v2791_v62 = vpop.f32.mrf.mxu2  ;;  %v8520_v9 = vor.u32 %v10734_v63, %v8519_v45 }
 0x241   :  { %6163 = vmatpush.bf16.msra.mxu2 %v9764_v56  ;;  %v9409_v25 = vld [vmem:[#allocation12 + $0x8e0] sm:$0xf0]  ;;  %v2804_v27 = vpop.f32.mrf.mxu3 }
 0x242   :  { %v11017_v4 = vld [vmem:[#allocation12 + $0xac4] sm:$0xf]  ;;  %v9412_v50 = vor.u32 %v10953_v23, %v9409_v25  ;;  %vm2877_vm13 = vcmp.gt.f32.partialorder %v2803_v58, 0.0  ;;  %v2885_v36 = vmul.f32 0.2, %v2803_v58 }
 0x243   :  { %6137 = vmatpush.bf16.msra.mxu0 %v9252_v1  ;;  %6151 = vmatpush.bf16.msra.mxu1 %v9476_v5  ;;  %v9665_v26 = vld [vmem:[#allocation12 + $0xae0] sm:$0xf0]  ;;  %v8775_v5 = vld [vmem:[#allocation12 + $0x3c8] sm:$0xf] }
 0x244   :  { %v10897_v28 = vld [vmem:[#allocation12 + $0x704] sm:$0xf]  ;;  %v9668_v61 = vor.u32 %v11017_v4, %v9665_v26  ;;  %v2893_v13 = vsel %vm2877_vm13, %v2803_v58, %v2885_v36  ;;  %v10726_v25 = vld [vmem:[#allocation12 + $0x1a4] sm:$0xf0]  ;;  %v11201_v58 = vld [vmem:[#allocation11] sm:$0xff] }
 0x245   :  { %6164 = vmatpush.bf16.msra.mxu2 %v9732_v6  ;;  %v9185_v14 = vld [vmem:[#allocation12 + $0x720] sm:$0xf0]  ;;  %v10798_v6 = vld [vmem:[#allocation12 + $0x3e4] sm:$0xf0] }
 0x246   :  { %v10945_v29 = vld [vmem:[#allocation12 + $0x884] sm:$0xf]  ;;  %v9188_v16 = vor.u32 %v10897_v28, %v9185_v14  ;;  %v8776_v15 = vor.u32 %v10798_v6, %v8775_v5  ;;  %v8743_v4 = vld [vmem:[#allocation12 + $0x388] sm:$0xf] }
 0x247   :  { %6138 = vmatpush.bf16.msra.mxu0 %v9220_v24  ;;  %6152 = vmatpush.bf16.msra.mxu1 %v9444_v20  ;;  %v9377_v32 = vld [vmem:[#allocation12 + $0x8a0] sm:$0xf0]  ;;  %v11699_v24 = vpack.c.bf16 %v2893_v13, %v2893_v13  ;;  %v10790_v26 = vld [vmem:[#allocation12 + $0x3a4] sm:$0xf0] }
 0x248   :  { %v11009_v33 = vld [vmem:[#allocation12 + $0xa84] sm:$0xf]  ;;  %v9380_v2 = vor.u32 %v10945_v29, %v9377_v32  ;;  %v8744_v29 = vor.u32 %v10790_v26, %v8743_v4  ;;  %v8359_v5 = vld [vmem:[#allocation12 + $0x88] sm:$0xf] }
 0x249   :  { %6165 = vmatpush.bf16.msra.mxu2 %v9700_v22  ;;  %v9633_v52 = vld [vmem:[#allocation12 + $0xaa0] sm:$0xf0]  ;;  %v8487_v22 = vld [vmem:[#allocation12 + $0x188] sm:$0xf]  ;;  %6079 = vmatmul.bf16.vlgmr.msra.gmra.mxu3 %v11699_v24 }
 0x24a   :  { %v10889_v21 = vld [vmem:[#allocation12 + $0x6c4] sm:$0xf]  ;;  %v9636_v41 = vor.u32 %v11009_v33, %v9633_v52  ;;  %v8455_v33 = vld [vmem:[#allocation12 + $0x148] sm:$0xf] }
 0x24b   :  { %6139 = vmatpush.bf16.msra.mxu0 %v9188_v16  ;;  %v9153_v40 = vld [vmem:[#allocation12 + $0x6e0] sm:$0xf0]  ;;  %6153 = vmatpush.bf16.msra.mxu1 %v9412_v50  ;;  %v8456_v12 = vor.u32 %v10718_v34, %v8455_v33  ;;  %v10694_v6 = vld [vmem:[#allocation12 + $0xa4] sm:$0xf0] }
 0x24c   :  { %v10937_v46 = vld [vmem:[#allocation12 + $0x844] sm:$0xf]  ;;  %v9156_v42 = vor.u32 %v10889_v21, %v9153_v40  ;;  %v10782_v21 = vld [vmem:[#allocation12 + $0x364] sm:$0xf0] }
 0x24d   :  { %6166 = vmatpush.bf16.msra.mxu2 %v9668_v61  ;;  %v9345_v47 = vld [vmem:[#allocation12 + $0x860] sm:$0xf0]  ;;  %v8488_v61 = vor.u32 %v10726_v25, %v8487_v22  ;;  %v8615_v36 = vld [vmem:[#allocation12 + $0x288] sm:$0xf] }
 0x24e   :  { %v11001_v48 = vld [vmem:[#allocation12 + $0xa44] sm:$0xf]  ;;  %v9348_v35 = vor.u32 %v10937_v46, %v9345_v47  ;;  %v8679_v47 = vld [vmem:[#allocation12 + $0x308] sm:$0xf] }
 0x24f   :  { %v9601_v49 = vld [vmem:[#allocation12 + $0xa60] sm:$0xf0]  ;;  %6140 = vmatpush.bf16.msra.mxu0 %v9156_v42  ;;  %6154 = vmatpush.bf16.msra.mxu1 %v9380_v2  ;;  %v8712_v2 = vor.u32 %v10782_v21, %v8711_v39  ;;  %v8423_v42 = vld [vmem:[#allocation12 + $0x108] sm:$0xf] }
 0x250   :  { %v10881_v53 = vld [vmem:[#allocation12 + $0x684] sm:$0xf]  ;;  %v9604_v44 = vor.u32 %v11001_v48, %v9601_v49  ;;  %v10774_v48 = vld [vmem:[#allocation12 + $0x324] sm:$0xf0]  ;;  %v8424_v51 = vor.u32 %v10710_v43, %v8423_v42 }
 0x251   :  { %v9121_v55 = vld [vmem:[#allocation12 + $0x6a0] sm:$0xf0]  ;;  %6167 = vmatpush.bf16.msra.mxu2 %v9636_v41  ;;  %v8327_v22 = vld [vmem:[#allocation12 + $0x48] sm:$0xf]  ;;  %v2854_v33 = vpop.f32.mrf.mxu3 }
 0x252   :  { %v10929_v31 = vld [vmem:[#allocation12 + $0x804] sm:$0xf]  ;;  %v9124_v57 = vor.u32 %v10881_v53, %v9121_v55  ;;  %v8680_v53 = vor.u32 %v10774_v48, %v8679_v47  ;;  %v10686_v25 = vld [vmem:[#allocation12 + $0x64] sm:$0xf0] }
 0x253   :  { %v9313_v56 = vld [vmem:[#allocation12 + $0x820] sm:$0xf0]  ;;  %6155 = vmatpush.bf16.msra.mxu1 %v9348_v35  ;;  %v8391_v35 = vld [vmem:[#allocation12 + $0xc8] sm:$0xf] }
 0x254   :  { %v10993_v59 = vld [vmem:[#allocation12 + $0xa04] sm:$0xf]  ;;  %6141 = vmatpush.bf16.msra.mxu0 %v9124_v57  ;;  %v9316_v10 = vor.u32 %v10929_v31, %v9313_v56  ;;  %v10702_v31 = vld [vmem:[#allocation12 + $0xe4] sm:$0xf0] }
 0x255   :  { %v9569_v60 = vld [vmem:[#allocation12 + $0xa20] sm:$0xf0]  ;;  %6168 = vmatpush.bf16.msra.mxu2 %v9604_v44  ;;  %v2828_v44 = vpop.f32.mrf.mxu1  ;;  %v8647_v56 = vld [vmem:[#allocation12 + $0x2c8] sm:$0xf]  ;;  %v8392_v45 = vor.u32 %v10702_v31, %v8391_v35 }
 0x256   :  { %v10873_v1 = vld [vmem:[#allocation12 + $0x644] sm:$0xf]  ;;  %v9572_v8 = vor.u32 %v10993_v59, %v9569_v60  ;;  %v10766_v57 = vld [vmem:[#allocation12 + $0x2e4] sm:$0xf0]  ;;  %v742_v59 = vperm.slane %v11201_v58, 7 }
 0x257   :  { %v9089_v30 = vld [vmem:[#allocation12 + $0x660] sm:$0xf0]  ;;  %6156 = vmatpush.bf16.msra.mxu1 %v9316_v10  ;;  %v8648_v62 = vor.u32 %v10766_v57, %v8647_v56  ;;  %v2841_v10 = vpop.f32.mrf.mxu2  ;;  %v8583_v4 = vld [vmem:[#allocation12 + $0x248] sm:$0xf] }
 0x258   :  { %v11113_v19 = vld [vmem:[#allocation12 + $0xdc4] sm:$0xf]  ;;  %v9092_v23 = vor.u32 %v10873_v1, %v9089_v30  ;;  %v10758_v1 = vld [vmem:[#allocation12 + $0x2a4] sm:$0xf0]  ;;  %v2816_v13 = vadd.f32 %v11696_v38, %v742_v59  ;;  %v8328_v38 = vor.u32 %v10686_v25, %v8327_v22 }
 0x259   :  { %v10049_v20 = vld [vmem:[#allocation12 + $0xde0] sm:$0xf0]  ;;  %6169 = vmatpush.bf16.msra.mxu2 %v9572_v8  ;;  %v2867_v8 = vpop.f32.mrf.mxu0  ;;  %6131 = vmatmul.bf16.vlgmr.msrb.gmra.mxu3 %v11662_v37  ;;  %v10750_v26 = vld [vmem:[#allocation12 + $0x264] sm:$0xf0] }
 0x25a   :  { %6142 = vmatpush.bf16.msra.mxu0 %v9092_v23  ;;  %v10052_v28 = vor.u32 %v11113_v19, %v10049_v20  ;;  %v10865_v14 = vld [vmem:[#allocation12 + $0x604] sm:$0xf]  ;;  %6157 = vmatmul.bf16.vlgmr.msra.gmra.mxu1 %v11679_v3  ;;  %v2829_v27 = vadd.f32 %v2828_v44, %v2816_v13  ;;  %v10742_v34 = vld [vmem:[#allocation12 + $0x224] sm:$0xf0] }
 0x25b   :  { %v9057_v50 = vld [vmem:[#allocation12 + $0x620] sm:$0xf0]  ;;  %6201 = vmatpush.bf16.msrb.mxu1 %v8520_v9  ;;  %v8360_v9 = vor.u32 %v10694_v6, %v8359_v5  ;;  %v9543_v39 = vld [vmem:[#allocation12 + $0x9c8] sm:$0xf]  ;;  %v2856_v5 = vpop.f32.mrf.mxu3 }
 0x25c   :  { %v11105_v16 = vld [vmem:[#allocation12 + $0xd84] sm:$0xf]  ;;  %v9060_v52 = vor.u32 %v10865_v14, %v9057_v50  ;;  %6170 = vmatmul.bf16.vlgmr.msra.gmra.mxu2 %v11687_v11  ;;  %6175 = vmatpush.bf16.msra.mxu3 %v10052_v28  ;;  %v2842_v50 = vadd.f32 %v2841_v10, %v2829_v27  ;;  %v10862_v35 = vld [vmem:[#allocation12 + $0x5e4] sm:$0xf0] }
 0x25d   :  { %6214 = vmatpush.bf16.msrb.mxu2 %v8776_v15  ;;  %v10017_v32 = vld [vmem:[#allocation12 + $0xda0] sm:$0xf0]  ;;  %v8616_v15 = vor.u32 %v10758_v1, %v8615_v36  ;;  %v2830_v23 = vpop.f32.mrf.mxu1  ;;  %v9511_v31 = vld [vmem:[#allocation12 + $0x988] sm:$0xf] }
 0x25e   :  { %v10020_v40 = vor.u32 %v11105_v16, %v10017_v32  ;;  %6143 = vmatpush.bf16.msra.mxu0 %v9060_v52  ;;  %v11097_v41 = vld [vmem:[#allocation12 + $0xd44] sm:$0xf]  ;;  %v8295_v16 = vld [vmem:[#allocation12 + $0x8] sm:$0xf]  ;;  %v2855_v21 = vadd.f32 %v2854_v33, %v2842_v50 }
 0x25f   :  { %6202 = vmatpush.bf16.msrb.mxu1 %v8488_v61  ;;  %v9985_v46 = vld [vmem:[#allocation12 + $0xd60] sm:$0xf0]  ;;  %v8584_v61 = vor.u32 %v10750_v26, %v8583_v4  ;;  %v10678_v32 = vld [vmem:[#allocation12 + $0x24] sm:$0xf0] }
 0x260   :  { %6176 = vmatpush.bf16.msra.mxu3 %v10020_v40  ;;  %v9988_v49 = vor.u32 %v11097_v41, %v9985_v46  ;;  %v11089_v55 = vld [vmem:[#allocation12 + $0xd04] sm:$0xf]  ;;  %v8551_v52 = vld [vmem:[#allocation12 + $0x208] sm:$0xf]  ;;  %v2843_v41 = vpop.f32.mrf.mxu2  ;;  %v2868_v43 = vadd.f32 %v2867_v8, %v2855_v21  ;;  %v8296_v47 = vor.u32 %v10678_v32, %v8295_v16 }
 0x261   :  { %6215 = vmatpush.bf16.msrb.mxu2 %v8744_v29  ;;  %v9953_v54 = vld [vmem:[#allocation12 + $0xd20] sm:$0xf0]  ;;  %v10990_v40 = vld [vmem:[#allocation12 + $0x9e4] sm:$0xf0]  ;;  %v2869_v46 = vpop.f32.mrf.mxu0  ;;  %v8552_v48 = vor.u32 %v10742_v34, %v8551_v52 }
 0x262   :  { %v9956_v60 = vor.u32 %v11089_v55, %v9953_v54  ;;  %v11081_v0 = vld [vmem:[#allocation12 + $0xcc4] sm:$0xf]  ;;  %v9544_v55 = vor.u32 %v10990_v40, %v9543_v39  ;;  %vm2878_vm14 = vcmp.gt.f32.partialorder %v2868_v43, 0.0  ;;  %v2886_v56 = vmul.f32 0.2, %v2868_v43 }
 0x263   :  { %6203 = vmatpush.bf16.msrb.mxu1 %v8456_v12  ;;  %v9921_v63 = vld [vmem:[#allocation12 + $0xce0] sm:$0xf0]  ;;  %v9799_v12 = vld [vmem:[#allocation12 + $0xbc8] sm:$0xf] }
 0x264   :  { %6177 = vmatpush.bf16.msra.mxu3 %v9988_v49  ;;  %v9924_v30 = vor.u32 %v11081_v0, %v9921_v63  ;;  %v11073_v19 = vld [vmem:[#allocation12 + $0xc84] sm:$0xf]  ;;  %v10982_v57 = vld [vmem:[#allocation12 + $0x9a4] sm:$0xf0] }
 0x265   :  { %6216 = vmatpush.bf16.msrb.mxu2 %v8712_v2  ;;  %v9889_v20 = vld [vmem:[#allocation12 + $0xca0] sm:$0xf0]  ;;  %v11054_v2 = vld [vmem:[#allocation12 + $0xbe4] sm:$0xf0]  ;;  %v9512_v6 = vor.u32 %v10982_v57, %v9511_v31  ;;  %v6002_v41 = vpop.f32.mrf.mxu1 }
 0x266   :  { %v9892_v28 = vor.u32 %v11073_v19, %v9889_v20  ;;  %v11065_v14 = vld [vmem:[#allocation12 + $0xc44] sm:$0xf]  ;;  %v9800_v54 = vor.u32 %v11054_v2, %v9799_v12  ;;  %v8999_v36 = vld [vmem:[#allocation12 + $0x588] sm:$0xf] }
 0x267   :  { %6204 = vmatpush.bf16.msrb.mxu1 %v8424_v51  ;;  %v9857_v29 = vld [vmem:[#allocation12 + $0xc60] sm:$0xf0]  ;;  %v10854_v1 = vld [vmem:[#allocation12 + $0x5a4] sm:$0xf0] }
 0x268   :  { %6178 = vmatpush.bf16.msra.mxu3 %v9956_v60  ;;  %v9860_v42 = vor.u32 %v11065_v14, %v9857_v29  ;;  %v11057_v49 = vld [vmem:[#allocation12 + $0xc04] sm:$0xf]  ;;  %v9767_v60 = vld [vmem:[#allocation12 + $0xb88] sm:$0xf]  ;;  %v9000_v22 = vor.u32 %v10854_v1, %v8999_v36 }
 0x269   :  { %6217 = vmatpush.bf16.msrb.mxu2 %v8680_v53  ;;  %v9825_v51 = vld [vmem:[#allocation12 + $0xc20] sm:$0xf0]  ;;  %v9031_v53 = vld [vmem:[#allocation12 + $0x5c8] sm:$0xf] }
 0x26a   :  { %v11177_v44 = vld [vmem:[#allocation12 + $0xfc4] sm:$0xf]  ;;  %v9828_v58 = vor.u32 %v11057_v49, %v9825_v51  ;;  %v9032_v0 = vor.u32 %v10862_v35, %v9031_v53  ;;  %v9479_v13 = vld [vmem:[#allocation12 + $0x948] sm:$0xf] }
 0x26b   :  { %6205 = vmatpush.bf16.msrb.mxu1 %v8392_v45  ;;  %v10305_v59 = vld [vmem:[#allocation12 + $0xfe0] sm:$0xf0]  ;;  %v11046_v45 = vld [vmem:[#allocation12 + $0xba4] sm:$0xf0] }
 0x26c   :  { %6179 = vmatpush.bf16.msra.mxu3 %v9924_v30  ;;  %v10308_v10 = vor.u32 %v11177_v44, %v10305_v59  ;;  %v9768_v8 = vor.u32 %v11046_v45, %v9767_v60  ;;  %v11169_v30 = vld [vmem:[#allocation12 + $0xf84] sm:$0xf]  ;;  %v9735_v19 = vld [vmem:[#allocation12 + $0xb48] sm:$0xf]  ;;  %v6015_v45 = vpop.f32.mrf.mxu2 }
 0x26d   :  { %6218 = vmatpush.bf16.msrb.mxu2 %v8648_v62  ;;  %v2894_v62 = vsel %vm2878_vm14, %v2868_v43, %v2886_v56  ;;  %v11038_v20 = vld [vmem:[#allocation12 + $0xb64] sm:$0xf0]  ;;  %v11712_v32 = vld [vmem:[#allocation14] sm:$0xff] }
 0x26e   :  { %v11706_v63 = vpack.c.bf16 %v2894_v62, %v2894_v62  ;;  %v8967_v25 = vld [vmem:[#allocation12 + $0x548] sm:$0xf]  ;;  %v9736_v27 = vor.u32 %v11038_v20, %v9735_v19  ;;  %v11153_v40 = vld [vmem:[#allocation12 + $0xf04] sm:$0xf] }
 0x26f   :  { %6206 = vmatpush.bf16.msrb.mxu1 %v8360_v9  ;;  %v10974_v9 = vld [vmem:[#allocation12 + $0x964] sm:$0xf0]  ;;  %v10209_v46 = vld [vmem:[#allocation12 + $0xf20] sm:$0xf0] }
 0x270   :  { %6180 = vmatpush.bf16.msra.mxu3 %v9892_v28  ;;  %6092 = vmatmul.bf16.vlgmr.msrb.gmra.mxu0 %v11706_v63  ;;  %v9480_v23 = vor.u32 %v10974_v9, %v9479_v13  ;;  %v10846_v4 = vld [vmem:[#allocation12 + $0x564] sm:$0xf0]  ;;  %v11161_v28 = vld [vmem:[#allocation12 + $0xf44] sm:$0xf]  ;;  %v6004_v9 = vpop.f32.mrf.mxu1 }
 0x271   :  { %6219 = vmatpush.bf16.msrb.mxu2 %v8616_v15  ;;  %v10273_v15 = vld [vmem:[#allocation12 + $0xfa0] sm:$0xf0]  ;;  %6188 = vmatpush.bf16.msrb.mxu0 %v10308_v10  ;;  %v9447_v14 = vld [vmem:[#allocation12 + $0x908] sm:$0xf]  ;;  %v8968_v16 = vor.u32 %v10846_v4, %v8967_v25 }
 0x272   :  { %v10276_v26 = vor.u32 %v11169_v30, %v10273_v15  ;;  %v10966_v50 = vld [vmem:[#allocation12 + $0x924] sm:$0xf0]  ;;  %v11145_v35 = vld [vmem:[#allocation12 + $0xec4] sm:$0xf] }
 0x273   :  { %6207 = vmatpush.bf16.msrb.mxu1 %v8328_v38  ;;  %v10241_v38 = vld [vmem:[#allocation12 + $0xf60] sm:$0xf0]  ;;  %v11030_v29 = vld [vmem:[#allocation12 + $0xb24] sm:$0xf0]  ;;  %v9448_v33 = vor.u32 %v10966_v50, %v9447_v14 }
 0x274   :  { %6181 = vmatpush.bf16.msra.mxu3 %v9860_v42  ;;  %v8935_v52 = vld [vmem:[#allocation12 + $0x508] sm:$0xf]  ;;  %v10244_v39 = vor.u32 %v11161_v28, %v10241_v38  ;;  %v10177_v56 = vld [vmem:[#allocation12 + $0xee0] sm:$0xf0] }
 0x275   :  { %6220 = vmatpush.bf16.msrb.mxu2 %v8584_v61  ;;  %v9703_v61 = vld [vmem:[#allocation12 + $0xb08] sm:$0xf]  ;;  %6189 = vmatpush.bf16.msrb.mxu0 %v10276_v26  ;;  %v6041_v62 = vpop.f32.mrf.mxu0  ;;  %v10180_v1 = vor.u32 %v11145_v35, %v10177_v56  ;;  %v10145_v15 = vld [vmem:[#allocation12 + $0xea0] sm:$0xf0] }
 0x276   :  { %v10838_v34 = vld [vmem:[#allocation12 + $0x524] sm:$0xf0]  ;;  %v9704_v21 = vor.u32 %v11030_v29, %v9703_v61  ;;  %v11129_v26 = vld [vmem:[#allocation12 + $0xe44] sm:$0xf] }
 0x277   :  { %6208 = vmatpush.bf16.msrb.mxu1 %v8296_v47  ;;  %v9415_v12 = vld [vmem:[#allocation12 + $0x8c8] sm:$0xf]  ;;  %v3417_v47 = vperm.slane %v11712_v32, 0  ;;  %v10113_v14 = vld [vmem:[#allocation12 + $0xe60] sm:$0xf0] }
 0x278   :  { %6182 = vmatpush.bf16.msra.mxu3 %v9828_v58  ;;  %v10958_v2 = vld [vmem:[#allocation12 + $0x8e4] sm:$0xf0]  ;;  %v10081_v35 = vld [vmem:[#allocation12 + $0xe20] sm:$0xf0] }
 0x279   :  { %6221 = vmatpush.bf16.msrb.mxu2 %v8552_v48  ;;  %v9671_v42 = vld [vmem:[#allocation12 + $0xac8] sm:$0xf]  ;;  %v8936_v48 = vor.u32 %v10838_v34, %v8935_v52  ;;  %v9416_v49 = vor.u32 %v10958_v2, %v9415_v12  ;;  %6190 = vmatpush.bf16.msrb.mxu0 %v10244_v39  ;;  %v6003_v59 = vadd.f32 %v6002_v41, %v3417_v47  ;;  %v6028_v61 = vpop.f32.mrf.mxu3  ;;  %v8521_v39 = vld [vmem:[#allocation12 + $0x1e8] sm:$0xf0]  ;;  %v6017_v12 = vpop.f32.mrf.mxu2 }
 0x27a   :  { %6209 = vmatmul.bf16.vlgmr.msrb.gmra.mxu1 %v11650_v18  ;;  %v11022_v43 = vld [vmem:[#allocation12 + $0xae4] sm:$0xf0]  ;;  %v10698_v12 = vld [vmem:[#allocation12 + $0xcc] sm:$0xf] }
 0x27b   :  { %6253 = vmatpush.bf16.msra.mxu1 %v9544_v55  ;;  %6183 = vmatmul.bf16.vlgmr.msra.gmra.mxu3 %v11699_v24  ;;  %v8903_v51 = vld [vmem:[#allocation12 + $0x4c8] sm:$0xf]  ;;  %v10212_v55 = vor.u32 %v11153_v40, %v10209_v46  ;;  %v6016_v36 = vadd.f32 %v6015_v45, %v6003_v59  ;;  %v8777_v40 = vld [vmem:[#allocation12 + $0x3e8] sm:$0xf0] }
 0x27c   :  { %6222 = vmatmul.bf16.vlgmr.msrb.gmra.mxu2 %v11652_v17  ;;  %6227 = vmatpush.bf16.msrb.mxu3 %v9032_v0  ;;  %v10830_v53 = vld [vmem:[#allocation12 + $0x4e4] sm:$0xf0]  ;;  %v8489_v59 = vld [vmem:[#allocation12 + $0x1a8] sm:$0xf0] }
 0x27d   :  { %6266 = vmatpush.bf16.msra.mxu2 %v9800_v54  ;;  %v9672_v54 = vor.u32 %v11022_v43, %v9671_v42  ;;  %v9383_v44 = vld [vmem:[#allocation12 + $0x888] sm:$0xf]  ;;  %v8904_v60 = vor.u32 %v10830_v53, %v8903_v51  ;;  %6191 = vmatpush.bf16.msrb.mxu0 %v10212_v55  ;;  %v6029_v52 = vadd.f32 %v6028_v61, %v6016_v36  ;;  %v6043_v2 = vpop.f32.mrf.mxu0  ;;  %v8745_v45 = vld [vmem:[#allocation12 + $0x3a8] sm:$0xf0] }
 0x27e   :  { %v10950_v31 = vld [vmem:[#allocation12 + $0x8a4] sm:$0xf0]  ;;  %v10116_v43 = vor.u32 %v11129_v26, %v10113_v14  ;;  %v10706_v14 = vld [vmem:[#allocation12 + $0x10c] sm:$0xf] }
 0x27f   :  { %6254 = vmatpush.bf16.msra.mxu1 %v9512_v6  ;;  %v9639_v57 = vld [vmem:[#allocation12 + $0xa88] sm:$0xf]  ;;  %v9384_v0 = vor.u32 %v10950_v31, %v9383_v44  ;;  %v11716_v51 = vadd.f32 %v6041_v62, %v6029_v52  ;;  %v10770_v61 = vld [vmem:[#allocation12 + $0x30c] sm:$0xf] }
 0x280   :  { %6228 = vmatpush.bf16.msrb.mxu3 %v9000_v22  ;;  %v11014_v58 = vld [vmem:[#allocation12 + $0xaa4] sm:$0xf0]  ;;  %6144 = vmatmul.bf16.vlgmr.msra.gmra.mxu0 %v11664_v7 }
 0x281   :  { %6267 = vmatpush.bf16.msra.mxu2 %v9768_v8  ;;  %v8871_v5 = vld [vmem:[#allocation12 + $0x488] sm:$0xf]  ;;  %v9640_v10 = vor.u32 %v11014_v58, %v9639_v57  ;;  %v11137_v8 = vld [vmem:[#allocation12 + $0xe84] sm:$0xf]  ;;  %6192 = vmatpush.bf16.msrb.mxu0 %v10180_v1  ;;  %v10722_v57 = vld [vmem:[#allocation12 + $0x18c] sm:$0xf] }
 0x282   :  { %v10822_v6 = vld [vmem:[#allocation12 + $0x4a4] sm:$0xf0]  ;;  %v8492_v1 = vor.u32 %v10722_v57, %v8489_v59  ;;  %v8361_v57 = vld [vmem:[#allocation12 + $0xa8] sm:$0xf0] }
 0x283   :  { %6255 = vmatpush.bf16.msra.mxu1 %v9480_v23  ;;  %v9351_v30 = vld [vmem:[#allocation12 + $0x848] sm:$0xf]  ;;  %v8872_v22 = vor.u32 %v10822_v6, %v8871_v5  ;;  %v6030_v6 = vpop.f32.mrf.mxu3  ;;  %v8617_v59 = vld [vmem:[#allocation12 + $0x2a8] sm:$0xf0] }
 0x284   :  { %6229 = vmatpush.bf16.msrb.mxu3 %v8968_v16  ;;  %v10942_v13 = vld [vmem:[#allocation12 + $0x864] sm:$0xf0] }
 0x285   :  { %6268 = vmatpush.bf16.msra.mxu2 %v9736_v27  ;;  %v9607_v19 = vld [vmem:[#allocation12 + $0xa48] sm:$0xf]  ;;  %v9352_v23 = vor.u32 %v10942_v13, %v9351_v30  ;;  %v10148_v27 = vor.u32 %v11137_v8, %v10145_v15  ;;  %v10714_v13 = vld [vmem:[#allocation12 + $0x14c] sm:$0xf] }
 0x286   :  { %v11006_v20 = vld [vmem:[#allocation12 + $0xa64] sm:$0xf0]  ;;  %v8457_v15 = vld [vmem:[#allocation12 + $0x168] sm:$0xf0] }
 0x287   :  { %6256 = vmatpush.bf16.msra.mxu1 %v9448_v33  ;;  %v8839_v25 = vld [vmem:[#allocation12 + $0x448] sm:$0xf]  ;;  %v9608_v28 = vor.u32 %v11006_v20, %v9607_v19  ;;  %v10730_v33 = vld [vmem:[#allocation12 + $0x1cc] sm:$0xf]  ;;  %6193 = vmatpush.bf16.msrb.mxu0 %v10148_v27 }
 0x288   :  { %6230 = vmatpush.bf16.msrb.mxu3 %v8936_v48  ;;  %v10814_v4 = vld [vmem:[#allocation12 + $0x464] sm:$0xf0]  ;;  %v8524_v53 = vor.u32 %v10730_v33, %v8521_v39  ;;  %v10778_v19 = vld [vmem:[#allocation12 + $0x34c] sm:$0xf] }
 0x289   :  { %6269 = vmatpush.bf16.msra.mxu2 %v9704_v21  ;;  %v9319_v50 = vld [vmem:[#allocation12 + $0x808] sm:$0xf]  ;;  %v8840_v34 = vor.u32 %v10814_v4, %v8839_v25  ;;  %v10794_v21 = vld [vmem:[#allocation12 + $0x3cc] sm:$0xf]  ;;  %v8460_v4 = vor.u32 %v10714_v13, %v8457_v15 }
 0x28a   :  { %v10934_v38 = vld [vmem:[#allocation12 + $0x824] sm:$0xf0]  ;;  %v8780_v55 = vor.u32 %v10794_v21, %v8777_v40  ;;  %v8713_v20 = vld [vmem:[#allocation12 + $0x368] sm:$0xf0] }
 0x28b   :  { %6257 = vmatpush.bf16.msra.mxu1 %v9416_v49  ;;  %v9575_v29 = vld [vmem:[#allocation12 + $0xa08] sm:$0xf]  ;;  %v9320_v41 = vor.u32 %v10934_v38, %v9319_v50  ;;  %6194 = vmatpush.bf16.msrb.mxu0 %v10116_v43  ;;  %v8716_v26 = vor.u32 %v10778_v19, %v8713_v20  ;;  %v8425_v38 = vld [vmem:[#allocation12 + $0x128] sm:$0xf0] }
 0x28c   :  { %6231 = vmatpush.bf16.msrb.mxu3 %v8904_v60  ;;  %v10998_v16 = vld [vmem:[#allocation12 + $0xa24] sm:$0xf0]  ;;  %v10786_v60 = vld [vmem:[#allocation12 + $0x38c] sm:$0xf] }
 0x28d   :  { %6270 = vmatpush.bf16.msra.mxu2 %v9672_v54  ;;  %v8807_v46 = vld [vmem:[#allocation12 + $0x408] sm:$0xf]  ;;  %v9576_v47 = vor.u32 %v10998_v16, %v9575_v29  ;;  %v11121_v54 = vld [vmem:[#allocation12 + $0xe04] sm:$0xf]  ;;  %v8681_v29 = vld [vmem:[#allocation12 + $0x328] sm:$0xf0] }
 0x28e   :  { %v10806_v42 = vld [vmem:[#allocation12 + $0x424] sm:$0xf0]  ;;  %v8684_v39 = vor.u32 %v10770_v61, %v8681_v29  ;;  %v8649_v43 = vld [vmem:[#allocation12 + $0x2e8] sm:$0xf0] }
 0x28f   :  { %6258 = vmatpush.bf16.msra.mxu1 %v9384_v0  ;;  %v10055_v48 = vld [vmem:[#allocation12 + $0xdc8] sm:$0xf]  ;;  %v8808_v44 = vor.u32 %v10806_v42, %v8807_v46  ;;  %v10084_v0 = vor.u32 %v11121_v54, %v10081_v35  ;;  %v8393_v46 = vld [vmem:[#allocation12 + $0xe8] sm:$0xf0] }
 0x290   :  { %6232 = vmatpush.bf16.msrb.mxu3 %v8872_v22  ;;  %v11118_v49 = vld [vmem:[#allocation12 + $0xde4] sm:$0xf0]  ;;  %v10762_v42 = vld [vmem:[#allocation12 + $0x2cc] sm:$0xf] }
 0x291   :  { %6271 = vmatpush.bf16.msra.mxu2 %v9640_v10  ;;  %v9287_v31 = vld [vmem:[#allocation12 + $0x7c8] sm:$0xf]  ;;  %v10056_v58 = vor.u32 %v11118_v49, %v10055_v48  ;;  %v8748_v10 = vor.u32 %v10786_v60, %v8745_v45  ;;  %6195 = vmatpush.bf16.msrb.mxu0 %v10084_v0  ;;  %v8652_v54 = vor.u32 %v10762_v42, %v8649_v43  ;;  %v8585_v13 = vld [vmem:[#allocation12 + $0x268] sm:$0xf0] }
 0x292   :  { %v10926_v56 = vld [vmem:[#allocation12 + $0x7e4] sm:$0xf0]  ;;  %v11050_v61 = vld [vmem:[#allocation12 + $0xbcc] sm:$0xf] }
 0x293   :  { %6259 = vmatpush.bf16.msra.mxu1 %v9352_v23  ;;  %v10023_v5 = vld [vmem:[#allocation12 + $0xd88] sm:$0xf]  ;;  %v9288_v36 = vor.u32 %v10926_v56, %v9287_v31  ;;  %v10690_v31 = vld [vmem:[#allocation12 + $0x8c] sm:$0xf] }
 0x294   :  { %6233 = vmatpush.bf16.msrb.mxu3 %v8840_v34  ;;  %v11110_v62 = vld [vmem:[#allocation12 + $0xda4] sm:$0xf0]  ;;  %6196 = vmatmul.bf16.vlgmr.msrb.gmra.mxu0 %v11706_v63  ;;  %v8428_v34 = vor.u32 %v10706_v14, %v8425_v38  ;;  %v8364_v0 = vor.u32 %v10690_v31, %v8361_v57  ;;  %v8553_v14 = vld [vmem:[#allocation12 + $0x228] sm:$0xf0] }
 0x295   :  { %6272 = vmatpush.bf16.msra.mxu2 %v9608_v28  ;;  %v9255_v8 = vld [vmem:[#allocation12 + $0x788] sm:$0xf]  ;;  %v10024_v9 = vor.u32 %v11110_v62, %v10023_v5  ;;  %6240 = vmatpush.bf16.msra.mxu0 %v9288_v36  ;;  %v10682_v36 = vld [vmem:[#allocation12 + $0x4c] sm:$0xf] }
 0x296   :  { %v10918_v30 = vld [vmem:[#allocation12 + $0x7a4] sm:$0xf0]  ;;  %v9545_v38 = vld [vmem:[#allocation12 + $0x9e8] sm:$0xf0] }
 0x297   :  { %6260 = vmatpush.bf16.msra.mxu1 %v9320_v41  ;;  %v9991_v22 = vld [vmem:[#allocation12 + $0xd48] sm:$0xf]  ;;  %v9256_v25 = vor.u32 %v10918_v30, %v9255_v8  ;;  %v6054_v2 = vpop.f32.mrf.mxu1  ;;  %v8329_v8 = vld [vmem:[#allocation12 + $0x68] sm:$0xf0] }
 0x298   :  { %6234 = vmatpush.bf16.msrb.mxu3 %v8808_v44  ;;  %v11102_v23 = vld [vmem:[#allocation12 + $0xd64] sm:$0xf0]  ;;  %v10746_v30 = vld [vmem:[#allocation12 + $0x24c] sm:$0xf] }
 0x299   :  { %6273 = vmatpush.bf16.msra.mxu2 %v9576_v47  ;;  %v9223_v27 = vld [vmem:[#allocation12 + $0x748] sm:$0xf]  ;;  %v9992_v50 = vor.u32 %v11102_v23, %v9991_v22  ;;  %6241 = vmatpush.bf16.msra.mxu0 %v9256_v25  ;;  %v11723_v47 = vadd.f32 %v6054_v2, %v11716_v51  ;;  %v8332_v22 = vor.u32 %v10682_v36, %v8329_v8  ;;  %v9801_v29 = vld [vmem:[#allocation12 + $0xbe8] sm:$0xf0] }
 0x29a   :  { %6261 = vmatmul.bf16.vlgmr.msra.gmra.mxu1 %v11679_v3  ;;  %v10910_v28 = vld [vmem:[#allocation12 + $0x764] sm:$0xf0]  ;;  %v8588_v23 = vor.u32 %v10746_v30, %v8585_v13  ;;  %v9033_v2 = vld [vmem:[#allocation12 + $0x5e8] sm:$0xf0] }
 0x29b   :  { %6305 = vmatpush.bf16.msrb.mxu1 %v8524_v53  ;;  %6235 = vmatmul.bf16.vlgmr.msrb.gmra.mxu3 %v11662_v37  ;;  %v9959_v16 = vld [vmem:[#allocation12 + $0xd08] sm:$0xf]  ;;  %v9224_v52 = vor.u32 %v10910_v28, %v9223_v27  ;;  %v10738_v28 = vld [vmem:[#allocation12 + $0x20c] sm:$0xf] }
 0x29c   :  { %6274 = vmatmul.bf16.vlgmr.msra.gmra.mxu2 %v11687_v11  ;;  %6279 = vmatpush.bf16.msra.mxu3 %v10056_v58  ;;  %v11094_v33 = vld [vmem:[#allocation12 + $0xd24] sm:$0xf0]  ;;  %v10754_v58 = vld [vmem:[#allocation12 + $0x28c] sm:$0xf] }
 0x29d   :  { %6318 = vmatpush.bf16.msrb.mxu2 %v8780_v55  ;;  %v9191_v21 = vld [vmem:[#allocation12 + $0x708] sm:$0xf]  ;;  %v9960_v41 = vor.u32 %v11094_v33, %v9959_v16  ;;  %6242 = vmatpush.bf16.msra.mxu0 %v9224_v52  ;;  %v8396_v55 = vor.u32 %v10698_v12, %v8393_v46  ;;  %v8620_v5 = vor.u32 %v10754_v58, %v8617_v59  ;;  %v9001_v57 = vld [vmem:[#allocation12 + $0x5a8] sm:$0xf0] }
 0x29e   :  { %v10902_v40 = vld [vmem:[#allocation12 + $0x724] sm:$0xf0]  ;;  %v9804_v12 = vor.u32 %v11050_v61, %v9801_v29 }
 0x29f   :  { %6306 = vmatpush.bf16.msrb.mxu1 %v8492_v1  ;;  %v9927_v48 = vld [vmem:[#allocation12 + $0xcc8] sm:$0xf]  ;;  %v9192_v53 = vor.u32 %v10902_v40, %v9191_v21  ;;  %v6056_v1 = vpop.f32.mrf.mxu1  ;;  %v10858_v21 = vld [vmem:[#allocation12 + $0x5cc] sm:$0xf] }
 0x2a0   :  { %6280 = vmatpush.bf16.msra.mxu3 %v10024_v9  ;;  %v11086_v49 = vld [vmem:[#allocation12 + $0xce4] sm:$0xf0]  ;;  %v10842_v1 = vld [vmem:[#allocation12 + $0x54c] sm:$0xf] }
 0x2a1   :  { %6319 = vmatpush.bf16.msrb.mxu2 %v8748_v10  ;;  %v9159_v35 = vld [vmem:[#allocation12 + $0x6c8] sm:$0xf]  ;;  %v9928_v56 = vor.u32 %v11086_v49, %v9927_v48  ;;  %6243 = vmatpush.bf16.msra.mxu0 %v9192_v53  ;;  %v10978_v49 = vld [vmem:[#allocation12 + $0x98c] sm:$0xf] }
 0x2a2   :  { %v10894_v44 = vld [vmem:[#allocation12 + $0x6e4] sm:$0xf0]  ;;  %v9513_v53 = vld [vmem:[#allocation12 + $0x9a8] sm:$0xf0] }
 0x2a3   :  { %6307 = vmatpush.bf16.msrb.mxu1 %v8460_v4  ;;  %v9895_v60 = vld [vmem:[#allocation12 + $0xc88] sm:$0xf]  ;;  %v9160_v51 = vor.u32 %v10894_v44, %v9159_v35  ;;  %v10674_v4 = vld [vmem:[#allocation12 + $0xc] sm:$0xf]  ;;  %v9036_v35 = vor.u32 %v10858_v21, %v9033_v2  ;;  %v9516_v58 = vor.u32 %v10978_v49, %v9513_v53 }
 0x2a4   :  { %6281 = vmatpush.bf16.msra.mxu3 %v9992_v50  ;;  %v11078_v45 = vld [vmem:[#allocation12 + $0xca4] sm:$0xf0]  ;;  %v10986_v50 = vld [vmem:[#allocation12 + $0x9cc] sm:$0xf] }
 0x2a5   :  { %6320 = vmatpush.bf16.msrb.mxu2 %v8716_v26  ;;  %v9127_v62 = vld [vmem:[#allocation12 + $0x688] sm:$0xf]  ;;  %v9896_v10 = vor.u32 %v11078_v45, %v9895_v60  ;;  %6244 = vmatpush.bf16.msra.mxu0 %v9160_v51  ;;  %v8297_v26 = vld [vmem:[#allocation12 + $0x28] sm:$0xf0]  ;;  %v9548_v40 = vor.u32 %v10986_v50, %v9545_v38 }
 0x2a6   :  { %v10886_v6 = vld [vmem:[#allocation12 + $0x6a4] sm:$0xf0]  ;;  %v10970_v51 = vld [vmem:[#allocation12 + $0x94c] sm:$0xf] }
 0x2a7   :  { %6308 = vmatpush.bf16.msrb.mxu1 %v8428_v34  ;;  %v9863_v9 = vld [vmem:[#allocation12 + $0xc48] sm:$0xf]  ;;  %v9128_v19 = vor.u32 %v10886_v6, %v9127_v62  ;;  %v8300_v34 = vor.u32 %v10674_v4, %v8297_v26  ;;  %v9737_v62 = vld [vmem:[#allocation12 + $0xb68] sm:$0xf0] }
 0x2a8   :  { %6282 = vmatpush.bf16.msra.mxu3 %v9960_v41  ;;  %v11070_v15 = vld [vmem:[#allocation12 + $0xc64] sm:$0xf0]  ;;  %v10826_v21 = vld [vmem:[#allocation12 + $0x4cc] sm:$0xf] }
 0x2a9   :  { %6321 = vmatpush.bf16.msrb.mxu2 %v8684_v39  ;;  %v9095_v20 = vld [vmem:[#allocation12 + $0x648] sm:$0xf]  ;;  %v9864_v27 = vor.u32 %v11070_v15, %v9863_v9  ;;  %6245 = vmatpush.bf16.msra.mxu0 %v9128_v19  ;;  %v8556_v39 = vor.u32 %v10738_v28, %v8553_v14  ;;  %v6067_v13 = vpop.f32.mrf.mxu2  ;;  %v10962_v19 = vld [vmem:[#allocation12 + $0x90c] sm:$0xf] }
 0x2aa   :  { %v10878_v25 = vld [vmem:[#allocation12 + $0x664] sm:$0xf0]  ;;  %v8937_v28 = vld [vmem:[#allocation12 + $0x528] sm:$0xf0] }
 0x2ab   :  { %6309 = vmatpush.bf16.msrb.mxu1 %v8396_v55  ;;  %v9096_v16 = vor.u32 %v10878_v25, %v9095_v20  ;;  %v9831_v33 = vld [vmem:[#allocation12 + $0xc08] sm:$0xf]  ;;  %v11042_v55 = vld [vmem:[#allocation12 + $0xb8c] sm:$0xf]  ;;  %v11730_v20 = vadd.f32 %v6067_v13, %v11723_v47 }
 0x2ac   :  { %6283 = vmatpush.bf16.msra.mxu3 %v9928_v56  ;;  %v11062_v52 = vld [vmem:[#allocation12 + $0xc24] sm:$0xf0]  ;;  %v10850_v56 = vld [vmem:[#allocation12 + $0x58c] sm:$0xf] }
 0x2ad   :  { %6322 = vmatpush.bf16.msrb.mxu2 %v8652_v54  ;;  %v9063_v41 = vld [vmem:[#allocation12 + $0x608] sm:$0xf]  ;;  %v9832_v42 = vor.u32 %v11062_v52, %v9831_v33  ;;  %6246 = vmatpush.bf16.msra.mxu0 %v9096_v16  ;;  %v9769_v54 = vld [vmem:[#allocation12 + $0xba8] sm:$0xf0]  ;;  %v9004_v6 = vor.u32 %v10850_v56, %v9001_v57 }
 0x2ae   :  { %v10870_v46 = vld [vmem:[#allocation12 + $0x624] sm:$0xf0]  ;;  %v9772_v59 = vor.u32 %v11042_v55, %v9769_v54  ;;  %v9705_v25 = vld [vmem:[#allocation12 + $0xb28] sm:$0xf0]  ;;  %v3418_v54 = vperm.slane %v11712_v32, 1 }
 0x2af   :  { %6310 = vmatpush.bf16.msrb.mxu1 %v8364_v0  ;;  %v10311_v43 = vld [vmem:[#allocation12 + $0xfc8] sm:$0xf]  ;;  %v9064_v44 = vor.u32 %v10870_v46, %v9063_v41  ;;  %v9481_v0 = vld [vmem:[#allocation12 + $0x968] sm:$0xf0] }
 0x2b0   :  { %6284 = vmatpush.bf16.msra.mxu3 %v9896_v10  ;;  %v11182_v48 = vld [vmem:[#allocation12 + $0xfe4] sm:$0xf0]  ;;  %v8969_v10 = vld [vmem:[#allocation12 + $0x568] sm:$0xf0]  ;;  %v9484_v8 = vor.u32 %v10970_v51, %v9481_v0 }
 0x2b1   :  { %6323 = vmatpush.bf16.msrb.mxu2 %v8620_v5  ;;  %v10312_v31 = vor.u32 %v11182_v48, %v10311_v43  ;;  %v10279_v60 = vld [vmem:[#allocation12 + $0xf88] sm:$0xf]  ;;  %v11034_v5 = vld [vmem:[#allocation12 + $0xb4c] sm:$0xf]  ;;  %6247 = vmatpush.bf16.msra.mxu0 %v9064_v44  ;;  %v8972_v4 = vor.u32 %v10842_v1, %v8969_v10  ;;  %v6069_v41 = vpop.f32.mrf.mxu2 }
 0x2b2   :  { %v11174_v45 = vld [vmem:[#allocation12 + $0xfa4] sm:$0xf0]  ;;  %v9740_v30 = vor.u32 %v11034_v5, %v9737_v62  ;;  %v10954_v16 = vld [vmem:[#allocation12 + $0x8cc] sm:$0xf]  ;;  %v8495_v41 = vld [vmem:[#allocation12 + $0x190] sm:$0xf] }
 0x2b3   :  { %6311 = vmatpush.bf16.msrb.mxu1 %v8332_v22  ;;  %v10280_v36 = vor.u32 %v11174_v45, %v10279_v60  ;;  %v10247_v9 = vld [vmem:[#allocation12 + $0xf48] sm:$0xf]  ;;  %v9449_v22 = vld [vmem:[#allocation12 + $0x928] sm:$0xf0] }
 0x2b4   :  { %6285 = vmatpush.bf16.msra.mxu3 %v9864_v27  ;;  %v11166_v15 = vld [vmem:[#allocation12 + $0xf64] sm:$0xf0]  ;;  %6248 = vmatmul.bf16.vlgmr.msra.gmra.mxu0 %v11664_v7  ;;  %v10834_v27 = vld [vmem:[#allocation12 + $0x50c] sm:$0xf]  ;;  %v9452_v50 = vor.u32 %v10962_v19, %v9449_v22 }
 0x2b5   :  { %6324 = vmatpush.bf16.msrb.mxu2 %v8588_v23  ;;  %6292 = vmatpush.bf16.msrb.mxu0 %v10312_v31  ;;  %v11026_v23 = vld [vmem:[#allocation12 + $0xb0c] sm:$0xf]  ;;  %v10248_v26 = vor.u32 %v11166_v15, %v10247_v9  ;;  %v10215_v61 = vld [vmem:[#allocation12 + $0xf08] sm:$0xf] }
 0x2b6   :  { %v9708_v38 = vor.u32 %v11026_v23, %v9705_v25  ;;  %v11158_v29 = vld [vmem:[#allocation12 + $0xf24] sm:$0xf0]  ;;  %v9417_v33 = vld [vmem:[#allocation12 + $0x8e8] sm:$0xf0]  ;;  %v8527_v25 = vld [vmem:[#allocation12 + $0x1d0] sm:$0xf] }
 0x2b7   :  { %6312 = vmatpush.bf16.msrb.mxu1 %v8300_v34  ;;  %v6106_v14 = vpop.f32.mrf.mxu1  ;;  %v11018_v47 = vld [vmem:[#allocation12 + $0xacc] sm:$0xf]  ;;  %v8940_v34 = vor.u32 %v10834_v27, %v8937_v28  ;;  %v10183_v46 = vld [vmem:[#allocation12 + $0xec8] sm:$0xf]  ;;  %v10735_v27 = vld [vmem:[#allocation12 + $0x1ec] sm:$0xf0] }
 0x2b8   :  { %6286 = vmatpush.bf16.msra.mxu3 %v9832_v42  ;;  %v9673_v52 = vld [vmem:[#allocation12 + $0xae8] sm:$0xf0]  ;;  %v11150_v42 = vld [vmem:[#allocation12 + $0xee4] sm:$0xf0]  ;;  %v6107_v10 = vadd.f32 %v6106_v14, %v3418_v54  ;;  %v8783_v28 = vld [vmem:[#allocation12 + $0x3d0] sm:$0xf] }
 0x2b9   :  { %6325 = vmatpush.bf16.msrb.mxu2 %v8556_v39  ;;  %6293 = vmatpush.bf16.msrb.mxu0 %v10280_v36  ;;  %v10216_v39 = vor.u32 %v11158_v29, %v10215_v61  ;;  %v9676_v2 = vor.u32 %v11018_v47, %v9673_v52  ;;  %v10946_v43 = vld [vmem:[#allocation12 + $0x88c] sm:$0xf]  ;;  %v11142_v60 = vld [vmem:[#allocation12 + $0xea4] sm:$0xf0]  ;;  %v8528_v47 = vor.u32 %v10735_v27, %v8527_v25 }
 0x2ba   :  { %6313 = vmatmul.bf16.vlgmr.msrb.gmra.mxu1 %v11650_v18  ;;  %v9385_v48 = vld [vmem:[#allocation12 + $0x8a8] sm:$0xf0]  ;;  %v10119_v1 = vld [vmem:[#allocation12 + $0xe48] sm:$0xf] }
 0x2bb   :  { %6357 = vmatpush.bf16.msra.mxu1 %v9548_v40  ;;  %6287 = vmatmul.bf16.vlgmr.msra.gmra.mxu3 %v11699_v24  ;;  %v8905_v40 = vld [vmem:[#allocation12 + $0x4e8] sm:$0xf0]  ;;  %v9388_v57 = vor.u32 %v10946_v43, %v9385_v48  ;;  %v11134_v13 = vld [vmem:[#allocation12 + $0xe64] sm:$0xf0]  ;;  %v10791_v43 = vld [vmem:[#allocation12 + $0x3ac] sm:$0xf0] }
 0x2bc   :  { %6326 = vmatmul.bf16.vlgmr.msrb.gmra.mxu2 %v11652_v17  ;;  %6331 = vmatpush.bf16.msrb.mxu3 %v9036_v35  ;;  %v11010_v49 = vld [vmem:[#allocation12 + $0xa8c] sm:$0xf]  ;;  %v8908_v55 = vor.u32 %v10826_v21, %v8905_v40  ;;  %v10184_v35 = vor.u32 %v11150_v42, %v10183_v46  ;;  %v10120_v14 = vor.u32 %v11134_v13, %v10119_v1  ;;  %v11126_v21 = vld [vmem:[#allocation12 + $0xe24] sm:$0xf0]  ;;  %v10727_v46 = vld [vmem:[#allocation12 + $0x1ac] sm:$0xf0] }
 0x2bd   :  { %6370 = vmatpush.bf16.msra.mxu2 %v9804_v12  ;;  %6294 = vmatpush.bf16.msrb.mxu0 %v10248_v26  ;;  %v9420_v12 = vor.u32 %v10954_v16, %v9417_v33  ;;  %v9641_v53 = vld [vmem:[#allocation12 + $0xaa8] sm:$0xf0]  ;;  %v8751_v42 = vld [vmem:[#allocation12 + $0x390] sm:$0xf] }
 0x2be   :  { %v10818_v44 = vld [vmem:[#allocation12 + $0x48c] sm:$0xf]  ;;  %v10775_v13 = vld [vmem:[#allocation12 + $0x32c] sm:$0xf0] }
 0x2bf   :  { %6358 = vmatpush.bf16.msra.mxu1 %v9516_v58  ;;  %v8873_v31 = vld [vmem:[#allocation12 + $0x4a8] sm:$0xf0]  ;;  %v6108_v56 = vpop.f32.mrf.mxu1  ;;  %v9644_v58 = vor.u32 %v11010_v49, %v9641_v53  ;;  %v6119_v19 = vpop.f32.mrf.mxu2 }
 0x2c0   :  { %6332 = vmatpush.bf16.msrb.mxu3 %v9004_v6  ;;  %v10938_v45 = vld [vmem:[#allocation12 + $0x84c] sm:$0xf]  ;;  %v8876_v62 = vor.u32 %v10818_v44, %v8873_v31  ;;  %v11733_v26 = vadd.f32 %v6119_v19, %v6107_v10  ;;  %v8496_v44 = vor.u32 %v10727_v46, %v8495_v41  ;;  %v8752_v31 = vor.u32 %v10791_v43, %v8751_v42  ;;  %v8431_v10 = vld [vmem:[#allocation12 + $0x110] sm:$0xf] }
 0x2c1   :  { %6371 = vmatpush.bf16.msra.mxu2 %v9772_v59  ;;  %6295 = vmatpush.bf16.msrb.mxu0 %v10216_v39  ;;  %v10151_v59 = vld [vmem:[#allocation12 + $0xe88] sm:$0xf]  ;;  %v9353_v51 = vld [vmem:[#allocation12 + $0x868] sm:$0xf0]  ;;  %v10695_v46 = vld [vmem:[#allocation12 + $0xac] sm:$0xf0] }
 0x2c2   :  { %v11002_v0 = vld [vmem:[#allocation12 + $0xa4c] sm:$0xf]  ;;  %v10152_v6 = vor.u32 %v11142_v60, %v10151_v59  ;;  %v10087_v39 = vld [vmem:[#allocation12 + $0xe08] sm:$0xf]  ;;  %v10719_v59 = vld [vmem:[#allocation12 + $0x16c] sm:$0xf0] }
 0x2c3   :  { %6359 = vmatpush.bf16.msra.mxu1 %v9484_v8  ;;  %v9609_v5 = vld [vmem:[#allocation12 + $0xa68] sm:$0xf0]  ;;  %v9356_v8 = vor.u32 %v10938_v45, %v9353_v51  ;;  %v10088_v49 = vor.u32 %v11126_v21, %v10087_v39  ;;  %v8719_v60 = vld [vmem:[#allocation12 + $0x350] sm:$0xf] }
 0x2c4   :  { %6333 = vmatpush.bf16.msrb.mxu3 %v8972_v4  ;;  %v10810_v32 = vld [vmem:[#allocation12 + $0x44c] sm:$0xf]  ;;  %v10783_v45 = vld [vmem:[#allocation12 + $0x36c] sm:$0xf0] }
 0x2c5   :  { %6372 = vmatpush.bf16.msra.mxu2 %v9740_v30  ;;  %6296 = vmatpush.bf16.msrb.mxu0 %v10184_v35  ;;  %v8841_v36 = vld [vmem:[#allocation12 + $0x468] sm:$0xf0]  ;;  %v9612_v30 = vor.u32 %v11002_v0, %v9609_v5  ;;  %v8623_v42 = vld [vmem:[#allocation12 + $0x290] sm:$0xf] }
 0x2c6   :  { %v10930_v9 = vld [vmem:[#allocation12 + $0x80c] sm:$0xf]  ;;  %v8844_v4 = vor.u32 %v10810_v32, %v8841_v36  ;;  %v8720_v32 = vor.u32 %v10783_v45, %v8719_v60  ;;  %v10759_v43 = vld [vmem:[#allocation12 + $0x2ac] sm:$0xf0] }
 0x2c7   :  { %6360 = vmatpush.bf16.msra.mxu1 %v9452_v50  ;;  %v9321_v15 = vld [vmem:[#allocation12 + $0x828] sm:$0xf0]  ;;  %v10799_v50 = vld [vmem:[#allocation12 + $0x3ec] sm:$0xf0] }
 0x2c8   :  { %6334 = vmatpush.bf16.msrb.mxu3 %v8940_v34  ;;  %v10994_v22 = vld [vmem:[#allocation12 + $0xa0c] sm:$0xf]  ;;  %v9324_v29 = vor.u32 %v10930_v9, %v9321_v15  ;;  %v8784_v52 = vor.u32 %v10799_v50, %v8783_v28  ;;  %v8399_v50 = vld [vmem:[#allocation12 + $0xd0] sm:$0xf] }
 0x2c9   :  { %6373 = vmatpush.bf16.msra.mxu2 %v9708_v38  ;;  %v9577_v23 = vld [vmem:[#allocation12 + $0xa28] sm:$0xf0]  ;;  %6297 = vmatpush.bf16.msrb.mxu0 %v10152_v6 }
 0x2ca   :  { %v10802_v38 = vld [vmem:[#allocation12 + $0x40c] sm:$0xf]  ;;  %v9580_v16 = vor.u32 %v10994_v22, %v9577_v23 }
 0x2cb   :  { %6361 = vmatpush.bf16.msra.mxu1 %v9420_v12  ;;  %v8809_v61 = vld [vmem:[#allocation12 + $0x428] sm:$0xf0] }
 0x2cc   :  { %6335 = vmatpush.bf16.msrb.mxu3 %v8908_v55  ;;  %v11114_v33 = vld [vmem:[#allocation12 + $0xdcc] sm:$0xf]  ;;  %v8812_v40 = vor.u32 %v10802_v38, %v8809_v61  ;;  %v6121_v55 = vpop.f32.mrf.mxu2  ;;  %v8655_v38 = vld [vmem:[#allocation12 + $0x2d0] sm:$0xf]  ;;  %v6080_v39 = vpop.f32.mrf.mxu3 }
 0x2cd   :  { %6374 = vmatpush.bf16.msra.mxu2 %v9676_v2  ;;  %v10057_v34 = vld [vmem:[#allocation12 + $0xde8] sm:$0xf0]  ;;  %6298 = vmatpush.bf16.msrb.mxu0 %v10120_v14  ;;  %v10703_v14 = vld [vmem:[#allocation12 + $0xec] sm:$0xf0] }
 0x2ce   :  { %v10922_v12 = vld [vmem:[#allocation12 + $0x7cc] sm:$0xf]  ;;  %v10060_v48 = vor.u32 %v11114_v33, %v10057_v34  ;;  %v10767_v61 = vld [vmem:[#allocation12 + $0x2ec] sm:$0xf0] }
 0x2cf   :  { %6362 = vmatpush.bf16.msra.mxu1 %v9388_v57  ;;  %v9289_v2 = vld [vmem:[#allocation12 + $0x7e8] sm:$0xf0]  ;;  %v8656_v34 = vor.u32 %v10767_v61, %v8655_v38  ;;  %v9039_v38 = vld [vmem:[#allocation12 + $0x5d0] sm:$0xf] }
 0x2d0   :  { %6336 = vmatpush.bf16.msrb.mxu3 %v8876_v62  ;;  %v9292_v53 = vor.u32 %v10922_v12, %v9289_v2  ;;  %v11106_v54 = vld [vmem:[#allocation12 + $0xd8c] sm:$0xf]  ;;  %v8367_v12 = vld [vmem:[#allocation12 + $0x90] sm:$0xf]  ;;  %v11742_v2 = vadd.f32 %v6080_v39, %v11730_v20 }
 0x2d1   :  { %6375 = vmatpush.bf16.msra.mxu2 %v9644_v58  ;;  %v10025_v35 = vld [vmem:[#allocation12 + $0xda8] sm:$0xf0]  ;;  %v8463_v58 = vld [vmem:[#allocation12 + $0x150] sm:$0xf]  ;;  %6299 = vmatpush.bf16.msrb.mxu0 %v10088_v49 }
 0x2d2   :  { %v10914_v56 = vld [vmem:[#allocation12 + $0x78c] sm:$0xf]  ;;  %v10028_v51 = vor.u32 %v11106_v54, %v10025_v35  ;;  %v8464_v6 = vor.u32 %v10719_v59, %v8463_v58  ;;  %v8368_v35 = vor.u32 %v10695_v46, %v8367_v12  ;;  %v8335_v20 = vld [vmem:[#allocation12 + $0x50] sm:$0xf] }
 0x2d3   :  { %6363 = vmatpush.bf16.msra.mxu1 %v9356_v8  ;;  %v9257_v57 = vld [vmem:[#allocation12 + $0x7a8] sm:$0xf0]  ;;  %v10711_v8 = vld [vmem:[#allocation12 + $0x12c] sm:$0xf0] }
 0x2d4   :  { %6337 = vmatpush.bf16.msrb.mxu3 %v8844_v4  ;;  %v9260_v0 = vor.u32 %v10914_v56, %v9257_v57  ;;  %v11098_v5 = vld [vmem:[#allocation12 + $0xd4c] sm:$0xf]  ;;  %6300 = vmatmul.bf16.vlgmr.msrb.gmra.mxu0 %v11706_v63  ;;  %v8432_v25 = vor.u32 %v10711_v8, %v8431_v10  ;;  %v10687_v57 = vld [vmem:[#allocation12 + $0x6c] sm:$0xf0] }
 0x2d5   :  { %6376 = vmatpush.bf16.msra.mxu2 %v9612_v30  ;;  %6344 = vmatpush.bf16.msra.mxu0 %v9292_v53  ;;  %v9993_v62 = vld [vmem:[#allocation12 + $0xd68] sm:$0xf0]  ;;  %v8687_v30 = vld [vmem:[#allocation12 + $0x310] sm:$0xf] }
 0x2d6   :  { %v10906_v36 = vld [vmem:[#allocation12 + $0x74c] sm:$0xf]  ;;  %v9996_v9 = vor.u32 %v11098_v5, %v9993_v62  ;;  %v8688_v4 = vor.u32 %v10775_v13, %v8687_v30  ;;  %v8591_v58 = vld [vmem:[#allocation12 + $0x250] sm:$0xf]  ;;  %v8336_v62 = vor.u32 %v10687_v57, %v8335_v20 }
 0x2d7   :  { %6364 = vmatpush.bf16.msra.mxu1 %v9324_v29  ;;  %v9225_v1 = vld [vmem:[#allocation12 + $0x768] sm:$0xf0]  ;;  %v11739_v15 = vpop.f32.mrf.mxu1  ;;  %v10751_v59 = vld [vmem:[#allocation12 + $0x26c] sm:$0xf0] }
 0x2d8   :  { %6338 = vmatpush.bf16.msrb.mxu3 %v8812_v40  ;;  %v9228_v19 = vor.u32 %v10906_v36, %v9225_v1  ;;  %v11090_v22 = vld [vmem:[#allocation12 + $0xd0c] sm:$0xf]  ;;  %v8303_v1 = vld [vmem:[#allocation12 + $0x10] sm:$0xf] }
 0x2d9   :  { %6377 = vmatpush.bf16.msra.mxu2 %v9580_v16  ;;  %6345 = vmatpush.bf16.msra.mxu0 %v9260_v0  ;;  %v9961_v23 = vld [vmem:[#allocation12 + $0xd28] sm:$0xf0]  ;;  %v10679_v10 = vld [vmem:[#allocation12 + $0x2c] sm:$0xf0] }
 0x2da   :  { %6365 = vmatmul.bf16.vlgmr.msra.gmra.mxu1 %v11679_v3  ;;  %v10898_v27 = vld [vmem:[#allocation12 + $0x70c] sm:$0xf]  ;;  %v9964_v29 = vor.u32 %v11090_v22, %v9961_v23  ;;  %v8559_v30 = vld [vmem:[#allocation12 + $0x210] sm:$0xf] }
 0x2db   :  { %6409 = vmatpush.bf16.msrb.mxu1 %v8528_v47  ;;  %6339 = vmatmul.bf16.vlgmr.msrb.gmra.mxu3 %v11662_v37  ;;  %v9193_v28 = vld [vmem:[#allocation12 + $0x728] sm:$0xf0]  ;;  %v10743_v13 = vld [vmem:[#allocation12 + $0x22c] sm:$0xf0] }
 0x2dc   :  { %6378 = vmatmul.bf16.vlgmr.msra.gmra.mxu2 %v11687_v11  ;;  %6383 = vmatpush.bf16.msra.mxu3 %v10060_v48  ;;  %v9196_v16 = vor.u32 %v10898_v27, %v9193_v28  ;;  %v11082_v33 = vld [vmem:[#allocation12 + $0xccc] sm:$0xf]  ;;  %v10991_v22 = vld [vmem:[#allocation12 + $0x9ec] sm:$0xf0] }
 0x2dd   :  { %6422 = vmatpush.bf16.msrb.mxu2 %v8784_v52  ;;  %6346 = vmatpush.bf16.msra.mxu0 %v9228_v19  ;;  %v9929_v47 = vld [vmem:[#allocation12 + $0xce8] sm:$0xf0]  ;;  %v8400_v52 = vor.u32 %v10703_v14, %v8399_v50  ;;  %v9807_v23 = vld [vmem:[#allocation12 + $0xbd0] sm:$0xf]  ;;  %v8304_v50 = vor.u32 %v10679_v10, %v8303_v1  ;;  %v8560_v14 = vor.u32 %v10743_v13, %v8559_v30 }
 0x2de   :  { %v10890_v21 = vld [vmem:[#allocation12 + $0x6cc] sm:$0xf]  ;;  %v9932_v48 = vor.u32 %v11082_v33, %v9929_v47  ;;  %v9775_v12 = vld [vmem:[#allocation12 + $0xb90] sm:$0xf] }
 0x2df   :  { %6410 = vmatpush.bf16.msrb.mxu1 %v8496_v44  ;;  %v9161_v40 = vld [vmem:[#allocation12 + $0x6e8] sm:$0xf0]  ;;  %v11744_v41 = vpop.f32.mrf.mxu2  ;;  %v6160_v49 = vpop.f32.mrf.mxu1  ;;  %v8624_v44 = vor.u32 %v10759_v43, %v8623_v42  ;;  %v11047_v46 = vld [vmem:[#allocation12 + $0xbac] sm:$0xf0] }
 0x2e0   :  { %6384 = vmatpush.bf16.msra.mxu3 %v10028_v51  ;;  %v9164_v53 = vor.u32 %v10890_v21, %v9161_v40  ;;  %v11074_v55 = vld [vmem:[#allocation12 + $0xc8c] sm:$0xf]  ;;  %v9519_v21 = vld [vmem:[#allocation12 + $0x990] sm:$0xf] }
 0x2e1   :  { %6423 = vmatpush.bf16.msrb.mxu2 %v8752_v31  ;;  %6347 = vmatpush.bf16.msra.mxu0 %v9196_v16  ;;  %v9897_v54 = vld [vmem:[#allocation12 + $0xca8] sm:$0xf0]  ;;  %v10863_v16 = vld [vmem:[#allocation12 + $0x5ec] sm:$0xf0] }
 0x2e2   :  { %v10882_v31 = vld [vmem:[#allocation12 + $0x68c] sm:$0xf]  ;;  %v9900_v60 = vor.u32 %v11074_v55, %v9897_v54  ;;  %v10983_v40 = vld [vmem:[#allocation12 + $0x9ac] sm:$0xf0]  ;;  %v9040_v42 = vor.u32 %v10863_v16, %v9039_v38 }
 0x2e3   :  { %6411 = vmatpush.bf16.msrb.mxu1 %v8464_v6  ;;  %v9129_v56 = vld [vmem:[#allocation12 + $0x6a8] sm:$0xf0]  ;;  %v8592_v6 = vor.u32 %v10751_v59, %v8591_v58  ;;  %v9007_v55 = vld [vmem:[#allocation12 + $0x590] sm:$0xf] }
 0x2e4   :  { %6385 = vmatpush.bf16.msra.mxu3 %v9996_v9  ;;  %v9132_v45 = vor.u32 %v10882_v31, %v9129_v56  ;;  %v11066_v51 = vld [vmem:[#allocation12 + $0xc4c] sm:$0xf]  ;;  %v9551_v9 = vld [vmem:[#allocation12 + $0x9d0] sm:$0xf] }
 0x2e5   :  { %6424 = vmatpush.bf16.msrb.mxu2 %v8720_v32  ;;  %6348 = vmatpush.bf16.msra.mxu0 %v9164_v53  ;;  %v9865_v0 = vld [vmem:[#allocation12 + $0xc68] sm:$0xf0]  ;;  %v6082_v32 = vpop.f32.mrf.mxu3  ;;  %v9552_v61 = vor.u32 %v10991_v22, %v9551_v9  ;;  %v10855_v54 = vld [vmem:[#allocation12 + $0x5ac] sm:$0xf0]  ;;  %v11753_v9 = vld [vmem:[#allocation14] sm:$0xff] }
 0x2e6   :  { %v10874_v5 = vld [vmem:[#allocation12 + $0x64c] sm:$0xf]  ;;  %v9868_v19 = vor.u32 %v11066_v51, %v9865_v0  ;;  %v9487_v20 = vld [vmem:[#allocation12 + $0x950] sm:$0xf] }
 0x2e7   :  { %6412 = vmatpush.bf16.msrb.mxu1 %v8432_v25  ;;  %v9097_v36 = vld [vmem:[#allocation12 + $0x668] sm:$0xf0]  ;;  %v6173_v8 = vpop.f32.mrf.mxu2  ;;  %v11055_v25 = vld [vmem:[#allocation12 + $0xbec] sm:$0xf0] }
 0x2e8   :  { %6386 = vmatpush.bf16.msra.mxu3 %v9964_v29  ;;  %v11058_v27 = vld [vmem:[#allocation12 + $0xc0c] sm:$0xf]  ;;  %v9808_v29 = vor.u32 %v11055_v25, %v9807_v23  ;;  %v10975_v57 = vld [vmem:[#allocation12 + $0x96c] sm:$0xf0] }
 0x2e9   :  { %6425 = vmatpush.bf16.msrb.mxu2 %v8688_v4  ;;  %6349 = vmatpush.bf16.msra.mxu0 %v9132_v45  ;;  %v9100_v4 = vor.u32 %v10874_v5, %v9097_v36  ;;  %v9833_v28 = vld [vmem:[#allocation12 + $0xc28] sm:$0xf0]  ;;  %v9743_v58 = vld [vmem:[#allocation12 + $0xb50] sm:$0xf]  ;;  %v9488_v0 = vor.u32 %v10975_v57, %v9487_v20 }
 0x2ea   :  { %v10866_v33 = vld [vmem:[#allocation12 + $0x60c] sm:$0xf]  ;;  %v11039_v59 = vld [vmem:[#allocation12 + $0xb6c] sm:$0xf0] }
 0x2eb   :  { %6413 = vmatpush.bf16.msrb.mxu1 %v8400_v52  ;;  %v9065_v47 = vld [vmem:[#allocation12 + $0x628] sm:$0xf0]  ;;  %v9836_v52 = vor.u32 %v11058_v27, %v9833_v28  ;;  %v8975_v45 = vld [vmem:[#allocation12 + $0x550] sm:$0xf]  ;;  %v9744_v5 = vor.u32 %v11039_v59, %v9743_v58 }
 0x2ec   :  { %6387 = vmatpush.bf16.msra.mxu3 %v9932_v48  ;;  %v10313_v39 = vld [vmem:[#allocation12 + $0xfe8] sm:$0xf0]  ;;  %v9068_v43 = vor.u32 %v10866_v33, %v9065_v47  ;;  %v10847_v51 = vld [vmem:[#allocation12 + $0x56c] sm:$0xf0] }
 0x2ed   :  { %6426 = vmatpush.bf16.msrb.mxu2 %v8656_v34  ;;  %v11178_v34 = vld [vmem:[#allocation12 + $0xfcc] sm:$0xf]  ;;  %6350 = vmatpush.bf16.msra.mxu0 %v9100_v4  ;;  %v6132_v48 = vpop.f32.mrf.mxu3  ;;  %v9455_v32 = vld [vmem:[#allocation12 + $0x910] sm:$0xf]  ;;  %v8976_v8 = vor.u32 %v10847_v51, %v8975_v45  ;;  %v6093_v28 = vpop.f32.mrf.mxu0 }
 0x2ee   :  { %v11747_v49 = vadd.f32 %v6132_v48, %v11733_v26  ;;  %v10316_v53 = vor.u32 %v11178_v34, %v10313_v39  ;;  %v11170_v31 = vld [vmem:[#allocation12 + $0xf8c] sm:$0xf]  ;;  %v9008_v26 = vor.u32 %v10855_v54, %v9007_v55  ;;  %v10967_v36 = vld [vmem:[#allocation12 + $0x92c] sm:$0xf0] }
 0x2ef   :  { %6414 = vmatpush.bf16.msrb.mxu1 %v8368_v35  ;;  %v9520_v35 = vor.u32 %v10983_v40, %v9519_v21  ;;  %v10281_v56 = vld [vmem:[#allocation12 + $0xfa8] sm:$0xf0]  ;;  %v9711_v1 = vld [vmem:[#allocation12 + $0xb10] sm:$0xf]  ;;  %v9456_v4 = vor.u32 %v10967_v36, %v9455_v32 }
 0x2f0   :  { %6388 = vmatpush.bf16.msra.mxu3 %v9900_v60  ;;  %v10284_v60 = vor.u32 %v11170_v31, %v10281_v56  ;;  %v11031_v10 = vld [vmem:[#allocation12 + $0xb2c] sm:$0xf0]  ;;  %v10153_v45 = vld [vmem:[#allocation12 + $0xea8] sm:$0xf0] }
 0x2f1   :  { %6427 = vmatpush.bf16.msrb.mxu2 %v8624_v44  ;;  %v9776_v44 = vor.u32 %v11047_v46, %v9775_v12  ;;  %6351 = vmatpush.bf16.msra.mxu0 %v9068_v43  ;;  %v8943_v23 = vld [vmem:[#allocation12 + $0x510] sm:$0xf]  ;;  %v9712_v27 = vor.u32 %v11031_v10, %v9711_v1  ;;  %v11146_v46 = vld [vmem:[#allocation12 + $0xecc] sm:$0xf] }
 0x2f2   :  { %v10839_v25 = vld [vmem:[#allocation12 + $0x52c] sm:$0xf0]  ;;  %v11130_v10 = vld [vmem:[#allocation12 + $0xe4c] sm:$0xf] }
 0x2f3   :  { %6415 = vmatpush.bf16.msrb.mxu1 %v8336_v62  ;;  %v11162_v62 = vld [vmem:[#allocation12 + $0xf4c] sm:$0xf]  ;;  %v9423_v38 = vld [vmem:[#allocation12 + $0x8d0] sm:$0xf]  ;;  %v8944_v47 = vor.u32 %v10839_v25, %v8943_v23 }
 0x2f4   :  { %6389 = vmatpush.bf16.msra.mxu3 %v9868_v19  ;;  %6352 = vmatmul.bf16.vlgmr.msra.gmra.mxu0 %v11664_v7  ;;  %v3419_v19 = vperm.slane %v11753_v9, 2  ;;  %v9679_v16 = vld [vmem:[#allocation12 + $0xad0] sm:$0xf] }
 0x2f5   :  { %6428 = vmatpush.bf16.msrb.mxu2 %v8592_v6  ;;  %6396 = vmatpush.bf16.msrb.mxu0 %v10316_v53  ;;  %v10249_v6 = vld [vmem:[#allocation12 + $0xf68] sm:$0xf0]  ;;  %v6134_v13 = vpop.f32.mrf.mxu3  ;;  %v11023_v33 = vld [vmem:[#allocation12 + $0xaec] sm:$0xf0] }
 0x2f6   :  { %v10252_v22 = vor.u32 %v11162_v62, %v10249_v6  ;;  %v8911_v34 = vld [vmem:[#allocation12 + $0x4d0] sm:$0xf]  ;;  %v9680_v12 = vor.u32 %v11023_v33, %v9679_v16  ;;  %v10121_v13 = vld [vmem:[#allocation12 + $0xe68] sm:$0xf0] }
 0x2f7   :  { %6416 = vmatpush.bf16.msrb.mxu1 %v8304_v50  ;;  %v6210_v30 = vpop.f32.mrf.mxu1  ;;  %v11154_v50 = vld [vmem:[#allocation12 + $0xf0c] sm:$0xf]  ;;  %v10831_v39 = vld [vmem:[#allocation12 + $0x4ec] sm:$0xf0] }
 0x2f8   :  { %6390 = vmatpush.bf16.msra.mxu3 %v9836_v52  ;;  %v6211_v21 = vadd.f32 %v6210_v30, %v3419_v19  ;;  %v9391_v43 = vld [vmem:[#allocation12 + $0x890] sm:$0xf] }
 0x2f9   :  { %6429 = vmatpush.bf16.msrb.mxu2 %v8560_v14  ;;  %6397 = vmatpush.bf16.msrb.mxu0 %v10284_v60  ;;  %v10217_v14 = vld [vmem:[#allocation12 + $0xf28] sm:$0xf0]  ;;  %v9647_v53 = vld [vmem:[#allocation12 + $0xa90] sm:$0xf] }
 0x2fa   :  { %6417 = vmatmul.bf16.vlgmr.msrb.gmra.mxu1 %v11650_v18  ;;  %v10220_v52 = vor.u32 %v11154_v50, %v10217_v14  ;;  %v11015_v55 = vld [vmem:[#allocation12 + $0xaac] sm:$0xf0]  ;;  %v11138_v60 = vld [vmem:[#allocation12 + $0xe8c] sm:$0xf]  ;;  %v8529_v50 = vld [vmem:[#allocation12 + $0x1f0] sm:$0xf0] }
 0x2fb   :  { %6461 = vmatpush.bf16.msra.mxu1 %v9552_v61  ;;  %6391 = vmatmul.bf16.vlgmr.msra.gmra.mxu3 %v11699_v24  ;;  %v11757_v61 = vadd.f32 %v6093_v28, %v11742_v2  ;;  %v10951_v2 = vld [vmem:[#allocation12 + $0x8ac] sm:$0xf0]  ;;  %v9648_v59 = vor.u32 %v11015_v55, %v9647_v53  ;;  %v10156_v32 = vor.u32 %v11138_v60, %v10153_v45  ;;  %v10795_v14 = vld [vmem:[#allocation12 + $0x3d4] sm:$0xf] }
 0x2fc   :  { %6430 = vmatmul.bf16.vlgmr.msrb.gmra.mxu2 %v11652_v17  ;;  %6435 = vmatpush.bf16.msrb.mxu3 %v9040_v42  ;;  %v10185_v42 = vld [vmem:[#allocation12 + $0xee8] sm:$0xf0]  ;;  %v8879_v56 = vld [vmem:[#allocation12 + $0x490] sm:$0xf]  ;;  %v9392_v58 = vor.u32 %v10951_v2, %v9391_v43 }
 0x2fd   :  { %6474 = vmatpush.bf16.msra.mxu2 %v9808_v29  ;;  %v10959_v29 = vld [vmem:[#allocation12 + $0x8ec] sm:$0xf0]  ;;  %6398 = vmatpush.bf16.msrb.mxu0 %v10252_v22  ;;  %v10188_v31 = vor.u32 %v11146_v46, %v10185_v42  ;;  %v11122_v43 = vld [vmem:[#allocation12 + $0xe0c] sm:$0xf]  ;;  %vm6825_vm15 = vcmp.gt.f32.partialorder %v11757_v61, 0.0 }
 0x2fe   :  { %v9424_v40 = vor.u32 %v10959_v29, %v9423_v38  ;;  %v10823_v20 = vld [vmem:[#allocation12 + $0x4ac] sm:$0xf0]  ;;  %v11761_v57 = vpop.f32.mrf.mxu3  ;;  %v8785_v38 = vld [vmem:[#allocation12 + $0x3f0] sm:$0xf0]  ;;  %v10124_v29 = vor.u32 %v11130_v10, %v10121_v13 }
 0x2ff   :  { %6462 = vmatpush.bf16.msra.mxu1 %v9520_v35  ;;  %v6223_v48 = vpop.f32.mrf.mxu2  ;;  %v8912_v35 = vor.u32 %v10831_v39, %v8911_v34  ;;  %v9359_v51 = vld [vmem:[#allocation12 + $0x850] sm:$0xf]  ;;  %v8880_v6 = vor.u32 %v10823_v20, %v8879_v56  ;;  %v8788_v46 = vor.u32 %v10795_v14, %v8785_v38  ;;  %v10787_v56 = vld [vmem:[#allocation12 + $0x394] sm:$0xf] }
 0x300   :  { %6436 = vmatpush.bf16.msrb.mxu3 %v9008_v26  ;;  %v11759_v54 = vadd.f32 %v6223_v48, %v6211_v21  ;;  %v6095_v26 = vpop.f32.mrf.mxu0  ;;  %v11007_v62 = vld [vmem:[#allocation12 + $0xa6c] sm:$0xf0]  ;;  %v10089_v48 = vld [vmem:[#allocation12 + $0xe28] sm:$0xf0]  ;;  %v8753_v20 = vld [vmem:[#allocation12 + $0x3b0] sm:$0xf0] }
 0x301   :  { %6475 = vmatpush.bf16.msra.mxu2 %v9776_v44  ;;  %v6212_v44 = vpop.f32.mrf.mxu1  ;;  %6399 = vmatpush.bf16.msrb.mxu0 %v10220_v52  ;;  %v8847_v36 = vld [vmem:[#allocation12 + $0x450] sm:$0xf] }
 0x302   :  { %v10815_v1 = vld [vmem:[#allocation12 + $0x46c] sm:$0xf0] }
 0x303   :  { %6463 = vmatpush.bf16.msra.mxu1 %v9488_v0  ;;  %v10943_v0 = vld [vmem:[#allocation12 + $0x86c] sm:$0xf0]  ;;  %v8848_v28 = vor.u32 %v10815_v1, %v8847_v36  ;;  %v8721_v36 = vld [vmem:[#allocation12 + $0x370] sm:$0xf0] }
 0x304   :  { %6437 = vmatpush.bf16.msrb.mxu3 %v8976_v8  ;;  %v9360_v8 = vor.u32 %v10943_v0, %v9359_v51  ;;  %v9327_v19 = vld [vmem:[#allocation12 + $0x810] sm:$0xf]  ;;  %v8756_v0 = vor.u32 %v10787_v56, %v8753_v20 }
 0x305   :  { %6476 = vmatpush.bf16.msra.mxu2 %v9744_v5  ;;  %v9615_v5 = vld [vmem:[#allocation12 + $0xa50] sm:$0xf]  ;;  %6400 = vmatpush.bf16.msrb.mxu0 %v10188_v31  ;;  %v8497_v31 = vld [vmem:[#allocation12 + $0x1b0] sm:$0xf0] }
 0x306   :  { %v9616_v30 = vor.u32 %v11007_v62, %v9615_v5  ;;  %v10935_v22 = vld [vmem:[#allocation12 + $0x82c] sm:$0xf0] }
 0x307   :  { %6464 = vmatpush.bf16.msra.mxu1 %v9456_v4  ;;  %v6225_v23 = vpop.f32.mrf.mxu2  ;;  %v9583_v25 = vld [vmem:[#allocation12 + $0xa10] sm:$0xf]  ;;  %v9328_v52 = vor.u32 %v10935_v22, %v9327_v19 }
 0x308   :  { %6438 = vmatpush.bf16.msrb.mxu3 %v8944_v47  ;;  %v10999_v4 = vld [vmem:[#allocation12 + $0xa2c] sm:$0xf0]  ;;  %v6186_v47 = vpop.f32.mrf.mxu3  ;;  %v6145_v39 = vpop.f32.mrf.mxu0 }
 0x309   :  { %6477 = vmatpush.bf16.msra.mxu2 %v9712_v27  ;;  %v10731_v27 = vld [vmem:[#allocation12 + $0x1d4] sm:$0xf]  ;;  %6401 = vmatpush.bf16.msrb.mxu0 %v10156_v32  ;;  %v8815_v16 = vld [vmem:[#allocation12 + $0x410] sm:$0xf]  ;;  %v9584_v34 = vor.u32 %v10999_v4, %v9583_v25 }
 0x30a   :  { %v10807_v33 = vld [vmem:[#allocation12 + $0x42c] sm:$0xf0]  ;;  %v10779_v32 = vld [vmem:[#allocation12 + $0x354] sm:$0xf] }
 0x30b   :  { %6465 = vmatpush.bf16.msra.mxu1 %v9424_v40  ;;  %v10063_v21 = vld [vmem:[#allocation12 + $0xdd0] sm:$0xf]  ;;  %v6146_v40 = vadd.f32 %v6145_v39, %v11747_v49  ;;  %v8816_v2 = vor.u32 %v10807_v33, %v8815_v16  ;;  %v10092_v49 = vor.u32 %v11122_v43, %v10089_v48  ;;  %v8724_v22 = vor.u32 %v10779_v32, %v8721_v36  ;;  %v10707_v4 = vld [vmem:[#allocation12 + $0x114] sm:$0xf]  ;;  %v11775_v16 = vld [vmem:[#allocation15] sm:$0xff] }
 0x30c   :  { %6439 = vmatpush.bf16.msrb.mxu3 %v8912_v35  ;;  %v11119_v42 = vld [vmem:[#allocation12 + $0xdec] sm:$0xf0]  ;;  %v10723_v35 = vld [vmem:[#allocation12 + $0x194] sm:$0xf]  ;;  %v6851_v43 = vperm.slane %v11775_v16, 0 }
 0x30d   :  { %6478 = vmatpush.bf16.msra.mxu2 %v9680_v12  ;;  %v8532_v12 = vor.u32 %v10731_v27, %v8529_v50  ;;  %v9295_v53 = vld [vmem:[#allocation12 + $0x7d0] sm:$0xf]  ;;  %6402 = vmatpush.bf16.msrb.mxu0 %v10124_v29  ;;  %v6159_v44 = vadd.f32 %v11739_v15, %v6146_v40  ;;  %v8500_v51 = vor.u32 %v10723_v35, %v8497_v31  ;;  %v10715_v15 = vld [vmem:[#allocation12 + $0x154] sm:$0xf]  ;;  %v6833_v29 = vmul.f32 0.2, %v11757_v61 }
 0x30e   :  { %v10927_v55 = vld [vmem:[#allocation12 + $0x7ec] sm:$0xf0]  ;;  %v8433_v27 = vld [vmem:[#allocation12 + $0x130] sm:$0xf0] }
 0x30f   :  { %6466 = vmatpush.bf16.msra.mxu1 %v9392_v58  ;;  %v10064_v58 = vor.u32 %v11119_v42, %v10063_v21  ;;  %v10031_v26 = vld [vmem:[#allocation12 + $0xd90] sm:$0xf]  ;;  %v6172_v45 = vadd.f32 %v11744_v41, %v6159_v44  ;;  %v8689_v50 = vld [vmem:[#allocation12 + $0x330] sm:$0xf0] }
 0x310   :  { %6440 = vmatpush.bf16.msrb.mxu3 %v8880_v6  ;;  %v11111_v60 = vld [vmem:[#allocation12 + $0xdac] sm:$0xf0]  ;;  %v8465_v6 = vld [vmem:[#allocation12 + $0x170] sm:$0xf0] }
 0x311   :  { %6479 = vmatpush.bf16.msra.mxu2 %v9648_v59  ;;  %v9296_v59 = vor.u32 %v10927_v55, %v9295_v53  ;;  %v9263_v5 = vld [vmem:[#allocation12 + $0x790] sm:$0xf]  ;;  %v6185_v1 = vadd.f32 %v11761_v57, %v6172_v45  ;;  %6403 = vmatpush.bf16.msrb.mxu0 %v10092_v49  ;;  %v10032_v10 = vor.u32 %v11111_v60, %v10031_v26  ;;  %v10699_v40 = vld [vmem:[#allocation12 + $0xd4] sm:$0xf]  ;;  %v6852_v53 = vperm.slane %v11775_v16, 1 }
 0x312   :  { %v10919_v62 = vld [vmem:[#allocation12 + $0x7ac] sm:$0xf0]  ;;  %v8468_v19 = vor.u32 %v10715_v15, %v8465_v6  ;;  %v8657_v42 = vld [vmem:[#allocation12 + $0x2f0] sm:$0xf0] }
 0x313   :  { %6467 = vmatpush.bf16.msra.mxu1 %v9360_v8  ;;  %v6147_v8 = vpop.f32.mrf.mxu0  ;;  %v9264_v41 = vor.u32 %v10919_v62, %v9263_v5  ;;  %v11103_v13 = vld [vmem:[#allocation12 + $0xd6c] sm:$0xf0]  ;;  %v10691_v60 = vld [vmem:[#allocation12 + $0x94] sm:$0xf] }
 0x314   :  { %6441 = vmatpush.bf16.msrb.mxu3 %v8848_v28  ;;  %v9231_v23 = vld [vmem:[#allocation12 + $0x750] sm:$0xf]  ;;  %6404 = vmatmul.bf16.vlgmr.msrb.gmra.mxu0 %v11706_v63  ;;  %v10771_v28 = vld [vmem:[#allocation12 + $0x314] sm:$0xf] }
 0x315   :  { %6480 = vmatpush.bf16.msra.mxu2 %v9616_v30  ;;  %6448 = vmatpush.bf16.msra.mxu0 %v9296_v59  ;;  %v9999_v30 = vld [vmem:[#allocation12 + $0xd50] sm:$0xf]  ;;  %v8369_v45 = vld [vmem:[#allocation12 + $0xb0] sm:$0xf0] }
 0x316   :  { %v10911_v25 = vld [vmem:[#allocation12 + $0x76c] sm:$0xf0]  ;;  %v10000_v14 = vor.u32 %v11103_v13, %v9999_v30  ;;  %v8625_v62 = vld [vmem:[#allocation12 + $0x2b0] sm:$0xf0]  ;;  %v8372_v30 = vor.u32 %v10691_v60, %v8369_v45 }
 0x317   :  { %6468 = vmatpush.bf16.msra.mxu1 %v9328_v52  ;;  %v11771_v57 = vpop.f32.mrf.mxu1  ;;  %v9967_v38 = vld [vmem:[#allocation12 + $0xd10] sm:$0xf]  ;;  %v9232_v33 = vor.u32 %v10911_v25, %v9231_v23  ;;  %v8436_v52 = vor.u32 %v10707_v4, %v8433_v27  ;;  %v10683_v23 = vld [vmem:[#allocation12 + $0x54] sm:$0xf] }
 0x318   :  { %6442 = vmatpush.bf16.msrb.mxu3 %v8816_v2  ;;  %v11095_v47 = vld [vmem:[#allocation12 + $0xd2c] sm:$0xf0]  ;;  %v8337_v25 = vld [vmem:[#allocation12 + $0x70] sm:$0xf0] }
 0x319   :  { %6481 = vmatpush.bf16.msra.mxu2 %v9584_v34  ;;  %6449 = vmatpush.bf16.msra.mxu0 %v9264_v41  ;;  %v8692_v34 = vor.u32 %v10771_v28, %v8689_v50  ;;  %v9199_v39 = vld [vmem:[#allocation12 + $0x710] sm:$0xf]  ;;  %v9968_v48 = vor.u32 %v11095_v47, %v9967_v38  ;;  %v10747_v4 = vld [vmem:[#allocation12 + $0x254] sm:$0xf]  ;;  %v8340_v47 = vor.u32 %v10683_v23, %v8337_v25 }
 0x31a   :  { %6469 = vmatmul.bf16.vlgmr.msra.gmra.mxu1 %v11679_v3  ;;  %v10903_v21 = vld [vmem:[#allocation12 + $0x72c] sm:$0xf0]  ;;  %v8593_v27 = vld [vmem:[#allocation12 + $0x270] sm:$0xf0] }
 0x31b   :  { %6513 = vmatpush.bf16.msrb.mxu1 %v8532_v12  ;;  %6443 = vmatmul.bf16.vlgmr.msrb.gmra.mxu3 %v11662_v37  ;;  %v8401_v12 = vld [vmem:[#allocation12 + $0xf0] sm:$0xf0]  ;;  %v6197_v2 = vpop.f32.mrf.mxu0  ;;  %v9935_v55 = vld [vmem:[#allocation12 + $0xcd0] sm:$0xf]  ;;  %v9200_v44 = vor.u32 %v10903_v21, %v9199_v39 }
 0x31c   :  { %6482 = vmatmul.bf16.vlgmr.msra.gmra.mxu2 %v11687_v11  ;;  %6487 = vmatpush.bf16.msra.mxu3 %v10064_v58  ;;  %v6198_v35 = vadd.f32 %v6197_v2, %v6185_v1  ;;  %v11087_v31 = vld [vmem:[#allocation12 + $0xcec] sm:$0xf0]  ;;  %v6841_v58 = vsel %vm6825_vm15, %v11757_v61, %v6833_v29  ;;  %v8404_v49 = vor.u32 %v10699_v40, %v8401_v12  ;;  %v10675_v21 = vld [vmem:[#allocation12 + $0x14] sm:$0xf] }
 0x31d   :  { %6526 = vmatpush.bf16.msrb.mxu2 %v8788_v46  ;;  %v10763_v46 = vld [vmem:[#allocation12 + $0x2d4] sm:$0xf]  ;;  %6450 = vmatpush.bf16.msra.mxu0 %v9232_v33  ;;  %v9167_v56 = vld [vmem:[#allocation12 + $0x6d0] sm:$0xf]  ;;  %v9936_v15 = vor.u32 %v11087_v31, %v9935_v55  ;;  %v6867_v32 = vmul.f32 %v6851_v43, %v6841_v58 }
 0x31e   :  { %v10895_v20 = vld [vmem:[#allocation12 + $0x6ec] sm:$0xf0]  ;;  %v8660_v59 = vor.u32 %v10763_v46, %v8657_v42  ;;  %vm6826_vm0 = vcmp.gt.f32.partialorder %v6198_v35, 0.0  ;;  %v6236_v6 = vpop.f32.mrf.mxu3  ;;  %v8305_v40 = vld [vmem:[#allocation12 + $0x30] sm:$0xf0] }
 0x31f   :  { %6514 = vmatpush.bf16.msrb.mxu1 %v8500_v51  ;;  %v11782_v26 = vpop.f32.mrf.mxu2  ;;  %v10755_v51 = vld [vmem:[#allocation12 + $0x294] sm:$0xf]  ;;  %v6264_v5 = vpop.f32.mrf.mxu1  ;;  %v11785_v61 = vadd.f32 %v6236_v6, %v11759_v54  ;;  %v9168_v1 = vor.u32 %v10895_v20, %v9167_v56  ;;  %v11079_v8 = vld [vmem:[#allocation12 + $0xcac] sm:$0xf0]  ;;  %v8308_v56 = vor.u32 %v10675_v21, %v8305_v40 }
 0x320   :  { %6488 = vmatpush.bf16.msra.mxu3 %v10032_v10  ;;  %v9903_v10 = vld [vmem:[#allocation12 + $0xc90] sm:$0xf]  ;;  %v8628_v13 = vor.u32 %v10755_v51, %v8625_v62  ;;  %v10739_v12 = vld [vmem:[#allocation12 + $0x214] sm:$0xf] }
 0x321   :  { %6527 = vmatpush.bf16.msrb.mxu2 %v8756_v0  ;;  %v6834_v0 = vmul.f32 0.2, %v6198_v35  ;;  %6451 = vmatpush.bf16.msra.mxu0 %v9200_v44  ;;  %v9904_v50 = vor.u32 %v11079_v8, %v9903_v10  ;;  %v9871_v38 = vld [vmem:[#allocation12 + $0xc50] sm:$0xf]  ;;  %v8561_v46 = vld [vmem:[#allocation12 + $0x230] sm:$0xf0] }
 0x322   :  { %v11071_v29 = vld [vmem:[#allocation12 + $0xc6c] sm:$0xf0]  ;;  %v10987_v42 = vld [vmem:[#allocation12 + $0x9d4] sm:$0xf]  ;;  %v8564_v20 = vor.u32 %v10739_v12, %v8561_v46 }
 0x323   :  { %6515 = vmatpush.bf16.msrb.mxu1 %v8468_v19  ;;  %v6842_v36 = vsel %vm6826_vm0, %v6198_v35, %v6834_v0  ;;  %v9135_v19 = vld [vmem:[#allocation12 + $0x690] sm:$0xf]  ;;  %v6199_v54 = vpop.f32.mrf.mxu0  ;;  %v9872_v43 = vor.u32 %v11071_v29, %v9871_v38  ;;  %v9553_v2 = vld [vmem:[#allocation12 + $0x9f0] sm:$0xf0] }
 0x324   :  { %6489 = vmatpush.bf16.msra.mxu3 %v10000_v14  ;;  %v6868_v41 = vmul.f32 %v6852_v53, %v6842_v36  ;;  %v9103_v33 = vld [vmem:[#allocation12 + $0x650] sm:$0xf]  ;;  %v11051_v53 = vld [vmem:[#allocation12 + $0xbd4] sm:$0xf] }
 0x325   :  { %6528 = vmatpush.bf16.msrb.mxu2 %v8724_v22  ;;  %v10887_v22 = vld [vmem:[#allocation12 + $0x6ac] sm:$0xf0]  ;;  %6452 = vmatpush.bf16.msra.mxu0 %v9168_v1  ;;  %v9809_v55 = vld [vmem:[#allocation12 + $0xbf0] sm:$0xf0] }
 0x326   :  { %v11787_v28 = vadd.f32 %v6868_v41, %v6867_v32  ;;  %v9136_v14 = vor.u32 %v10887_v22, %v9135_v19  ;;  %v10879_v39 = vld [vmem:[#allocation12 + $0x66c] sm:$0xf0]  ;;  %v10859_v58 = vld [vmem:[#allocation12 + $0x5d4] sm:$0xf] }
 0x327   :  { %6516 = vmatpush.bf16.msrb.mxu1 %v8436_v52  ;;  %v8596_v52 = vor.u32 %v10747_v4, %v8593_v27  ;;  %v9104_v35 = vor.u32 %v10879_v39, %v9103_v33  ;;  %v9839_v44 = vld [vmem:[#allocation12 + $0xc10] sm:$0xf]  ;;  %v9041_v60 = vld [vmem:[#allocation12 + $0x5f0] sm:$0xf0] }
 0x328   :  { %6490 = vmatpush.bf16.msra.mxu3 %v9968_v48  ;;  %v6238_v48 = vpop.f32.mrf.mxu3  ;;  %v11063_v31 = vld [vmem:[#allocation12 + $0xc2c] sm:$0xf0]  ;;  %v9521_v6 = vld [vmem:[#allocation12 + $0x9b0] sm:$0xf0]  ;;  %v9044_v1 = vor.u32 %v10859_v58, %v9041_v60 }
 0x329   :  { %6529 = vmatpush.bf16.msrb.mxu2 %v8692_v34  ;;  %v6277_v34 = vpop.f32.mrf.mxu2  ;;  %6453 = vmatpush.bf16.msra.mxu0 %v9136_v14  ;;  %v9071_v45 = vld [vmem:[#allocation12 + $0x610] sm:$0xf]  ;;  %v9840_v0 = vor.u32 %v11063_v31, %v9839_v44  ;;  %v11043_v32 = vld [vmem:[#allocation12 + $0xb94] sm:$0xf] }
 0x32a   :  { %v10871_v51 = vld [vmem:[#allocation12 + $0x62c] sm:$0xf0]  ;;  %v9777_v36 = vld [vmem:[#allocation12 + $0xbb0] sm:$0xf0] }
 0x32b   :  { %6517 = vmatpush.bf16.msrb.mxu1 %v8404_v49  ;;  %v9556_v49 = vor.u32 %v10987_v42, %v9553_v2  ;;  %v10319_v5 = vld [vmem:[#allocation12 + $0xfd0] sm:$0xf]  ;;  %v9072_v10 = vor.u32 %v10871_v51, %v9071_v45  ;;  %v10851_v41 = vld [vmem:[#allocation12 + $0x594] sm:$0xf]  ;;  %v9780_v19 = vor.u32 %v11043_v32, %v9777_v36 }
 0x32c   :  { %6491 = vmatpush.bf16.msra.mxu3 %v9936_v15  ;;  %v11183_v62 = vld [vmem:[#allocation12 + $0xfec] sm:$0xf0]  ;;  %v10979_v15 = vld [vmem:[#allocation12 + $0x994] sm:$0xf] }
 0x32d   :  { %6530 = vmatpush.bf16.msrb.mxu2 %v8660_v59  ;;  %v9812_v59 = vor.u32 %v11051_v53, %v9809_v55  ;;  %6454 = vmatpush.bf16.msra.mxu0 %v9104_v35  ;;  %v10320_v8 = vor.u32 %v11183_v62, %v10319_v5  ;;  %v10287_v22 = vld [vmem:[#allocation12 + $0xf90] sm:$0xf]  ;;  %v10971_v25 = vld [vmem:[#allocation12 + $0x954] sm:$0xf] }
 0x32e   :  { %v11175_v23 = vld [vmem:[#allocation12 + $0xfac] sm:$0xf0]  ;;  %v9489_v4 = vld [vmem:[#allocation12 + $0x970] sm:$0xf0] }
 0x32f   :  { %6518 = vmatpush.bf16.msrb.mxu1 %v8372_v30  ;;  %v9009_v30 = vld [vmem:[#allocation12 + $0x5b0] sm:$0xf0]  ;;  %v10288_v14 = vor.u32 %v11175_v23, %v10287_v22  ;;  %v9492_v33 = vor.u32 %v10971_v25, %v9489_v4  ;;  %v11167_v34 = vld [vmem:[#allocation12 + $0xf6c] sm:$0xf0] }
 0x330   :  { %6492 = vmatpush.bf16.msra.mxu3 %v9904_v50  ;;  %v11035_v27 = vld [vmem:[#allocation12 + $0xb54] sm:$0xf]  ;;  %v9012_v54 = vor.u32 %v10851_v41, %v9009_v30  ;;  %v10223_v44 = vld [vmem:[#allocation12 + $0xf10] sm:$0xf] }
 0x331   :  { %6531 = vmatpush.bf16.msrb.mxu2 %v8628_v13  ;;  %v9524_v13 = vor.u32 %v10979_v15, %v9521_v6  ;;  %v9745_v50 = vld [vmem:[#allocation12 + $0xb70] sm:$0xf0]  ;;  %6455 = vmatpush.bf16.msra.mxu0 %v9072_v10  ;;  %v11159_v31 = vld [vmem:[#allocation12 + $0xf2c] sm:$0xf0]  ;;  %v6249_v60 = vpop.f32.mrf.mxu0 }
 0x332   :  { %v10843_v38 = vld [vmem:[#allocation12 + $0x554] sm:$0xf]  ;;  %v10224_v51 = vor.u32 %v11159_v31, %v10223_v44  ;;  %v10191_v32 = vld [vmem:[#allocation12 + $0xed0] sm:$0xf]  ;;  %v8535_v44 = vld [vmem:[#allocation12 + $0x1d8] sm:$0xf] }
 0x333   :  { %6519 = vmatpush.bf16.msrb.mxu1 %v8340_v47  ;;  %v8977_v29 = vld [vmem:[#allocation12 + $0x570] sm:$0xf0]  ;;  %v9748_v47 = vor.u32 %v11035_v27, %v9745_v50  ;;  %v11151_v36 = vld [vmem:[#allocation12 + $0xeec] sm:$0xf0] }
 0x334   :  { %6493 = vmatpush.bf16.msra.mxu3 %v9872_v43  ;;  %v10963_v39 = vld [vmem:[#allocation12 + $0x914] sm:$0xf]  ;;  %6456 = vmatmul.bf16.vlgmr.msra.gmra.mxu0 %v11664_v7  ;;  %v8980_v46 = vor.u32 %v10843_v38, %v8977_v29  ;;  %v3420_v43 = vperm.slane %v11753_v9, 3  ;;  %v6250_v9 = vadd.f32 %v6249_v60, %v11785_v61  ;;  %v10192_v25 = vor.u32 %v11151_v36, %v10191_v32  ;;  %v11127_v32 = vld [vmem:[#allocation12 + $0xe2c] sm:$0xf0] }
 0x335   :  { %6532 = vmatpush.bf16.msrb.mxu2 %v8596_v52  ;;  %6500 = vmatpush.bf16.msrb.mxu0 %v10320_v8  ;;  %v10255_v52 = vld [vmem:[#allocation12 + $0xf50] sm:$0xf]  ;;  %v9457_v21 = vld [vmem:[#allocation12 + $0x930] sm:$0xf0] }
 0x336   :  { %v11027_v40 = vld [vmem:[#allocation12 + $0xb14] sm:$0xf]  ;;  %v10256_v48 = vor.u32 %v11167_v34, %v10255_v52  ;;  %v9460_v55 = vor.u32 %v10963_v39, %v9457_v21  ;;  %v6263_v10 = vadd.f32 %v11771_v57, %v6250_v9  ;;  %v10159_v57 = vld [vmem:[#allocation12 + $0xe90] sm:$0xf] }
 0x337   :  { %6520 = vmatpush.bf16.msrb.mxu1 %v8308_v56  ;;  %v9713_v12 = vld [vmem:[#allocation12 + $0xb30] sm:$0xf0]  ;;  %v6314_v42 = vpop.f32.mrf.mxu1 }
 0x338   :  { %6494 = vmatpush.bf16.msra.mxu3 %v9840_v0  ;;  %v10835_v2 = vld [vmem:[#allocation12 + $0x514] sm:$0xf]  ;;  %v9716_v35 = vor.u32 %v11027_v40, %v9713_v12  ;;  %v6315_v45 = vadd.f32 %v6314_v42, %v3420_v43  ;;  %v6276_v23 = vadd.f32 %v11782_v26, %v6263_v10  ;;  %v10127_v12 = vld [vmem:[#allocation12 + $0xe50] sm:$0xf] }
 0x339   :  { %6533 = vmatpush.bf16.msrb.mxu2 %v8564_v20  ;;  %6501 = vmatpush.bf16.msrb.mxu0 %v10288_v14  ;;  %v8945_v53 = vld [vmem:[#allocation12 + $0x530] sm:$0xf0]  ;;  %v11143_v14 = vld [vmem:[#allocation12 + $0xeac] sm:$0xf0]  ;;  %v6251_v39 = vpop.f32.mrf.mxu0 }
 0x33a   :  { %6521 = vmatmul.bf16.vlgmr.msrb.gmra.mxu1 %v11650_v18  ;;  %v10955_v56 = vld [vmem:[#allocation12 + $0x8d4] sm:$0xf]  ;;  %v10160_v26 = vor.u32 %v11143_v14, %v10159_v57  ;;  %v8471_v14 = vld [vmem:[#allocation12 + $0x158] sm:$0xf] }
 0x33b   :  { %6565 = vmatpush.bf16.msra.mxu1 %v9556_v49  ;;  %6495 = vmatmul.bf16.vlgmr.msra.gmra.mxu3 %v11699_v24  ;;  %v9425_v20 = vld [vmem:[#allocation12 + $0x8f0] sm:$0xf0] }
 0x33c   :  { %6534 = vmatmul.bf16.vlgmr.msrb.gmra.mxu2 %v11652_v17  ;;  %6539 = vmatpush.bf16.msrb.mxu3 %v9044_v1  ;;  %v11019_v58 = vld [vmem:[#allocation12 + $0xad4] sm:$0xf]  ;;  %v9428_v62 = vor.u32 %v10955_v56, %v9425_v20  ;;  %v10736_v20 = vld [vmem:[#allocation12 + $0x1f4] sm:$0xf0] }
 0x33d   :  { %6578 = vmatpush.bf16.msra.mxu2 %v9812_v59  ;;  %v9681_v49 = vld [vmem:[#allocation12 + $0xaf0] sm:$0xf0]  ;;  %v8948_v59 = vor.u32 %v10835_v2, %v8945_v53  ;;  %6502 = vmatpush.bf16.msrb.mxu0 %v10256_v48  ;;  %v11135_v48 = vld [vmem:[#allocation12 + $0xe6c] sm:$0xf0] }
 0x33e   :  { %v10827_v0 = vld [vmem:[#allocation12 + $0x4d4] sm:$0xf]  ;;  %v9684_v15 = vor.u32 %v11019_v58, %v9681_v49  ;;  %v8791_v58 = vld [vmem:[#allocation12 + $0x3d8] sm:$0xf] }
 0x33f   :  { %6566 = vmatpush.bf16.msra.mxu1 %v9524_v13  ;;  %v8913_v5 = vld [vmem:[#allocation12 + $0x4f0] sm:$0xf0]  ;;  %v6327_v6 = vpop.f32.mrf.mxu2  ;;  %v6316_v22 = vpop.f32.mrf.mxu1  ;;  %v10800_v49 = vld [vmem:[#allocation12 + $0x3f4] sm:$0xf0] }
 0x340   :  { %6540 = vmatpush.bf16.msrb.mxu3 %v9012_v54  ;;  %v10947_v1 = vld [vmem:[#allocation12 + $0x894] sm:$0xf]  ;;  %v11796_v8 = vadd.f32 %v6327_v6, %v6315_v45  ;;  %v8916_v61 = vor.u32 %v10827_v0, %v8913_v5  ;;  %v8536_v5 = vor.u32 %v10736_v20, %v8535_v44  ;;  %v10095_v6 = vld [vmem:[#allocation12 + $0xe10] sm:$0xf] }
 0x341   :  { %6579 = vmatpush.bf16.msra.mxu2 %v9780_v19  ;;  %v9393_v41 = vld [vmem:[#allocation12 + $0x8b0] sm:$0xf0]  ;;  %v6288_v19 = vpop.f32.mrf.mxu3  ;;  %6503 = vmatpush.bf16.msrb.mxu0 %v10224_v51  ;;  %v10096_v22 = vor.u32 %v11127_v32, %v10095_v6 }
 0x342   :  { %v11011_v30 = vld [vmem:[#allocation12 + $0xa94] sm:$0xf]  ;;  %v9396_v50 = vor.u32 %v10947_v1, %v9393_v41  ;;  %v11799_v29 = vadd.f32 %v6288_v19, %v6276_v23  ;;  %v8503_v41 = vld [vmem:[#allocation12 + $0x198] sm:$0xf] }
 0x343   :  { %6567 = vmatpush.bf16.msra.mxu1 %v9492_v33  ;;  %v9649_v13 = vld [vmem:[#allocation12 + $0xab0] sm:$0xf0] }
 0x344   :  { %6541 = vmatpush.bf16.msrb.mxu3 %v8980_v46  ;;  %v10819_v4 = vld [vmem:[#allocation12 + $0x494] sm:$0xf]  ;;  %v9652_v54 = vor.u32 %v11011_v30, %v9649_v13  ;;  %v10728_v30 = vld [vmem:[#allocation12 + $0x1b4] sm:$0xf0] }
 0x345   :  { %6580 = vmatpush.bf16.msra.mxu2 %v9748_v47  ;;  %v8881_v27 = vld [vmem:[#allocation12 + $0x4b0] sm:$0xf0]  ;;  %6504 = vmatpush.bf16.msrb.mxu0 %v10192_v25  ;;  %v8759_v13 = vld [vmem:[#allocation12 + $0x398] sm:$0xf] }
 0x346   :  { %v10939_v38 = vld [vmem:[#allocation12 + $0x854] sm:$0xf]  ;;  %v8884_v34 = vor.u32 %v10819_v4, %v8881_v27  ;;  %v8504_v27 = vor.u32 %v10728_v30, %v8503_v41 }
 0x347   :  { %6568 = vmatpush.bf16.msra.mxu1 %v9460_v55  ;;  %v9361_v33 = vld [vmem:[#allocation12 + $0x870] sm:$0xf0]  ;;  %v6329_v43 = vpop.f32.mrf.mxu2 }
 0x348   :  { %6542 = vmatpush.bf16.msrb.mxu3 %v8948_v59  ;;  %v11003_v47 = vld [vmem:[#allocation12 + $0xa54] sm:$0xf]  ;;  %v9364_v46 = vor.u32 %v10939_v38, %v9361_v33  ;;  %v10128_v59 = vor.u32 %v11135_v48, %v10127_v12  ;;  %v10720_v38 = vld [vmem:[#allocation12 + $0x174] sm:$0xf0] }
 0x349   :  { %6581 = vmatpush.bf16.msra.mxu2 %v9716_v35  ;;  %v9617_v52 = vld [vmem:[#allocation12 + $0xa70] sm:$0xf0]  ;;  %v6290_v56 = vpop.f32.mrf.mxu3  ;;  %6505 = vmatpush.bf16.msrb.mxu0 %v10160_v26  ;;  %v8727_v33 = vld [vmem:[#allocation12 + $0x358] sm:$0xf] }
 0x34a   :  { %v10811_v21 = vld [vmem:[#allocation12 + $0x454] sm:$0xf]  ;;  %v9620_v42 = vor.u32 %v11003_v47, %v9617_v52  ;;  %v10784_v47 = vld [vmem:[#allocation12 + $0x374] sm:$0xf0] }
 0x34b   :  { %6569 = vmatpush.bf16.msra.mxu1 %v9428_v62  ;;  %v8849_v40 = vld [vmem:[#allocation12 + $0x470] sm:$0xf0]  ;;  %v8792_v62 = vor.u32 %v10800_v49, %v8791_v58  ;;  %v10712_v43 = vld [vmem:[#allocation12 + $0x134] sm:$0xf0] }
 0x34c   :  { %6543 = vmatpush.bf16.msrb.mxu3 %v8916_v61  ;;  %v10931_v2 = vld [vmem:[#allocation12 + $0x814] sm:$0xf]  ;;  %v8852_v31 = vor.u32 %v10811_v21, %v8849_v40  ;;  %v10792_v61 = vld [vmem:[#allocation12 + $0x3b4] sm:$0xf0]  ;;  %v8472_v21 = vor.u32 %v10720_v38, %v8471_v14  ;;  %v8728_v40 = vor.u32 %v10784_v47, %v8727_v33 }
 0x34d   :  { %6582 = vmatpush.bf16.msra.mxu2 %v9684_v15  ;;  %v9329_v53 = vld [vmem:[#allocation12 + $0x830] sm:$0xf0]  ;;  %6506 = vmatpush.bf16.msrb.mxu0 %v10128_v59  ;;  %v8695_v48 = vld [vmem:[#allocation12 + $0x318] sm:$0xf] }
 0x34e   :  { %v10995_v55 = vld [vmem:[#allocation12 + $0xa14] sm:$0xf]  ;;  %v9332_v9 = vor.u32 %v10931_v2, %v9329_v53  ;;  %v10776_v2 = vld [vmem:[#allocation12 + $0x334] sm:$0xf0] }
 0x34f   :  { %6570 = vmatpush.bf16.msra.mxu1 %v9396_v50  ;;  %v9585_v35 = vld [vmem:[#allocation12 + $0xa30] sm:$0xf0]  ;;  %v8760_v50 = vor.u32 %v10792_v61, %v8759_v13  ;;  %v8696_v20 = vor.u32 %v10776_v2, %v8695_v48  ;;  %v8407_v59 = vld [vmem:[#allocation12 + $0xd8] sm:$0xf] }
 0x350   :  { %6544 = vmatpush.bf16.msrb.mxu3 %v8884_v34  ;;  %v10803_v60 = vld [vmem:[#allocation12 + $0x414] sm:$0xf]  ;;  %v9588_v51 = vor.u32 %v10995_v55, %v9585_v35  ;;  %v8375_v13 = vld [vmem:[#allocation12 + $0x98] sm:$0xf] }
 0x351   :  { %6583 = vmatpush.bf16.msra.mxu2 %v9652_v54  ;;  %v8817_v45 = vld [vmem:[#allocation12 + $0x430] sm:$0xf0]  ;;  %6507 = vmatpush.bf16.msrb.mxu0 %v10096_v22  ;;  %v10696_v61 = vld [vmem:[#allocation12 + $0xb4] sm:$0xf0] }
 0x352   :  { %v11115_v0 = vld [vmem:[#allocation12 + $0xdd4] sm:$0xf]  ;;  %v8820_v36 = vor.u32 %v10803_v60, %v8817_v45  ;;  %v10704_v60 = vld [vmem:[#allocation12 + $0xf4] sm:$0xf0]  ;;  %v8376_v38 = vor.u32 %v10696_v61, %v8375_v13 }
 0x353   :  { %6571 = vmatpush.bf16.msra.mxu1 %v9364_v46  ;;  %v10065_v15 = vld [vmem:[#allocation12 + $0xdf0] sm:$0xf0]  ;;  %v8663_v45 = vld [vmem:[#allocation12 + $0x2d8] sm:$0xf] }
 0x354   :  { %6545 = vmatpush.bf16.msrb.mxu3 %v8852_v31  ;;  %v10923_v1 = vld [vmem:[#allocation12 + $0x7d4] sm:$0xf]  ;;  %v10068_v19 = vor.u32 %v11115_v0, %v10065_v15  ;;  %6508 = vmatmul.bf16.vlgmr.msrb.gmra.mxu0 %v11706_v63  ;;  %v6301_v0 = vpop.f32.mrf.mxu0 }
 0x355   :  { %6584 = vmatpush.bf16.msra.mxu2 %v9620_v42  ;;  %v9297_v10 = vld [vmem:[#allocation12 + $0x7f0] sm:$0xf0]  ;;  %v8439_v42 = vld [vmem:[#allocation12 + $0x118] sm:$0xf]  ;;  %v6302_v15 = vadd.f32 %v6301_v0, %v11799_v29 }
 0x356   :  { %v9300_v23 = vor.u32 %v10923_v1, %v9297_v10  ;;  %v11107_v25 = vld [vmem:[#allocation12 + $0xd94] sm:$0xf]  ;;  %v8440_v56 = vor.u32 %v10712_v43, %v8439_v42  ;;  %v8408_v10 = vor.u32 %v10704_v60, %v8407_v59  ;;  %v10992_v60 = vld [vmem:[#allocation12 + $0x9f4] sm:$0xf0] }
 0x357   :  { %6572 = vmatpush.bf16.msra.mxu1 %v9332_v9  ;;  %v10033_v4 = vld [vmem:[#allocation12 + $0xdb0] sm:$0xf0]  ;;  %v11805_v55 = vpop.f32.mrf.mxu1  ;;  %v10768_v9 = vld [vmem:[#allocation12 + $0x2f4] sm:$0xf0]  ;;  %vm6827_vm1 = vcmp.gt.f32.partialorder %v6302_v15, 0.0 }
 0x358   :  { %6546 = vmatpush.bf16.msrb.mxu3 %v8820_v36  ;;  %v10915_v54 = vld [vmem:[#allocation12 + $0x794] sm:$0xf]  ;;  %v10036_v52 = vor.u32 %v11107_v25, %v10033_v4  ;;  %6552 = vmatpush.bf16.msra.mxu0 %v9300_v23  ;;  %v8664_v41 = vor.u32 %v10768_v9, %v8663_v45  ;;  %v6835_v22 = vmul.f32 0.2, %v6302_v15  ;;  %v9815_v45 = vld [vmem:[#allocation12 + $0xbd8] sm:$0xf] }
 0x359   :  { %6585 = vmatpush.bf16.msra.mxu2 %v9588_v51  ;;  %v9265_v57 = vld [vmem:[#allocation12 + $0x7b0] sm:$0xf0]  ;;  %v11056_v9 = vld [vmem:[#allocation12 + $0xbf4] sm:$0xf0] }
 0x35a   :  { %6573 = vmatmul.bf16.vlgmr.msra.gmra.mxu1 %v11679_v3  ;;  %v9268_v34 = vor.u32 %v10915_v54, %v9265_v57  ;;  %v11099_v39 = vld [vmem:[#allocation12 + $0xd54] sm:$0xf]  ;;  %v6843_v4 = vsel %vm6827_vm1, %v6302_v15, %v6835_v22  ;;  %v9527_v22 = vld [vmem:[#allocation12 + $0x998] sm:$0xf] }
 0x35b   :  { %6617 = vmatpush.bf16.msrb.mxu1 %v8536_v5  ;;  %6547 = vmatmul.bf16.vlgmr.msrb.gmra.mxu3 %v11662_v37  ;;  %v10001_v26 = vld [vmem:[#allocation12 + $0xd70] sm:$0xf0]  ;;  %v6853_v5 = vperm.slane %v11775_v16, 2  ;;  %v10760_v16 = vld [vmem:[#allocation12 + $0x2b4] sm:$0xf0] }
 0x35c   :  { %6586 = vmatmul.bf16.vlgmr.msra.gmra.mxu2 %v11687_v11  ;;  %6591 = vmatpush.bf16.msra.mxu3 %v10068_v19  ;;  %v10907_v12 = vld [vmem:[#allocation12 + $0x754] sm:$0xf]  ;;  %v10004_v53 = vor.u32 %v11099_v39, %v10001_v26  ;;  %v8631_v19 = vld [vmem:[#allocation12 + $0x298] sm:$0xf] }
 0x35d   :  { %6630 = vmatpush.bf16.msrb.mxu2 %v8792_v62  ;;  %v9233_v46 = vld [vmem:[#allocation12 + $0x770] sm:$0xf0]  ;;  %6553 = vmatpush.bf16.msra.mxu0 %v9268_v34  ;;  %v6869_v14 = vmul.f32 %v6853_v5, %v6843_v4  ;;  %v8632_v33 = vor.u32 %v10760_v16, %v8631_v19  ;;  %v8343_v34 = vld [vmem:[#allocation12 + $0x58] sm:$0xf] }
 0x35e   :  { %v9236_v35 = vor.u32 %v10907_v12, %v9233_v46  ;;  %v11091_v44 = vld [vmem:[#allocation12 + $0xd14] sm:$0xf]  ;;  %v6340_v25 = vpop.f32.mrf.mxu3  ;;  %v10688_v39 = vld [vmem:[#allocation12 + $0x74] sm:$0xf0]  ;;  %v6303_v12 = vpop.f32.mrf.mxu0 }
 0x35f   :  { %6618 = vmatpush.bf16.msrb.mxu1 %v8504_v27  ;;  %v9969_v31 = vld [vmem:[#allocation12 + $0xd30] sm:$0xf0]  ;;  %v11809_v30 = vpop.f32.mrf.mxu2  ;;  %v6368_v29 = vpop.f32.mrf.mxu1  ;;  %v11812_v27 = vadd.f32 %v6340_v25, %v11796_v8  ;;  %v8599_v26 = vld [vmem:[#allocation12 + $0x258] sm:$0xf]  ;;  %v8344_v2 = vor.u32 %v10688_v39, %v8343_v34 }
 0x360   :  { %6592 = vmatpush.bf16.msra.mxu3 %v10036_v52  ;;  %v10899_v58 = vld [vmem:[#allocation12 + $0x714] sm:$0xf]  ;;  %v9972_v51 = vor.u32 %v11091_v44, %v9969_v31  ;;  %v8311_v31 = vld [vmem:[#allocation12 + $0x18] sm:$0xf] }
 0x361   :  { %6631 = vmatpush.bf16.msrb.mxu2 %v8760_v50  ;;  %v9201_v49 = vld [vmem:[#allocation12 + $0x730] sm:$0xf0]  ;;  %6554 = vmatpush.bf16.msra.mxu0 %v9236_v35  ;;  %v10984_v16 = vld [vmem:[#allocation12 + $0x9b4] sm:$0xf0] }
 0x362   :  { %v11083_v62 = vld [vmem:[#allocation12 + $0xcd4] sm:$0xf]  ;;  %v9204_v6 = vor.u32 %v10899_v58, %v9201_v49  ;;  %v10744_v58 = vld [vmem:[#allocation12 + $0x234] sm:$0xf0] }
 0x363   :  { %6619 = vmatpush.bf16.msrb.mxu1 %v8472_v21  ;;  %v9937_v32 = vld [vmem:[#allocation12 + $0xcf0] sm:$0xf0]  ;;  %v10752_v21 = vld [vmem:[#allocation12 + $0x274] sm:$0xf0] }
 0x364   :  { %6593 = vmatpush.bf16.msra.mxu3 %v10004_v53  ;;  %v10891_v36 = vld [vmem:[#allocation12 + $0x6d4] sm:$0xf]  ;;  %v9940_v23 = vor.u32 %v11083_v62, %v9937_v32  ;;  %v8600_v53 = vor.u32 %v10752_v21, %v8599_v26  ;;  %v11048_v25 = vld [vmem:[#allocation12 + $0xbb4] sm:$0xf0] }
 0x365   :  { %6632 = vmatpush.bf16.msrb.mxu2 %v8728_v40  ;;  %v9169_v1 = vld [vmem:[#allocation12 + $0x6f0] sm:$0xf0]  ;;  %6555 = vmatpush.bf16.msra.mxu0 %v9204_v6  ;;  %v11815_v40 = vadd.f32 %v11787_v28, %v6869_v14  ;;  %v9559_v28 = vld [vmem:[#allocation12 + $0x9d8] sm:$0xf]  ;;  %v9528_v14 = vor.u32 %v10984_v16, %v9527_v22 }
 0x366   :  { %v9172_v50 = vor.u32 %v10891_v36, %v9169_v1  ;;  %v11075_v54 = vld [vmem:[#allocation12 + $0xc94] sm:$0xf]  ;;  %v6342_v59 = vpop.f32.mrf.mxu3  ;;  %v9047_v6 = vld [vmem:[#allocation12 + $0x5d8] sm:$0xf]  ;;  %v9560_v32 = vor.u32 %v10992_v60, %v9559_v28  ;;  %v9816_v36 = vor.u32 %v11056_v9, %v9815_v45 }
 0x367   :  { %6620 = vmatpush.bf16.msrb.mxu1 %v8440_v56  ;;  %v9905_v57 = vld [vmem:[#allocation12 + $0xcb0] sm:$0xf0]  ;;  %v6381_v35 = vpop.f32.mrf.mxu2  ;;  %v10680_v56 = vld [vmem:[#allocation12 + $0x34] sm:$0xf0] }
 0x368   :  { %6594 = vmatpush.bf16.msra.mxu3 %v9972_v51  ;;  %v10883_v47 = vld [vmem:[#allocation12 + $0x694] sm:$0xf]  ;;  %v9908_v8 = vor.u32 %v11075_v54, %v9905_v57  ;;  %v8312_v62 = vor.u32 %v10680_v56, %v8311_v31  ;;  %v10864_v1 = vld [vmem:[#allocation12 + $0x5f4] sm:$0xf0] }
 0x369   :  { %6633 = vmatpush.bf16.msrb.mxu2 %v8696_v20  ;;  %v9137_v52 = vld [vmem:[#allocation12 + $0x6b0] sm:$0xf0]  ;;  %6556 = vmatpush.bf16.msra.mxu0 %v9172_v50  ;;  %v8567_v20 = vld [vmem:[#allocation12 + $0x218] sm:$0xf]  ;;  %v9048_v29 = vor.u32 %v10864_v1, %v9047_v6 }
 0x36a   :  { %v9140_v46 = vor.u32 %v10883_v47, %v9137_v52  ;;  %v11067_v42 = vld [vmem:[#allocation12 + $0xc54] sm:$0xf]  ;;  %v8568_v15 = vor.u32 %v10744_v58, %v8567_v20  ;;  %v9015_v54 = vld [vmem:[#allocation12 + $0x598] sm:$0xf]  ;;  %v11821_v58 = vld [vmem:[#allocation14] sm:$0xff] }
 0x36b   :  { %6621 = vmatpush.bf16.msrb.mxu1 %v8408_v10  ;;  %v9873_v43 = vld [vmem:[#allocation12 + $0xc70] sm:$0xf0]  ;;  %v10856_v57 = vld [vmem:[#allocation12 + $0x5b4] sm:$0xf0]  ;;  %v3421_v28 = vperm.slane %v11821_v58, 4 }
 0x36c   :  { %6595 = vmatpush.bf16.msra.mxu3 %v9940_v23  ;;  %v10875_v48 = vld [vmem:[#allocation12 + $0x654] sm:$0xf]  ;;  %v9876_v49 = vor.u32 %v11067_v42, %v9873_v43  ;;  %v9783_v23 = vld [vmem:[#allocation12 + $0xb98] sm:$0xf]  ;;  %v9016_v21 = vor.u32 %v10856_v57, %v9015_v54 }
 0x36d   :  { %6634 = vmatpush.bf16.msrb.mxu2 %v8664_v41  ;;  %v9105_v44 = vld [vmem:[#allocation12 + $0x670] sm:$0xf0]  ;;  %6557 = vmatpush.bf16.msra.mxu0 %v9140_v46  ;;  %v9495_v52 = vld [vmem:[#allocation12 + $0x958] sm:$0xf] }
 0x36e   :  { %v9108_v51 = vor.u32 %v10875_v48, %v9105_v44  ;;  %v11059_v0 = vld [vmem:[#allocation12 + $0xc14] sm:$0xf]  ;;  %v10976_v34 = vld [vmem:[#allocation12 + $0x974] sm:$0xf0] }
 0x36f   :  { %6622 = vmatpush.bf16.msrb.mxu1 %v8376_v38  ;;  %v9841_v5 = vld [vmem:[#allocation12 + $0xc30] sm:$0xf0]  ;;  %v9784_v38 = vor.u32 %v11048_v25, %v9783_v23  ;;  %v9751_v39 = vld [vmem:[#allocation12 + $0xb58] sm:$0xf]  ;;  %v9496_v42 = vor.u32 %v10976_v34, %v9495_v52 }
 0x370   :  { %6596 = vmatpush.bf16.msra.mxu3 %v9908_v8  ;;  %v10867_v10 = vld [vmem:[#allocation12 + $0x614] sm:$0xf]  ;;  %v9844_v13 = vor.u32 %v11059_v0, %v9841_v5  ;;  %v11040_v26 = vld [vmem:[#allocation12 + $0xb74] sm:$0xf0] }
 0x371   :  { %6635 = vmatpush.bf16.msrb.mxu2 %v8632_v33  ;;  %v9073_v41 = vld [vmem:[#allocation12 + $0x630] sm:$0xf0]  ;;  %6558 = vmatpush.bf16.msra.mxu0 %v9108_v51  ;;  %v8983_v12 = vld [vmem:[#allocation12 + $0x558] sm:$0xf]  ;;  %v9752_v43 = vor.u32 %v11040_v26, %v9751_v39 }
 0x372   :  { %v11179_v61 = vld [vmem:[#allocation12 + $0xfd4] sm:$0xf]  ;;  %v9076_v4 = vor.u32 %v10867_v10, %v9073_v41  ;;  %v10848_v46 = vld [vmem:[#allocation12 + $0x574] sm:$0xf0] }
 0x373   :  { %6623 = vmatpush.bf16.msrb.mxu1 %v8344_v2  ;;  %v10321_v19 = vld [vmem:[#allocation12 + $0xff0] sm:$0xf0]  ;;  %v10968_v35 = vld [vmem:[#allocation12 + $0x934] sm:$0xf0]  ;;  %v8984_v56 = vor.u32 %v10848_v46, %v8983_v12 }
 0x374   :  { %6597 = vmatpush.bf16.msra.mxu3 %v9876_v49  ;;  %v10324_v50 = vor.u32 %v11179_v61, %v10321_v19  ;;  %v11171_v33 = vld [vmem:[#allocation12 + $0xf94] sm:$0xf]  ;;  %v9719_v44 = vld [vmem:[#allocation12 + $0xb18] sm:$0xf] }
 0x375   :  { %6636 = vmatpush.bf16.msrb.mxu2 %v8600_v53  ;;  %v10289_v47 = vld [vmem:[#allocation12 + $0xfb0] sm:$0xf0]  ;;  %6559 = vmatpush.bf16.msra.mxu0 %v9076_v4  ;;  %v9463_v53 = vld [vmem:[#allocation12 + $0x918] sm:$0xf] }
 0x376   :  { %v10292_v8 = vor.u32 %v11171_v33, %v10289_v47  ;;  %v11163_v48 = vld [vmem:[#allocation12 + $0xf54] sm:$0xf]  ;;  %v11032_v31 = vld [vmem:[#allocation12 + $0xb34] sm:$0xf0]  ;;  %v9464_v45 = vor.u32 %v10968_v35, %v9463_v53 }
 0x377   :  { %6624 = vmatpush.bf16.msrb.mxu1 %v8312_v62  ;;  %v10257_v2 = vld [vmem:[#allocation12 + $0xf70] sm:$0xf0]  ;;  %v6418_v20 = vpop.f32.mrf.mxu1  ;;  %v8951_v59 = vld [vmem:[#allocation12 + $0x518] sm:$0xf]  ;;  %v9720_v9 = vor.u32 %v11032_v31, %v9719_v44 }
 0x378   :  { %6598 = vmatpush.bf16.msra.mxu3 %v9844_v13  ;;  %6560 = vmatmul.bf16.vlgmr.msra.gmra.mxu0 %v11664_v7  ;;  %v10260_v49 = vor.u32 %v11163_v48, %v10257_v2  ;;  %v10840_v60 = vld [vmem:[#allocation12 + $0x534] sm:$0xf0]  ;;  %v11155_v51 = vld [vmem:[#allocation12 + $0xf14] sm:$0xf]  ;;  %v6419_v1 = vadd.f32 %v6418_v20, %v3421_v28 }
 0x379   :  { %6637 = vmatpush.bf16.msrb.mxu2 %v8568_v15  ;;  %6604 = vmatpush.bf16.msrb.mxu0 %v10324_v50  ;;  %v10225_v0 = vld [vmem:[#allocation12 + $0xf30] sm:$0xf0]  ;;  %v9431_v5 = vld [vmem:[#allocation12 + $0x8d8] sm:$0xf] }
 0x37a   :  { %6625 = vmatmul.bf16.vlgmr.msrb.gmra.mxu1 %v11650_v18  ;;  %v10960_v62 = vld [vmem:[#allocation12 + $0x8f4] sm:$0xf0]  ;;  %v10228_v41 = vor.u32 %v11155_v51, %v10225_v0  ;;  %v11147_v23 = vld [vmem:[#allocation12 + $0xed4] sm:$0xf]  ;;  %v10732_v51 = vld [vmem:[#allocation12 + $0x1dc] sm:$0xf] }
 0x37b   :  { %6669 = vmatpush.bf16.msra.mxu1 %v9560_v32  ;;  %6599 = vmatmul.bf16.vlgmr.msra.gmra.mxu3 %v11699_v24  ;;  %v9687_v15 = vld [vmem:[#allocation12 + $0xad8] sm:$0xf]  ;;  %v8952_v32 = vor.u32 %v10840_v60, %v8951_v59  ;;  %v9432_v19 = vor.u32 %v10960_v62, %v9431_v5  ;;  %v10193_v25 = vld [vmem:[#allocation12 + $0xef0] sm:$0xf0]  ;;  %v8537_v62 = vld [vmem:[#allocation12 + $0x1f8] sm:$0xf0] }
 0x37c   :  { %6638 = vmatmul.bf16.vlgmr.msrb.gmra.mxu2 %v11652_v17  ;;  %6643 = vmatpush.bf16.msrb.mxu3 %v9048_v29  ;;  %v11024_v6 = vld [vmem:[#allocation12 + $0xaf4] sm:$0xf0]  ;;  %v10196_v52 = vor.u32 %v11147_v23, %v10193_v25  ;;  %v11131_v31 = vld [vmem:[#allocation12 + $0xe54] sm:$0xf] }
 0x37d   :  { %6682 = vmatpush.bf16.msra.mxu2 %v9816_v36  ;;  %6605 = vmatpush.bf16.msrb.mxu0 %v10292_v8  ;;  %v6353_v36 = vpop.f32.mrf.mxu0  ;;  %v8919_v13 = vld [vmem:[#allocation12 + $0x4d8] sm:$0xf]  ;;  %v9688_v22 = vor.u32 %v11024_v6, %v9687_v15  ;;  %v10161_v8 = vld [vmem:[#allocation12 + $0xeb0] sm:$0xf0]  ;;  %v10796_v15 = vld [vmem:[#allocation12 + $0x3dc] sm:$0xf] }
 0x37e   :  { %v6354_v10 = vadd.f32 %v6353_v36, %v11812_v27  ;;  %v10832_v61 = vld [vmem:[#allocation12 + $0x4f4] sm:$0xf0]  ;;  %v8793_v6 = vld [vmem:[#allocation12 + $0x3f8] sm:$0xf0]  ;;  %v10097_v23 = vld [vmem:[#allocation12 + $0xe30] sm:$0xf0] }
 0x37f   :  { %6670 = vmatpush.bf16.msra.mxu1 %v9528_v14  ;;  %v6431_v16 = vpop.f32.mrf.mxu2  ;;  %v9399_v29 = vld [vmem:[#allocation12 + $0x898] sm:$0xf]  ;;  %v8920_v27 = vor.u32 %v10832_v61, %v8919_v13  ;;  %v6420_v33 = vpop.f32.mrf.mxu1  ;;  %v8540_v61 = vor.u32 %v10732_v51, %v8537_v62 }
 0x380   :  { %6644 = vmatpush.bf16.msrb.mxu3 %v9016_v21  ;;  %v6367_v4 = vadd.f32 %v11805_v55, %v6354_v10  ;;  %v11826_v50 = vadd.f32 %v6431_v16, %v6419_v1  ;;  %v10952_v54 = vld [vmem:[#allocation12 + $0x8b4] sm:$0xf0]  ;;  %v11139_v55 = vld [vmem:[#allocation12 + $0xe94] sm:$0xf] }
 0x381   :  { %6683 = vmatpush.bf16.msra.mxu2 %v9784_v38  ;;  %6606 = vmatpush.bf16.msrb.mxu0 %v10260_v49  ;;  %v9655_v57 = vld [vmem:[#allocation12 + $0xa98] sm:$0xf]  ;;  %v6392_v38 = vpop.f32.mrf.mxu3  ;;  %v9400_v26 = vor.u32 %v10952_v54, %v9399_v29  ;;  %v10129_v49 = vld [vmem:[#allocation12 + $0xe70] sm:$0xf0]  ;;  %v10724_v54 = vld [vmem:[#allocation12 + $0x19c] sm:$0xf] }
 0x382   :  { %v11016_v14 = vld [vmem:[#allocation12 + $0xab4] sm:$0xf0]  ;;  %v6380_v47 = vadd.f32 %v11809_v30, %v6367_v4  ;;  %v10164_v30 = vor.u32 %v11139_v55, %v10161_v8  ;;  %v11123_v16 = vld [vmem:[#allocation12 + $0xe14] sm:$0xf]  ;;  %v10716_v8 = vld [vmem:[#allocation12 + $0x15c] sm:$0xf] }
 0x383   :  { %6671 = vmatpush.bf16.msra.mxu1 %v9496_v42  ;;  %v8887_v34 = vld [vmem:[#allocation12 + $0x498] sm:$0xf]  ;;  %v9656_v21 = vor.u32 %v11016_v14, %v9655_v57  ;;  %v8505_v57 = vld [vmem:[#allocation12 + $0x1b8] sm:$0xf0]  ;;  %v10100_v33 = vor.u32 %v11123_v16, %v10097_v23 }
 0x384   :  { %6645 = vmatpush.bf16.msrb.mxu3 %v8984_v56  ;;  %v10824_v39 = vld [vmem:[#allocation12 + $0x4b4] sm:$0xf0]  ;;  %v11829_v46 = vadd.f32 %v6392_v38, %v6380_v47  ;;  %v10788_v14 = vld [vmem:[#allocation12 + $0x39c] sm:$0xf] }
 0x385   :  { %6684 = vmatpush.bf16.msra.mxu2 %v9752_v43  ;;  %6607 = vmatpush.bf16.msrb.mxu0 %v10228_v41  ;;  %v9367_v12 = vld [vmem:[#allocation12 + $0x858] sm:$0xf]  ;;  %v8888_v2 = vor.u32 %v10824_v39, %v8887_v34  ;;  %v6355_v53 = vpop.f32.mrf.mxu0  ;;  %v8508_v39 = vor.u32 %v10724_v54, %v8505_v57 }
 0x386   :  { %v10944_v42 = vld [vmem:[#allocation12 + $0x874] sm:$0xf0] }
 0x387   :  { %6672 = vmatpush.bf16.msra.mxu1 %v9464_v45  ;;  %v9623_v43 = vld [vmem:[#allocation12 + $0xa58] sm:$0xf]  ;;  %v9368_v56 = vor.u32 %v10944_v42, %v9367_v12  ;;  %v6433_v28 = vpop.f32.mrf.mxu2  ;;  %v8473_v12 = vld [vmem:[#allocation12 + $0x178] sm:$0xf0] }
 0x388   :  { %6646 = vmatpush.bf16.msrb.mxu3 %v8952_v32  ;;  %v11008_v48 = vld [vmem:[#allocation12 + $0xa74] sm:$0xf0]  ;;  %v10132_v32 = vor.u32 %v11131_v31, %v10129_v49  ;;  %v10780_v42 = vld [vmem:[#allocation12 + $0x35c] sm:$0xf] }
 0x389   :  { %6685 = vmatpush.bf16.msra.mxu2 %v9720_v9  ;;  %6608 = vmatpush.bf16.msrb.mxu0 %v10196_v52  ;;  %v8855_v35 = vld [vmem:[#allocation12 + $0x458] sm:$0xf]  ;;  %v9624_v20 = vor.u32 %v11008_v48, %v9623_v43  ;;  %v6394_v5 = vpop.f32.mrf.mxu3  ;;  %v8729_v43 = vld [vmem:[#allocation12 + $0x378] sm:$0xf0] }
 0x38a   :  { %v10816_v44 = vld [vmem:[#allocation12 + $0x474] sm:$0xf0]  ;;  %v8441_v28 = vld [vmem:[#allocation12 + $0x138] sm:$0xf0] }
 0x38b   :  { %6673 = vmatpush.bf16.msra.mxu1 %v9432_v19  ;;  %v9335_v59 = vld [vmem:[#allocation12 + $0x818] sm:$0xf]  ;;  %v8856_v0 = vor.u32 %v10816_v44, %v8855_v35  ;;  %v8796_v19 = vor.u32 %v10796_v15, %v8793_v6  ;;  %v8476_v35 = vor.u32 %v10716_v8, %v8473_v12  ;;  %v8732_v44 = vor.u32 %v10780_v42, %v8729_v43  ;;  %v10772_v49 = vld [vmem:[#allocation12 + $0x31c] sm:$0xf] }
 0x38c   :  { %6647 = vmatpush.bf16.msrb.mxu3 %v8920_v27  ;;  %v10936_v60 = vld [vmem:[#allocation12 + $0x834] sm:$0xf0]  ;;  %v8761_v27 = vld [vmem:[#allocation12 + $0x3b8] sm:$0xf0] }
 0x38d   :  { %6686 = vmatpush.bf16.msra.mxu2 %v9688_v22  ;;  %v9591_v45 = vld [vmem:[#allocation12 + $0xa18] sm:$0xf]  ;;  %6609 = vmatpush.bf16.msrb.mxu0 %v10164_v30  ;;  %v9336_v10 = vor.u32 %v10936_v60, %v9335_v59  ;;  %v8697_v59 = vld [vmem:[#allocation12 + $0x338] sm:$0xf0] }
 0x38e   :  { %v11000_v9 = vld [vmem:[#allocation12 + $0xa34] sm:$0xf0]  ;;  %v8700_v62 = vor.u32 %v10772_v49, %v8697_v59 }
 0x38f   :  { %6674 = vmatpush.bf16.msra.mxu1 %v9400_v26  ;;  %v8823_v36 = vld [vmem:[#allocation12 + $0x418] sm:$0xf]  ;;  %v9592_v41 = vor.u32 %v11000_v9, %v9591_v45  ;;  %v8764_v26 = vor.u32 %v10788_v14, %v8761_v27  ;;  %v10692_v27 = vld [vmem:[#allocation12 + $0x9c] sm:$0xf] }
 0x390   :  { %6648 = vmatpush.bf16.msrb.mxu3 %v8888_v2  ;;  %v10808_v1 = vld [vmem:[#allocation12 + $0x434] sm:$0xf0] }
 0x391   :  { %6687 = vmatpush.bf16.msra.mxu2 %v9656_v21  ;;  %v10071_v13 = vld [vmem:[#allocation12 + $0xdd8] sm:$0xf]  ;;  %v8824_v25 = vor.u32 %v10808_v1, %v8823_v36  ;;  %6610 = vmatpush.bf16.msrb.mxu0 %v10132_v32  ;;  %v10700_v32 = vld [vmem:[#allocation12 + $0xdc] sm:$0xf] }
 0x392   :  { %v11120_v22 = vld [vmem:[#allocation12 + $0xdf4] sm:$0xf0]  ;;  %v8409_v36 = vld [vmem:[#allocation12 + $0xf8] sm:$0xf0] }
 0x393   :  { %6675 = vmatpush.bf16.msra.mxu1 %v9368_v56  ;;  %v9303_v29 = vld [vmem:[#allocation12 + $0x7d8] sm:$0xf]  ;;  %v10072_v38 = vor.u32 %v11120_v22, %v10071_v13  ;;  %v10764_v1 = vld [vmem:[#allocation12 + $0x2dc] sm:$0xf]  ;;  %v6405_v13 = vpop.f32.mrf.mxu0  ;;  %v8412_v54 = vor.u32 %v10700_v32, %v8409_v36 }
 0x394   :  { %6649 = vmatpush.bf16.msrb.mxu3 %v8856_v0  ;;  %v10928_v4 = vld [vmem:[#allocation12 + $0x7f4] sm:$0xf0]  ;;  %v6406_v16 = vadd.f32 %v6405_v13, %v11829_v46  ;;  %v8569_v32 = vld [vmem:[#allocation12 + $0x238] sm:$0xf0] }
 0x395   :  { %6688 = vmatpush.bf16.msra.mxu2 %v9624_v20  ;;  %v9304_v47 = vor.u32 %v10928_v4, %v9303_v29  ;;  %v10039_v52 = vld [vmem:[#allocation12 + $0xd98] sm:$0xf]  ;;  %6611 = vmatpush.bf16.msrb.mxu0 %v10100_v33  ;;  %v10708_v20 = vld [vmem:[#allocation12 + $0x11c] sm:$0xf] }
 0x396   :  { %v11112_v34 = vld [vmem:[#allocation12 + $0xdb4] sm:$0xf0]  ;;  %v8444_v5 = vor.u32 %v10708_v20, %v8441_v28  ;;  %v10756_v33 = vld [vmem:[#allocation12 + $0x29c] sm:$0xf]  ;;  %vm6828_vm2 = vcmp.gt.f32.partialorder %v6406_v16, 0.0 }
 0x397   :  { %6676 = vmatpush.bf16.msra.mxu1 %v9336_v10  ;;  %v9271_v21 = vld [vmem:[#allocation12 + $0x798] sm:$0xf]  ;;  %v10040_v48 = vor.u32 %v11112_v34, %v10039_v52  ;;  %v11835_v45 = vpop.f32.mrf.mxu1  ;;  %v8665_v10 = vld [vmem:[#allocation12 + $0x2f8] sm:$0xf0] }
 0x398   :  { %6650 = vmatpush.bf16.msrb.mxu3 %v8824_v25  ;;  %v10920_v55 = vld [vmem:[#allocation12 + $0x7b4] sm:$0xf0]  ;;  %6612 = vmatmul.bf16.vlgmr.msrb.gmra.mxu0 %v11706_v63  ;;  %v8668_v57 = vor.u32 %v10764_v1, %v8665_v10  ;;  %v8633_v52 = vld [vmem:[#allocation12 + $0x2b8] sm:$0xf0] }
 0x399   :  { %6689 = vmatpush.bf16.msra.mxu2 %v9592_v41  ;;  %6656 = vmatpush.bf16.msra.mxu0 %v9304_v47  ;;  %v9272_v2 = vor.u32 %v10920_v55, %v9271_v21  ;;  %v10007_v53 = vld [vmem:[#allocation12 + $0xd58] sm:$0xf]  ;;  %v6836_v47 = vmul.f32 0.2, %v6406_v16  ;;  %v9561_v10 = vld [vmem:[#allocation12 + $0x9f8] sm:$0xf0] }
 0x39a   :  { %6677 = vmatmul.bf16.vlgmr.msra.gmra.mxu1 %v11679_v3  ;;  %v11104_v30 = vld [vmem:[#allocation12 + $0xd74] sm:$0xf0]  ;;  %v9817_v13 = vld [vmem:[#allocation12 + $0xbf8] sm:$0xf0] }
 0x39b   :  { %6721 = vmatpush.bf16.msrb.mxu1 %v8540_v61  ;;  %6651 = vmatmul.bf16.vlgmr.msrb.gmra.mxu3 %v11662_v37  ;;  %v9239_v31 = vld [vmem:[#allocation12 + $0x758] sm:$0xf]  ;;  %v10008_v60 = vor.u32 %v11104_v30, %v10007_v53  ;;  %v11837_v61 = vld [vmem:[#allocation15] sm:$0xff]  ;;  %v10684_v30 = vld [vmem:[#allocation12 + $0x5c] sm:$0xf]  ;;  %v6407_v20 = vpop.f32.mrf.mxu0 }
 0x39c   :  { %6690 = vmatmul.bf16.vlgmr.msra.gmra.mxu2 %v11687_v11  ;;  %6695 = vmatpush.bf16.msra.mxu3 %v10072_v38  ;;  %v10912_v56 = vld [vmem:[#allocation12 + $0x774] sm:$0xf0]  ;;  %v8377_v38 = vld [vmem:[#allocation12 + $0xb8] sm:$0xf0] }
 0x39d   :  { %6734 = vmatpush.bf16.msrb.mxu2 %v8796_v19  ;;  %6657 = vmatpush.bf16.msra.mxu0 %v9272_v2  ;;  %v9240_v9 = vor.u32 %v10912_v56, %v9239_v31  ;;  %v9975_v51 = vld [vmem:[#allocation12 + $0xd18] sm:$0xf]  ;;  %v6854_v19 = vperm.slane %v11837_v61, 3  ;;  %v8380_v43 = vor.u32 %v10692_v27, %v8377_v38  ;;  %v8601_v31 = vld [vmem:[#allocation12 + $0x278] sm:$0xf0] }
 0x39e   :  { %v11096_v0 = vld [vmem:[#allocation12 + $0xd34] sm:$0xf0] }
 0x39f   :  { %6722 = vmatpush.bf16.msrb.mxu1 %v8508_v39  ;;  %v9207_v15 = vld [vmem:[#allocation12 + $0x718] sm:$0xf]  ;;  %v9976_v41 = vor.u32 %v11096_v0, %v9975_v51  ;;  %v11841_v14 = vpop.f32.mrf.mxu2  ;;  %v6444_v39 = vpop.f32.mrf.mxu3 }
 0x3a0   :  { %6696 = vmatpush.bf16.msra.mxu3 %v10040_v48  ;;  %v10904_v6 = vld [vmem:[#allocation12 + $0x734] sm:$0xf0]  ;;  %v6472_v46 = vpop.f32.mrf.mxu1  ;;  %v11844_v21 = vadd.f32 %v6444_v39, %v11826_v50  ;;  %v8636_v48 = vor.u32 %v10756_v33, %v8633_v52  ;;  %v9529_v39 = vld [vmem:[#allocation12 + $0x9b8] sm:$0xf0] }
 0x3a1   :  { %6735 = vmatpush.bf16.msrb.mxu2 %v8764_v26  ;;  %v9943_v22 = vld [vmem:[#allocation12 + $0xcd8] sm:$0xf]  ;;  %6658 = vmatpush.bf16.msra.mxu0 %v9240_v9  ;;  %v9208_v23 = vor.u32 %v10904_v6, %v9207_v15  ;;  %v6844_v26 = vsel %vm6828_vm2, %v6406_v16, %v6836_v47  ;;  %v8313_v15 = vld [vmem:[#allocation12 + $0x38] sm:$0xf0] }
 0x3a2   :  { %v11088_v25 = vld [vmem:[#allocation12 + $0xcf4] sm:$0xf0]  ;;  %v6870_v42 = vmul.f32 %v6854_v19, %v6844_v26  ;;  %v10740_v6 = vld [vmem:[#allocation12 + $0x21c] sm:$0xf] }
 0x3a3   :  { %6723 = vmatpush.bf16.msrb.mxu1 %v8476_v35  ;;  %v9175_v29 = vld [vmem:[#allocation12 + $0x6d8] sm:$0xf]  ;;  %v9944_v34 = vor.u32 %v11088_v25, %v9943_v22  ;;  %v8345_v35 = vld [vmem:[#allocation12 + $0x78] sm:$0xf0]  ;;  %v8572_v25 = vor.u32 %v10740_v6, %v8569_v32  ;;  %v3422_v32 = vperm.slane %v11821_v58, 5 }
 0x3a4   :  { %6697 = vmatpush.bf16.msra.mxu3 %v10008_v60  ;;  %v10896_v4 = vld [vmem:[#allocation12 + $0x6f4] sm:$0xf0]  ;;  %v11847_v56 = vadd.f32 %v11815_v40, %v6870_v42  ;;  %v8348_v9 = vor.u32 %v10684_v30, %v8345_v35  ;;  %v10988_v40 = vld [vmem:[#allocation12 + $0x9dc] sm:$0xf] }
 0x3a5   :  { %6736 = vmatpush.bf16.msrb.mxu2 %v8732_v44  ;;  %6659 = vmatpush.bf16.msra.mxu0 %v9208_v23  ;;  %v9176_v55 = vor.u32 %v10896_v4, %v9175_v29  ;;  %v9911_v8 = vld [vmem:[#allocation12 + $0xc98] sm:$0xf]  ;;  %v10748_v44 = vld [vmem:[#allocation12 + $0x25c] sm:$0xf]  ;;  %v9564_v4 = vor.u32 %v10988_v40, %v9561_v10 }
 0x3a6   :  { %v11080_v12 = vld [vmem:[#allocation12 + $0xcb4] sm:$0xf0]  ;;  %v8604_v51 = vor.u32 %v10748_v44, %v8601_v31  ;;  %v10860_v29 = vld [vmem:[#allocation12 + $0x5dc] sm:$0xf] }
 0x3a7   :  { %6724 = vmatpush.bf16.msrb.mxu1 %v8444_v5  ;;  %v9143_v2 = vld [vmem:[#allocation12 + $0x698] sm:$0xf]  ;;  %v9912_v50 = vor.u32 %v11080_v12, %v9911_v8  ;;  %v6485_v0 = vpop.f32.mrf.mxu2  ;;  %v6446_v1 = vpop.f32.mrf.mxu3  ;;  %v11044_v46 = vld [vmem:[#allocation12 + $0xb9c] sm:$0xf] }
 0x3a8   :  { %6698 = vmatpush.bf16.msra.mxu3 %v9976_v41  ;;  %v10888_v53 = vld [vmem:[#allocation12 + $0x6b4] sm:$0xf0]  ;;  %v11052_v41 = vld [vmem:[#allocation12 + $0xbdc] sm:$0xf] }
 0x3a9   :  { %6737 = vmatpush.bf16.msrb.mxu2 %v8700_v62  ;;  %6660 = vmatpush.bf16.msra.mxu0 %v9176_v55  ;;  %v9144_v28 = vor.u32 %v10888_v53, %v9143_v2  ;;  %v9879_v49 = vld [vmem:[#allocation12 + $0xc58] sm:$0xf]  ;;  %v10676_v62 = vld [vmem:[#allocation12 + $0x1c] sm:$0xf] }
 0x3aa   :  { %v11072_v59 = vld [vmem:[#allocation12 + $0xc74] sm:$0xf0]  ;;  %v8316_v23 = vor.u32 %v10676_v62, %v8313_v15  ;;  %v9785_v26 = vld [vmem:[#allocation12 + $0xbb8] sm:$0xf0] }
 0x3ab   :  { %6725 = vmatpush.bf16.msrb.mxu1 %v8412_v54  ;;  %v9111_v60 = vld [vmem:[#allocation12 + $0x658] sm:$0xf]  ;;  %v9880_v36 = vor.u32 %v11072_v59, %v9879_v49  ;;  %v9820_v54 = vor.u32 %v11052_v41, %v9817_v13  ;;  %v10852_v42 = vld [vmem:[#allocation12 + $0x59c] sm:$0xf]  ;;  %v9788_v2 = vor.u32 %v11044_v46, %v9785_v26 }
 0x3ac   :  { %6699 = vmatpush.bf16.msra.mxu3 %v9944_v34  ;;  %v10880_v5 = vld [vmem:[#allocation12 + $0x674] sm:$0xf0]  ;;  %v10980_v34 = vld [vmem:[#allocation12 + $0x99c] sm:$0xf] }
 0x3ad   :  { %6738 = vmatpush.bf16.msrb.mxu2 %v8668_v57  ;;  %6661 = vmatpush.bf16.msra.mxu0 %v9144_v28  ;;  %v9112_v19 = vor.u32 %v10880_v5, %v9111_v60  ;;  %v9847_v22 = vld [vmem:[#allocation12 + $0xc18] sm:$0xf]  ;;  %v9049_v57 = vld [vmem:[#allocation12 + $0x5f8] sm:$0xf0] }
 0x3ae   :  { %v11064_v16 = vld [vmem:[#allocation12 + $0xc34] sm:$0xf0]  ;;  %v9052_v55 = vor.u32 %v10860_v29, %v9049_v57  ;;  %v10972_v35 = vld [vmem:[#allocation12 + $0x95c] sm:$0xf] }
 0x3af   :  { %6726 = vmatpush.bf16.msrb.mxu1 %v8380_v43  ;;  %v9079_v27 = vld [vmem:[#allocation12 + $0x618] sm:$0xf]  ;;  %v9848_v33 = vor.u32 %v11064_v16, %v9847_v22  ;;  %v9017_v43 = vld [vmem:[#allocation12 + $0x5b8] sm:$0xf0] }
 0x3b0   :  { %6700 = vmatpush.bf16.msra.mxu3 %v9912_v50  ;;  %v10872_v38 = vld [vmem:[#allocation12 + $0x634] sm:$0xf0]  ;;  %v9497_v44 = vld [vmem:[#allocation12 + $0x978] sm:$0xf0]  ;;  %v9020_v20 = vor.u32 %v10852_v42, %v9017_v43 }
 0x3b1   :  { %6739 = vmatpush.bf16.msrb.mxu2 %v8636_v48  ;;  %v10327_v47 = vld [vmem:[#allocation12 + $0xfd8] sm:$0xf]  ;;  %6662 = vmatpush.bf16.msra.mxu0 %v9112_v19  ;;  %v9080_v8 = vor.u32 %v10872_v38, %v9079_v27  ;;  %v9532_v48 = vor.u32 %v10980_v34, %v9529_v39  ;;  %v11036_v31 = vld [vmem:[#allocation12 + $0xb5c] sm:$0xf]  ;;  %v9500_v60 = vor.u32 %v10972_v35, %v9497_v44 }
 0x3b2   :  { %v11184_v52 = vld [vmem:[#allocation12 + $0xff4] sm:$0xf0]  ;;  %v9753_v50 = vld [vmem:[#allocation12 + $0xb78] sm:$0xf0] }
 0x3b3   :  { %6727 = vmatpush.bf16.msrb.mxu1 %v8348_v9  ;;  %v10328_v12 = vor.u32 %v11184_v52, %v10327_v47  ;;  %v10295_v53 = vld [vmem:[#allocation12 + $0xf98] sm:$0xf]  ;;  %v10844_v49 = vld [vmem:[#allocation12 + $0x55c] sm:$0xf]  ;;  %v9756_v9 = vor.u32 %v11036_v31, %v9753_v50 }
 0x3b4   :  { %6701 = vmatpush.bf16.msra.mxu3 %v9880_v36  ;;  %v11176_v30 = vld [vmem:[#allocation12 + $0xfb4] sm:$0xf0]  ;;  %v8985_v59 = vld [vmem:[#allocation12 + $0x578] sm:$0xf0] }
 0x3b5   :  { %6740 = vmatpush.bf16.msrb.mxu2 %v8604_v51  ;;  %6663 = vmatpush.bf16.msra.mxu0 %v9080_v8  ;;  %v10296_v28 = vor.u32 %v11176_v30, %v10295_v53  ;;  %v10263_v51 = vld [vmem:[#allocation12 + $0xf58] sm:$0xf]  ;;  %v10964_v0 = vld [vmem:[#allocation12 + $0x91c] sm:$0xf]  ;;  %v8988_v15 = vor.u32 %v10844_v49, %v8985_v59 }
 0x3b6   :  { %v11028_v5 = vld [vmem:[#allocation12 + $0xb1c] sm:$0xf]  ;;  %v10231_v13 = vld [vmem:[#allocation12 + $0xf18] sm:$0xf] }
 0x3b7   :  { %6728 = vmatpush.bf16.msrb.mxu1 %v8316_v23  ;;  %v9721_v62 = vld [vmem:[#allocation12 + $0xb38] sm:$0xf0]  ;;  %v6522_v6 = vpop.f32.mrf.mxu1  ;;  %v11160_v19 = vld [vmem:[#allocation12 + $0xf34] sm:$0xf0] }
 0x3b8   :  { %6702 = vmatpush.bf16.msra.mxu3 %v9848_v33  ;;  %6664 = vmatmul.bf16.vlgmr.msra.gmra.mxu0 %v11664_v7  ;;  %v10836_v36 = vld [vmem:[#allocation12 + $0x51c] sm:$0xf]  ;;  %v9724_v41 = vor.u32 %v11028_v5, %v9721_v62  ;;  %v10232_v27 = vor.u32 %v11160_v19, %v10231_v13  ;;  %v10199_v39 = vld [vmem:[#allocation12 + $0xed8] sm:$0xf] }
 0x3b9   :  { %6741 = vmatpush.bf16.msrb.mxu2 %v8572_v25  ;;  %6708 = vmatpush.bf16.msrb.mxu0 %v10328_v12  ;;  %v8953_v1 = vld [vmem:[#allocation12 + $0x538] sm:$0xf0]  ;;  %v11152_v46 = vld [vmem:[#allocation12 + $0xef4] sm:$0xf0] }
 0x3ba   :  { %6729 = vmatmul.bf16.vlgmr.msrb.gmra.mxu1 %v11650_v18  ;;  %v11168_v18 = vld [vmem:[#allocation12 + $0xf74] sm:$0xf0]  ;;  %v10956_v22 = vld [vmem:[#allocation12 + $0x8dc] sm:$0xf]  ;;  %v8956_v29 = vor.u32 %v10836_v36, %v8953_v1  ;;  %v10200_v30 = vor.u32 %v11152_v46, %v10199_v39 }
 0x3bb   :  { %6773 = vmatpush.bf16.msra.mxu1 %v9564_v4  ;;  %6703 = vmatmul.bf16.vlgmr.msra.gmra.mxu3 %v11699_v24  ;;  %v10264_v40 = vor.u32 %v11168_v18, %v10263_v51  ;;  %v9433_v16 = vld [vmem:[#allocation12 + $0x8f8] sm:$0xf0]  ;;  %v6457_v4 = vpop.f32.mrf.mxu0 }
 0x3bc   :  { %6742 = vmatmul.bf16.vlgmr.msrb.gmra.mxu2 %v11652_v17  ;;  %6747 = vmatpush.bf16.msrb.mxu3 %v9052_v55  ;;  %v9465_v17 = vld [vmem:[#allocation12 + $0x938] sm:$0xf0]  ;;  %v6458_v57 = vadd.f32 %v6457_v4, %v11844_v21  ;;  %v9436_v47 = vor.u32 %v10956_v22, %v9433_v16 }
 0x3bd   :  { %6786 = vmatpush.bf16.msra.mxu2 %v9820_v54  ;;  %6709 = vmatpush.bf16.msrb.mxu0 %v10296_v28  ;;  %v9468_v10 = vor.u32 %v10964_v0, %v9465_v17  ;;  %v11020_v23 = vld [vmem:[#allocation12 + $0xadc] sm:$0xf]  ;;  %v6523_v54 = vadd.f32 %v6522_v6, %v3422_v32  ;;  %v10135_v6 = vld [vmem:[#allocation12 + $0xe58] sm:$0xf] }
 0x3be   :  { %v9689_v25 = vld [vmem:[#allocation12 + $0xaf8] sm:$0xf0]  ;;  %v6471_v55 = vadd.f32 %v11835_v45, %v6458_v57  ;;  %v10167_v45 = vld [vmem:[#allocation12 + $0xe98] sm:$0xf] }
 0x3bf   :  { %6774 = vmatpush.bf16.msra.mxu1 %v9532_v48  ;;  %v10828_v38 = vld [vmem:[#allocation12 + $0x4dc] sm:$0xf]  ;;  %v9692_v52 = vor.u32 %v11020_v23, %v9689_v25  ;;  %v6535_v34 = vpop.f32.mrf.mxu2  ;;  %v6496_v48 = vpop.f32.mrf.mxu3  ;;  %v11136_v32 = vld [vmem:[#allocation12 + $0xe74] sm:$0xf0] }
 0x3c0   :  { %6748 = vmatpush.bf16.msrb.mxu3 %v9020_v20  ;;  %v8921_v33 = vld [vmem:[#allocation12 + $0x4f8] sm:$0xf0]  ;;  %v11856_v8 = vadd.f32 %v6535_v34, %v6523_v54  ;;  %v6484_v53 = vadd.f32 %v11841_v14, %v6471_v55  ;;  %v11144_v20 = vld [vmem:[#allocation12 + $0xeb4] sm:$0xf0]  ;;  %v10136_v19 = vor.u32 %v11136_v32, %v10135_v6 }
 0x3c1   :  { %6787 = vmatpush.bf16.msra.mxu2 %v9788_v2  ;;  %6710 = vmatpush.bf16.msrb.mxu0 %v10264_v40  ;;  %v10948_v26 = vld [vmem:[#allocation12 + $0x89c] sm:$0xf]  ;;  %v8924_v21 = vor.u32 %v10828_v38, %v8921_v33  ;;  %v6524_v2 = vpop.f32.mrf.mxu1  ;;  %v10168_v14 = vor.u32 %v11144_v20, %v10167_v45  ;;  %v10103_v54 = vld [vmem:[#allocation12 + $0xe18] sm:$0xf] }
 0x3c2   :  { %v9401_v12 = vld [vmem:[#allocation12 + $0x8b8] sm:$0xf0]  ;;  %v11859_v49 = vadd.f32 %v6496_v48, %v6484_v53  ;;  %v11128_v57 = vld [vmem:[#allocation12 + $0xe34] sm:$0xf0] }
 0x3c3   :  { %6775 = vmatpush.bf16.msra.mxu1 %v9500_v60  ;;  %v11012_v42 = vld [vmem:[#allocation12 + $0xa9c] sm:$0xf]  ;;  %v9404_v31 = vor.u32 %v10948_v26, %v9401_v12  ;;  %v6459_v18 = vpop.f32.mrf.mxu0 }
 0x3c4   :  { %6749 = vmatpush.bf16.msrb.mxu3 %v8988_v15  ;;  %v9657_v43 = vld [vmem:[#allocation12 + $0xab8] sm:$0xf0] }
 0x3c5   :  { %6788 = vmatpush.bf16.msra.mxu2 %v9756_v9  ;;  %6711 = vmatpush.bf16.msrb.mxu0 %v10232_v27  ;;  %v10820_v35 = vld [vmem:[#allocation12 + $0x49c] sm:$0xf]  ;;  %v9660_v50 = vor.u32 %v11012_v42, %v9657_v43 }
 0x3c6   :  { %v8889_v44 = vld [vmem:[#allocation12 + $0x4b8] sm:$0xf0] }
 0x3c7   :  { %6776 = vmatpush.bf16.msra.mxu1 %v9468_v10  ;;  %v10940_v28 = vld [vmem:[#allocation12 + $0x85c] sm:$0xf]  ;;  %v8892_v51 = vor.u32 %v10820_v35, %v8889_v44  ;;  %v6537_v15 = vpop.f32.mrf.mxu2  ;;  %v6498_v13 = vpop.f32.mrf.mxu3 }
 0x3c8   :  { %6750 = vmatpush.bf16.msrb.mxu3 %v8956_v29  ;;  %v9369_v59 = vld [vmem:[#allocation12 + $0x878] sm:$0xf0] }
 0x3c9   :  { %6789 = vmatpush.bf16.msra.mxu2 %v9724_v41  ;;  %v11004_v60 = vld [vmem:[#allocation12 + $0xa5c] sm:$0xf]  ;;  %6712 = vmatpush.bf16.msrb.mxu0 %v10200_v30  ;;  %v9372_v5 = vor.u32 %v10940_v28, %v9369_v59 }
 0x3ca   :  { %v9625_v9 = vld [vmem:[#allocation12 + $0xa78] sm:$0xf0] }
 0x3cb   :  { %6777 = vmatpush.bf16.msra.mxu1 %v9436_v47  ;;  %v10812_v0 = vld [vmem:[#allocation12 + $0x45c] sm:$0xf]  ;;  %v9628_v62 = vor.u32 %v11004_v60, %v9625_v9  ;;  %v6855_v60 = vperm.slane %v11837_v61, 4 }
 0x3cc   :  { %6751 = vmatpush.bf16.msrb.mxu3 %v8924_v21  ;;  %v8857_v17 = vld [vmem:[#allocation12 + $0x478] sm:$0xf0] }
 0x3cd   :  { %6790 = vmatpush.bf16.msra.mxu2 %v9692_v52  ;;  %v10932_v40 = vld [vmem:[#allocation12 + $0x81c] sm:$0xf]  ;;  %v8860_v41 = vor.u32 %v10812_v0, %v8857_v17  ;;  %6713 = vmatpush.bf16.msrb.mxu0 %v10168_v14  ;;  %v10104_v52 = vor.u32 %v11128_v57, %v10103_v54 }
 0x3ce   :  { %v9337_v36 = vld [vmem:[#allocation12 + $0x838] sm:$0xf0] }
 0x3cf   :  { %6778 = vmatpush.bf16.msra.mxu1 %v9404_v31  ;;  %v10996_v1 = vld [vmem:[#allocation12 + $0xa1c] sm:$0xf]  ;;  %v9340_v23 = vor.u32 %v10932_v40, %v9337_v36 }
 0x3d0   :  { %v9593_v10 = vld [vmem:[#allocation12 + $0xa38] sm:$0xf0]  ;;  %6752 = vmatpush.bf16.msrb.mxu3 %v8892_v51 }
 0x3d1   :  { %6791 = vmatpush.bf16.msra.mxu2 %v9660_v50  ;;  %v10804_v22 = vld [vmem:[#allocation12 + $0x41c] sm:$0xf]  ;;  %v9596_v25 = vor.u32 %v10996_v1, %v9593_v10  ;;  %6714 = vmatpush.bf16.msrb.mxu0 %v10136_v19  ;;  %v6509_v50 = vpop.f32.mrf.mxu0 }
 0x3d2   :  { %v8825_v16 = vld [vmem:[#allocation12 + $0x438] sm:$0xf0]  ;;  %v6510_v45 = vadd.f32 %v6509_v50, %v11859_v49 }
 0x3d3   :  { %6779 = vmatpush.bf16.msra.mxu1 %v9372_v5  ;;  %v11116_v29 = vld [vmem:[#allocation12 + $0xddc] sm:$0xf]  ;;  %v8828_v27 = vor.u32 %v10804_v22, %v8825_v16 }
 0x3d4   :  { %v10073_v4 = vld [vmem:[#allocation12 + $0xdf8] sm:$0xf0]  ;;  %6753 = vmatpush.bf16.msrb.mxu3 %v8860_v41  ;;  %vm6829_vm3 = vcmp.gt.f32.partialorder %v6510_v45, 0.0  ;;  %v6837_v14 = vmul.f32 0.2, %v6510_v45 }
 0x3d5   :  { %6792 = vmatpush.bf16.msra.mxu2 %v9628_v62  ;;  %v10924_v38 = vld [vmem:[#allocation12 + $0x7dc] sm:$0xf]  ;;  %v10076_v47 = vor.u32 %v11116_v29, %v10073_v4  ;;  %6715 = vmatpush.bf16.msrb.mxu0 %v10104_v52 }
 0x3d6   :  { %v9305_v33 = vld [vmem:[#allocation12 + $0x7f8] sm:$0xf0]  ;;  %v6845_v62 = vsel %vm6829_vm3, %v6510_v45, %v6837_v14 }
 0x3d7   :  { %6780 = vmatpush.bf16.msra.mxu1 %v9340_v23  ;;  %v9308_v34 = vor.u32 %v10924_v38, %v9305_v33  ;;  %v11108_v39 = vld [vmem:[#allocation12 + $0xd9c] sm:$0xf]  ;;  %v11865_v30 = vpop.f32.mrf.mxu1  ;;  %v6871_v40 = vmul.f32 %v6855_v60, %v6845_v62 }
 0x3d8   :  { %v10041_v46 = vld [vmem:[#allocation12 + $0xdb8] sm:$0xf0]  ;;  %6754 = vmatpush.bf16.msrb.mxu3 %v8828_v27  ;;  %6716 = vmatmul.bf16.vlgmr.msrb.gmra.mxu0 %v11706_v63 }
 0x3d9   :  { %6793 = vmatpush.bf16.msra.mxu2 %v9596_v25  ;;  %v10916_v26 = vld [vmem:[#allocation12 + $0x79c] sm:$0xf]  ;;  %v10044_v12 = vor.u32 %v11108_v39, %v10041_v46  ;;  %6760 = vmatpush.bf16.msra.mxu0 %v9308_v34  ;;  %v6511_v41 = vpop.f32.mrf.mxu0  ;;  %v11873_v13 = vadd.f32 %v11847_v56, %v6871_v40 }
 0x3da   :  { %v9273_v55 = vld [vmem:[#allocation12 + $0x7b8] sm:$0xf0]  ;;  %6781 = vmatmul.bf16.vlgmr.msra.gmra.mxu1 %v11679_v3 }
 0x3db   :  { %6755 = vmatmul.bf16.vlgmr.msrb.gmra.mxu3 %v11662_v37  ;;  %v9276_v42 = vor.u32 %v10916_v26, %v9273_v55  ;;  %v11100_v43 = vld [vmem:[#allocation12 + $0xd5c] sm:$0xf] }
 0x3dc   :  { %6794 = vmatmul.bf16.vlgmr.msra.gmra.mxu2 %v11687_v11  ;;  %6799 = vmatpush.bf16.msra.mxu3 %v10076_v47  ;;  %v10009_v21 = vld [vmem:[#allocation12 + $0xd78] sm:$0xf0] }
 0x3dd   :  { %v10908_v48 = vld [vmem:[#allocation12 + $0x75c] sm:$0xf]  ;;  %v10012_v53 = vor.u32 %v11100_v43, %v10009_v21  ;;  %6761 = vmatpush.bf16.msra.mxu0 %v9276_v42 }
 0x3de   :  { %v9241_v2 = vld [vmem:[#allocation12 + $0x778] sm:$0xf0]  ;;  %v6548_v17 = vpop.f32.mrf.mxu3 }
 0x3df   :  { %v9244_v3 = vor.u32 %v10908_v48, %v9241_v2  ;;  %v11092_v11 = vld [vmem:[#allocation12 + $0xd1c] sm:$0xf]  ;;  %v11869_v9 = vpop.f32.mrf.mxu2  ;;  %v6576_v5 = vpop.f32.mrf.mxu1  ;;  %v6549_v15 = vadd.f32 %v6548_v17, %v11856_v8  ;;  %v3423_v48 = vperm.slane %v11821_v58, 6 }
 0x3e0   :  { %6800 = vmatpush.bf16.msra.mxu3 %v10044_v12  ;;  %v9977_v35 = vld [vmem:[#allocation12 + $0xd38] sm:$0xf0] }
 0x3e1   :  { %v10900_v44 = vld [vmem:[#allocation12 + $0x71c] sm:$0xf]  ;;  %v9980_v37 = vor.u32 %v11092_v11, %v9977_v35  ;;  %6762 = vmatpush.bf16.msra.mxu0 %v9244_v3 }
 0x3e2   :  { %v9209_v31 = vld [vmem:[#allocation12 + $0x738] sm:$0xf0] }
 0x3e3   :  { %v9212_v20 = vor.u32 %v10900_v44, %v9209_v31  ;;  %v11084_v28 = vld [vmem:[#allocation12 + $0xcdc] sm:$0xf] }
 0x3e4   :  { %6801 = vmatpush.bf16.msra.mxu3 %v10012_v53  ;;  %v9945_v59 = vld [vmem:[#allocation12 + $0xcf8] sm:$0xf0] }
 0x3e5   :  { %v10892_v51 = vld [vmem:[#allocation12 + $0x6dc] sm:$0xf]  ;;  %v9948_v0 = vor.u32 %v11084_v28, %v9945_v59  ;;  %6763 = vmatpush.bf16.msra.mxu0 %v9212_v20 }
 0x3e6   :  { %v9177_v18 = vld [vmem:[#allocation12 + $0x6f8] sm:$0xf0]  ;;  %v6550_v4 = vpop.f32.mrf.mxu3 }
 0x3e7   :  { %v9180_v49 = vor.u32 %v10892_v51, %v9177_v18  ;;  %v11076_v6 = vld [vmem:[#allocation12 + $0xc9c] sm:$0xf]  ;;  %v6589_v23 = vpop.f32.mrf.mxu2 }
 0x3e8   :  { %6802 = vmatpush.bf16.msra.mxu3 %v9980_v37  ;;  %v9913_v32 = vld [vmem:[#allocation12 + $0xcb8] sm:$0xf0] }
 0x3e9   :  { %v10884_v36 = vld [vmem:[#allocation12 + $0x69c] sm:$0xf]  ;;  %v9916_v10 = vor.u32 %v11076_v6, %v9913_v32  ;;  %6764 = vmatpush.bf16.msra.mxu0 %v9180_v49 }
 0x3ea   :  { %v9145_v1 = vld [vmem:[#allocation12 + $0x6b8] sm:$0xf0] }
 0x3eb   :  { %v9148_v19 = vor.u32 %v10884_v36, %v9145_v1  ;;  %v11068_v22 = vld [vmem:[#allocation12 + $0xc5c] sm:$0xf]  ;;  %v6856_v36 = vperm.slane %v11837_v61, 5 }
 0x3ec   :  { %6803 = vmatpush.bf16.msra.mxu3 %v9948_v0  ;;  %v9881_v16 = vld [vmem:[#allocation12 + $0xc78] sm:$0xf0] }
 0x3ed   :  { %v10876_v25 = vld [vmem:[#allocation12 + $0x65c] sm:$0xf]  ;;  %v9884_v8 = vor.u32 %v11068_v22, %v9881_v16  ;;  %6765 = vmatpush.bf16.msra.mxu0 %v9148_v19 }
 0x3ee   :  { %v9113_v29 = vld [vmem:[#allocation12 + $0x678] sm:$0xf0] }
 0x3ef   :  { %v9116_v54 = vor.u32 %v10876_v25, %v9113_v29  ;;  %v11060_v57 = vld [vmem:[#allocation12 + $0xc1c] sm:$0xf] }
 0x3f0   :  { %6804 = vmatpush.bf16.msra.mxu3 %v9916_v10  ;;  %v9849_v27 = vld [vmem:[#allocation12 + $0xc38] sm:$0xf0] }
 0x3f1   :  { %v10868_v38 = vld [vmem:[#allocation12 + $0x61c] sm:$0xf]  ;;  %v9852_v56 = vor.u32 %v11060_v57, %v9849_v27  ;;  %6766 = vmatpush.bf16.msra.mxu0 %v9116_v54 }
 0x3f2   :  { %v9081_v33 = vld [vmem:[#allocation12 + $0x638] sm:$0xf0] }
 0x3f3   :  { %v11180_v47 = vld [vmem:[#allocation12 + $0xfdc] sm:$0xf]  ;;  %v9084_v34 = vor.u32 %v10868_v38, %v9081_v33 }
 0x3f4   :  { %v10329_v52 = vld [vmem:[#allocation12 + $0xff8] sm:$0xf0]  ;;  %6805 = vmatpush.bf16.msra.mxu3 %v9884_v8 }
 0x3f5   :  { %v10332_v39 = vor.u32 %v11180_v47, %v10329_v52  ;;  %v11172_v46 = vld [vmem:[#allocation12 + $0xf9c] sm:$0xf]  ;;  %6767 = vmatpush.bf16.msra.mxu0 %v9084_v34  ;;  %v6561_v3 = vpop.f32.mrf.mxu0 }
 0x3f6   :  { %v10297_v26 = vld [vmem:[#allocation12 + $0xfb8] sm:$0xf0]  ;;  %v6562_v44 = vadd.f32 %v6561_v3, %v6549_v15  ;;  %v6857_v3 = vperm.slane %v11837_v61, 6 }
 0x3f7   :  { %v10300_v55 = vor.u32 %v11172_v46, %v10297_v26  ;;  %v11164_v12 = vld [vmem:[#allocation12 + $0xf5c] sm:$0xf]  ;;  %v6626_v43 = vpop.f32.mrf.mxu1 }
 0x3f8   :  { %6806 = vmatpush.bf16.msra.mxu3 %v9852_v56  ;;  %v10265_v42 = vld [vmem:[#allocation12 + $0xf78] sm:$0xf0]  ;;  %6768 = vmatmul.bf16.vlgmr.msra.gmra.mxu0 %v11664_v7  ;;  %v6627_v35 = vadd.f32 %v6626_v43, %v3423_v48  ;;  %v11446_v43 = vmov 0  }
 0x3f9   :  { %6812 = vmatpush.bf16.msrb.mxu0 %v10332_v39  ;;  %v10268_v21 = vor.u32 %v11164_v12, %v10265_v42  ;;  %v11156_v2 = vld [vmem:[#allocation12 + $0xf1c] sm:$0xf]  ;;  %v6884_v42 = vld [vmem:[#allocation2] sm:$0x1]  ;;  %11199 = vset.pattern.permute.xlu0 %v11446_v43 }
 0x3fa   :  { %v10233_v53 = vld [vmem:[#allocation12 + $0xf38] sm:$0xf0]  ;;  %6887 = vperm.xlu0 %11199, %v6884_v42  }
 0x3fb   :  { %6807 = vmatmul.bf16.vlgmr.msra.gmra.mxu3 %v11699_v24  ;;  %v10236_v11 = vor.u32 %v11156_v2, %v10233_v53  ;;  %v11148_v31 = vld [vmem:[#allocation12 + $0xedc] sm:$0xf]  ;;  %v6575_v24 = vadd.f32 %v11865_v30, %v6562_v44 }
 0x3fc   :  { %v10201_v37 = vld [vmem:[#allocation12 + $0xef8] sm:$0xf0] }
 0x3fd   :  { %6813 = vmatpush.bf16.msrb.mxu0 %v10300_v55  ;;  %v10204_v28 = vor.u32 %v11148_v31, %v10201_v37  ;;  %v6588_v59 = vadd.f32 %v11869_v9, %v6575_v24  ;;  %v11140_v58 = vld [vmem:[#allocation12 + $0xe9c] sm:$0xf]  ;;  %v6563_v18 = vpop.f32.mrf.mxu0 }
 0x3fe   :  { %v6600_v7 = vpop.f32.mrf.mxu3  ;;  %v10169_v60 = vld [vmem:[#allocation12 + $0xeb8] sm:$0xf0] }
 0x3ff   :  { %v6639_v50 = vpop.f32.mrf.mxu2  ;;  %v6628_v20 = vpop.f32.mrf.mxu1  ;;  %v6601_v51 = vadd.f32 %v6600_v7, %v6588_v59  ;;  %v10172_v14 = vor.u32 %v11140_v58, %v10169_v60  ;;  %v11132_v0 = vld [vmem:[#allocation12 + $0xe5c] sm:$0xf] }
 0x400   :  { %v6640_v45 = vadd.f32 %v6639_v50, %v6627_v35  ;;  %v10137_v17 = vld [vmem:[#allocation12 + $0xe78] sm:$0xf0] }
 0x401   :  { %6814 = vmatpush.bf16.msrb.mxu0 %v10268_v21  ;;  %v10140_v15 = vor.u32 %v11132_v0, %v10137_v17  ;;  %v11124_v30 = vld [vmem:[#allocation12 + $0xe1c] sm:$0xf] }
 0x402   :  { %v10105_v49 = vld [vmem:[#allocation12 + $0xe38] sm:$0xf0] }
 0x403   :  { %v10108_v6 = vor.u32 %v11124_v30, %v10105_v49 }
 0x405   :  { %6815 = vmatpush.bf16.msrb.mxu0 %v10236_v11 }
 0x406   :  { %v6602_v62 = vpop.f32.mrf.mxu3 }
 0x407   :  { %v6641_v5 = vpop.f32.mrf.mxu2  ;;  %v6858_v62 = vperm.slane %v11837_v61, 7 }
 0x409   :  { %6816 = vmatpush.bf16.msrb.mxu0 %v10204_v28 }
 0x40d   :  { %6817 = vmatpush.bf16.msrb.mxu0 %v10172_v14 }
 0x411   :  { %6818 = vmatpush.bf16.msrb.mxu0 %v10140_v15 }
 0x415   :  { %6819 = vmatpush.bf16.msrb.mxu0 %v10108_v6  ;;  %v6613_v32 = vpop.f32.mrf.mxu0 }
 0x416   :  { %v6614_v40 = vadd.f32 %v6613_v32, %v6601_v51 }
 0x417   :  { %v6678_v9 = vpop.f32.mrf.mxu1 }
 0x418   :  { %6820 = vmatmul.bf16.vlgmr.msrb.gmra.mxu0 %v11706_v63  ;;  %vm6830_vm4 = vcmp.gt.f32.partialorder %v6614_v40, 0.0  ;;  %v6838_v10 = vmul.f32 0.2, %v6614_v40  ;;  %v11205_v63 = vld [vmem:[#allocation14] sm:$0xff] }
 0x419   :  { %v3424_v57 = vperm.slane %v11205_v63, 7 }
 0x41a   :  { %v6846_v22 = vsel %vm6830_vm4, %v6614_v40, %v6838_v10  ;;  %v6893_v40 = vlaneseq }
 0x41b   :  { %v6872_v23 = vmul.f32 %v6856_v36, %v6846_v22 }
 0x41d   :  { %v6615_v25 = vpop.f32.mrf.mxu0  ;;  %v6879_v29 = vadd.f32 %v11873_v13, %v6872_v23 }
 0x41e   :  { %v6652_v41 = vpop.f32.mrf.mxu3 }
 0x41f   :  { %v6691_v1 = vpop.f32.mrf.mxu2  ;;  %v6680_v19 = vpop.f32.mrf.mxu1  ;;  %v6653_v16 = vadd.f32 %v6652_v41, %v6640_v45 }
 0x426   :  { %v6654_v4 = vpop.f32.mrf.mxu3 }
 0x427   :  { %v6693_v8 = vpop.f32.mrf.mxu2 }
 0x435   :  { %v6665_v27 = vpop.f32.mrf.mxu0 }
 0x436   :  { %v6666_v33 = vadd.f32 %v6665_v27, %v6653_v16 }
 0x437   :  { %v6730_v54 = vpop.f32.mrf.mxu1 }
 0x438   :  { %v6731_v38 = vadd.f32 %v6730_v54, %v3424_v57  ;;  %v6679_v52 = vadd.f32 %v6678_v9, %v6666_v33 }
 0x43a   :  { %v6692_v46 = vadd.f32 %v6691_v1, %v6679_v52  ;;  %v6894_v1 = vand.u32 127, %v6893_v40 }
 0x43d   :  { %v6667_v55 = vpop.f32.mrf.mxu0 }
 0x43e   :  { %v6704_v34 = vpop.f32.mrf.mxu3 }
 0x43f   :  { %v6743_v47 = vpop.f32.mrf.mxu2  ;;  %v6732_v39 = vpop.f32.mrf.mxu1  ;;  %v6705_v26 = vadd.f32 %v6704_v34, %v6692_v46 }
 0x440   :  { %v6744_v56 = vadd.f32 %v6743_v47, %v6731_v38 }
 0x446   :  { %v6706_v13 = vpop.f32.mrf.mxu3 }
 0x447   :  { %v6745_v12 = vpop.f32.mrf.mxu2 }
 0x455   :  { %v6717_v48 = vpop.f32.mrf.mxu0 }
 0x456   :  { %v6718_v2 = vadd.f32 %v6717_v48, %v6705_v26 }
 0x457   :  { %v6782_v21 = vpop.f32.mrf.mxu1 }
 0x458   :  { %vm6831_vm5 = vcmp.gt.f32.partialorder %v6718_v2, 0.0  ;;  %v6839_v11 = vmul.f32 0.2, %v6718_v2 }
 0x45a   :  { %v6847_v31 = vsel %vm6831_vm5, %v6718_v2, %v6839_v11 }
 0x45b   :  { %v6873_v37 = vmul.f32 %v6857_v3, %v6847_v31 }
 0x45d   :  { %v6719_v50 = vpop.f32.mrf.mxu0  ;;  %v6880_v24 = vadd.f32 %v6879_v29, %v6873_v37 }
 0x45e   :  { %v6756_v35 = vpop.f32.mrf.mxu3 }
 0x45f   :  { %v6795_v53 = vpop.f32.mrf.mxu2  ;;  %v6784_v44 = vpop.f32.mrf.mxu1  ;;  %v6757_v60 = vadd.f32 %v6756_v35, %v6744_v56 }
 0x466   :  { %v6758_v7 = vpop.f32.mrf.mxu3 }
 0x467   :  { %v6797_v45 = vpop.f32.mrf.mxu2 }
 0x46c   :  { %v6888_v32 = vpop.permute.xlu0 %6887 }
 0x46d   :  { %v6890_v36 = vperm.slane %v6888_v32, 0 }
 0x475   :  { %v6769_v20 = vpop.f32.mrf.mxu0 }
 0x476   :  { %v6770_v51 = vadd.f32 %v6769_v20, %v6757_v60 }
 0x478   :  { %v6783_v18 = vadd.f32 %v6782_v21, %v6770_v51 }
 0x47a   :  { %v6796_v14 = vadd.f32 %v6795_v53, %v6783_v18 }
 0x47d   :  { %v6771_v59 = vpop.f32.mrf.mxu0 }
 0x47e   :  { %v6808_v28 = vpop.f32.mrf.mxu3 }
 0x47f   :  { %v6809_v0 = vadd.f32 %v6808_v28, %v6796_v14 }
 0x486   :  { %v6810_v58 = vpop.f32.mrf.mxu3 }
 0x495   :  { %v6821_v17 = vpop.f32.mrf.mxu0 }
 0x496   :  { %v6822_v5 = vadd.f32 %v6821_v17, %v6809_v0 }
 0x498   :  { %vm6832_vm6 = vcmp.gt.f32.partialorder %v6822_v5, 0.0  ;;  %v6840_v15 = vmul.f32 0.2, %v6822_v5 }
 0x49a   :  { %v6848_v30 = vsel %vm6832_vm6, %v6822_v5, %v6840_v15 }
 0x49b   :  { %v6874_v49 = vmul.f32 %v6858_v62, %v6848_v30 }
 0x49d   :  { %v6823_v6 = vpop.f32.mrf.mxu0  ;;  %v6881_v9 = vadd.f32 %v6880_v24, %v6874_v49 }
 0x49f   :  { %6882 = vadd.xlane.f32.xlu0 %v6881_v9 }
 0x512   :  { %v6883_v10 = vpop.xlane.xlu0 %6882 }
 0x513   :  { %v6891_v41 = vadd.f32 %v6890_v36, %v6883_v10 }
 0x515   :  { %v6895_v61 = vperm.slane %v6891_v41, %v6894_v1 }
 0x517   :  { %6898 = vst.msk [vmem:[#allocation17] sm:$0x1] %vm6897_vm7, %v6895_v61 }
 0x518   :  { %6909 = dma.vmem_to_hbm [thread:$0]  %s6905_s7, 16, %s6907_s27, [#allocation5]  }
 0x519   :  { %11432 = dma.done.wait [#allocation5], 16  }
 0x51a   :  { %11433 = vsyncadd [#allocation5], 4294967280 }
 0x51b   :  { %6914 = vsyncpa [#allocation4], 1 }
 0x51c   :  { %6915 = vsyncpa [#allocation7], 1 }
 0x51d   :  { %6916 = vsyncpa [#allocation10], 1 }
 0x51e   :  { %6917 = vsyncpa [#allocation13], 1 }
 0x51f   :  { %6918 = vsyncpa [#allocation16], 1 }
 0x520   :  { %6919 = vsyncpa [#allocation5], 1 }

</bundles_post_ra>
